<compile_context>
chip_gen: v7x
topology: tpu7x:2x2x1
jax: 0.10.0
libtpu: 0.0.40
codegen_flags: <defaults>
</compile_context>

<pallas_src>
import functools

import jax
import jax.numpy as jnp
from jax.experimental import pallas as pl
from jax.experimental.pallas import tpu as pltpu

CFG = {
    'A': [64, 'M', 128, 'M', 256, 256, 'M', 512, 512, 'M', 512, 512, 'M'],
    'B': [64, 64, 'M', 128, 128, 'M', 256, 256, 'M', 512, 512, 'M', 512, 512, 'M'],
    'D': [64, 64, 'M', 128, 128, 'M', 256, 256, 256, 'M', 512, 512, 512, 'M',
          512, 512, 512, 'M'],
    'E': [64, 64, 'M', 128, 128, 'M', 256, 256, 256, 256, 'M', 512, 512, 512, 512, 'M',
          512, 512, 512, 512, 'M'],
}


def _vmem_limit_bytes():
    """Per-generation VMEM budget: ~3/4 of core capacity (v7x has only 64 MiB/core)."""
    cap = 64 * 1024 * 1024
    try:
        info = pltpu.get_tpu_info()
        cap = int(getattr(info, "vmem_capacity_bytes", cap))
    except Exception:
        pass
    return int(min(cap * 3 // 4, 112 * 1024 * 1024))


_COMPILER_PARAMS = pltpu.CompilerParams(
    dimension_semantics=("parallel",),
    vmem_limit_bytes=_vmem_limit_bytes(),
)


# --------------------- general 3x3 conv (+ReLU, + fused pool) --------------------- #
def _conv3x3_tap_kernel(x_ref, w_ref, b_ref, o_ref, *, H, W, do_pool):
    # x_ref : (1, (H+3)*(W+2), Cin) bf16 -- flattened zero-padded image
    # w_ref : (3, 3, Cin, Cout)     bf16
    # b_ref : (1, Cout)             f32
    # o_ref : (1, H, W, Cout) bf16  or (1, H//2, W//2, Cout) bf16 when do_pool
    Wp = W + 2
    M = H * Wp
    Cout = w_ref.shape[-1]

    # Tap (kh, kw) of output wide-row m reads flat row m + kh*Wp + kw.  The first tap
    # initializes the accumulator (no separate zero fill); accumulation stays in f32.
    acc = jnp.dot(x_ref[0, 0:M, :], w_ref[0, 0], preferred_element_type=jnp.float32)
    for t in range(1, 9):
        kh, kw = divmod(t, 3)
        d = kh * Wp + kw
        acc = acc + jnp.dot(x_ref[0, d:d + M, :], w_ref[kh, kw],
                            preferred_element_type=jnp.float32)

    y = jnp.maximum(acc + b_ref[...], 0.0)              # (H*Wp, Cout) f32

    if do_pool:
        y = y.reshape(H // 2, 2, Wp // 2, 2, Cout)
        y = jnp.max(jnp.max(y, axis=3), axis=1)         # (H//2, Wp//2, Cout)
        o_ref[0] = y[:, :W // 2, :].astype(o_ref.dtype)  # drop garbage column pair
    else:
        y = y.reshape(H, Wp, Cout)
        o_ref[0] = y[:, :W, :].astype(o_ref.dtype)       # drop garbage columns


def conv3x3_relu_taps(x, w_bf16, b, do_pool):
    """x: (N,H,W,Cin) bf16; w: (3,3,Cin,Cout) bf16; b: (Cout,) f32."""
    N, H, W, Cin = x.shape
    Cout = w_bf16.shape[-1]
    Hp, Wp = H + 3, W + 2                       # 1 top pad, 2 bottom (slack), 1 left/right
    if do_pool:
        assert H % 2 == 0 and W % 2 == 0

    xp = jnp.pad(x, ((0, 0), (1, 2), (1, 1), (0, 0)))
    x_flat = xp.reshape(N, Hp * Wp, Cin)
    b2 = b.reshape(1, Cout).astype(jnp.float32)

    if do_pool:
        out_shape = jax.ShapeDtypeStruct((N, H // 2, W // 2, Cout), jnp.bfloat16)
        out_spec = pl.BlockSpec((1, H // 2, W // 2, Cout), lambda n: (n, 0, 0, 0))
    else:
        out_shape = jax.ShapeDtypeStruct((N, H, W, Cout), jnp.bfloat16)
        out_spec = pl.BlockSpec((1, H, W, Cout), lambda n: (n, 0, 0, 0))

    kernel = functools.partial(_conv3x3_tap_kernel, H=H, W=W, do_pool=do_pool)
    return pl.pallas_call(
        kernel,
        out_shape=out_shape,
        grid=(N,),
        in_specs=[
            pl.BlockSpec((1, Hp * Wp, Cin), lambda n: (n, 0, 0)),
            pl.BlockSpec((3, 3, Cin, Cout), lambda n: (0, 0, 0, 0)),
            pl.BlockSpec((1, Cout), lambda n: (0, 0)),
        ],
        out_specs=out_spec,
        compiler_params=_COMPILER_PARAMS,
    )(x_flat, w_bf16, b2)


# ------------- im2col matmul (+ReLU, + fused pool) for Cin=3 / tiny spatial -------- #
def _matmul_bias_relu_kernel(x_ref, w_ref, b_ref, o_ref, *, W, do_pool):
    # x_ref : (BM, K)   bf16  -- BM covers whole images (BM = imgs * H * W)
    # w_ref : (K, Cout) bf16
    # b_ref : (1, Cout) f32
    # o_ref : (BM, Cout) bf16  or  (BM//4, Cout) bf16 when do_pool
    BM = x_ref.shape[0]
    Cout = w_ref.shape[-1]

    acc = jnp.dot(x_ref[...], w_ref[...], preferred_element_type=jnp.float32)
    y = jnp.maximum(acc + b_ref[...], 0.0)               # (BM, Cout) f32

    if do_pool:
        y = y.reshape(BM // (2 * W), 2, W // 2, 2, Cout)
        y = jnp.max(jnp.max(y, axis=3), axis=1)          # (BM//(2W), W//2, Cout)
        o_ref[...] = y.reshape(BM // 4, Cout).astype(o_ref.dtype)
    else:
        o_ref[...] = y.astype(o_ref.dtype)


def _largest_divisor_leq(n, c):
    c = max(1, min(n, c))
    for d in range(c, 0, -1):
        if n % d == 0:
            return d
    return 1


def conv3x3_relu_im2col(x, w_bf16, b, do_pool):
    """im2col path: x (N,H,W,Cin) bf16 -> one (N*H*W, 9*Cin) @ (9*Cin, Cout) matmul."""
    N, H, W, Cin = x.shape
    Cout = w_bf16.shape[-1]
    K = 9 * Cin
    if do_pool:
        assert H % 2 == 0 and W % 2 == 0

    xp = jnp.pad(x, ((0, 0), (1, 1), (1, 1), (0, 0)))
    cols = [xp[:, kh:kh + H, kw:kw + W, :] for kh in range(3) for kw in range(3)]
    xi = jnp.concatenate(cols, axis=-1).reshape(N * H * W, K)   # bf16
    wk = w_bf16.reshape(K, Cout)
    b2 = b.reshape(1, Cout).astype(jnp.float32)

    # Fold several images into one block to recover MXU M-utilization on tiny layers.
    imgs_per_block = _largest_divisor_leq(N, max(1, 512 // (H * W)))
    BM = imgs_per_block * H * W
    n_blocks = N // imgs_per_block

    if do_pool:
        out_shape = jax.ShapeDtypeStruct((N * H * W // 4, Cout), jnp.bfloat16)
        out_spec = pl.BlockSpec((BM // 4, Cout), lambda i: (i, 0))
    else:
        out_shape = jax.ShapeDtypeStruct((N * H * W, Cout), jnp.bfloat16)
        out_spec = pl.BlockSpec((BM, Cout), lambda i: (i, 0))

    kernel = functools.partial(_matmul_bias_relu_kernel, W=W, do_pool=do_pool)
    out = pl.pallas_call(
        kernel,
        out_shape=out_shape,
        grid=(n_blocks,),
        in_specs=[
            pl.BlockSpec((BM, K), lambda i: (i, 0)),
            pl.BlockSpec((K, Cout), lambda i: (0, 0)),
            pl.BlockSpec((1, Cout), lambda i: (0, 0)),
        ],
        out_specs=out_spec,
        compiler_params=_COMPILER_PARAMS,
    )(xi, wk, b2)

    if do_pool:
        return out.reshape(N, H // 2, W // 2, Cout)
    return out.reshape(N, H, W, Cout)


# ------------------------- standalone 2x2/2 max-pool (fallback) -------------------- #
def _maxpool2x2_kernel(x_ref, o_ref):
    # x_ref: (1, H, W, C) ; o_ref: (1, H//2, W//2, C)
    H, W, C = x_ref.shape[1], x_ref.shape[2], x_ref.shape[3]
    x = x_ref[0].reshape(H // 2, 2, W // 2, 2, C)
    o_ref[0] = jnp.max(jnp.max(x, axis=3), axis=1)


def maxpool2x2(x):
    """Used only if an 'M' is not preceded by a conv (never in standard VGG cfgs)."""
    N, H, W, C = x.shape
    return pl.pallas_call(
        _maxpool2x2_kernel,
        out_shape=jax.ShapeDtypeStruct((N, H // 2, W // 2, C), x.dtype),
        grid=(N,),
        in_specs=[pl.BlockSpec((1, H, W, C), lambda n: (n, 0, 0, 0))],
        out_specs=pl.BlockSpec((1, H // 2, W // 2, C), lambda n: (n, 0, 0, 0)),
        compiler_params=_COMPILER_PARAMS,
    )(x)


# ---------------------------------- VGG features ----------------------------------- #
class VGGFeaturesPallas:
    """Pallas port of VGG_features(cfg, batch_norm=False)."""

    def __init__(self, cfg_list, key, batch_norm=False):
        if batch_norm:
            # TODO(synk): batch_norm=True branch (nn.BatchNorm2d) not implemented.
            raise NotImplementedError("batch_norm=True not supported")
        self.cfg = list(cfg_list)
        self.kernel_sizes, self.strides, self.paddings = [], [], []
        self.params = []          # f32 (matches PyTorch init semantics)
        self.params_bf16 = []     # bf16 weights for the MXU
        in_c = 3
        for v in self.cfg:
            if v == 'M':
                self.kernel_sizes.append(2); self.strides.append(2); self.paddings.append(0)
            else:
                key, wk = jax.random.split(key)
                fan_out = v * 3 * 3                      # kaiming_normal_, mode='fan_out'
                std = (2.0 / fan_out) ** 0.5             # nonlinearity='relu'
                w = std * jax.random.normal(wk, (3, 3, in_c, v), dtype=jnp.float32)
                b = jnp.zeros((v,), dtype=jnp.float32)   # bias init constant 0
                self.params.append((w, b))
                self.params_bf16.append((w.astype(jnp.bfloat16), b))
                self.kernel_sizes.append(3); self.strides.append(1); self.paddings.append(1)
                in_c = v
        self.n_layers = len(self.params)

    def conv_info(self):
        return self.kernel_sizes, self.strides, self.paddings

    def num_layers(self):
        return self.n_layers

    def __call__(self, x_nchw):
        x = jnp.transpose(x_nchw, (0, 2, 3, 1)).astype(jnp.bfloat16)  # NCHW -> NHWC bf16
        cfg = self.cfg
        li = 0
        i = 0
        while i < len(cfg):
            v = cfg[i]
            if v == 'M':
                x = maxpool2x2(x)          # only reached for non-standard cfgs
                i += 1
                continue
            w_bf, b = self.params_bf16[li]
            li += 1
            do_pool = (i + 1 < len(cfg)) and (cfg[i + 1] == 'M')   # fuse the pool
            N, H, W, Cin = x.shape
            if Cin < 8 or H * W <= 64:
                x = conv3x3_relu_im2col(x, w_bf, b, do_pool)
            else:
                x = conv3x3_relu_taps(x, w_bf, b, do_pool)
            i += 2 if do_pool else 1
        return jnp.transpose(x, (0, 3, 1, 2)).astype(jnp.float32)     # NHWC -> NCHW


# --------------------------------- pure-JAX reference ------------------------------ #
def reference_forward(x_nchw, model, match_bf16=False):
    """f32 reference; match_bf16=True mirrors the kernel's bf16 rounding points."""
    def rnd(t):
        return t.astype(jnp.bfloat16).astype(jnp.float32) if match_bf16 else t

    x = rnd(jnp.transpose(x_nchw, (0, 2, 3, 1)).astype(jnp.float32))
    li = 0
    for v in model.cfg:
        if v == 'M':
            x = jax.lax.reduce_window(x, -jnp.inf, jax.lax.max,
                                      (1, 2, 2, 1), (1, 2, 2, 1), 'VALID')
        else:
            w, b = model.params[li]
            li += 1
            x = jax.lax.conv_general_dilated(
                x, rnd(w), window_strides=(1, 1), padding='SAME',
                dimension_numbers=('NHWC', 'HWIO', 'NHWC'),
                precision=jax.lax.Precision.HIGHEST)
            x = rnd(jnp.maximum(x + b, 0.0))
    return jnp.transpose(x, (0, 3, 1, 2))


if __name__ == "__main__":
    key = jax.random.PRNGKey(0)
    key, pkey, xkey = jax.random.split(key, 3)

    # VGG11 ('A') features; 32x32 is the smallest spatial size that survives the five
    # 2x2/2 max-pools (32 -> 16 -> 8 -> 4 -> 2 -> 1).
    model = VGGFeaturesPallas(CFG['A'], pkey, batch_norm=False)
    x = jax.random.normal(xkey, (2, 3, 32, 32), dtype=jnp.float32)    # NCHW like PyTorch

    out = jax.block_until_ready(model(x))

    ref_bf = jax.block_until_ready(reference_forward(x, model, match_bf16=True))
    ref_f32 = jax.block_until_ready(reference_forward(x, model, match_bf16=False))

    assert out.shape == ref_bf.shape == (2, 512, 1, 1), out.shape

    err_matched = float(jnp.max(jnp.abs(out - ref_bf))) / (float(jnp.max(jnp.abs(ref_bf))) + 1e-6)
    err_full = float(jnp.max(jnp.abs(out - ref_f32))) / (float(jnp.max(jnp.abs(ref_f32))) + 1e-6)

    if not (err_matched < 1e-2):
        raise RuntimeError(f"mismatch vs precision-matched reference: rel_err={err_matched}")
    if not (err_full < 8e-2):
        raise RuntimeError(f"mismatch vs f32 reference: rel_err={err_full}")

    print("KERNEL_OK")
</pallas_src>

<mosaic_0001>
module attributes {stable_mosaic.version = 11 : i64} {
  func.func @_matmul_bias_relu_kernel(%arg0: i32, %arg1: memref<1024x27xbf16, #tpu.memory_space<vmem>>, %arg2: memref<27x64xbf16, #tpu.memory_space<vmem>>, %arg3: memref<1x64xf32, #tpu.memory_space<vmem>>, %arg4: memref<256x64xbf16, #tpu.memory_space<vmem>>) attributes {dimension_semantics = [#tpu.dimension_semantics<parallel>], iteration_bounds = array<i64: 2>, scalar_prefetch = 0 : i64, scratch_operands = 0 : i64, tpu.core_type = #tpu.core_type<tc>, window_params = [{transform_indices = @transform_0, window_bounds = array<i64: 1024, 27>}, {pipeline_mode = #tpu.pipeline_mode<synchronous>, transform_indices = @transform_1, window_bounds = array<i64: 27, 64>}, {pipeline_mode = #tpu.pipeline_mode<synchronous>, transform_indices = @transform_2, window_bounds = array<i64: 1, 64>}, {transform_indices = @transform_3, window_bounds = array<i64: 256, 64>}]} {
    %c0 = arith.constant 0 : index
    %c0_0 = arith.constant 0 : index
    %0 = vector.load %arg1[%c0, %c0_0] : memref<1024x27xbf16, #tpu.memory_space<vmem>>, vector<1024x27xbf16>
    %c0_1 = arith.constant 0 : index
    %c0_2 = arith.constant 0 : index
    %1 = vector.load %arg2[%c0_1, %c0_2] : memref<27x64xbf16, #tpu.memory_space<vmem>>, vector<27x64xbf16>
    %cst = arith.constant dense<0.000000e+00> : vector<1024x64xf32>
    %2 = tpu.matmul %0, %1, %cst {dimension_numbers = #tpu.dot_dimension_numbers<[1], [0], [0], [1], [0, 0, 1, 1], [], []>} : vector<1024x27xbf16>, vector<27x64xbf16>, vector<1024x64xf32> -> vector<1024x64xf32>
    %c0_3 = arith.constant 0 : index
    %c0_4 = arith.constant 0 : index
    %3 = vector.load %arg3[%c0_3, %c0_4] : memref<1x64xf32, #tpu.memory_space<vmem>>, vector<1x64xf32>
    %4 = vector.broadcast %3 : vector<1x64xf32> to vector<1024x64xf32>
    %5 = arith.addf %2, %4 : vector<1024x64xf32>
    %cst_5 = arith.constant 0.000000e+00 : f32
    %6 = vector.broadcast %cst_5 : f32 to vector<1024x64xf32>
    %7 = arith.maximumf %5, %6 : vector<1024x64xf32>
    %8 = vector.shape_cast %7 : vector<1024x64xf32> to vector<16x2x16x2x64xf32>
    %cst_6 = arith.constant dense<0xFF800000> : vector<16x2x16x64xf32>
    %9 = vector.multi_reduction <maximumf>, %8, %cst_6 [3] : vector<16x2x16x2x64xf32> to vector<16x2x16x64xf32>
    %cst_7 = arith.constant dense<0xFF800000> : vector<16x16x64xf32>
    %10 = vector.multi_reduction <maximumf>, %9, %cst_7 [1] : vector<16x2x16x64xf32> to vector<16x16x64xf32>
    %11 = vector.shape_cast %10 : vector<16x16x64xf32> to vector<256x64xf32>
    %12 = arith.truncf %11 : vector<256x64xf32> to vector<256x64xbf16>
    %c0_8 = arith.constant 0 : index
    %c0_9 = arith.constant 0 : index
    %13 = vector.load %arg4[%c0_8, %c0_9] : memref<256x64xbf16, #tpu.memory_space<vmem>>, vector<256x64xbf16>
    tpu.vector_store %arg4[%c0_8, %c0_9], %12 {strides = array<i32>} : memref<256x64xbf16, #tpu.memory_space<vmem>>, vector<256x64xbf16>,
    return
  }
  func.func @transform_0(%arg0: i32) -> (i32, i32) {
    %c0_i32 = arith.constant 0 : i32
    %c0_i32_0 = arith.constant 0 : i32
    return %arg0, %c0_i32 : i32, i32
  }
  func.func @transform_1(%arg0: i32) -> (i32, i32) {
    %c0_i32 = arith.constant 0 : i32
    %c0_i32_0 = arith.constant 0 : i32
    %c0_i32_1 = arith.constant 0 : i32
    return %c0_i32, %c0_i32_0 : i32, i32
  }
  func.func @transform_2(%arg0: i32) -> (i32, i32) {
    %c0_i32 = arith.constant 0 : i32
    %c0_i32_0 = arith.constant 0 : i32
    %c0_i32_1 = arith.constant 0 : i32
    return %c0_i32, %c0_i32_0 : i32, i32
  }
  func.func @transform_3(%arg0: i32) -> (i32, i32) {
    %c0_i32 = arith.constant 0 : i32
    %c0_i32_0 = arith.constant 0 : i32
    return %arg0, %c0_i32 : i32, i32
  }
}

</mosaic_0001>

<bundles_post_ra>
// kernel: tpu_custom_call.1
= control target key start
LH: loop header
LB: loop body
LE: loop exit
PB: predicated region body
PF: predicated region fallthrough
CT: control target
= control target key end

     0   :  { %s11324_s12 = smov 0   ;;  %s14778_s0 = inlined_call_operand.vmem [shape: bf16[2048,27], index: 0, kind: input, shape index: {}]   ;;  %s14779_s1 = inlined_call_operand.vmem [shape: bf16[27,64], index: 1, kind: input, shape index: {}]   ;;  %s14780_s2 = inlined_call_operand.vmem [shape: f32[1,64], index: 2, kind: input, shape index: {}]   ;;  %s14781_s3 = inlined_call_operand.vmem [shape: bf16[512,64], index: 3, kind: output, shape index: {}]  }
   0x1 LB: > { %s10352_s13 = sadd.s32 4294967295, %s11300_s12   ;;  %p10356_p0 = scmp.ge.s32.totalorder %s11300_s12, 1  ;;  %s11300_s12 = sphi %s11324_s12, %s13_s12  }
   0x2   : > { %p138_p1 = scmp.lt.s32.totalorder %s11300_s12, 3 }
   0x4   : > { %p139_p2 = pnand %p10356_p0, %p138_p1 }
   0x6   : > { %142 = sbr.rel (%p139_p2) target bundleno = 1753 (0x6d9), region = 32 }
   0xd   : > { %v11218_v0 = vld [vmem:[%s14779_s1] sm:$0xff]   ;;  %vm838_vm0 = vcmask 1044480   ;;  %v11219_v1 = vld [vmem:[%s14779_s1 + $0x8] sm:$0x3f]   ;;  %vm839_vm1 = vcmask 1045504   ;;  %s10357_s18 = sshll.u32 %s10352_s13, 7 }
   0xe   : > { %11072 = vmatprep.subr.bf16.mxu0 %v11218_v0  ;;  %11204 = vmatprep.subr.bf16.mxu1 %v11218_v0  ;;  %v11302_v2 = vmov 65535   ;;  %p163_p3 = scmp.lt.s32.totalorder %s10357_s18, 255  ;;  %vm645_vm2 = vcmask 220160   ;;  %vm4334_vm3 = vcmask 517120   ;;  %vm7919_vm4 = vcmask 523264   ;;  %s11859_s27 = sshll.u32 %s10352_s13, 5 }
   0xf   : > { %11073 = vmatpush3.bf16.msra.mxu0 %v11218_v0  ;;  %11206 = vmatpush3.bf16.msra.mxu1 %v11218_v0  ;;  %v840_v3 = vsel %vm838_vm0, 4294967295, %v11302_v2  ;;  %vm9968_vm5 = vcmask 1041409   ;;  %vm9970_vm6 = vcmask 1042434   ;;  %vm9972_vm7 = vcmask 1043459   ;;  %p169_p4 = scmp.lt.s32.totalorder %s11859_s27, 63 }
  0x10   : > { %v841_v4 = vsel %vm839_vm1, %v840_v3, 0  ;;  %s14924_s18 = smov (!%p163_p3, %s10357_s18), 255  ;;  %vm9974_vm8 = vcmask 1044484   ;;  %vm9976_vm9 = vcmask 1045509   ;;  %vm9978_vm10 = vcmask 1046534  }
  0x11   : > { %v843_v5 = vand.u32 %v11219_v1, %v841_v4  ;;  %s10358_s19 = sshll.u32 %s14924_s18, 2  ;;  %vm9980_vm11 = vcmask 1047559   ;;  %vm10263_vm12 = vcmask 519168   ;;  %s14926_s27 = smov (!%p169_p4, %s11859_s27), 63 }
  0x12   : > { %s11343_s22 = scalar_lea.vmem %s14778_s0, %s10358_s19  ;;  %s10360_s28 = sshll.u32 %s14926_s27, 2 }
  0x13   : > { %11074 = vmatprep.subr.bf16.mxu0 %v843_v5  ;;  %11205 = vmatprep.subr.bf16.mxu1 %v843_v5  ;;  %v11220_v6 = vld [vmem:[%s11343_s22] sm:$0xff]   ;;  %v11222_v8 = vld [vmem:[%s11343_s22 + $0x8] sm:$0xff]   ;;  %v11224_v10 = vld [vmem:[%s11343_s22 + $0x10] sm:$0xff]   ;;  %s11900_s4 = scalar_lea.vmem %s14781_s3, %s10360_s28 }
  0x14   : > { %11075 = vmatpush3.bf16.msra.mxu0 %v843_v5  ;;  %11207 = vmatpush3.bf16.msra.mxu1 %v843_v5  ;;  %v11221_v7 = vld [vmem:[%s11343_s22 + $0x100] sm:$0xff]   ;;  %v11223_v9 = vld [vmem:[%s11343_s22 + $0x108] sm:$0xff]   ;;  %v11225_v11 = vld [vmem:[%s11343_s22 + $0x110] sm:$0xff]  }
  0x15   : > { %11076 = vmatprep.mubr.msk.bf16.mxu0 %vm645_vm2, %v11220_v6  ;;  %11140 = vmatprep.mubr.msk.bf16.mxu1 %vm645_vm2, %v11221_v7  ;;  %v11226_v12 = vld [vmem:[%s11343_s22 + $0x18] sm:$0xff]   ;;  %v11228_v14 = vld [vmem:[%s11343_s22 + $0x20] sm:$0xff]   ;;  %v11230_v16 = vld [vmem:[%s11343_s22 + $0x28] sm:$0xff]   ;;  %v11303_v6 = vmov 1983009808  }
  0x16   : > { %v11227_v13 = vld [vmem:[%s11343_s22 + $0x118] sm:$0xff]   ;;  %v11229_v15 = vld [vmem:[%s11343_s22 + $0x120] sm:$0xff]   ;;  %v11231_v17 = vld [vmem:[%s11343_s22 + $0x128] sm:$0xff]   ;;  %v1648_v7 = vunpack.c.l.s4 %v11303_v6 }
  0x17   : > { %11077 = vmatmul.mubr.msk.bf16.vlgmr.msra.gmra.mrb[0].mxu0 %vm645_vm2, %v11222_v8  ;;  %11141 = vmatmul.mubr.msk.bf16.vlgmr.msra.gmra.mrb[0].mxu1 %vm645_vm2, %v11223_v9  ;;  %v11232_v18 = vld [vmem:[%s11343_s22 + $0x30] sm:$0xff]   ;;  %v11234_v20 = vld [vmem:[%s11343_s22 + $0x38] sm:$0xff]   ;;  %v11236_v22 = vld [vmem:[%s11343_s22 + $0x40] sm:$0xff]   ;;  %v1650_v8 = vlaneseq }
  0x18   : > { %11080 = vmatprep.mubr.msk.bf16.mxu0 %vm645_vm2, %v11224_v10  ;;  %11144 = vmatprep.mubr.msk.bf16.mxu1 %vm645_vm2, %v11225_v11  ;;  %v11233_v19 = vld [vmem:[%s11343_s22 + $0x130] sm:$0xff]   ;;  %v11235_v21 = vld [vmem:[%s11343_s22 + $0x138] sm:$0xff]   ;;  %v11237_v23 = vld [vmem:[%s11343_s22 + $0x140] sm:$0xff]   ;;  %v1649_v9 = vunpack.c.0.s8 %v1648_v7 }
  0x19   : > { %v11238_v24 = vld [vmem:[%s11343_s22 + $0x48] sm:$0xff]   ;;  %v11240_v26 = vld [vmem:[%s11343_s22 + $0x50] sm:$0xff]   ;;  %v11242_v28 = vld [vmem:[%s11343_s22 + $0x58] sm:$0xff]   ;;  %v1651_v10 = vshrl.u32 %v1650_v8, 7 }
  0x1a   : > { %v11239_v25 = vld [vmem:[%s11343_s22 + $0x148] sm:$0xff]   ;;  %v11241_v27 = vld [vmem:[%s11343_s22 + $0x150] sm:$0xff]   ;;  %v11243_v29 = vld [vmem:[%s11343_s22 + $0x158] sm:$0xff]  }
  0x1b   : > { %v11244_v30 = vld [vmem:[%s11343_s22 + $0x60] sm:$0xff]   ;;  %v11246_v32 = vld [vmem:[%s11343_s22 + $0x68] sm:$0xff]   ;;  %v11248_v34 = vld [vmem:[%s11343_s22 + $0x70] sm:$0xff]  }
  0x1c   : > { %v11245_v31 = vld [vmem:[%s11343_s22 + $0x160] sm:$0xff]   ;;  %v11247_v33 = vld [vmem:[%s11343_s22 + $0x168] sm:$0xff]   ;;  %v11249_v35 = vld [vmem:[%s11343_s22 + $0x170] sm:$0xff]  }
  0x1d   : > { %v11250_v36 = vld [vmem:[%s11343_s22 + $0x78] sm:$0xff]   ;;  %v11252_v38 = vld [vmem:[%s11343_s22 + $0x80] sm:$0xff]   ;;  %v11254_v40 = vld [vmem:[%s11343_s22 + $0x88] sm:$0xff]  }
  0x1e   : > { %v11251_v37 = vld [vmem:[%s11343_s22 + $0x178] sm:$0xff]   ;;  %v11253_v39 = vld [vmem:[%s11343_s22 + $0x180] sm:$0xff]   ;;  %v11255_v41 = vld [vmem:[%s11343_s22 + $0x188] sm:$0xff]  }
  0x1f   : > { %11081 = vmatmul.mubr.msk.bf16.gmra.mrb[4].mxu0 %vm645_vm2, %v11226_v12  ;;  %11145 = vmatmul.mubr.msk.bf16.gmra.mrb[4].mxu1 %vm645_vm2, %v11227_v13  ;;  %v11256_v42 = vld [vmem:[%s11343_s22 + $0x90] sm:$0xff]   ;;  %v11258_v44 = vld [vmem:[%s11343_s22 + $0x98] sm:$0xff]   ;;  %v11260_v46 = vld [vmem:[%s11343_s22 + $0xa0] sm:$0xff]  }
  0x20   : > { %11084 = vmatprep.mubr.msk.bf16.mxu0 %vm645_vm2, %v11228_v14  ;;  %11148 = vmatprep.mubr.msk.bf16.mxu1 %vm645_vm2, %v11229_v15  ;;  %v11257_v43 = vld [vmem:[%s11343_s22 + $0x190] sm:$0xff]   ;;  %v11259_v45 = vld [vmem:[%s11343_s22 + $0x198] sm:$0xff]   ;;  %v11261_v47 = vld [vmem:[%s11343_s22 + $0x1a0] sm:$0xff]   ;;  %v11479_v14 = vsub.s32 %v1649_v9, %v1651_v10 }
  0x21   : > { %v11262_v48 = vld [vmem:[%s11343_s22 + $0xa8] sm:$0xff]   ;;  %v11264_v50 = vld [vmem:[%s11343_s22 + $0xb0] sm:$0xff]   ;;  %v11266_v52 = vld [vmem:[%s11343_s22 + $0xb8] sm:$0xff]  }
  0x22   : > { %v11263_v49 = vld [vmem:[%s11343_s22 + $0x1a8] sm:$0xff]   ;;  %v11265_v51 = vld [vmem:[%s11343_s22 + $0x1b0] sm:$0xff]   ;;  %v11267_v53 = vld [vmem:[%s11343_s22 + $0x1b8] sm:$0xff]  }
  0x23   : > { %v11268_v54 = vld [vmem:[%s11343_s22 + $0xc0] sm:$0xff]   ;;  %v11270_v56 = vld [vmem:[%s11343_s22 + $0xc8] sm:$0xff]   ;;  %v11272_v58 = vld [vmem:[%s11343_s22 + $0xd0] sm:$0xff]  }
  0x24   : > { %v11269_v55 = vld [vmem:[%s11343_s22 + $0x1c0] sm:$0xff]   ;;  %v11271_v57 = vld [vmem:[%s11343_s22 + $0x1c8] sm:$0xff]   ;;  %v11273_v59 = vld [vmem:[%s11343_s22 + $0x1d0] sm:$0xff]  }
  0x25   : > { %v11274_v60 = vld [vmem:[%s11343_s22 + $0xd8] sm:$0xff]   ;;  %v11276_v62 = vld [vmem:[%s11343_s22 + $0xe0] sm:$0xff]   ;;  %v11278_v0 = vld [vmem:[%s11343_s22 + $0xe8] sm:$0xff]  }
  0x26   : > { %v11275_v61 = vld [vmem:[%s11343_s22 + $0x1d8] sm:$0xff]   ;;  %v11277_v63 = vld [vmem:[%s11343_s22 + $0x1e0] sm:$0xff]   ;;  %v11279_v1 = vld [vmem:[%s11343_s22 + $0x1e8] sm:$0xff]  }
  0x27   : > { %11085 = vmatmul.mubr.msk.bf16.gmra.mrb[8].mxu0 %vm645_vm2, %v11230_v16  ;;  %11149 = vmatmul.mubr.msk.bf16.gmra.mrb[8].mxu1 %vm645_vm2, %v11231_v17  ;;  %v11280_v2 = vld [vmem:[%s11343_s22 + $0xf0] sm:$0xff]   ;;  %v11282_v4 = vld [vmem:[%s11343_s22 + $0xf8] sm:$0xff]   ;;  %v11476_v11 = vld [vmem:[%s14780_s2] ss:$0 sm:$0xff] }
  0x28   : > { %11088 = vmatprep.mubr.msk.bf16.mxu0 %vm645_vm2, %v11232_v18  ;;  %11152 = vmatprep.mubr.msk.bf16.mxu1 %vm645_vm2, %v11233_v19  ;;  %v11281_v3 = vld [vmem:[%s11343_s22 + $0x1f0] sm:$0xff]   ;;  %v11283_v5 = vld [vmem:[%s11343_s22 + $0x1f8] sm:$0xff]  }
  0x2f   : > { %11089 = vmatmul.mubr.msk.bf16.gmra.mrb[12].mxu0 %vm645_vm2, %v11234_v20  ;;  %11153 = vmatmul.mubr.msk.bf16.gmra.mrb[12].mxu1 %vm645_vm2, %v11235_v21 }
  0x30   : > { %11092 = vmatprep.mubr.msk.bf16.mxu0 %vm645_vm2, %v11236_v22  ;;  %11156 = vmatprep.mubr.msk.bf16.mxu1 %vm645_vm2, %v11237_v23 }
  0x37   : > { %11093 = vmatmul.mubr.msk.bf16.gmra.mrb[16].mxu0 %vm645_vm2, %v11238_v24  ;;  %11157 = vmatmul.mubr.msk.bf16.gmra.mrb[16].mxu1 %vm645_vm2, %v11239_v25 }
  0x38   : > { %11096 = vmatprep.mubr.msk.bf16.mxu0 %vm645_vm2, %v11240_v26  ;;  %11160 = vmatprep.mubr.msk.bf16.mxu1 %vm645_vm2, %v11241_v27 }
  0x3f   : > { %11097 = vmatmul.mubr.msk.bf16.gmra.mrb[20].mxu0 %vm645_vm2, %v11242_v28  ;;  %11161 = vmatmul.mubr.msk.bf16.gmra.mrb[20].mxu1 %vm645_vm2, %v11243_v29 }
  0x40   : > { %11100 = vmatprep.mubr.msk.bf16.mxu0 %vm645_vm2, %v11244_v30  ;;  %11164 = vmatprep.mubr.msk.bf16.mxu1 %vm645_vm2, %v11245_v31 }
  0x47   : > { %11101 = vmatmul.mubr.msk.bf16.gmra.mrb[24].mxu0 %vm645_vm2, %v11246_v32  ;;  %11165 = vmatmul.mubr.msk.bf16.gmra.mrb[24].mxu1 %vm645_vm2, %v11247_v33 }
  0x48   : > { %11104 = vmatprep.mubr.msk.bf16.mxu0 %vm645_vm2, %v11248_v34  ;;  %11168 = vmatprep.mubr.msk.bf16.mxu1 %vm645_vm2, %v11249_v35 }
  0x4f   : > { %11105 = vmatmul.mubr.msk.bf16.gmra.mrb[28].mxu0 %vm645_vm2, %v11250_v36  ;;  %11169 = vmatmul.mubr.msk.bf16.gmra.mrb[28].mxu1 %vm645_vm2, %v11251_v37 }
  0x50   : > { %11108 = vmatprep.mubr.msk.bf16.mxu0 %vm645_vm2, %v11252_v38  ;;  %11172 = vmatprep.mubr.msk.bf16.mxu1 %vm645_vm2, %v11253_v39 }
  0x57   : > { %11109 = vmatmul.mubr.msk.bf16.gmra.mrb[32].mxu0 %vm645_vm2, %v11254_v40  ;;  %11173 = vmatmul.mubr.msk.bf16.gmra.mrb[32].mxu1 %vm645_vm2, %v11255_v41 }
  0x58   : > { %11112 = vmatprep.mubr.msk.bf16.mxu0 %vm645_vm2, %v11256_v42  ;;  %11176 = vmatprep.mubr.msk.bf16.mxu1 %vm645_vm2, %v11257_v43 }
  0x5f   : > { %11113 = vmatmul.mubr.msk.bf16.gmra.mrb[36].mxu0 %vm645_vm2, %v11258_v44  ;;  %11177 = vmatmul.mubr.msk.bf16.gmra.mrb[36].mxu1 %vm645_vm2, %v11259_v45 }
  0x60   : > { %11116 = vmatprep.mubr.msk.bf16.mxu0 %vm645_vm2, %v11260_v46  ;;  %11180 = vmatprep.mubr.msk.bf16.mxu1 %vm645_vm2, %v11261_v47 }
  0x67   : > { %11117 = vmatmul.mubr.msk.bf16.gmra.mrb[40].mxu0 %vm645_vm2, %v11262_v48  ;;  %11181 = vmatmul.mubr.msk.bf16.gmra.mrb[40].mxu1 %vm645_vm2, %v11263_v49 }
  0x68   : > { %11120 = vmatprep.mubr.msk.bf16.mxu0 %vm645_vm2, %v11264_v50  ;;  %11184 = vmatprep.mubr.msk.bf16.mxu1 %vm645_vm2, %v11265_v51 }
  0x6f   : > { %11121 = vmatmul.mubr.msk.bf16.gmra.mrb[44].mxu0 %vm645_vm2, %v11266_v52  ;;  %11185 = vmatmul.mubr.msk.bf16.gmra.mrb[44].mxu1 %vm645_vm2, %v11267_v53 }
  0x70   : > { %11124 = vmatprep.mubr.msk.bf16.mxu0 %vm645_vm2, %v11268_v54  ;;  %11188 = vmatprep.mubr.msk.bf16.mxu1 %vm645_vm2, %v11269_v55 }
  0x77   : > { %11125 = vmatmul.mubr.msk.bf16.gmra.mrb[48].mxu0 %vm645_vm2, %v11270_v56  ;;  %11189 = vmatmul.mubr.msk.bf16.gmra.mrb[48].mxu1 %vm645_vm2, %v11271_v57 }
  0x78   : > { %11128 = vmatprep.mubr.msk.bf16.mxu0 %vm645_vm2, %v11272_v58  ;;  %11192 = vmatprep.mubr.msk.bf16.mxu1 %vm645_vm2, %v11273_v59 }
  0x7f   : > { %11129 = vmatmul.mubr.msk.bf16.gmra.mrb[52].mxu0 %vm645_vm2, %v11274_v60  ;;  %11193 = vmatmul.mubr.msk.bf16.gmra.mrb[52].mxu1 %vm645_vm2, %v11275_v61 }
  0x80   : > { %11132 = vmatprep.mubr.msk.bf16.mxu0 %vm645_vm2, %v11276_v62  ;;  %11196 = vmatprep.mubr.msk.bf16.mxu1 %vm645_vm2, %v11277_v63 }
  0x87   : > { %11133 = vmatmul.mubr.msk.bf16.gmra.mrb[56].mxu0 %vm645_vm2, %v11278_v0  ;;  %11197 = vmatmul.mubr.msk.bf16.gmra.mrb[56].mxu1 %vm645_vm2, %v11279_v1 }
  0x88   : > { %11136 = vmatprep.mubr.msk.bf16.mxu0 %vm645_vm2, %v11280_v2  ;;  %11200 = vmatprep.mubr.msk.bf16.mxu1 %vm645_vm2, %v11281_v3 }
  0x8f   : > { %11137 = vmatmul.mubr.msk.bf16.gmra.mrb[60].mxu0 %vm645_vm2, %v11282_v4  ;;  %11201 = vmatmul.mubr.msk.bf16.gmra.mrb[60].mxu1 %vm645_vm2, %v11283_v5 }
  0xea   : > { %v11078_v12 = vpop.f32.mrb[0].mxu0  ;;  %v11142_v15 = vpop.f32.mrb[0].mxu1 }
  0xeb   : > { %v888_v13 = vadd.f32 %v11078_v12, %v11476_v11  ;;  %v879_v16 = vpop.f32.mrb[1].mxu0  ;;  %v1144_v17 = vadd.f32 %v11142_v15, %v11476_v11  ;;  %v1135_v19 = vpop.f32.mrb[1].mxu1 }
  0xec   : > { %v880_v18 = vadd.f32 %v11476_v11, %v879_v16  ;;  %v11079_v20 = vpop.f32.mrb[2].mxu0  ;;  %v1136_v22 = vadd.f32 %v11476_v11, %v1135_v19  ;;  %v11484_v23 = vpop.f32.mrb[2].mxu1 }
  0xed   : > { %v1392_v21 = vmax.f32 %v888_v13, 0.0  ;;  %v11486_v24 = vpop.f32.mrb[3].mxu0  ;;  %v1456_v25 = vmax.f32 %v1144_v17, 0.0  ;;  %v11490_v27 = vpop.f32.mrb[3].mxu1  ;;  %v11494_v30 = vadd.f32 %v11079_v20, %v11476_v11 }
  0xee   : > { %v11488_v26 = vmax.f32 %v880_v18, 0.0  ;;  %v11499_v34 = vmax.f32 %v1136_v22, 0.0 }
  0xef   : > { %v1680_v28 = vcombine.high %v1392_v21, %v1392_v21  ;;  %v1687_v29 = vrot.slane %v1392_v21, %v11479_v14  ;;  %v2768_v31 = vcombine.high %v1456_v25, %v1456_v25  ;;  %v2775_v32 = vrot.slane %v1456_v25, %v11479_v14 }
  0xf0   : > { %v1646_v33 = vcombine.high %v11488_v26, %v11488_v26  ;;  %v11505_v38 = vrot.slane %v11488_v26, %v11479_v14 }
  0xf1   : > { %v1694_v35 = vrot.slane %v1680_v28, %v11479_v14  ;;  %v1695_v36 = vcombine.high %v1687_v29, %v1687_v29  ;;  %v4391_v37 = vsel %vm4334_vm3, %v1687_v29, -inf  ;;  %v2782_v40 = vrot.slane %v2768_v31, %v11479_v14 }
  0xf2   : > { %v4392_v39 = vrot.slane %v4391_v37, 4  ;;  %v2783_v41 = vcombine.high %v2775_v32, %v2775_v32  ;;  %v6183_v42 = vsel %vm4334_vm3, %v2775_v32, -inf  ;;  %v11509_v43 = vpop.f32.mrb[4].mxu0  ;;  %v11513_v48 = vpop.f32.mrb[4].mxu1  ;;  %v4335_v26 = vsel %vm4334_vm3, %v11505_v38, -inf }
  0xf3   : > { %v1696_v44 = vcombine.high %v1694_v35, %v1694_v35  ;;  %v4398_v45 = vsel %vm4334_vm3, %v1695_v36, -inf  ;;  %v4405_v46 = vsel %vm4334_vm3, %v1694_v35, -inf  ;;  %v6184_v47 = vrot.slane %v6183_v42, 4  ;;  %v11515_v49 = vpop.f32.mrb[5].mxu0  ;;  %v11517_v54 = vpop.f32.mrb[5].mxu1 }
  0xf4   : > { %v4393_v50 = vmax.f32 %v4391_v37, %v4392_v39  ;;  %v4399_v51 = vrot.slane %v4398_v45, 4  ;;  %v4406_v52 = vrot.slane %v4405_v46, 4  ;;  %v2784_v53 = vcombine.high %v2782_v40, %v2782_v40  ;;  %v11519_v55 = vpop.f32.mrb[6].mxu0  ;;  %v11524_v60 = vpop.f32.mrb[6].mxu1 }
  0xf5   : > { %v4412_v56 = vsel %vm4334_vm3, %v1696_v44, -inf  ;;  %v6185_v57 = vmax.f32 %v6183_v42, %v6184_v47  ;;  %v6190_v58 = vsel %vm4334_vm3, %v2783_v41, -inf  ;;  %v6197_v59 = vsel %vm4334_vm3, %v2782_v40, -inf  ;;  %v11527_v15 = vpop.f32.mrb[7].mxu0 }
  0xf6   : > { %v4394_v61 = vrot.slane %v4393_v50, 2  ;;  %v4400_v62 = vmax.f32 %v4398_v45, %v4399_v51  ;;  %v4407_v63 = vmax.f32 %v4405_v46, %v4406_v52  ;;  %v4413_v0 = vrot.slane %v4412_v56, 4 }
  0xf7   : > { %v6186_v1 = vrot.slane %v6185_v57, 2  ;;  %v6191_v2 = vrot.slane %v6190_v58, 4  ;;  %v6198_v3 = vrot.slane %v6197_v59, 4  ;;  %v6204_v4 = vsel %vm4334_vm3, %v2784_v53, -inf }
  0xf8   : > { %v4395_v5 = vmax.f32 %v4393_v50, %v4394_v61  ;;  %v4401_v6 = vrot.slane %v4400_v62, 2  ;;  %v4408_v7 = vrot.slane %v4407_v63, 2  ;;  %v4414_v8 = vmax.f32 %v4412_v56, %v4413_v0  ;;  %v11563_v0 = vpop.f32.mrb[7].mxu1 }
  0xf9   : > { %v6187_v9 = vmax.f32 %v6185_v57, %v6186_v1  ;;  %v6192_v10 = vmax.f32 %v6190_v58, %v6191_v2  ;;  %v6199_v12 = vmax.f32 %v6197_v59, %v6198_v3  ;;  %v6205_v13 = vrot.slane %v6204_v4, 4 }
  0xfa   : > { %v4396_v16 = vrot.slane %v4395_v5, 1  ;;  %v4402_v17 = vmax.f32 %v4400_v62, %v4401_v6  ;;  %v4409_v18 = vmax.f32 %v4407_v63, %v4408_v7  ;;  %v4415_v19 = vrot.slane %v4414_v8, 2 }
  0xfb   : > { %v6188_v20 = vrot.slane %v6187_v9, 1  ;;  %v6193_v21 = vrot.slane %v6192_v10, 2  ;;  %v6200_v22 = vrot.slane %v6199_v12, 2  ;;  %v6206_v25 = vmax.f32 %v6204_v4, %v6205_v13 }
  0xfc   : > { %v4397_v28 = vmax.f32 %v4395_v5, %v4396_v16  ;;  %v4403_v29 = vrot.slane %v4402_v17, 1  ;;  %v4410_v31 = vrot.slane %v4409_v18, 1  ;;  %v4416_v32 = vmax.f32 %v4414_v8, %v4415_v19 }
  0xfd   : > { %v6189_v35 = vmax.f32 %v6187_v9, %v6188_v20  ;;  %v6194_v36 = vmax.f32 %v6192_v10, %v6193_v21  ;;  %v6201_v37 = vmax.f32 %v6199_v12, %v6200_v22  ;;  %v6207_v39 = vrot.slane %v6206_v25, 2 }
  0xfe   : > { %v4404_v40 = vmax.f32 %v4402_v17, %v4403_v29  ;;  %v4417_v41 = vrot.slane %v4416_v32, 1  ;;  %v11531_v42 = vadd.f32 %v11484_v23, %v11476_v11  ;;  %v4411_v44 = vmax.f32 %v4409_v18, %v4410_v31 }
  0xff   : > { %v6195_v45 = vrot.slane %v6194_v36, 1  ;;  %v6202_v46 = vrot.slane %v6201_v37, 1  ;;  %v11535_v47 = vadd.f32 %v11476_v11, %v11486_v24  ;;  %v11538_v50 = vsel %vm7919_vm4, %v4397_v28, -inf }
 0x100   : > { %v1660_v51 = vrot.slane %v1646_v33, %v11479_v14  ;;  %v2734_v52 = vcombine.high %v11499_v34, %v11499_v34  ;;  %v11547_v23 = vmax.f32 %v11494_v30, 0.0  ;;  %v4418_v53 = vmax.f32 %v4416_v32, %v4417_v41 }
 0x101   : > { %v6208_v56 = vmax.f32 %v6206_v25, %v6207_v39  ;;  %v11550_v57 = vsel %vm7919_vm4, %v6189_v35, -inf  ;;  %v1661_v24 = vcombine.high %v11505_v38, %v11505_v38  ;;  %v11555_v58 = vsel %vm7919_vm4, %v4404_v40, -inf }
 0x102   : > { %v1662_v59 = vcombine.high %v1660_v51, %v1660_v51  ;;  %v4349_v33 = vsel %vm4334_vm3, %v1660_v51, -inf  ;;  %v11561_v30 = vsel %vm7919_vm4, %v4411_v44, -inf  ;;  %v6196_v61 = vmax.f32 %v6194_v36, %v6195_v45 }
 0x103   : > { %v6203_v62 = vmax.f32 %v6201_v37, %v6202_v46  ;;  %v4336_v63 = vrot.slane %v4335_v26, 4  ;;  %v4342_v1 = vsel %vm4334_vm3, %v1661_v24, -inf  ;;  %v4350_v2 = vrot.slane %v4349_v33, 4 }
 0x104   : > { %v4356_v3 = vsel %vm4334_vm3, %v1662_v59, -inf  ;;  %v2741_v4 = vrot.slane %v11499_v34, %v11479_v14  ;;  %v6209_v5 = vrot.slane %v6208_v56, 1  ;;  %v4343_v6 = vrot.slane %v4342_v1, 4 }
 0x105   : > { %v4337_v38 = vmax.f32 %v4335_v26, %v4336_v63  ;;  %v4357_v7 = vrot.slane %v4356_v3, 4  ;;  %v4351_v8 = vmax.f32 %v4349_v33, %v4350_v2  ;;  %v2748_v9 = vrot.slane %v2734_v52, %v11479_v14 }
 0x106   : > { %v2749_v10 = vcombine.high %v2741_v4, %v2741_v4  ;;  %v6127_v12 = vsel %vm4334_vm3, %v2741_v4, -inf  ;;  %v4344_v16 = vmax.f32 %v4342_v1, %v4343_v6  ;;  %v6210_v52 = vmax.f32 %v6208_v56, %v6209_v5 }
 0x107   : > { %v4338_v13 = vrot.slane %v4337_v38, 2  ;;  %v4358_v17 = vmax.f32 %v4356_v3, %v4357_v7  ;;  %v6128_v18 = vrot.slane %v6127_v12, 4  ;;  %v4352_v19 = vrot.slane %v4351_v8, 2 }
 0x108   : > { %v2750_v20 = vcombine.high %v2748_v9, %v2748_v9  ;;  %v6134_v21 = vsel %vm4334_vm3, %v2749_v10, -inf  ;;  %v6141_v34 = vsel %vm4334_vm3, %v2748_v9, -inf  ;;  %v4345_v25 = vrot.slane %v4344_v16, 2 }
 0x109   : > { %v4339_v22 = vmax.f32 %v4337_v38, %v4338_v13  ;;  %v4359_v28 = vrot.slane %v4358_v17, 2  ;;  %v6129_v29 = vmax.f32 %v6127_v12, %v6128_v18  ;;  %v4353_v31 = vmax.f32 %v4351_v8, %v4352_v19 }
 0x10a   : > { %v6135_v32 = vrot.slane %v6134_v21, 4  ;;  %v6142_v35 = vrot.slane %v6141_v34, 4  ;;  %v6148_v36 = vsel %vm4334_vm3, %v2750_v20, -inf  ;;  %v4346_v39 = vmax.f32 %v4344_v16, %v4345_v25 }
 0x10b   : > { %v4340_v37 = vrot.slane %v4339_v22, 1  ;;  %v4360_v40 = vmax.f32 %v4358_v17, %v4359_v28  ;;  %v6130_v41 = vrot.slane %v6129_v29, 2  ;;  %v4354_v44 = vrot.slane %v4353_v31, 1 }
 0x10c   : > { %v6136_v45 = vmax.f32 %v6134_v21, %v6135_v32  ;;  %v6143_v46 = vmax.f32 %v6141_v34, %v6142_v35  ;;  %v6149_v51 = vrot.slane %v6148_v36, 4  ;;  %v4347_v24 = vrot.slane %v4346_v39, 1 }
 0x10d   : > { %v4361_v59 = vrot.slane %v4360_v40, 1  ;;  %v6131_v26 = vmax.f32 %v6129_v29, %v6130_v41  ;;  %v4341_v33 = vmax.f32 %v4339_v22, %v4340_v37  ;;  %v11575_v3 = vsel %vm7919_vm4, %v4418_v53, -inf }
 0x10e   : > { %v6137_v63 = vrot.slane %v6136_v45, 2  ;;  %v6144_v1 = vrot.slane %v6143_v46, 2  ;;  %v6150_v2 = vmax.f32 %v6148_v36, %v6149_v51  ;;  %v4348_v4 = vmax.f32 %v4346_v39, %v4347_v24 }
 0x10f   : > { %v4355_v38 = vmax.f32 %v4353_v31, %v4354_v44  ;;  %v4362_v6 = vmax.f32 %v4360_v40, %v4361_v59  ;;  %v6132_v7 = vrot.slane %v6131_v26, 1  ;;  %v11578_v12 = vsel %vm7919_vm4, %v6196_v61, -inf }
 0x110   : > { %v6138_v8 = vmax.f32 %v6136_v45, %v6137_v63  ;;  %v6145_v9 = vmax.f32 %v6143_v46, %v6144_v1  ;;  %v6151_v10 = vrot.slane %v6150_v2, 2  ;;  %v11581_v56 = vsel %vm7919_vm4, %v6203_v62, -inf }
 0x111   : > { %v11584_v5 = vsel %vm7919_vm4, %v6210_v52, -inf  ;;  %v1697_v53 = vcombine.high %v11547_v23, %v11547_v23  ;;  %v11589_v13 = vsel %vm7919_vm4, %v4341_v33, -inf  ;;  %v1704_v18 = vrot.slane %v11547_v23, %v11479_v14  ;;  %v11614_v33 = vpop.f32.mrb[8].mxu0 }
 0x112   : > { %v6139_v16 = vrot.slane %v6138_v8, 1  ;;  %v6146_v17 = vrot.slane %v6145_v9, 1  ;;  %v11594_v61 = vsel %vm7919_vm4, %v4348_v4, -inf  ;;  %v11597_v62 = vsel %vm7919_vm4, %v4355_v38, -inf  ;;  %14782 = vst [vmem:[#allocation2_spill] sm:$0xff] %v11614_v33 }
 0x113   : > { %v1711_v19 = vrot.slane %v1697_v53, %v11479_v14  ;;  %v1457_v20 = vmax.f32 %v11531_v42, 0.0  ;;  %v11602_v21 = vsel %vm7919_vm4, %v4362_v6, -inf  ;;  %v6133_v34 = vmax.f32 %v6131_v26, %v6132_v7 }
 0x114   : > { %v6152_v22 = vmax.f32 %v6150_v2, %v6151_v10  ;;  %v1712_v25 = vcombine.high %v1704_v18, %v1704_v18  ;;  %v4419_v29 = vsel %vm4334_vm3, %v1704_v18, -inf  ;;  %v6140_v32 = vmax.f32 %v6138_v8, %v6139_v16 }
 0x115   : > { %v1713_v28 = vcombine.high %v1711_v19, %v1711_v19  ;;  %v4433_v23 = vsel %vm4334_vm3, %v1711_v19, -inf  ;;  %v2785_v31 = vcombine.high %v1457_v20, %v1457_v20  ;;  %v6147_v35 = vmax.f32 %v6145_v9, %v6146_v17 }
 0x116   : > { %v4420_v36 = vrot.slane %v4419_v29, 4  ;;  %v11607_v37 = vmax.f32 %v11535_v47, 0.0  ;;  %v4426_v42 = vsel %vm4334_vm3, %v1712_v25, -inf  ;;  %v4434_v39 = vrot.slane %v4433_v23, 4 }
 0x117   : > { %v4440_v40 = vsel %vm4334_vm3, %v1713_v28, -inf  ;;  %v2792_v41 = vrot.slane %v1457_v20, %v11479_v14  ;;  %v6153_v44 = vrot.slane %v6152_v22, 1  ;;  %v4427_v46 = vrot.slane %v4426_v42, 4 }
 0x118   : > { %v4421_v45 = vmax.f32 %v4419_v29, %v4420_v36  ;;  %v4441_v51 = vrot.slane %v4440_v40, 4  ;;  %v4435_v52 = vmax.f32 %v4433_v23, %v4434_v39  ;;  %v2799_v24 = vrot.slane %v2785_v31, %v11479_v14 }
 0x119   : > { %v2800_v59 = vcombine.high %v2792_v41, %v2792_v41  ;;  %v6211_v26 = vsel %vm4334_vm3, %v2792_v41, -inf  ;;  %v4428_v63 = vmax.f32 %v4426_v42, %v4427_v46  ;;  %v6154_v39 = vmax.f32 %v6152_v22, %v6153_v44 }
 0x11a   : > { %v4422_v47 = vrot.slane %v4421_v45, 2  ;;  %v4442_v1 = vmax.f32 %v4440_v40, %v4441_v51  ;;  %v6212_v2 = vrot.slane %v6211_v26, 4  ;;  %v4436_v4 = vrot.slane %v4435_v52, 2 }
 0x11b   : > { %v2801_v38 = vcombine.high %v2799_v24, %v2799_v24  ;;  %v6218_v6 = vsel %vm4334_vm3, %v2800_v59, -inf  ;;  %v6225_v7 = vsel %vm4334_vm3, %v2799_v24, -inf  ;;  %v4429_v9 = vrot.slane %v4428_v63, 2 }
 0x11c   : > { %v4423_v8 = vmax.f32 %v4421_v45, %v4422_v47  ;;  %v4443_v10 = vrot.slane %v4442_v1, 2  ;;  %v6213_v53 = vmax.f32 %v6211_v26, %v6212_v2  ;;  %v4437_v16 = vmax.f32 %v4435_v52, %v4436_v4 }
 0x11d   : > { %v6219_v17 = vrot.slane %v6218_v6, 4  ;;  %v6226_v18 = vrot.slane %v6225_v7, 4  ;;  %v6232_v19 = vsel %vm4334_vm3, %v2801_v38, -inf  ;;  %v4430_v25 = vmax.f32 %v4428_v63, %v4429_v9 }
 0x11e   : > { %v4424_v20 = vrot.slane %v4423_v8, 1  ;;  %v4444_v28 = vmax.f32 %v4442_v1, %v4443_v10  ;;  %v6214_v29 = vrot.slane %v6213_v53, 2  ;;  %v4438_v23 = vrot.slane %v4437_v16, 1  ;;  %v11622_v1 = vpop.f32.mrb[8].mxu1 }
 0x11f   : > { %v6220_v31 = vmax.f32 %v6218_v6, %v6219_v17  ;;  %v6227_v36 = vmax.f32 %v6225_v7, %v6226_v18  ;;  %v6233_v42 = vrot.slane %v6232_v19, 4  ;;  %v4431_v40 = vrot.slane %v4430_v25, 1  ;;  %14783 = vst [vmem:[#allocation3_spill] sm:$0xff] %v11622_v1 }
 0x120   : > { %v4445_v41 = vrot.slane %v4444_v28, 1  ;;  %v6215_v45 = vmax.f32 %v6213_v53, %v6214_v29  ;;  %v4425_v46 = vmax.f32 %v4423_v8, %v4424_v20  ;;  %v11620_v59 = vsel %vm7919_vm4, %v6133_v34, -inf }
 0x121   : > { %v6221_v51 = vrot.slane %v6220_v31, 2  ;;  %v6228_v24 = vrot.slane %v6227_v36, 2  ;;  %v6234_v52 = vmax.f32 %v6232_v19, %v6233_v42  ;;  %v4432_v26 = vmax.f32 %v4430_v25, %v4431_v40 }
 0x122   : > { %v4439_v47 = vmax.f32 %v4437_v16, %v4438_v23  ;;  %v6216_v63 = vrot.slane %v6215_v45, 1  ;;  %v4446_v2 = vmax.f32 %v4444_v28, %v4445_v41  ;;  %v11625_v22 = vsel %vm7919_vm4, %v6140_v32, -inf }
 0x123   : > { %v6222_v4 = vmax.f32 %v6220_v31, %v6221_v51  ;;  %v6229_v38 = vmax.f32 %v6227_v36, %v6228_v24  ;;  %v6235_v6 = vrot.slane %v6234_v52, 2  ;;  %v11628_v44 = vsel %vm7919_vm4, %v6147_v35, -inf }
 0x124   : > { %v11631_v7 = vsel %vm7919_vm4, %v6154_v39, -inf  ;;  %v1663_v34 = vcombine.high %v11607_v37, %v11607_v37  ;;  %v11636_v8 = vsel %vm7919_vm4, %v4425_v46, -inf  ;;  %v6217_v9 = vmax.f32 %v6215_v45, %v6216_v63 }
 0x125   : > { %v6236_v10 = vmax.f32 %v6234_v52, %v6235_v6  ;;  %v1670_v53 = vrot.slane %v11607_v37, %v11479_v14  ;;  %v11641_v32 = vsel %vm7919_vm4, %v4432_v26, -inf  ;;  %v11644_v35 = vsel %vm7919_vm4, %v4439_v47, -inf }
 0x126   : > { %v1677_v16 = vrot.slane %v1663_v34, %v11479_v14  ;;  %v1139_v17 = vadd.f32 %v11476_v11, %v11490_v27  ;;  %v11650_v18 = vsel %vm7919_vm4, %v4446_v2, -inf  ;;  %v6223_v19 = vrot.slane %v6222_v4, 1 }
 0x127   : > { %v6230_v20 = vrot.slane %v6229_v38, 1  ;;  %v1678_v25 = vcombine.high %v1670_v53, %v1670_v53  ;;  %v4363_v37 = vsel %vm4334_vm3, %v1670_v53, -inf  ;;  %v6237_v31 = vrot.slane %v6236_v10, 1  ;;  %v11663_v53 = vpop.f32.mrb[9].mxu0 }
 0x128   : > { %v1679_v28 = vcombine.high %v1677_v16, %v1677_v16  ;;  %v4377_v29 = vsel %vm4334_vm3, %v1677_v16, -inf  ;;  %v1455_v23 = vmax.f32 %v1139_v17, 0.0  ;;  %v11655_v36 = vsel %vm7919_vm4, %v6217_v9, -inf  ;;  %14784 = vst [vmem:[#allocation4_spill] sm:$0xff] %v11663_v53 }
 0x129   : > { %v4364_v42 = vrot.slane %v4363_v37, 4  ;;  %v904_v27 = vadd.f32 %v11509_v43, %v11476_v11  ;;  %v4370_v39 = vsel %vm4334_vm3, %v1678_v25, -inf  ;;  %v4378_v40 = vrot.slane %v4377_v29, 4 }
 0x12a   : > { %v4384_v41 = vsel %vm4334_vm3, %v1679_v28, -inf  ;;  %v2751_v45 = vcombine.high %v1455_v23, %v1455_v23  ;;  %v6224_v46 = vmax.f32 %v6222_v4, %v6223_v19  ;;  %v4371_v24 = vrot.slane %v4370_v39, 4 }
 0x12b   : > { %v4365_v51 = vmax.f32 %v4363_v37, %v4364_v42  ;;  %v4385_v52 = vrot.slane %v4384_v41, 4  ;;  %v6231_v26 = vmax.f32 %v6229_v38, %v6230_v20  ;;  %v4379_v47 = vmax.f32 %v4377_v29, %v4378_v40 }
 0x12c   : > { %v2758_v63 = vrot.slane %v1455_v23, %v11479_v14  ;;  %v2765_v2 = vrot.slane %v2751_v45, %v11479_v14  ;;  %v6238_v6 = vmax.f32 %v6236_v10, %v6237_v31  ;;  %v4372_v9 = vmax.f32 %v4370_v39, %v4371_v24 }
 0x12d   : > { %v4366_v34 = vrot.slane %v4365_v51, 2  ;;  %v4386_v43 = vmax.f32 %v4384_v41, %v4385_v52  ;;  %v4380_v16 = vrot.slane %v4379_v47, 2 }
 0x12e   : > { %v2766_v17 = vcombine.high %v2758_v63, %v2758_v63  ;;  %v2767_v25 = vcombine.high %v2765_v2, %v2765_v2  ;;  %v6155_v4 = vsel %vm4334_vm3, %v2758_v63, -inf  ;;  %v4373_v28 = vrot.slane %v4372_v9, 2 }
 0x12f   : > { %v4367_v19 = vmax.f32 %v4365_v51, %v4366_v34  ;;  %v4387_v37 = vrot.slane %v4386_v43, 2  ;;  %v6156_v38 = vrot.slane %v6155_v4, 4  ;;  %v4381_v20 = vmax.f32 %v4379_v47, %v4380_v16 }
 0x130   : > { %v6162_v29 = vsel %vm4334_vm3, %v2766_v17, -inf  ;;  %v6169_v23 = vsel %vm4334_vm3, %v2765_v2, -inf  ;;  %v6176_v10 = vsel %vm4334_vm3, %v2767_v25, -inf  ;;  %v4374_v42 = vmax.f32 %v4372_v9, %v4373_v28 }
 0x131   : > { %v4368_v31 = vrot.slane %v4367_v19, 1  ;;  %v4388_v39 = vmax.f32 %v4386_v43, %v4387_v37  ;;  %v6157_v40 = vmax.f32 %v6155_v4, %v6156_v38  ;;  %v4382_v41 = vrot.slane %v4381_v20, 1  ;;  %v11677_v37 = vpop.f32.mrb[9].mxu1 }
 0x132   : > { %v6163_v45 = vrot.slane %v6162_v29, 4  ;;  %v6170_v24 = vrot.slane %v6169_v23, 4  ;;  %v6177_v52 = vrot.slane %v6176_v10, 4  ;;  %v11670_v51 = vsel %vm7919_vm4, %v6224_v46, -inf  ;;  %14785 = vst [vmem:[#allocation5_spill] sm:$0xff] %v11677_v37 }
 0x133   : > { %v4375_v63 = vrot.slane %v4374_v42, 1  ;;  %v6158_v34 = vrot.slane %v6157_v40, 2  ;;  %v1396_v47 = vmax.f32 %v904_v27, 0.0  ;;  %v4389_v16 = vrot.slane %v4388_v39, 1 }
 0x134   : > { %v6164_v17 = vmax.f32 %v6162_v29, %v6163_v45  ;;  %v6171_v53 = vmax.f32 %v6169_v23, %v6170_v24  ;;  %v6178_v2 = vmax.f32 %v6176_v10, %v6177_v52  ;;  %v4369_v1 = vmax.f32 %v4367_v19, %v4368_v31 }
 0x135   : > { %v4383_v25 = vmax.f32 %v4381_v20, %v4382_v41  ;;  %v6159_v33 = vmax.f32 %v6157_v40, %v6158_v34  ;;  %v1160_v9 = vadd.f32 %v11513_v48, %v11476_v11  ;;  %v11675_v43 = vsel %vm7919_vm4, %v6231_v26, -inf }
 0x136   : > { %v6165_v4 = vrot.slane %v6164_v17, 2  ;;  %v6172_v28 = vrot.slane %v6171_v53, 2  ;;  %v6179_v46 = vrot.slane %v6178_v2, 2  ;;  %v11680_v27 = vsel %vm7919_vm4, %v6238_v6, -inf }
 0x137   : > { %14786 = vst [vmem:[#allocation6_spill] sm:$0xff] %v11680_v27  ;;  %v4376_v38 = vmax.f32 %v4374_v42, %v4375_v63  ;;  %v6160_v29 = vrot.slane %v6159_v33, 1  ;;  %v1748_v23 = vcombine.high %v1396_v47, %v1396_v47  ;;  %v4390_v19 = vmax.f32 %v4388_v39, %v4389_v16 }
 0x138   : > { %v6166_v20 = vmax.f32 %v6164_v17, %v6165_v4  ;;  %v6173_v10 = vmax.f32 %v6171_v53, %v6172_v28  ;;  %v1755_v31 = vrot.slane %v1396_v47, %v11479_v14  ;;  %v11684_v48 = vsel %vm7919_vm4, %v4369_v1, -inf }
 0x139   : > { %14787 = vst [vmem:[#allocation7_spill] sm:$0xff] %v11684_v48  ;;  %v11687_v26 = vsel %vm7919_vm4, %v4383_v25, -inf  ;;  %v1762_v40 = vrot.slane %v1748_v23, %v11479_v14  ;;  %v1460_v41 = vmax.f32 %v1160_v9, 0.0  ;;  %v6161_v45 = vmax.f32 %v6159_v33, %v6160_v29 }
 0x13a   : > { %14788 = vst [vmem:[#allocation8_spill] sm:$0xff] %v11687_v26  ;;  %v6167_v6 = vrot.slane %v6166_v20, 1  ;;  %v11690_v24 = vmax.f32 %v6178_v2, %v6179_v46  ;;  %v1763_v42 = vcombine.high %v1755_v31, %v1755_v31  ;;  %v11693_v39 = vsel %vm7919_vm4, %v4376_v38, -inf }
 0x13b   : > { %14789 = vst [vmem:[#allocation9_spill] sm:$0xff] %v11693_v39  ;;  %v1764_v53 = vcombine.high %v1762_v40, %v1762_v40  ;;  %v4503_v52 = vsel %vm4334_vm3, %v1755_v31, -inf  ;;  %v4517_v1 = vsel %vm4334_vm3, %v1762_v40, -inf  ;;  %v11698_v63 = vsel %vm7919_vm4, %v4390_v19, -inf }
 0x13c   : > { %14790 = vst [vmem:[#allocation10_spill] sm:$0xff] %v11698_v63  ;;  %v6174_v34 = vrot.slane %v6173_v10, 1  ;;  %v4504_v47 = vrot.slane %v4503_v52, 4  ;;  %v896_v33 = vadd.f32 %v11476_v11, %v11515_v49  ;;  %v4510_v16 = vsel %vm4334_vm3, %v1763_v42, -inf  ;;  %v11711_v49 = vpop.f32.mrb[10].mxu0 }
 0x13d   : > { %v4518_v17 = vrot.slane %v4517_v1, 4  ;;  %v4524_v2 = vsel %vm4334_vm3, %v1764_v53, -inf  ;;  %v2836_v25 = vcombine.high %v1460_v41, %v1460_v41  ;;  %v11704_v9 = vmax.f32 %v6166_v20, %v6167_v6  ;;  %14792 = vst [vmem:[#allocation12_spill] sm:$0xff] %v11711_v49 }
 0x13e   : > { %v11708_v28 = vsel %vm7919_vm4, %v6161_v45, -inf  ;;  %v4505_v46 = vmax.f32 %v4503_v52, %v4504_v47  ;;  %v4511_v38 = vrot.slane %v4510_v16, 4  ;;  %v4525_v23 = vrot.slane %v4524_v2, 4 }
 0x13f   : > { %14791 = vst [vmem:[#allocation11_spill] sm:$0xff] %v11708_v28  ;;  %v4519_v29 = vmax.f32 %v4517_v1, %v4518_v17  ;;  %v2843_v19 = vrot.slane %v1460_v41, %v11479_v14  ;;  %v11713_v31 = vmax.f32 %v6173_v10, %v6174_v34  ;;  %v2850_v42 = vrot.slane %v2836_v25, %v11479_v14 }
 0x140   : > { %v4506_v40 = vrot.slane %v4505_v46, 2  ;;  %v11716_v20 = vmax.f32 %v896_v33, 0.0  ;;  %v4512_v6 = vmax.f32 %v4510_v16, %v4511_v38  ;;  %v4526_v4 = vmax.f32 %v4524_v2, %v4525_v23 }
 0x141   : > { %v4520_v53 = vrot.slane %v4519_v29, 2  ;;  %v2851_v45 = vcombine.high %v2843_v19, %v2843_v19  ;;  %v2852_v52 = vcombine.high %v2850_v42, %v2850_v42  ;;  %v6295_v1 = vsel %vm4334_vm3, %v2843_v19, -inf }
 0x142   : > { %v4507_v28 = vmax.f32 %v4505_v46, %v4506_v40  ;;  %v6309_v47 = vsel %vm4334_vm3, %v2850_v42, -inf  ;;  %v4513_v41 = vrot.slane %v4512_v6, 2  ;;  %v4527_v49 = vrot.slane %v4526_v4, 2 }
 0x143   : > { %v4521_v17 = vmax.f32 %v4519_v29, %v4520_v53  ;;  %v6296_v10 = vrot.slane %v6295_v1, 4  ;;  %v6302_v37 = vsel %vm4334_vm3, %v2851_v45, -inf  ;;  %v6310_v25 = vrot.slane %v6309_v47, 4 }
 0x144   : > { %v4508_v34 = vrot.slane %v4507_v28, 1  ;;  %v6316_v33 = vsel %vm4334_vm3, %v2852_v52, -inf  ;;  %v4514_v16 = vmax.f32 %v4512_v6, %v4513_v41  ;;  %v4528_v2 = vmax.f32 %v4526_v4, %v4527_v49 }
 0x145   : > { %v4522_v38 = vrot.slane %v4521_v17, 1  ;;  %v6297_v23 = vmax.f32 %v6295_v1, %v6296_v10  ;;  %v6303_v40 = vrot.slane %v6302_v37, 4  ;;  %v6311_v63 = vmax.f32 %v6309_v47, %v6310_v25 }
 0x146   : > { %v4509_v46 = vmax.f32 %v4507_v28, %v4508_v34  ;;  %v6317_v19 = vrot.slane %v6316_v33, 4  ;;  %v4515_v26 = vrot.slane %v4514_v16, 1  ;;  %v4529_v39 = vrot.slane %v4528_v2, 1 }
 0x147   : > { %v4523_v42 = vmax.f32 %v4521_v17, %v4522_v38  ;;  %v6298_v29 = vrot.slane %v6297_v23, 2  ;;  %v6304_v45 = vmax.f32 %v6302_v37, %v6303_v40  ;;  %v6312_v48 = vrot.slane %v6311_v63, 2  ;;  %v11728_v37 = vpop.f32.mrb[10].mxu1 }
 0x148   : > { %v7945_v53 = vsel %vm7919_vm4, %v4509_v46, -inf  ;;  %v6318_v27 = vmax.f32 %v6316_v33, %v6317_v19  ;;  %v4516_v52 = vmax.f32 %v4514_v16, %v4515_v26  ;;  %v4530_v6 = vmax.f32 %v4528_v2, %v4529_v39 }
 0x149   : > { %v7946_v4 = vmax.f32 %v11538_v50, %v7945_v53  ;;  %v7951_v28 = vsel %vm7919_vm4, %v4523_v42, -inf  ;;  %v6299_v1 = vmax.f32 %v6297_v23, %v6298_v29  ;;  %v6305_v47 = vrot.slane %v6304_v45, 2 }
 0x14a   : > { %v7952_v49 = vmax.f32 %v11561_v30, %v7951_v28  ;;  %v6313_v41 = vmax.f32 %v6311_v63, %v6312_v48  ;;  %v7948_v17 = vsel %vm7919_vm4, %v4516_v52, -inf  ;;  %v7954_v10 = vsel %vm7919_vm4, %v4530_v6, -inf }
 0x14b   : > { %v10758_v34 = vpack.c.bf16 %v7946_v4, %v7946_v4  ;;  %v6319_v25 = vrot.slane %v6318_v27, 2  ;;  %v7949_v26 = vmax.f32 %v11555_v58, %v7948_v17  ;;  %v11732_v39 = vmax.f32 %v11575_v3, %v7954_v10 }
 0x14c   : > { %v10760_v50 = vpack.c.bf16 %v7952_v49, %v7952_v49  ;;  %v6300_v33 = vrot.slane %v6299_v1, 1  ;;  %v14793_v30 = vrot.slane %v11690_v24, 1  ;;  %v6306_v48 = vmax.f32 %v6304_v45, %v6305_v47  ;;  %v11751_v47 = vpop.f32.mrb[11].mxu0 }
 0x14d   : > { %v6314_v63 = vrot.slane %v6313_v41, 1  ;;  %v6320_v38 = vmax.f32 %v6318_v27, %v6319_v25  ;;  %v10759_v2 = vpack.c.bf16 %v7949_v26, %v7949_v26  ;;  %v1152_v40 = vadd.f32 %v11476_v11, %v11517_v54 }
 0x14e   : > { %v11737_v16 = vmax.f32 %v11690_v24, %v14793_v30  ;;  %v9722_v23 = vunpack.c.l.b16 %v10760_v50  ;;  %v6301_v46 = vmax.f32 %v6299_v1, %v6300_v33  ;;  %v6307_v58 = vrot.slane %v6306_v48, 1 }
 0x14f   : > { %v6315_v19 = vmax.f32 %v6313_v41, %v6314_v63  ;;  %v6321_v3 = vrot.slane %v6320_v38, 1  ;;  %v1714_v42 = vcombine.high %v11716_v20, %v11716_v20  ;;  %v9720_v29 = vunpack.c.l.b16 %v10758_v34 }
 0x150   : > { %v9721_v53 = vunpack.c.l.b16 %v10759_v2  ;;  %v8329_v24 = vsel %vm7919_vm4, %v6301_v46, -inf  ;;  %v1721_v45 = vrot.slane %v11716_v20, %v11479_v14  ;;  %v6308_v27 = vmax.f32 %v6306_v48, %v6307_v58 }
 0x151   : > { %v6322_v52 = vmax.f32 %v6320_v38, %v6321_v3  ;;  %v8330_v6 = vmax.f32 %v11550_v57, %v8329_v24  ;;  %v8335_v4 = vsel %vm7919_vm4, %v6315_v19, -inf  ;;  %v1728_v49 = vrot.slane %v1714_v42, %v11479_v14 }
 0x152   : > { %v9982_v54 = vsel %vm9968_vm5, %v9721_v53, %v9720_v29  ;;  %v8336_v28 = vmax.f32 %v11581_v56, %v8335_v4  ;;  %v1729_v1 = vcombine.high %v1721_v45, %v1721_v45  ;;  %v8332_v20 = vsel %vm7919_vm4, %v6308_v27, -inf }
 0x153   : > { %v11754_v41 = vsel %vm9970_vm6, %v9722_v23, %v9982_v54  ;;  %v8338_v17 = vsel %vm7919_vm4, %v6322_v52, -inf  ;;  %v10886_v10 = vpack.c.bf16 %v8330_v6, %v8330_v6  ;;  %v8333_v57 = vmax.f32 %v11578_v12, %v8332_v20 }
 0x154   : > { %v11760_v34 = vmax.f32 %v11584_v5, %v8338_v17  ;;  %v10888_v25 = vpack.c.bf16 %v8336_v28, %v8336_v28  ;;  %v1730_v56 = vcombine.high %v1728_v49, %v1728_v49  ;;  %v11764_v26 = vsel %vm7919_vm4, %v11704_v9, -inf }
 0x155   : > { %v4447_v50 = vsel %vm4334_vm3, %v1721_v45, -inf  ;;  %v4454_v33 = vsel %vm4334_vm3, %v1729_v1, -inf  ;;  %v4461_v30 = vsel %vm4334_vm3, %v1728_v49, -inf  ;;  %v10761_v48 = vpack.c.bf16 %v11732_v39, %v11732_v39 }
 0x156   : > { %v10887_v63 = vpack.c.bf16 %v8333_v57, %v8333_v57  ;;  %v9850_v12 = vunpack.c.l.b16 %v10888_v25  ;;  %v4448_v38 = vrot.slane %v4447_v50, 4  ;;  %v4455_v5 = vrot.slane %v4454_v33, 4 }
 0x157   : > { %v4462_v2 = vrot.slane %v4461_v30, 4  ;;  %v4468_v23 = vsel %vm4334_vm3, %v1730_v56, -inf  ;;  %v1458_v46 = vmax.f32 %v1152_v40, 0.0  ;;  %v9848_v58 = vunpack.c.l.b16 %v10886_v10 }
 0x158   : > { %v9849_v9 = vunpack.c.l.b16 %v10887_v63  ;;  %v4449_v19 = vmax.f32 %v4447_v50, %v4448_v38  ;;  %v4469_v3 = vrot.slane %v4468_v23, 4  ;;  %v4456_v42 = vmax.f32 %v4454_v33, %v4455_v5 }
 0x159   : > { %v4463_v29 = vmax.f32 %v4461_v30, %v4462_v2  ;;  %v2802_v53 = vcombine.high %v1458_v46, %v1458_v46  ;;  %v2809_v24 = vrot.slane %v1458_v46, %v11479_v14  ;;  %v907_v6 = vadd.f32 %v11519_v55, %v11476_v11  ;;  %v11783_v30 = vpop.f32.mrb[11].mxu1 }
 0x15a   : > { %v10094_v45 = vsel %vm9968_vm5, %v9849_v9, %v9848_v58  ;;  %v4450_v27 = vrot.slane %v4449_v19, 2  ;;  %v4470_v52 = vmax.f32 %v4468_v23, %v4469_v3  ;;  %v4457_v40 = vrot.slane %v4456_v42, 2 }
 0x15b   : > { %v11777_v4 = vsel %vm9970_vm6, %v9850_v12, %v10094_v45  ;;  %v4464_v54 = vrot.slane %v4463_v29, 2  ;;  %v2816_v28 = vrot.slane %v2802_v53, %v11479_v14  ;;  %v2817_v20 = vcombine.high %v2809_v24, %v2809_v24 }
 0x15c   : > { %v4451_v49 = vmax.f32 %v4449_v19, %v4450_v27  ;;  %v4471_v1 = vrot.slane %v4470_v52, 2  ;;  %v6239_v17 = vsel %vm4334_vm3, %v2809_v24, -inf  ;;  %v4458_v10 = vmax.f32 %v4456_v42, %v4457_v40 }
 0x15d   : > { %v4465_v57 = vmax.f32 %v4463_v29, %v4464_v54  ;;  %v2818_v25 = vcombine.high %v2816_v28, %v2816_v28  ;;  %v6240_v56 = vrot.slane %v6239_v17, 4  ;;  %v6246_v11 = vsel %vm4334_vm3, %v2817_v20, -inf }
 0x15e   : > { %v4452_v50 = vrot.slane %v4451_v49, 1  ;;  %v4472_v33 = vmax.f32 %v4470_v52, %v4471_v1  ;;  %v6253_v55 = vsel %vm4334_vm3, %v2816_v28, -inf  ;;  %v4459_v63 = vrot.slane %v4458_v10, 1 }
 0x15f   : > { %v4466_v12 = vrot.slane %v4465_v57, 1  ;;  %v6241_v38 = vmax.f32 %v6239_v17, %v6240_v56  ;;  %v6247_v5 = vrot.slane %v6246_v11, 4  ;;  %v6254_v46 = vrot.slane %v6253_v55, 4 }
 0x160   : > { %v4453_v2 = vmax.f32 %v4451_v49, %v4452_v50  ;;  %v4473_v23 = vrot.slane %v4472_v33, 1  ;;  %v6260_v58 = vsel %vm4334_vm3, %v2818_v25, -inf  ;;  %v4460_v9 = vmax.f32 %v4458_v10, %v4459_v63 }
 0x161   : > { %v4467_v19 = vmax.f32 %v4465_v57, %v4466_v12  ;;  %v6242_v3 = vrot.slane %v6241_v38, 2  ;;  %v6248_v42 = vmax.f32 %v6246_v11, %v6247_v5  ;;  %v6255_v24 = vmax.f32 %v6253_v55, %v6254_v46 }
 0x162   : > { %v4474_v29 = vmax.f32 %v4472_v33, %v4473_v23  ;;  %v7921_v53 = vsel %vm7919_vm4, %v4453_v2, -inf  ;;  %v6261_v45 = vrot.slane %v6260_v58, 4  ;;  %v7924_v52 = vsel %vm7919_vm4, %v4460_v9, -inf }
 0x163   : > { %v7922_v27 = vmax.f32 %v11589_v13, %v7921_v53  ;;  %v7927_v40 = vsel %vm7919_vm4, %v4467_v19, -inf  ;;  %v6243_v54 = vmax.f32 %v6241_v38, %v6242_v3  ;;  %v7925_v28 = vmax.f32 %v11594_v61, %v7924_v52 }
 0x164   : > { %v7928_v49 = vmax.f32 %v11597_v62, %v7927_v40  ;;  %v7930_v1 = vsel %vm7919_vm4, %v4474_v29, -inf  ;;  %v6249_v20 = vrot.slane %v6248_v42, 2  ;;  %v6256_v25 = vrot.slane %v6255_v24, 2 }
 0x165   : > { %v11794_v17 = vmax.f32 %v11602_v21, %v7930_v1  ;;  %v10750_v10 = vpack.c.bf16 %v7922_v27, %v7922_v27  ;;  %v6244_v57 = vrot.slane %v6243_v54, 1  ;;  %v10751_v56 = vpack.c.bf16 %v7925_v28, %v7925_v28 }
 0x166   : > { %v10752_v13 = vpack.c.bf16 %v7928_v49, %v7928_v49  ;;  %v6250_v50 = vmax.f32 %v6248_v42, %v6249_v20  ;;  %v6262_v33 = vmax.f32 %v6260_v58, %v6261_v45  ;;  %v11799_v11 = vunpack.c.l.b16 %v10761_v48  ;;  %v11804_v58 = vpop.f32.mrb[12].mxu0 }
 0x167   : > { %v9712_v61 = vunpack.c.l.b16 %v10750_v10  ;;  %v6245_v62 = vmax.f32 %v6243_v54, %v6244_v57  ;;  %v6257_v55 = vmax.f32 %v6255_v24, %v6256_v25  ;;  %v9713_v63 = vunpack.c.l.b16 %v10751_v56 }
 0x168   : > { %v9714_v12 = vunpack.c.l.b16 %v10752_v13  ;;  %v6251_v38 = vrot.slane %v6250_v50, 1  ;;  %v6263_v21 = vrot.slane %v6262_v33, 2  ;;  %v10889_v5 = vpack.c.bf16 %v11760_v34, %v11760_v34 }
 0x169   : > { %v6258_v2 = vrot.slane %v6257_v55, 1  ;;  %v8305_v23 = vsel %vm7919_vm4, %v6245_v62, -inf  ;;  %v1397_v46 = vmax.f32 %v907_v6, 0.0  ;;  %v9969_v39 = vsel %vm9968_vm5, %v9713_v63, %v9712_v61 }
 0x16a   : > { %v6252_v48 = vmax.f32 %v6250_v50, %v6251_v38  ;;  %v6264_v9 = vmax.f32 %v6262_v33, %v6263_v21  ;;  %v8306_v19 = vmax.f32 %v11620_v59, %v8305_v23  ;;  %v11809_v3 = vsel %vm9970_vm6, %v9714_v12, %v9969_v39  ;;  %v11825_v12 = vpop.f32.mrb[12].mxu1 }
 0x16b   : > { %v6259_v42 = vmax.f32 %v6257_v55, %v6258_v2  ;;  %v1765_v29 = vcombine.high %v1397_v46, %v1397_v46  ;;  %v1772_v53 = vrot.slane %v1397_v46, %v11479_v14  ;;  %v10753_v34 = vpack.c.bf16 %v11794_v17, %v11794_v17 }
 0x16c   : > { %v6265_v24 = vrot.slane %v6264_v9, 1  ;;  %v8308_v6 = vsel %vm7919_vm4, %v6252_v48, -inf  ;;  %v10878_v45 = vpack.c.bf16 %v8306_v19, %v8306_v19  ;;  %v9851_v46 = vunpack.c.l.b16 %v10889_v5 }
 0x16d   : > { %v8309_v27 = vmax.f32 %v11625_v22, %v8308_v6  ;;  %v8311_v52 = vsel %vm7919_vm4, %v6259_v42, -inf  ;;  %v1779_v59 = vrot.slane %v1765_v29, %v11479_v14  ;;  %v1780_v40 = vcombine.high %v1772_v53, %v1772_v53 }
 0x16e   : > { %v6266_v54 = vmax.f32 %v6264_v9, %v6265_v24  ;;  %v8312_v28 = vmax.f32 %v11628_v44, %v8311_v52  ;;  %v9840_v49 = vunpack.c.l.b16 %v10878_v45  ;;  %v4531_v1 = vsel %vm4334_vm3, %v1772_v53, -inf }
 0x16f   : > { %v10879_v20 = vpack.c.bf16 %v8309_v27, %v8309_v27  ;;  %v1781_v10 = vcombine.high %v1779_v59, %v1779_v59  ;;  %v4532_v17 = vrot.slane %v4531_v1, 4  ;;  %v4538_v57 = vsel %vm4334_vm3, %v1780_v40, -inf }
 0x170   : > { %v8314_v25 = vsel %vm7919_vm4, %v6266_v54, -inf  ;;  %v10880_v56 = vpack.c.bf16 %v8312_v28, %v8312_v28  ;;  %v4539_v22 = vrot.slane %v4538_v57, 4  ;;  %v4545_v13 = vsel %vm4334_vm3, %v1779_v59, -inf }
 0x171   : > { %v8315_v50 = vmax.f32 %v11631_v7, %v8314_v25  ;;  %v9841_v33 = vunpack.c.l.b16 %v10879_v20  ;;  %v4533_v61 = vmax.f32 %v4531_v1, %v4532_v17  ;;  %v4546_v62 = vrot.slane %v4545_v13, 4 }
 0x172   : > { %v9842_v44 = vunpack.c.l.b16 %v10880_v56  ;;  %v4540_v55 = vmax.f32 %v4538_v57, %v4539_v22  ;;  %v4552_v63 = vsel %vm4334_vm3, %v1781_v10, -inf  ;;  %v11833_v9 = vsel %vm7919_vm4, %v11713_v31, -inf  ;;  %v11847_v31 = vld [vmem:[%s14780_s2] ss:$0 sm:$0xff]  ;;  %v11867_v10 = vpop.f32.mrb[13].mxu0 }
 0x173   : > { %v10881_v38 = vpack.c.bf16 %v8315_v50, %v8315_v50  ;;  %v10087_v21 = vsel %vm9968_vm5, %v9841_v33, %v9840_v49  ;;  %v4534_v2 = vrot.slane %v4533_v61, 2  ;;  %v4547_v23 = vmax.f32 %v4545_v13, %v4546_v62 }
 0x174   : > { %v11829_v39 = vsel %vm9970_vm6, %v9842_v44, %v10087_v21  ;;  %v4541_v7 = vrot.slane %v4540_v55, 2  ;;  %v4553_v48 = vrot.slane %v4552_v63, 4  ;;  %v9715_v19 = vunpack.c.l.b16 %v10753_v34 }
 0x175   : > { %v4535_v42 = vmax.f32 %v4533_v61, %v4534_v2  ;;  %v4548_v29 = vrot.slane %v4547_v23, 2  ;;  %v11837_v53 = vsel %vm7919_vm4, %v11737_v16, -inf  ;;  %v9984_v5 = vsel %vm9972_vm7, %v11799_v11, %v11754_v41 }
 0x176   : > { %v4542_v24 = vmax.f32 %v4540_v55, %v4541_v7  ;;  %v4554_v6 = vmax.f32 %v4552_v63, %v4553_v48  ;;  %v11842_v45 = vunpack.c.l.b16 %v10881_v38  ;;  %v1163_v16 = vadd.f32 %v11847_v31, %v11524_v60 }
 0x177   : > { %v4536_v27 = vrot.slane %v4535_v42, 1  ;;  %v4549_v52 = vmax.f32 %v4547_v23, %v4548_v29  ;;  %v11853_v40 = vsel %vm9972_vm7, %v9851_v46, %v11777_v4  ;;  %v899_v41 = vadd.f32 %v11847_v31, %v11527_v15 }
 0x178   : > { %v4543_v34 = vrot.slane %v4542_v24, 1  ;;  %v4555_v59 = vrot.slane %v4554_v6, 2  ;;  %v1461_v28 = vmax.f32 %v1163_v16, 0.0  ;;  %v11863_v60 = vsel %vm9972_vm7, %v9715_v19, %v11809_v3 }
 0x179   : > { %v4537_v11 = vmax.f32 %v4535_v42, %v4536_v27  ;;  %v4550_v54 = vrot.slane %v4549_v52, 1  ;;  %v1395_v20 = vmax.f32 %v899_v41, 0.0  ;;  %v1155_v4 = vadd.f32 %v11847_v31, %v11563_v0 }
 0x17a   : > { %v4544_v49 = vmax.f32 %v4542_v24, %v4543_v34  ;;  %v4556_v1 = vmax.f32 %v4554_v6, %v4555_v59  ;;  %v2853_v57 = vcombine.high %v1461_v28, %v1461_v28  ;;  %v2860_v25 = vrot.slane %v1461_v28, %v11479_v14 }
 0x17b   : > { %v4551_v15 = vmax.f32 %v4549_v52, %v4550_v54  ;;  %v7957_v17 = vsel %vm7919_vm4, %v4537_v11, -inf  ;;  %v1731_v13 = vcombine.high %v1395_v20, %v1395_v20 }
 0x17c   : > { %v4557_v56 = vrot.slane %v4556_v1, 1  ;;  %v7958_v22 = vmax.f32 %v11636_v8, %v7957_v17  ;;  %v7960_v3 = vsel %vm7919_vm4, %v4544_v49, -inf  ;;  %v2867_v33 = vrot.slane %v2853_v57, %v11479_v14 }
 0x17d   : > { %v7961_v0 = vmax.f32 %v11641_v32, %v7960_v3  ;;  %v7963_v50 = vsel %vm7919_vm4, %v4551_v15, -inf  ;;  %v2868_v61 = vcombine.high %v2860_v25, %v2860_v25  ;;  %v6323_v63 = vsel %vm4334_vm3, %v2860_v25, -inf }
 0x17e   : > { %v4558_v62 = vmax.f32 %v4556_v1, %v4557_v56  ;;  %v7964_v44 = vmax.f32 %v11644_v35, %v7963_v50  ;;  %v10762_v55 = vpack.c.bf16 %v7958_v22, %v7958_v22  ;;  %v2869_v38 = vcombine.high %v2867_v33, %v2867_v33 }
 0x17f   : > { %v10763_v8 = vpack.c.bf16 %v7961_v0, %v7961_v0  ;;  %v6324_v21 = vrot.slane %v6323_v63, 4  ;;  %v6330_v2 = vsel %vm4334_vm3, %v2868_v61, -inf  ;;  %v6337_v42 = vsel %vm4334_vm3, %v2867_v33, -inf }
 0x180   : > { %v7966_v32 = vsel %vm7919_vm4, %v4558_v62, -inf  ;;  %v10764_v23 = vpack.c.bf16 %v7964_v44, %v7964_v44  ;;  %v9724_v46 = vunpack.c.l.b16 %v10762_v55  ;;  %v6331_v7 = vrot.slane %v6330_v2, 4 }
 0x181   : > { %v7967_v35 = vmax.f32 %v11650_v18, %v7966_v32  ;;  %v9725_v48 = vunpack.c.l.b16 %v10763_v8  ;;  %v6325_v19 = vmax.f32 %v6323_v63, %v6324_v21  ;;  %v6338_v27 = vrot.slane %v6337_v42, 4 }
 0x182   : > { %v9726_v29 = vunpack.c.l.b16 %v10764_v23  ;;  %v9985_v24 = vsel %vm9974_vm8, %v9724_v46, %v9984_v5  ;;  %v6332_v6 = vmax.f32 %v6330_v2, %v6331_v7  ;;  %v6344_v59 = vsel %vm4334_vm3, %v2869_v38, -inf }
 0x183   : > { %v10765_v52 = vpack.c.bf16 %v7967_v35, %v7967_v35  ;;  %v9986_v16 = vsel %vm9976_vm9, %v9725_v48, %v9985_v24  ;;  %v6326_v34 = vrot.slane %v6325_v19, 2  ;;  %v6339_v18 = vmax.f32 %v6337_v42, %v6338_v27 }
 0x184   : > { %v9987_v41 = vsel %vm9978_vm10, %v9726_v29, %v9986_v16  ;;  %v6333_v11 = vrot.slane %v6332_v6, 2  ;;  %v6345_v54 = vrot.slane %v6344_v59, 4  ;;  %v1738_v1 = vrot.slane %v1395_v20, %v11479_v14 }
 0x185   : > { %v9727_v28 = vunpack.c.l.b16 %v10765_v52  ;;  %v6327_v49 = vmax.f32 %v6325_v19, %v6326_v34  ;;  %v1745_v5 = vrot.slane %v1731_v13, %v11479_v14  ;;  %v6340_v17 = vrot.slane %v6339_v18, 2  ;;  %v11912_v19 = vpop.f32.mrb[13].mxu1 }
 0x186   : > { %v6334_v15 = vmax.f32 %v6332_v6, %v6333_v11  ;;  %v6346_v57 = vmax.f32 %v6344_v59, %v6345_v54  ;;  %v11895_v25 = vmax.f32 %v1155_v4, 0.0  ;;  %v1746_v3 = vcombine.high %v1738_v1, %v1738_v1 }
 0x187   : > { %v9988_v56 = vsel %vm9980_vm11, %v9727_v28, %v9987_v41  ;;  %v6328_v22 = vrot.slane %v6327_v49, 1  ;;  %v1747_v0 = vcombine.high %v1745_v5, %v1745_v5  ;;  %v6341_v33 = vmax.f32 %v6339_v18, %v6340_v17 }
 0x188   : > { %v10200_v50 = vpack.c.b16 %v9988_v56, %v9988_v56  ;;  %v6335_v20 = vrot.slane %v6334_v15, 1  ;;  %v6347_v13 = vrot.slane %v6346_v57, 2  ;;  %v4475_v62 = vsel %vm4334_vm3, %v1738_v1, -inf  ;;  %v14794_v1 = vld [vmem:[#allocation6_spill] sm:$0xff] }
 0x189   : > { %v6329_v61 = vmax.f32 %v6327_v49, %v6328_v22  ;;  %v4482_v4 = vsel %vm4334_vm3, %v1746_v3, -inf  ;;  %v4489_v44 = vsel %vm4334_vm3, %v1745_v5, -inf  ;;  %v6342_v63 = vrot.slane %v6341_v33, 1 }
 0x18a   : > { %10265 = vst.msk [vmem:[%s11900_s4 + $0x4] sm:$0xf] %vm10263_vm12, %v10200_v50  ;;  %v6336_v55 = vmax.f32 %v6334_v15, %v6335_v20  ;;  %v6348_v8 = vmax.f32 %v6346_v57, %v6347_v13  ;;  %v4476_v38 = vrot.slane %v4475_v62, 4  ;;  %v4483_v2 = vrot.slane %v4482_v4, 4 }
 0x18b   : > { %v8341_v21 = vsel %vm7919_vm4, %v6329_v61, -inf  ;;  %v4490_v32 = vrot.slane %v4489_v44, 4  ;;  %v4496_v23 = vsel %vm4334_vm3, %v1747_v0, -inf  ;;  %v6343_v46 = vmax.f32 %v6341_v33, %v6342_v63 }
 0x18c   : > { %v6349_v7 = vrot.slane %v6348_v8, 1  ;;  %v8342_v35 = vmax.f32 %v11655_v36, %v8341_v21  ;;  %v8344_v48 = vsel %vm7919_vm4, %v6336_v55, -inf  ;;  %v4477_v29 = vmax.f32 %v4475_v62, %v4476_v38 }
 0x18d   : > { %v8345_v42 = vmax.f32 %v11670_v51, %v8344_v48  ;;  %v4484_v24 = vmax.f32 %v4482_v4, %v4483_v2  ;;  %v4491_v6 = vmax.f32 %v4489_v44, %v4490_v32  ;;  %v8347_v52 = vsel %vm7919_vm4, %v6343_v46, -inf  ;;  %v11928_v2 = vpop.f32.mrb[14].mxu0 }
 0x18e   : > { %v6350_v27 = vmax.f32 %v6348_v8, %v6349_v7  ;;  %v10890_v16 = vpack.c.bf16 %v8342_v35, %v8342_v35  ;;  %v4497_v34 = vrot.slane %v4496_v23, 4  ;;  %v8348_v59 = vmax.f32 %v11675_v43, %v8347_v52 }
 0x18f   : > { %v10891_v41 = vpack.c.bf16 %v8345_v42, %v8345_v42  ;;  %v4478_v11 = vrot.slane %v4477_v29, 2  ;;  %v4485_v18 = vrot.slane %v4484_v24, 2  ;;  %v4492_v28 = vrot.slane %v4491_v6, 2  ;;  %v14795_v42 = vld [vmem:[#allocation7_spill] sm:$0xff] }
 0x190   : > { %v8350_v36 = vsel %vm7919_vm4, %v6350_v27, -inf  ;;  %v9852_v54 = vunpack.c.l.b16 %v10890_v16  ;;  %v4498_v49 = vmax.f32 %v4496_v23, %v4497_v34  ;;  %v10892_v5 = vpack.c.bf16 %v8348_v59, %v8348_v59  ;;  %v14797_v34 = vld [vmem:[#allocation8_spill] sm:$0xff] }
 0x191   : > { %v8351_v51 = vmax.f32 %v14794_v1, %v8350_v36  ;;  %v9853_v15 = vunpack.c.l.b16 %v10891_v41  ;;  %v4479_v17 = vmax.f32 %v4477_v29, %v4478_v11  ;;  %v4486_v56 = vmax.f32 %v4484_v24, %v4485_v18  ;;  %v14796_v24 = vld [vmem:[#allocation9_spill] sm:$0xff]  ;;  %v14798_v36 = vld [vmem:[#allocation10_spill] sm:$0xff] }
 0x192   : > { %v10097_v57 = vsel %vm9974_vm8, %v9852_v54, %v11853_v40  ;;  %v4493_v22 = vmax.f32 %v4491_v6, %v4492_v28  ;;  %v4499_v3 = vrot.slane %v4498_v49, 2  ;;  %v9854_v0 = vunpack.c.l.b16 %v10892_v5 }
 0x193   : > { %v10893_v43 = vpack.c.bf16 %v8351_v51, %v8351_v51  ;;  %v10098_v50 = vsel %vm9976_vm9, %v9853_v15, %v10097_v57  ;;  %v4480_v20 = vrot.slane %v4479_v17, 1  ;;  %v4487_v33 = vrot.slane %v4486_v56, 1 }
 0x194   : > { %v4494_v13 = vrot.slane %v4493_v22, 1  ;;  %v4500_v61 = vmax.f32 %v4498_v49, %v4499_v3  ;;  %v2819_v62 = vcombine.high %v11895_v25, %v11895_v25  ;;  %v10099_v44 = vsel %vm9978_vm10, %v9854_v0, %v10098_v50 }
 0x195   : > { %v9855_v4 = vunpack.c.l.b16 %v10893_v43  ;;  %v4481_v55 = vmax.f32 %v4479_v17, %v4480_v20  ;;  %v2826_v40 = vrot.slane %v11895_v25, %v11479_v14  ;;  %v4488_v63 = vmax.f32 %v4486_v56, %v4487_v33 }
 0x196   : > { %v4495_v8 = vmax.f32 %v4493_v22, %v4494_v13  ;;  %v4501_v38 = vrot.slane %v4500_v61, 1  ;;  %v2833_v21 = vrot.slane %v2819_v62, %v11479_v14 }
 0x197   : > { %v10100_v32 = vsel %vm9980_vm11, %v9855_v4, %v10099_v44  ;;  %v7933_v23 = vsel %vm7919_vm4, %v4481_v55, -inf  ;;  %v2834_v46 = vcombine.high %v2826_v40, %v2826_v40  ;;  %v6267_v7 = vsel %vm4334_vm3, %v2826_v40, -inf }
 0x198   : > { %v10216_v35 = vpack.c.b16 %v10100_v32, %v10100_v32  ;;  %v4502_v48 = vmax.f32 %v4500_v61, %v4501_v38  ;;  %v7934_v29 = vmax.f32 %v14795_v42, %v7933_v23  ;;  %v7936_v25 = vsel %vm7919_vm4, %v4488_v63, -inf  ;;  %v14799_v38 = vld [vmem:[#allocation2_spill] sm:$0xff] }
 0x199   : > { %v7937_v6 = vmax.f32 %v14796_v24, %v7936_v25  ;;  %v7939_v27 = vsel %vm7919_vm4, %v4495_v8, -inf  ;;  %v2835_v52 = vcombine.high %v2833_v21, %v2833_v21  ;;  %v6268_v16 = vrot.slane %v6267_v7, 4  ;;  %v14801_v25 = vld [vmem:[#allocation4_spill] sm:$0xff] }
 0x19a   : > { %10281 = vst.msk [vmem:[%s11900_s4 + $0x44] sm:$0xf] %vm10263_vm12, %v10216_v35  ;;  %v7940_v59 = vmax.f32 %v14797_v34, %v7939_v27  ;;  %v7942_v41 = vsel %vm7919_vm4, %v4502_v48, -inf  ;;  %v10754_v11 = vpack.c.bf16 %v7934_v29, %v7934_v29  ;;  %v6274_v18 = vsel %vm4334_vm3, %v2834_v46, -inf  ;;  %v14802_v27 = vld [vmem:[#allocation5_spill] sm:$0xff] }
 0x19b   : > { %v7943_v54 = vmax.f32 %v14798_v36, %v7942_v41  ;;  %v10755_v28 = vpack.c.bf16 %v7937_v6, %v7937_v6  ;;  %v6269_v49 = vmax.f32 %v6267_v7, %v6268_v16  ;;  %v6275_v1 = vrot.slane %v6274_v18, 4  ;;  %v14800_v7 = vld [vmem:[#allocation3_spill] sm:$0xff] }
 0x19c   : > { %v10756_v51 = vpack.c.bf16 %v7940_v59, %v7940_v59  ;;  %v9716_v5 = vunpack.c.l.b16 %v10754_v11  ;;  %v6281_v15 = vsel %vm4334_vm3, %v2833_v21, -inf  ;;  %v6288_v17 = vsel %vm4334_vm3, %v2835_v52, -inf  ;;  %v14803_v36 = vld [vmem:[#allocation11_spill] sm:$0xff] }
 0x19d   : > { %v10757_v57 = vpack.c.bf16 %v7943_v54, %v7943_v54  ;;  %v9717_v56 = vunpack.c.l.b16 %v10755_v28  ;;  %v6270_v22 = vrot.slane %v6269_v49, 2  ;;  %v6276_v3 = vmax.f32 %v6274_v18, %v6275_v1 }
 0x19e   : > { %v9718_v43 = vunpack.c.l.b16 %v10756_v51  ;;  %v9975_v0 = vsel %vm9974_vm8, %v9716_v5, %v11863_v60  ;;  %v6282_v50 = vrot.slane %v6281_v15, 4  ;;  %v6289_v20 = vrot.slane %v6288_v17, 4 }
 0x19f   : > { %v9719_v33 = vunpack.c.l.b16 %v10757_v57  ;;  %v9977_v13 = vsel %vm9976_vm9, %v9717_v56, %v9975_v0  ;;  %v6271_v61 = vmax.f32 %v6269_v49, %v6270_v22  ;;  %v6277_v62 = vrot.slane %v6276_v3, 2 }
 0x1a0   : > { %v9979_v4 = vsel %vm9978_vm10, %v9718_v43, %v9977_v13  ;;  %v6283_v44 = vmax.f32 %v6281_v15, %v6282_v50  ;;  %v6290_v55 = vmax.f32 %v6288_v17, %v6289_v20  ;;  %v10089_v40 = vsel %vm9972_vm7, %v11842_v45, %v11829_v39  ;;  %v11973_v15 = vpop.f32.mrb[14].mxu1 }
 0x1a1   : > { %v9981_v63 = vsel %vm9980_vm11, %v9719_v33, %v9979_v4  ;;  %v6272_v8 = vrot.slane %v6271_v61, 1  ;;  %v6278_v60 = vmax.f32 %v6276_v3, %v6277_v62  ;;  %v920_v21 = vadd.f32 %v11847_v31, %v14799_v38 }
 0x1a2   : > { %v10199_v32 = vpack.c.b16 %v9981_v63, %v9981_v63  ;;  %v6284_v23 = vrot.slane %v6283_v44, 2  ;;  %v6291_v46 = vrot.slane %v6290_v55, 2  ;;  %v1176_v35 = vadd.f32 %v11847_v31, %v14800_v7 }
 0x1a3   : > { %v6273_v48 = vmax.f32 %v6271_v61, %v6272_v8  ;;  %v6279_v42 = vrot.slane %v6278_v60, 1  ;;  %v1400_v29 = vmax.f32 %v920_v21, 0.0  ;;  %v11959_v24 = vadd.f32 %v11847_v31, %v14801_v25  ;;  %v11986_v25 = vpop.f32.mrb[15].mxu0 }
 0x1a4   : > { %10264 = vst.msk [vmem:[%s11900_s4] sm:$0xf] %vm10263_vm12, %v10199_v32  ;;  %v6285_v39 = vmax.f32 %v6283_v44, %v6284_v23  ;;  %v6292_v45 = vmax.f32 %v6290_v55, %v6291_v46  ;;  %v1464_v6 = vmax.f32 %v1176_v35, 0.0  ;;  %v11965_v52 = vadd.f32 %v11847_v31, %v14802_v27 }
 0x1a5   : > { %v6280_v16 = vmax.f32 %v6278_v60, %v6279_v42  ;;  %v8317_v34 = vsel %vm7919_vm4, %v6273_v48, -inf  ;;  %v1816_v59 = vcombine.high %v1400_v29, %v1400_v29  ;;  %v1823_v41 = vrot.slane %v1400_v29, %v11479_v14 }
 0x1a6   : > { %v6286_v11 = vrot.slane %v6285_v39, 1  ;;  %v6293_v18 = vrot.slane %v6292_v45, 1  ;;  %v8318_v54 = vmax.f32 %v14803_v36, %v8317_v34  ;;  %v2904_v28 = vcombine.high %v1464_v6, %v1464_v6 }
 0x1a7   : > { %v8320_v49 = vsel %vm7919_vm4, %v6280_v16, -inf  ;;  %v1830_v1 = vrot.slane %v1816_v59, %v11479_v14  ;;  %v1831_v51 = vcombine.high %v1823_v41, %v1823_v41  ;;  %v4615_v5 = vsel %vm4334_vm3, %v1823_v41, -inf }
 0x1a8   : > { %v6287_v17 = vmax.f32 %v6285_v39, %v6286_v11  ;;  %v6294_v57 = vmax.f32 %v6292_v45, %v6293_v18  ;;  %v8321_v56 = vmax.f32 %v11764_v26, %v8320_v49  ;;  %v10882_v22 = vpack.c.bf16 %v8318_v54, %v8318_v54 }
 0x1a9   : > { %v1832_v3 = vcombine.high %v1830_v1, %v1830_v1  ;;  %v4616_v43 = vrot.slane %v4615_v5, 4  ;;  %v4622_v0 = vsel %vm4334_vm3, %v1831_v51, -inf  ;;  %v4629_v50 = vsel %vm4334_vm3, %v1830_v1, -inf }
 0x1aa   : > { %v8323_v20 = vsel %vm7919_vm4, %v6287_v17, -inf  ;;  %v8326_v33 = vsel %vm7919_vm4, %v6294_v57, -inf  ;;  %v10883_v13 = vpack.c.bf16 %v8321_v56, %v8321_v56  ;;  %v9844_v61 = vunpack.c.l.b16 %v10882_v22 }
 0x1ab   : > { %v8324_v62 = vmax.f32 %v11833_v9, %v8323_v20  ;;  %v8327_v4 = vmax.f32 %v11837_v53, %v8326_v33  ;;  %v4617_v44 = vmax.f32 %v4615_v5, %v4616_v43  ;;  %v4623_v55 = vrot.slane %v4622_v0, 4 }
 0x1ac   : > { %v9845_v26 = vunpack.c.l.b16 %v10883_v13  ;;  %v10090_v63 = vsel %vm9974_vm8, %v9844_v61, %v10089_v40  ;;  %v4630_v8 = vrot.slane %v4629_v50, 4  ;;  %v4636_v60 = vsel %vm4334_vm3, %v1832_v3, -inf }
 0x1ad   : > { %v10884_v38 = vpack.c.bf16 %v8324_v62, %v8324_v62  ;;  %v10885_v21 = vpack.c.bf16 %v8327_v4, %v8327_v4  ;;  %v4618_v32 = vrot.slane %v4617_v44, 2  ;;  %v4624_v23 = vmax.f32 %v4622_v0, %v4623_v55 }
 0x1ae   : > { %v10091_v46 = vsel %vm9976_vm9, %v9845_v26, %v10090_v63  ;;  %v4631_v7 = vmax.f32 %v4629_v50, %v4630_v8  ;;  %v4637_v35 = vrot.slane %v4636_v60, 4  ;;  %v2911_v9 = vrot.slane %v1464_v6, %v11479_v14 }
 0x1af   : > { %v9846_v48 = vunpack.c.l.b16 %v10884_v38  ;;  %v9847_v53 = vunpack.c.l.b16 %v10885_v21  ;;  %v4619_v42 = vmax.f32 %v4617_v44, %v4618_v32  ;;  %v4625_v29 = vrot.slane %v4624_v23, 2 }
 0x1b0   : > { %v4632_v40 = vrot.slane %v4631_v7, 2  ;;  %v4638_v39 = vmax.f32 %v4636_v60, %v4637_v35  ;;  %v2918_v45 = vrot.slane %v2904_v28, %v11479_v14  ;;  %v2919_v27 = vcombine.high %v2911_v9, %v2911_v9 }
 0x1b1   : > { %v10092_v16 = vsel %vm9978_vm10, %v9846_v48, %v10091_v46  ;;  %v4620_v34 = vrot.slane %v4619_v42, 1  ;;  %v4626_v59 = vmax.f32 %v4624_v23, %v4625_v29  ;;  %v6407_v41 = vsel %vm4334_vm3, %v2911_v9, -inf }
 0x1b2   : > { %v10093_v6 = vsel %vm9980_vm11, %v9847_v53, %v10092_v16  ;;  %v4633_v11 = vmax.f32 %v4631_v7, %v4632_v40  ;;  %v4639_v18 = vrot.slane %v4638_v39, 2  ;;  %v2920_v36 = vcombine.high %v2918_v45, %v2918_v45 }
 0x1b3   : > { %v10215_v54 = vpack.c.b16 %v10093_v6, %v10093_v6  ;;  %v4621_v49 = vmax.f32 %v4619_v42, %v4620_v34  ;;  %v4627_v1 = vrot.slane %v4626_v59, 1  ;;  %v6408_v51 = vrot.slane %v6407_v41, 4 }
 0x1b4   : > { %v4634_v5 = vrot.slane %v4633_v11, 1  ;;  %v4640_v17 = vmax.f32 %v4638_v39, %v4639_v18  ;;  %v6414_v28 = vsel %vm4334_vm3, %v2919_v27, -inf  ;;  %v6421_v57 = vsel %vm4334_vm3, %v2918_v45, -inf }
 0x1b5   : > { %10280 = vst.msk [vmem:[%s11900_s4 + $0x40] sm:$0xf] %vm10263_vm12, %v10215_v54  ;;  %v4628_v56 = vmax.f32 %v4626_v59, %v4627_v1  ;;  %v11997_v22 = vsel %vm7919_vm4, %v4621_v49, -inf  ;;  %v6409_v3 = vmax.f32 %v6407_v41, %v6408_v51  ;;  %v6415_v43 = vrot.slane %v6414_v28, 4 }
 0x1b6   : > { %v4635_v0 = vmax.f32 %v4633_v11, %v4634_v5  ;;  %v4641_v50 = vrot.slane %v4640_v17, 1  ;;  %v6422_v20 = vrot.slane %v6421_v57, 4  ;;  %v6428_v33 = vsel %vm4334_vm3, %v2920_v36, -inf }
 0x1b7   : > { %v12001_v13 = vsel %vm7919_vm4, %v4628_v56, -inf  ;;  %v6410_v61 = vrot.slane %v6409_v3, 2  ;;  %v6416_v62 = vmax.f32 %v6414_v28, %v6415_v43  ;;  %v6429_v4 = vrot.slane %v6428_v33, 4 }
 0x1b8   : > { %v4642_v44 = vmax.f32 %v4640_v17, %v4641_v50  ;;  %v12004_v55 = vsel %vm7919_vm4, %v4635_v0, -inf  ;;  %v6423_v26 = vmax.f32 %v6421_v57, %v6422_v20  ;;  %v1398_v63 = vmax.f32 %v11959_v24, 0.0 }
 0x1b9   : > { %v6411_v8 = vmax.f32 %v6409_v3, %v6410_v61  ;;  %v6417_v60 = vrot.slane %v6416_v62, 2  ;;  %v6430_v38 = vmax.f32 %v6428_v33, %v6429_v4  ;;  %v1462_v21 = vmax.f32 %v11965_v52, 0.0 }
 0x1ba   : > { %v12009_v32 = vsel %vm7919_vm4, %v4642_v44, -inf  ;;  %v6424_v23 = vrot.slane %v6423_v26, 2  ;;  %v1782_v46 = vcombine.high %v1398_v63, %v1398_v63  ;;  %v1789_v7 = vrot.slane %v1398_v63, %v11479_v14 }
 0x1bb   : > { %v6412_v35 = vrot.slane %v6411_v8, 1  ;;  %v6418_v9 = vmax.f32 %v6416_v62, %v6417_v60  ;;  %v6431_v48 = vrot.slane %v6430_v38, 2  ;;  %v2870_v53 = vcombine.high %v1462_v21, %v1462_v21 }
 0x1bc   : > { %v6425_v42 = vmax.f32 %v6423_v26, %v6424_v23  ;;  %v1796_v29 = vrot.slane %v1782_v46, %v11479_v14  ;;  %v1797_v24 = vcombine.high %v1789_v7, %v1789_v7  ;;  %v4559_v40 = vsel %vm4334_vm3, %v1789_v7, -inf  ;;  %v12032_v23 = vpop.f32.mrb[15].mxu1 }
 0x1bd   : > { %v6413_v39 = vmax.f32 %v6411_v8, %v6412_v35  ;;  %v6419_v45 = vrot.slane %v6418_v9, 1  ;;  %v6432_v52 = vmax.f32 %v6430_v38, %v6431_v48  ;;  %v4560_v27 = vrot.slane %v4559_v40, 4 }
 0x1be   : > { %v6426_v16 = vrot.slane %v6425_v42, 1  ;;  %v1798_v34 = vcombine.high %v1796_v29, %v1796_v29  ;;  %v4566_v59 = vsel %vm4334_vm3, %v1797_v24, -inf  ;;  %v4573_v41 = vsel %vm4334_vm3, %v1796_v29, -inf }
 0x1bf   : > { %v6420_v6 = vmax.f32 %v6418_v9, %v6419_v45  ;;  %v6433_v11 = vrot.slane %v6432_v52, 1  ;;  %v12017_v18 = vsel %vm7919_vm4, %v6413_v39, -inf  ;;  %v4561_v36 = vmax.f32 %v4559_v40, %v4560_v27 }
 0x1c0   : > { %v6427_v54 = vmax.f32 %v6425_v42, %v6426_v16  ;;  %v4567_v49 = vrot.slane %v4566_v59, 4  ;;  %v4574_v1 = vrot.slane %v4573_v41, 4  ;;  %v4580_v51 = vsel %vm4334_vm3, %v1798_v34, -inf }
 0x1c1   : > { %v6434_v5 = vmax.f32 %v6432_v52, %v6433_v11  ;;  %v12021_v17 = vsel %vm7919_vm4, %v6420_v6, -inf  ;;  %v4562_v28 = vrot.slane %v4561_v36, 2  ;;  %v4581_v57 = vrot.slane %v4580_v51, 4 }
 0x1c2   : > { %v12024_v56 = vsel %vm7919_vm4, %v6427_v54, -inf  ;;  %v4568_v3 = vmax.f32 %v4566_v59, %v4567_v49  ;;  %v4575_v43 = vmax.f32 %v4573_v41, %v4574_v1  ;;  %v2877_v0 = vrot.slane %v1462_v21, %v11479_v14  ;;  %v14804_v49 = vld [vmem:[#allocation12_spill] sm:$0xff] }
 0x1c3   : > { %v12028_v50 = vsel %vm7919_vm4, %v6434_v5, -inf  ;;  %v4563_v20 = vmax.f32 %v4561_v36, %v4562_v28  ;;  %v4582_v33 = vmax.f32 %v4580_v51, %v4581_v57  ;;  %v2884_v61 = vrot.slane %v2870_v53, %v11479_v14 }
 0x1c4   : > { %v4569_v62 = vrot.slane %v4568_v3, 2  ;;  %v4576_v4 = vrot.slane %v4575_v43, 2  ;;  %v2885_v44 = vcombine.high %v2877_v0, %v2877_v0  ;;  %v6351_v26 = vsel %vm4334_vm3, %v2877_v0, -inf }
 0x1c5   : > { %v4564_v63 = vrot.slane %v4563_v20, 1  ;;  %v4583_v8 = vrot.slane %v4582_v33, 2  ;;  %v2886_v60 = vcombine.high %v2884_v61, %v2884_v61  ;;  %v6352_v38 = vrot.slane %v6351_v26, 4 }
 0x1c6   : > { %v4570_v46 = vmax.f32 %v4568_v3, %v4569_v62  ;;  %v4577_v21 = vmax.f32 %v4575_v43, %v4576_v4  ;;  %v6358_v7 = vsel %vm4334_vm3, %v2885_v44, -inf  ;;  %v6365_v35 = vsel %vm4334_vm3, %v2884_v61, -inf }
 0x1c7   : > { %v4565_v9 = vmax.f32 %v4563_v20, %v4564_v63  ;;  %v4584_v48 = vmax.f32 %v4582_v33, %v4583_v8  ;;  %v6353_v53 = vmax.f32 %v6351_v26, %v6352_v38  ;;  %v6359_v42 = vrot.slane %v6358_v7, 4 }
 0x1c8   : > { %v4571_v29 = vrot.slane %v4570_v46, 1  ;;  %v4578_v24 = vrot.slane %v4577_v21, 1  ;;  %v6366_v40 = vrot.slane %v6365_v35, 4  ;;  %v6372_v39 = vsel %vm4334_vm3, %v2886_v60, -inf }
 0x1c9   : > { %v4585_v45 = vrot.slane %v4584_v48, 1  ;;  %v12038_v52 = vsel %vm7919_vm4, %v4565_v9, -inf  ;;  %v6354_v27 = vrot.slane %v6353_v53, 2  ;;  %v6360_v16 = vmax.f32 %v6358_v7, %v6359_v42 }
 0x1ca   : > { %v4572_v34 = vmax.f32 %v4570_v46, %v4571_v29  ;;  %v4579_v59 = vmax.f32 %v4577_v21, %v4578_v24  ;;  %v6367_v41 = vmax.f32 %v6365_v35, %v6366_v40  ;;  %v6373_v6 = vrot.slane %v6372_v39, 4  ;;  %v12063_v29 = vpop.f32.mrb[16].mxu0 }
 0x1cb   : > { %v4586_v11 = vmax.f32 %v4584_v48, %v4585_v45  ;;  %v6355_v36 = vmax.f32 %v6353_v53, %v6354_v27  ;;  %v6361_v54 = vrot.slane %v6360_v16, 2  ;;  %v923_v1 = vadd.f32 %v11847_v31, %v14804_v49  ;;  %14805 = vst [vmem:[#allocation6_spill] sm:$0xff] %v12063_v29 }
 0x1cc   : > { %v12043_v51 = vsel %vm7919_vm4, %v4572_v34, -inf  ;;  %v12046_v5 = vsel %vm7919_vm4, %v4579_v59, -inf  ;;  %v6368_v28 = vrot.slane %v6367_v41, 2  ;;  %v6374_v57 = vmax.f32 %v6372_v39, %v6373_v6 }
 0x1cd   : > { %v12049_v3 = vsel %vm7919_vm4, %v4586_v11, -inf  ;;  %v6356_v43 = vrot.slane %v6355_v36, 1  ;;  %v6362_v0 = vmax.f32 %v6360_v16, %v6361_v54  ;;  %v1401_v20 = vmax.f32 %v923_v1, 0.0 }
 0x1ce   : > { %v6369_v33 = vmax.f32 %v6367_v41, %v6368_v28  ;;  %v6375_v61 = vrot.slane %v6374_v57, 2  ;;  %v1179_v62 = vadd.f32 %v11847_v31, %v11728_v37  ;;  %v915_v4 = vadd.f32 %v11847_v31, %v11751_v47 }
 0x1cf   : > { %v6357_v44 = vmax.f32 %v6355_v36, %v6356_v43  ;;  %v6363_v26 = vrot.slane %v6362_v0, 1  ;;  %v1833_v63 = vcombine.high %v1401_v20, %v1401_v20  ;;  %v1840_v8 = vrot.slane %v1401_v20, %v11479_v14 }
 0x1d0   : > { %v6370_v60 = vrot.slane %v6369_v33, 1  ;;  %v6376_v38 = vmax.f32 %v6374_v57, %v6375_v61  ;;  %v1465_v46 = vmax.f32 %v1179_v62, 0.0  ;;  %v12056_v21 = vmax.f32 %v915_v4, 0.0 }
 0x1d1   : > { %v6364_v7 = vmax.f32 %v6362_v0, %v6363_v26  ;;  %v12059_v35 = vsel %vm7919_vm4, %v6357_v44, -inf  ;;  %v1847_v9 = vrot.slane %v1833_v63, %v11479_v14  ;;  %v1848_v37 = vcombine.high %v1840_v8, %v1840_v8 }
 0x1d2   : > { %v6371_v48 = vmax.f32 %v6369_v33, %v6370_v60  ;;  %v6377_v53 = vrot.slane %v6376_v38, 1  ;;  %v4643_v47 = vsel %vm4334_vm3, %v1840_v8, -inf  ;;  %v2921_v42 = vcombine.high %v1465_v46, %v1465_v46 }
 0x1d3   : > { %v12066_v24 = vsel %vm7919_vm4, %v6364_v7, -inf  ;;  %v1849_v40 = vcombine.high %v1847_v9, %v1847_v9  ;;  %v4644_v39 = vrot.slane %v4643_v47, 4  ;;  %v4650_v45 = vsel %vm4334_vm3, %v1848_v37, -inf }
 0x1d4   : > { %v6378_v27 = vmax.f32 %v6376_v38, %v6377_v53  ;;  %v12070_v16 = vsel %vm7919_vm4, %v6371_v48, -inf  ;;  %v4651_v34 = vrot.slane %v4650_v45, 4  ;;  %v4657_v59 = vsel %vm4334_vm3, %v1847_v9, -inf }
 0x1d5   : > { %v4645_v41 = vmax.f32 %v4643_v47, %v4644_v39  ;;  %v4658_v6 = vrot.slane %v4657_v59, 4  ;;  %v4664_v11 = vsel %vm4334_vm3, %v1849_v40, -inf  ;;  %v2928_v36 = vrot.slane %v1465_v46, %v11479_v14 }
 0x1d6   : > { %v12076_v54 = vsel %vm7919_vm4, %v6378_v27, -inf  ;;  %v4652_v49 = vmax.f32 %v4650_v45, %v4651_v34  ;;  %v4665_v1 = vrot.slane %v4664_v11, 4  ;;  %v2935_v28 = vrot.slane %v2921_v42, %v11479_v14 }
 0x1d7   : > { %v4646_v57 = vrot.slane %v4645_v41, 2  ;;  %v4659_v43 = vmax.f32 %v4657_v59, %v4658_v6  ;;  %v2936_v0 = vcombine.high %v2928_v36, %v2928_v36  ;;  %v6435_v20 = vsel %vm4334_vm3, %v2928_v36, -inf }
 0x1d8   : > { %v4653_v33 = vrot.slane %v4652_v49, 2  ;;  %v4666_v61 = vmax.f32 %v4664_v11, %v4665_v1  ;;  %v2937_v62 = vcombine.high %v2935_v28, %v2935_v28  ;;  %v6436_v4 = vrot.slane %v6435_v20, 4 }
 0x1d9   : > { %v4647_v44 = vmax.f32 %v4645_v41, %v4646_v57  ;;  %v4660_v26 = vrot.slane %v4659_v43, 2  ;;  %v6442_v63 = vsel %vm4334_vm3, %v2936_v0, -inf  ;;  %v6449_v8 = vsel %vm4334_vm3, %v2935_v28, -inf }
 0x1da   : > { %v4654_v60 = vmax.f32 %v4652_v49, %v4653_v33  ;;  %v4667_v38 = vrot.slane %v4666_v61, 2  ;;  %v6437_v46 = vmax.f32 %v6435_v20, %v6436_v4  ;;  %v6443_v7 = vrot.slane %v6442_v63, 4 }
 0x1db   : > { %v4648_v9 = vrot.slane %v4647_v44, 1  ;;  %v4661_v37 = vmax.f32 %v4659_v43, %v4660_v26  ;;  %v6450_v48 = vrot.slane %v6449_v8, 4  ;;  %v6456_v53 = vsel %vm4334_vm3, %v2937_v62, -inf  ;;  %v12086_v43 = vpop.f32.mrb[16].mxu1 }
 0x1dc   : > { %v4655_v47 = vrot.slane %v4654_v60, 1  ;;  %v4668_v42 = vmax.f32 %v4666_v61, %v4667_v38  ;;  %v6438_v40 = vrot.slane %v6437_v46, 2  ;;  %v6444_v39 = vmax.f32 %v6442_v63, %v6443_v7  ;;  %14806 = vst [vmem:[#allocation7_spill] sm:$0xff] %v12086_v43 }
 0x1dd   : > { %v4649_v45 = vmax.f32 %v4647_v44, %v4648_v9  ;;  %v4662_v27 = vrot.slane %v4661_v37, 1  ;;  %v6451_v34 = vmax.f32 %v6449_v8, %v6450_v48  ;;  %v6457_v59 = vrot.slane %v6456_v53, 4 }
 0x1de   : > { %v4656_v41 = vmax.f32 %v4654_v60, %v4655_v47  ;;  %v4669_v6 = vrot.slane %v4668_v42, 1  ;;  %v6439_v11 = vmax.f32 %v6437_v46, %v6438_v40  ;;  %v6445_v36 = vrot.slane %v6444_v39, 2 }
 0x1df   : > { %v4663_v49 = vmax.f32 %v4661_v37, %v4662_v27  ;;  %v12084_v1 = vsel %vm7919_vm4, %v4649_v45, -inf  ;;  %v6452_v28 = vrot.slane %v6451_v34, 2  ;;  %v6458_v57 = vmax.f32 %v6456_v53, %v6457_v59 }
 0x1e0   : > { %v4670_v0 = vmax.f32 %v4668_v42, %v4669_v6  ;;  %v12089_v20 = vsel %vm7919_vm4, %v4656_v41, -inf  ;;  %v6440_v33 = vrot.slane %v6439_v11, 1  ;;  %v6446_v61 = vmax.f32 %v6444_v39, %v6445_v36 }
 0x1e1   : > { %v12092_v62 = vsel %vm7919_vm4, %v4663_v49, -inf  ;;  %v6453_v4 = vmax.f32 %v6451_v34, %v6452_v28  ;;  %v6459_v44 = vrot.slane %v6458_v57, 2  ;;  %v1799_v26 = vcombine.high %v12056_v21, %v12056_v21 }
 0x1e2   : > { %v12097_v63 = vsel %vm7919_vm4, %v4670_v0, -inf  ;;  %v6441_v8 = vmax.f32 %v6439_v11, %v6440_v33  ;;  %v6447_v60 = vrot.slane %v6446_v61, 1  ;;  %v1806_v38 = vrot.slane %v12056_v21, %v11479_v14 }
 0x1e3   : > { %v6454_v46 = vrot.slane %v6453_v4, 1  ;;  %v6460_v7 = vmax.f32 %v6458_v57, %v6459_v44  ;;  %v1813_v9 = vrot.slane %v1799_v26, %v11479_v14  ;;  %v1171_v37 = vadd.f32 %v11847_v31, %v11783_v30  ;;  %v12121_v44 = vpop.f32.mrb[17].mxu0 }
 0x1e4   : > { %v6448_v48 = vmax.f32 %v6446_v61, %v6447_v60  ;;  %v12105_v53 = vsel %vm7919_vm4, %v6441_v8, -inf  ;;  %v1814_v47 = vcombine.high %v1806_v38, %v1806_v38  ;;  %v4587_v42 = vsel %vm4334_vm3, %v1806_v38, -inf  ;;  %14807 = vst [vmem:[#allocation9_spill] sm:$0xff] %v12121_v44 }
 0x1e5   : > { %v6455_v40 = vmax.f32 %v6453_v4, %v6454_v46  ;;  %v6461_v39 = vrot.slane %v6460_v7, 1  ;;  %v1815_v45 = vcombine.high %v1813_v9, %v1813_v9  ;;  %v4588_v27 = vrot.slane %v4587_v42, 4 }
 0x1e6   : > { %v12109_v21 = vsel %vm7919_vm4, %v6448_v48, -inf  ;;  %v4594_v34 = vsel %vm4334_vm3, %v1814_v47, -inf  ;;  %v4601_v59 = vsel %vm4334_vm3, %v1813_v9, -inf  ;;  %v1463_v41 = vmax.f32 %v1171_v37, 0.0 }
 0x1e7   : > { %v6462_v30 = vmax.f32 %v6460_v7, %v6461_v39  ;;  %v12114_v31 = vsel %vm7919_vm4, %v6455_v40, -inf  ;;  %v4589_v6 = vmax.f32 %v4587_v42, %v4588_v27  ;;  %v4595_v11 = vrot.slane %v4594_v34, 4 }
 0x1e8   : > { %v4602_v36 = vrot.slane %v4601_v59, 4  ;;  %v4608_v49 = vsel %vm4334_vm3, %v1815_v45, -inf  ;;  %v2887_v28 = vcombine.high %v1463_v41, %v1463_v41  ;;  %v2894_v57 = vrot.slane %v1463_v41, %v11479_v14 }
 0x1e9   : > { %v12119_v0 = vsel %vm7919_vm4, %v6462_v30, -inf  ;;  %v4590_v33 = vrot.slane %v4589_v6, 2  ;;  %v4596_v61 = vmax.f32 %v4594_v34, %v4595_v11  ;;  %v4609_v4 = vrot.slane %v4608_v49, 4 }
 0x1ea   : > { %v4603_v26 = vmax.f32 %v4601_v59, %v4602_v36  ;;  %v2901_v8 = vrot.slane %v2887_v28, %v11479_v14  ;;  %v2902_v60 = vcombine.high %v2894_v57, %v2894_v57  ;;  %v6379_v38 = vsel %vm4334_vm3, %v2894_v57, -inf }
 0x1eb   : > { %v4591_v46 = vmax.f32 %v4589_v6, %v4590_v33  ;;  %v4597_v7 = vrot.slane %v4596_v61, 2  ;;  %v4610_v9 = vmax.f32 %v4608_v49, %v4609_v4  ;;  %v6380_v37 = vrot.slane %v6379_v38, 4 }
 0x1ec   : > { %v4604_v48 = vrot.slane %v4603_v26, 2  ;;  %v2903_v47 = vcombine.high %v2901_v8, %v2901_v8  ;;  %v6386_v42 = vsel %vm4334_vm3, %v2902_v60, -inf  ;;  %v6393_v40 = vsel %vm4334_vm3, %v2901_v8, -inf }
 0x1ed   : > { %v4592_v39 = vrot.slane %v4591_v46, 1  ;;  %v4598_v45 = vmax.f32 %v4596_v61, %v4597_v7  ;;  %v4611_v27 = vrot.slane %v4610_v9, 2  ;;  %v6381_v34 = vmax.f32 %v6379_v38, %v6380_v37 }
 0x1ee   : > { %v4605_v59 = vmax.f32 %v4603_v26, %v4604_v48  ;;  %v6387_v41 = vrot.slane %v6386_v42, 4  ;;  %v6394_v30 = vrot.slane %v6393_v40, 4  ;;  %v6400_v11 = vsel %vm4334_vm3, %v2903_v47, -inf  ;;  %v12131_v48 = vpop.f32.mrb[17].mxu1 }
 0x1ef   : > { %v4593_v36 = vmax.f32 %v4591_v46, %v4592_v39  ;;  %v4599_v6 = vrot.slane %v4598_v45, 1  ;;  %v4612_v28 = vmax.f32 %v4610_v9, %v4611_v27  ;;  %v6382_v49 = vrot.slane %v6381_v34, 2  ;;  %14809 = vst [vmem:[#allocation10_spill] sm:$0xff] %v12131_v48 }
 0x1f0   : > { %v4606_v57 = vrot.slane %v4605_v59, 1  ;;  %v6388_v33 = vmax.f32 %v6386_v42, %v6387_v41  ;;  %v6395_v4 = vmax.f32 %v6393_v40, %v6394_v30  ;;  %v6401_v44 = vrot.slane %v6400_v11, 4  ;;  %v12139_v42 = vld [vmem:[%s14780_s2] ss:$0 sm:$0xff] }
 0x1f1   : > { %v4600_v60 = vmax.f32 %v4598_v45, %v4599_v6  ;;  %v4613_v43 = vrot.slane %v4612_v28, 1  ;;  %v12129_v8 = vsel %vm7919_vm4, %v4593_v36, -inf  ;;  %v6383_v61 = vmax.f32 %v6381_v34, %v6382_v49 }
 0x1f2   : > { %14808 = vst [vmem:[#allocation8_spill] sm:$0xff] %v12129_v8  ;;  %v4607_v38 = vmax.f32 %v4605_v59, %v4606_v57  ;;  %v6389_v26 = vrot.slane %v6388_v33, 2  ;;  %v6396_v7 = vrot.slane %v6395_v4, 2  ;;  %v6402_v37 = vmax.f32 %v6400_v11, %v6401_v44 }
 0x1f3   : > { %v4614_v46 = vmax.f32 %v4612_v28, %v4613_v43  ;;  %v12134_v9 = vsel %vm7919_vm4, %v4600_v60, -inf  ;;  %v6384_v47 = vrot.slane %v6383_v61, 1  ;;  %v936_v40 = vadd.f32 %v12139_v42, %v11804_v58 }
 0x1f4   : > { %14810 = vst [vmem:[#allocation2_spill] sm:$0xff] %v12134_v9  ;;  %v12144_v39 = vsel %vm7919_vm4, %v4607_v38, -inf  ;;  %v6390_v45 = vmax.f32 %v6388_v33, %v6389_v26  ;;  %v6397_v44 = vmax.f32 %v6395_v4, %v6396_v7  ;;  %v6403_v27 = vrot.slane %v6402_v37, 2 }
 0x1f5   : > { %14811 = vst [vmem:[#allocation3_spill] sm:$0xff] %v12144_v39  ;;  %v12147_v43 = vsel %vm7919_vm4, %v4614_v46, -inf  ;;  %v6385_v34 = vmax.f32 %v6383_v61, %v6384_v47  ;;  %v1404_v59 = vmax.f32 %v936_v40, 0.0  ;;  %v1192_v41 = vadd.f32 %v12139_v42, %v11825_v12 }
 0x1f6   : > { %14812 = vst [vmem:[#allocation4_spill] sm:$0xff] %v12147_v43  ;;  %v6391_v30 = vrot.slane %v6390_v45, 1  ;;  %v6398_v11 = vrot.slane %v6397_v44, 1  ;;  %v6404_v36 = vmax.f32 %v6402_v37, %v6403_v27  ;;  %v928_v58 = vadd.f32 %v12139_v42, %v11867_v10 }
 0x1f7   : > { %v12154_v6 = vsel %vm7919_vm4, %v6385_v34, -inf  ;;  %v1884_v28 = vcombine.high %v1404_v59, %v1404_v59  ;;  %v1891_v49 = vrot.slane %v1404_v59, %v11479_v14  ;;  %v1468_v57 = vmax.f32 %v1192_v41, 0.0 }
 0x1f8   : > { %14813 = vst [vmem:[#allocation5_spill] sm:$0xff] %v12154_v6  ;;  %v6392_v33 = vmax.f32 %v6390_v45, %v6391_v30  ;;  %v6399_v4 = vmax.f32 %v6397_v44, %v6398_v11  ;;  %v6405_v60 = vrot.slane %v6404_v36, 1  ;;  %v12157_v61 = vmax.f32 %v928_v58, 0.0 }
 0x1f9   : > { %v1898_v12 = vrot.slane %v1884_v28, %v11479_v14  ;;  %v1899_v38 = vcombine.high %v1891_v49, %v1891_v49  ;;  %v4727_v26 = vsel %vm4334_vm3, %v1891_v49, -inf  ;;  %v2972_v7 = vcombine.high %v1468_v57, %v1468_v57  ;;  %v12176_v49 = vpop.f32.mrb[18].mxu0 }
 0x1fa   : > { %v6406_v37 = vmax.f32 %v6404_v36, %v6405_v60  ;;  %v12162_v10 = vsel %vm7919_vm4, %v6392_v33, -inf  ;;  %v12165_v46 = vsel %vm7919_vm4, %v6399_v4, -inf  ;;  %v4728_v47 = vrot.slane %v4727_v26, 4  ;;  %14817 = vst [vmem:[#allocation14_spill] sm:$0xff] %v12176_v49 }
 0x1fb   : > { %14814 = vst [vmem:[#allocation11_spill] sm:$0xff] %v12162_v10  ;;  %14815 = vst [vmem:[#allocation12_spill] sm:$0xff] %v12165_v46  ;;  %v1900_v40 = vcombine.high %v1898_v12, %v1898_v12  ;;  %v4734_v45 = vsel %vm4334_vm3, %v1899_v38, -inf  ;;  %v4741_v44 = vsel %vm4334_vm3, %v1898_v12, -inf  ;;  %v2979_v27 = vrot.slane %v1468_v57, %v11479_v14 }
 0x1fc   : > { %v12171_v34 = vsel %vm7919_vm4, %v6406_v37, -inf  ;;  %v4729_v59 = vmax.f32 %v4727_v26, %v4728_v47  ;;  %v4735_v41 = vrot.slane %v4734_v45, 4  ;;  %v4742_v30 = vrot.slane %v4741_v44, 4 }
 0x1fd   : > { %14816 = vst [vmem:[#allocation13_spill] sm:$0xff] %v12171_v34  ;;  %v4748_v11 = vsel %vm4334_vm3, %v1900_v40, -inf  ;;  %v2986_v36 = vrot.slane %v2972_v7, %v11479_v14  ;;  %v2987_v58 = vcombine.high %v2979_v27, %v2979_v27  ;;  %v6519_v28 = vsel %vm4334_vm3, %v2979_v27, -inf }
 0x1fe   : > { %v4730_v33 = vrot.slane %v4729_v59, 2  ;;  %v4736_v4 = vmax.f32 %v4734_v45, %v4735_v41  ;;  %v4743_v60 = vmax.f32 %v4741_v44, %v4742_v30  ;;  %v4749_v12 = vrot.slane %v4748_v11, 4 }
 0x1ff   : > { %v2988_v57 = vcombine.high %v2986_v36, %v2986_v36  ;;  %v6520_v38 = vrot.slane %v6519_v28, 4  ;;  %v6526_v37 = vsel %vm4334_vm3, %v2987_v58, -inf  ;;  %v6533_v26 = vsel %vm4334_vm3, %v2986_v36, -inf }
 0x200   : > { %v4731_v47 = vmax.f32 %v4729_v59, %v4730_v33  ;;  %v4737_v48 = vrot.slane %v4736_v4, 2  ;;  %v4744_v40 = vrot.slane %v4743_v60, 2  ;;  %v4750_v34 = vmax.f32 %v4748_v11, %v4749_v12  ;;  %v12181_v12 = vpop.f32.mrb[18].mxu1 }
 0x201   : > { %v6521_v7 = vmax.f32 %v6519_v28, %v6520_v38  ;;  %v6527_v46 = vrot.slane %v6526_v37, 4  ;;  %v6534_v10 = vrot.slane %v6533_v26, 4  ;;  %v6540_v27 = vsel %vm4334_vm3, %v2988_v57, -inf }
 0x202   : > { %v4732_v49 = vrot.slane %v4731_v47, 1  ;;  %v4738_v6 = vmax.f32 %v4736_v4, %v4737_v48  ;;  %v4745_v45 = vmax.f32 %v4743_v60, %v4744_v40  ;;  %v4751_v44 = vrot.slane %v4750_v34, 2 }
 0x203   : > { %v6522_v41 = vrot.slane %v6521_v7, 2  ;;  %v6528_v30 = vmax.f32 %v6526_v37, %v6527_v46  ;;  %v6535_v43 = vmax.f32 %v6533_v26, %v6534_v10  ;;  %v6541_v9 = vrot.slane %v6540_v27, 4 }
 0x204   : > { %v4733_v58 = vmax.f32 %v4731_v47, %v4732_v49  ;;  %v4739_v39 = vrot.slane %v4738_v6, 1  ;;  %v4746_v36 = vrot.slane %v4745_v45, 1  ;;  %v4752_v59 = vmax.f32 %v4750_v34, %v4751_v44 }
 0x205   : > { %v6523_v33 = vmax.f32 %v6521_v7, %v6522_v41  ;;  %v6529_v8 = vrot.slane %v6528_v30, 2  ;;  %v6536_v11 = vrot.slane %v6535_v43, 2  ;;  %v6542_v28 = vmax.f32 %v6540_v27, %v6541_v9 }
 0x206   : > { %v4740_v38 = vmax.f32 %v4738_v6, %v4739_v39  ;;  %v4747_v57 = vmax.f32 %v4745_v45, %v4746_v36  ;;  %v4753_v29 = vrot.slane %v4752_v59, 1  ;;  %v7993_v48 = vsel %vm7919_vm4, %v4733_v58, -inf }
 0x207   : > { %v7994_v4 = vmax.f32 %v11997_v22, %v7993_v48  ;;  %v6524_v46 = vrot.slane %v6523_v33, 1  ;;  %v6530_v10 = vmax.f32 %v6528_v30, %v6529_v8  ;;  %v6537_v60 = vmax.f32 %v6535_v43, %v6536_v11 }
 0x208   : > { %v4754_v49 = vmax.f32 %v4752_v59, %v4753_v29  ;;  %v7996_v37 = vsel %vm7919_vm4, %v4740_v38, -inf  ;;  %v7999_v34 = vsel %vm7919_vm4, %v4747_v57, -inf  ;;  %v6543_v26 = vrot.slane %v6542_v28, 2 }
 0x209   : > { %v7997_v9 = vmax.f32 %v12001_v13, %v7996_v37  ;;  %v8000_v47 = vmax.f32 %v12004_v55, %v7999_v34  ;;  %v10774_v39 = vpack.c.bf16 %v7994_v4, %v7994_v4  ;;  %v6525_v6 = vmax.f32 %v6523_v33, %v6524_v46 }
 0x20a   : > { %v8002_v40 = vsel %vm7919_vm4, %v4754_v49, -inf  ;;  %v6531_v7 = vrot.slane %v6530_v10, 1  ;;  %v6538_v27 = vrot.slane %v6537_v60, 1  ;;  %v6544_v22 = vmax.f32 %v6542_v28, %v6543_v26 }
 0x20b   : > { %v8003_v8 = vmax.f32 %v12009_v32, %v8002_v40  ;;  %v10775_v43 = vpack.c.bf16 %v7997_v9, %v7997_v9  ;;  %v10776_v29 = vpack.c.bf16 %v8000_v47, %v8000_v47  ;;  %v9736_v45 = vunpack.c.l.b16 %v10774_v39  ;;  %v12206_v9 = vpop.f32.mrb[19].mxu0 }
 0x20c   : > { %v6532_v44 = vmax.f32 %v6530_v10, %v6531_v7  ;;  %v6539_v41 = vmax.f32 %v6537_v60, %v6538_v27  ;;  %v6545_v30 = vrot.slane %v6544_v22, 1  ;;  %v8377_v58 = vsel %vm7919_vm4, %v6525_v6, -inf }
 0x20d   : > { %v10777_v13 = vpack.c.bf16 %v8003_v8, %v8003_v8  ;;  %v9737_v36 = vunpack.c.l.b16 %v10775_v43  ;;  %v9738_v55 = vunpack.c.l.b16 %v10776_v29  ;;  %v8378_v59 = vmax.f32 %v12017_v18, %v8377_v58 }
 0x20e   : > { %v6546_v33 = vmax.f32 %v6544_v22, %v6545_v30  ;;  %v8380_v11 = vsel %vm7919_vm4, %v6532_v44, -inf  ;;  %v8383_v28 = vsel %vm7919_vm4, %v6539_v41, -inf  ;;  %v1850_v32 = vcombine.high %v12157_v61, %v12157_v61 }
 0x20f   : > { %v9739_v38 = vunpack.c.l.b16 %v10777_v13  ;;  %v9996_v57 = vsel %vm9968_vm5, %v9737_v36, %v9736_v45  ;;  %v8381_v48 = vmax.f32 %v12021_v17, %v8380_v11  ;;  %v8384_v4 = vmax.f32 %v12024_v56, %v8383_v28 }
 0x210   : > { %v9997_v46 = vsel %vm9970_vm6, %v9738_v55, %v9996_v57  ;;  %v8386_v10 = vsel %vm7919_vm4, %v6546_v33, -inf  ;;  %v10902_v18 = vpack.c.bf16 %v8378_v59, %v8378_v59  ;;  %v1857_v60 = vrot.slane %v12157_v61, %v11479_v14  ;;  %v12221_v33 = vpop.f32.mrb[19].mxu1 }
 0x211   : > { %v8387_v49 = vmax.f32 %v12028_v50, %v8386_v10  ;;  %v10903_v37 = vpack.c.bf16 %v8381_v48, %v8381_v48  ;;  %v10904_v34 = vpack.c.bf16 %v8384_v4, %v8384_v4  ;;  %v1864_v26 = vrot.slane %v1850_v32, %v11479_v14 }
 0x212   : > { %v9864_v47 = vunpack.c.l.b16 %v10902_v18  ;;  %v1865_v17 = vcombine.high %v1857_v60, %v1857_v60  ;;  %v4671_v56 = vsel %vm4334_vm3, %v1857_v60, -inf  ;;  %v1184_v39 = vadd.f32 %v12139_v42, %v11912_v19 }
 0x213   : > { %v10905_v6 = vpack.c.bf16 %v8387_v49, %v8387_v49  ;;  %v9865_v40 = vunpack.c.l.b16 %v10903_v37  ;;  %v9866_v7 = vunpack.c.l.b16 %v10904_v34  ;;  %v1866_v27 = vcombine.high %v1864_v26, %v1864_v26 }
 0x214   : > { %v4672_v61 = vrot.slane %v4671_v56, 4  ;;  %v4678_v50 = vsel %vm4334_vm3, %v1865_v17, -inf  ;;  %v4685_v22 = vsel %vm4334_vm3, %v1864_v26, -inf  ;;  %v1466_v8 = vmax.f32 %v1184_v39, 0.0 }
 0x215   : > { %v12213_v43 = vunpack.c.l.b16 %v10905_v6  ;;  %v10108_v29 = vsel %vm9968_vm5, %v9865_v40, %v9864_v47  ;;  %v4679_v45 = vrot.slane %v4678_v50, 4  ;;  %v4686_v44 = vrot.slane %v4685_v22, 4 }
 0x216   : > { %v12217_v41 = vsel %vm9970_vm6, %v9866_v7, %v10108_v29  ;;  %v4673_v19 = vmax.f32 %v4671_v56, %v4672_v61  ;;  %v4692_v30 = vsel %vm4334_vm3, %v1866_v27, -inf  ;;  %v2938_v58 = vcombine.high %v1466_v8, %v1466_v8 }
 0x217   : > { %v4680_v13 = vmax.f32 %v4678_v50, %v4679_v45  ;;  %v4687_v36 = vmax.f32 %v4685_v22, %v4686_v44  ;;  %v4693_v55 = vrot.slane %v4692_v30, 4  ;;  %v2945_v59 = vrot.slane %v1466_v8, %v11479_v14 }
 0x218   : > { %v4674_v11 = vrot.slane %v4673_v19, 2  ;;  %v2952_v28 = vrot.slane %v2938_v58, %v11479_v14  ;;  %v939_v32 = vadd.f32 %v12139_v42, %v11928_v2  ;;  %v12227_v57 = vsel %vm9972_vm7, %v9739_v38, %v9997_v46 }
 0x219   : > { %v4681_v48 = vrot.slane %v4680_v13, 2  ;;  %v4688_v4 = vrot.slane %v4687_v36, 2  ;;  %v4694_v10 = vmax.f32 %v4692_v30, %v4693_v55  ;;  %v2953_v18 = vcombine.high %v2945_v59, %v2945_v59 }
 0x21a   : > { %v4675_v60 = vmax.f32 %v4673_v19, %v4674_v11  ;;  %v2954_v49 = vcombine.high %v2952_v28, %v2952_v28  ;;  %v6463_v37 = vsel %vm4334_vm3, %v2945_v59, -inf  ;;  %v6477_v34 = vsel %vm4334_vm3, %v2952_v28, -inf }
 0x21b   : > { %v4682_v26 = vmax.f32 %v4680_v13, %v4681_v48  ;;  %v4689_v47 = vmax.f32 %v4687_v36, %v4688_v4  ;;  %v4695_v17 = vrot.slane %v4694_v10, 2  ;;  %v6464_v56 = vrot.slane %v6463_v37, 4 }
 0x21c   : > { %v4676_v39 = vrot.slane %v4675_v60, 1  ;;  %v6470_v2 = vsel %vm4334_vm3, %v2953_v18, -inf  ;;  %v6478_v6 = vrot.slane %v6477_v34, 4  ;;  %v6484_v38 = vsel %vm4334_vm3, %v2954_v49, -inf }
 0x21d   : > { %v4683_v46 = vrot.slane %v4682_v26, 1  ;;  %v4690_v40 = vrot.slane %v4689_v47, 1  ;;  %v4696_v7 = vmax.f32 %v4694_v10, %v4695_v17  ;;  %v6465_v27 = vmax.f32 %v6463_v37, %v6464_v56 }
 0x21e   : > { %v4677_v61 = vmax.f32 %v4675_v60, %v4676_v39  ;;  %v6471_v50 = vrot.slane %v6470_v2, 4  ;;  %v6479_v22 = vmax.f32 %v6477_v34, %v6478_v6  ;;  %v6485_v8 = vrot.slane %v6484_v38, 4 }
 0x21f   : > { %v4684_v29 = vmax.f32 %v4682_v26, %v4683_v46  ;;  %v4691_v45 = vmax.f32 %v4689_v47, %v4690_v40  ;;  %v4697_v44 = vrot.slane %v4696_v7, 1  ;;  %v6466_v19 = vrot.slane %v6465_v27, 2 }
 0x220   : > { %v7969_v30 = vsel %vm7919_vm4, %v4677_v61, -inf  ;;  %v6472_v58 = vmax.f32 %v6470_v2, %v6471_v50  ;;  %v6480_v13 = vrot.slane %v6479_v22, 2  ;;  %v6486_v36 = vmax.f32 %v6484_v38, %v6485_v8 }
 0x221   : > { %v4698_v55 = vmax.f32 %v4696_v7, %v4697_v44  ;;  %v7970_v59 = vmax.f32 %v12038_v52, %v7969_v30  ;;  %v7972_v11 = vsel %vm7919_vm4, %v4684_v29, -inf  ;;  %v7975_v28 = vsel %vm7919_vm4, %v4691_v45, -inf  ;;  %v12247_v29 = vpop.f32.mrb[20].mxu0 }
 0x222   : > { %v7973_v48 = vmax.f32 %v12043_v51, %v7972_v11  ;;  %v7976_v4 = vmax.f32 %v12046_v5, %v7975_v28  ;;  %v6467_v10 = vmax.f32 %v6465_v27, %v6466_v19  ;;  %v6473_v18 = vrot.slane %v6472_v58, 2 }
 0x223   : > { %v7978_v60 = vsel %vm7919_vm4, %v4698_v55, -inf  ;;  %v10766_v49 = vpack.c.bf16 %v7970_v59, %v7970_v59  ;;  %v6481_v37 = vmax.f32 %v6479_v22, %v6480_v13  ;;  %v6487_v34 = vrot.slane %v6486_v36, 2 }
 0x224   : > { %v7979_v26 = vmax.f32 %v12049_v3, %v7978_v60  ;;  %v10767_v47 = vpack.c.bf16 %v7973_v48, %v7973_v48  ;;  %v10768_v17 = vpack.c.bf16 %v7976_v4, %v7976_v4  ;;  %v6468_v52 = vrot.slane %v6467_v10, 1 }
 0x225   : > { %v9728_v56 = vunpack.c.l.b16 %v10766_v49  ;;  %v6474_v39 = vmax.f32 %v6472_v58, %v6473_v18  ;;  %v6482_v2 = vrot.slane %v6481_v37, 1  ;;  %v6488_v6 = vmax.f32 %v6486_v36, %v6487_v34 }
 0x226   : > { %v10769_v38 = vpack.c.bf16 %v7979_v26, %v7979_v26  ;;  %v9729_v51 = vunpack.c.l.b16 %v10767_v47  ;;  %v9730_v46 = vunpack.c.l.b16 %v10768_v17  ;;  %v6469_v5 = vmax.f32 %v6467_v10, %v6468_v52 }
 0x227   : > { %v6475_v40 = vrot.slane %v6474_v39, 1  ;;  %v6483_v7 = vmax.f32 %v6481_v37, %v6482_v2  ;;  %v6489_v27 = vrot.slane %v6488_v6, 1  ;;  %v1405_v61 = vmax.f32 %v939_v32, 0.0  ;;  %v12262_v37 = vpop.f32.mrb[20].mxu1 }
 0x228   : > { %v12241_v50 = vunpack.c.l.b16 %v10769_v38  ;;  %v9989_v22 = vsel %vm9968_vm5, %v9729_v51, %v9728_v56  ;;  %v8353_v3 = vsel %vm7919_vm4, %v6469_v5, -inf  ;;  %v1195_v8 = vadd.f32 %v12139_v42, %v11973_v15 }
 0x229   : > { %v12250_v45 = vsel %vm9970_vm6, %v9730_v46, %v9989_v22  ;;  %v6476_v44 = vmax.f32 %v6474_v39, %v6475_v40  ;;  %v6490_v19 = vmax.f32 %v6488_v6, %v6489_v27  ;;  %v8354_v30 = vmax.f32 %v12059_v35, %v8353_v3 }
 0x22a   : > { %v8359_v32 = vsel %vm7919_vm4, %v6483_v7, -inf  ;;  %v1901_v58 = vcombine.high %v1405_v61, %v1405_v61  ;;  %v1908_v13 = vrot.slane %v1405_v61, %v11479_v14  ;;  %v1469_v36 = vmax.f32 %v1195_v8, 0.0 }
 0x22b   : > { %v8356_v55 = vsel %vm7919_vm4, %v6476_v44, -inf  ;;  %v8360_v59 = vmax.f32 %v12070_v16, %v8359_v32  ;;  %v8362_v15 = vsel %vm7919_vm4, %v6490_v19, -inf  ;;  %v10894_v11 = vpack.c.bf16 %v8354_v30, %v8354_v30 }
 0x22c   : > { %v8357_v28 = vmax.f32 %v12066_v24, %v8356_v55  ;;  %v8363_v48 = vmax.f32 %v12076_v54, %v8362_v15  ;;  %v1915_v4 = vrot.slane %v1901_v58, %v11479_v14  ;;  %v1916_v35 = vcombine.high %v1908_v13, %v1908_v13 }
 0x22d   : > { %v10896_v10 = vpack.c.bf16 %v8360_v59, %v8360_v59  ;;  %v9856_v18 = vunpack.c.l.b16 %v10894_v11  ;;  %v4755_v60 = vsel %vm4334_vm3, %v1908_v13, -inf  ;;  %v2989_v49 = vcombine.high %v1469_v36, %v1469_v36 }
 0x22e   : > { %v10895_v34 = vpack.c.bf16 %v8357_v28, %v8357_v28  ;;  %v10897_v26 = vpack.c.bf16 %v8363_v48, %v8363_v48  ;;  %v1917_v16 = vcombine.high %v1915_v4, %v1915_v4  ;;  %v4756_v47 = vrot.slane %v4755_v60, 4 }
 0x22f   : > { %v9858_v17 = vunpack.c.l.b16 %v10896_v10  ;;  %v4762_v52 = vsel %vm4334_vm3, %v1916_v35, -inf  ;;  %v4769_v24 = vsel %vm4334_vm3, %v1915_v4, -inf  ;;  %v2996_v54 = vrot.slane %v1469_v36, %v11479_v14 }
 0x230   : > { %v9857_v56 = vunpack.c.l.b16 %v10895_v34  ;;  %v12267_v39 = vunpack.c.l.b16 %v10897_v26  ;;  %v4757_v2 = vmax.f32 %v4755_v60, %v4756_v47  ;;  %v4763_v6 = vrot.slane %v4762_v52, 4 }
 0x231   : > { %v4770_v38 = vrot.slane %v4769_v24, 4  ;;  %v4776_v51 = vsel %vm4334_vm3, %v1917_v16, -inf  ;;  %v3003_v46 = vrot.slane %v2989_v49, %v11479_v14  ;;  %v3004_v5 = vcombine.high %v2996_v54, %v2996_v54  ;;  %v12279_v16 = vpop.f32.mrb[21].mxu0 }
 0x232   : > { %v10101_v40 = vsel %vm9968_vm5, %v9857_v56, %v9856_v18  ;;  %v4758_v7 = vrot.slane %v4757_v2, 2  ;;  %v4764_v27 = vmax.f32 %v4762_v52, %v4763_v6  ;;  %v4777_v61 = vrot.slane %v4776_v51, 4 }
 0x233   : > { %v12273_v22 = vsel %vm9970_vm6, %v9858_v17, %v10101_v40  ;;  %v4771_v3 = vmax.f32 %v4769_v24, %v4770_v38  ;;  %v3005_v8 = vcombine.high %v3003_v46, %v3003_v46  ;;  %v6547_v44 = vsel %vm4334_vm3, %v2996_v54, -inf }
 0x234   : > { %v4759_v19 = vmax.f32 %v4757_v2, %v4758_v7  ;;  %v4765_v30 = vrot.slane %v4764_v27, 2  ;;  %v4778_v32 = vmax.f32 %v4776_v51, %v4777_v61  ;;  %v6548_v58 = vrot.slane %v6547_v44, 4 }
 0x235   : > { %v4772_v13 = vrot.slane %v4771_v3, 2  ;;  %v6554_v36 = vsel %vm4334_vm3, %v3004_v5, -inf  ;;  %v6561_v55 = vsel %vm4334_vm3, %v3003_v46, -inf  ;;  %v6568_v59 = vsel %vm4334_vm3, %v3005_v8, -inf }
 0x236   : > { %v4760_v15 = vrot.slane %v4759_v19, 1  ;;  %v4766_v11 = vmax.f32 %v4764_v27, %v4765_v30  ;;  %v4779_v28 = vrot.slane %v4778_v32, 2  ;;  %v6549_v48 = vmax.f32 %v6547_v44, %v6548_v58 }
 0x237   : > { %v4773_v4 = vmax.f32 %v4771_v3, %v4772_v13  ;;  %v6555_v35 = vrot.slane %v6554_v36, 4  ;;  %v6562_v10 = vrot.slane %v6561_v55, 4  ;;  %v6569_v18 = vrot.slane %v6568_v59, 4 }
 0x238   : > { %v4761_v60 = vmax.f32 %v4759_v19, %v4760_v15  ;;  %v4767_v49 = vrot.slane %v4766_v11, 1  ;;  %v4780_v34 = vmax.f32 %v4778_v32, %v4779_v28  ;;  %v6550_v26 = vrot.slane %v6549_v48, 2 }
 0x239   : > { %v4774_v47 = vrot.slane %v4773_v4, 1  ;;  %v6556_v17 = vmax.f32 %v6554_v36, %v6555_v35  ;;  %v6563_v52 = vmax.f32 %v6561_v55, %v6562_v10  ;;  %v6570_v24 = vmax.f32 %v6568_v59, %v6569_v18 }
 0x23a   : > { %v4768_v54 = vmax.f32 %v4766_v11, %v4767_v49  ;;  %v4781_v56 = vrot.slane %v4780_v34, 1  ;;  %v8005_v2 = vsel %vm7919_vm4, %v4761_v60, -inf  ;;  %v6551_v6 = vmax.f32 %v6549_v48, %v6550_v26 }
 0x23b   : > { %v4775_v38 = vmax.f32 %v4773_v4, %v4774_v47  ;;  %v8006_v51 = vmax.f32 %v12084_v1, %v8005_v2  ;;  %v6557_v46 = vrot.slane %v6556_v17, 2  ;;  %v6564_v5 = vrot.slane %v6563_v52, 2 }
 0x23c   : > { %v4782_v40 = vmax.f32 %v4780_v34, %v4781_v56  ;;  %v8008_v7 = vsel %vm7919_vm4, %v4768_v54, -inf  ;;  %v6552_v27 = vrot.slane %v6551_v6, 1  ;;  %v6571_v61 = vrot.slane %v6570_v24, 2 }
 0x23d   : > { %v8009_v3 = vmax.f32 %v12089_v20, %v8008_v7  ;;  %v8011_v8 = vsel %vm7919_vm4, %v4775_v38, -inf  ;;  %v10778_v44 = vpack.c.bf16 %v8006_v51, %v8006_v51  ;;  %v6558_v19 = vmax.f32 %v6556_v17, %v6557_v46 }
 0x23e   : > { %v8012_v30 = vmax.f32 %v12092_v62, %v8011_v8  ;;  %v8014_v32 = vsel %vm7919_vm4, %v4782_v40, -inf  ;;  %v6553_v58 = vmax.f32 %v6551_v6, %v6552_v27  ;;  %v6565_v13 = vmax.f32 %v6563_v52, %v6564_v5  ;;  %v12312_v40 = vpop.f32.mrb[21].mxu1 }
 0x23f   : > { %v8015_v1 = vmax.f32 %v12097_v63, %v8014_v32  ;;  %v10779_v36 = vpack.c.bf16 %v8009_v3, %v8009_v3  ;;  %v9740_v55 = vunpack.c.l.b16 %v10778_v44  ;;  %v6559_v59 = vrot.slane %v6558_v19, 1 }
 0x240   : > { %v10780_v15 = vpack.c.bf16 %v8012_v30, %v8012_v30  ;;  %v6566_v11 = vrot.slane %v6565_v13, 1  ;;  %v6572_v28 = vmax.f32 %v6570_v24, %v6571_v61  ;;  %v8389_v20 = vsel %vm7919_vm4, %v6553_v58, -inf }
 0x241   : > { %v10781_v48 = vpack.c.bf16 %v8015_v1, %v8015_v1  ;;  %v9741_v4 = vunpack.c.l.b16 %v10779_v36  ;;  %v9999_v35 = vsel %vm9974_vm8, %v9740_v55, %v12227_v57  ;;  %v6560_v62 = vmax.f32 %v6558_v19, %v6559_v59 }
 0x242   : > { %v9742_v10 = vunpack.c.l.b16 %v10780_v15  ;;  %v6567_v18 = vmax.f32 %v6565_v13, %v6566_v11  ;;  %v6573_v60 = vrot.slane %v6572_v28, 1  ;;  %v8390_v49 = vmax.f32 %v12105_v53, %v8389_v20 }
 0x243   : > { %v9743_v63 = vunpack.c.l.b16 %v10781_v48  ;;  %v10000_v34 = vsel %vm9976_vm9, %v9741_v4, %v9999_v35  ;;  %v8392_v26 = vsel %vm7919_vm4, %v6560_v62, -inf  ;;  %v10110_v47 = vsel %vm9972_vm7, %v12213_v43, %v12217_v41 }
 0x244   : > { %v10001_v17 = vsel %vm9978_vm10, %v9742_v10, %v10000_v34  ;;  %v6574_v52 = vmax.f32 %v6572_v28, %v6573_v60  ;;  %v8393_v57 = vmax.f32 %v12109_v21, %v8392_v26  ;;  %v8395_v24 = vsel %vm7919_vm4, %v6567_v18, -inf }
 0x245   : > { %v10002_v54 = vsel %vm9980_vm11, %v9743_v63, %v10001_v17  ;;  %v8396_v53 = vmax.f32 %v12114_v31, %v8395_v24  ;;  %v10906_v56 = vpack.c.bf16 %v8390_v49, %v8390_v49  ;;  %v931_v2 = vadd.f32 %v12139_v42, %v11986_v25 }
 0x246   : > { %v10202_v6 = vpack.c.b16 %v10002_v54, %v10002_v54  ;;  %v8398_v38 = vsel %vm7919_vm4, %v6574_v52, -inf  ;;  %v10907_v43 = vpack.c.bf16 %v8393_v57, %v8393_v57  ;;  %v12309_v41 = vsel %vm9972_vm7, %v12241_v50, %v12250_v45  ;;  %v14818_v50 = vld [vmem:[#allocation6_spill] sm:$0xff] }
 0x247   : > { %v8399_v21 = vmax.f32 %v12119_v0, %v8398_v38  ;;  %v10908_v51 = vpack.c.bf16 %v8396_v53, %v8396_v53  ;;  %v9868_v46 = vunpack.c.l.b16 %v10906_v56  ;;  %v1403_v5 = vmax.f32 %v931_v2, 0.0 }
 0x248   : > { %10267 = vst.msk [vmem:[%s11900_s4 + $0xc] sm:$0xf] %vm10263_vm12, %v10202_v6  ;;  %v9869_v31 = vunpack.c.l.b16 %v10907_v43  ;;  %v1187_v25 = vadd.f32 %v12139_v42, %v12032_v23  ;;  %v12321_v7 = vsel %vm9972_vm7, %v12267_v39, %v12273_v22  ;;  %v952_v45 = vadd.f32 %v12139_v42, %v14818_v50  ;;  %v14819_v22 = vld [vmem:[#allocation7_spill] sm:$0xff] }
 0x249   : > { %v10909_v0 = vpack.c.bf16 %v8399_v21, %v8399_v21  ;;  %v9870_v27 = vunpack.c.l.b16 %v10908_v51  ;;  %v10111_v61 = vsel %vm9974_vm8, %v9868_v46, %v10110_v47  ;;  %v1867_v3 = vcombine.high %v1403_v5, %v1403_v5 }
 0x24a   : > { %v10112_v8 = vsel %vm9976_vm9, %v9869_v31, %v10111_v61  ;;  %v1874_v44 = vrot.slane %v1403_v5, %v11479_v14  ;;  %v1467_v19 = vmax.f32 %v1187_v25, 0.0  ;;  %v12328_v30 = vmax.f32 %v952_v45, 0.0  ;;  %v12349_v31 = vpop.f32.mrb[22].mxu0 }
 0x24b   : > { %v9871_v23 = vunpack.c.l.b16 %v10909_v0  ;;  %v10113_v32 = vsel %vm9978_vm10, %v9870_v27, %v10112_v8  ;;  %v1881_v39 = vrot.slane %v1867_v3, %v11479_v14  ;;  %v12334_v58 = vadd.f32 %v12139_v42, %v14819_v22 }
 0x24c   : > { %v1882_v13 = vcombine.high %v1874_v44, %v1874_v44  ;;  %v4699_v1 = vsel %vm4334_vm3, %v1874_v44, -inf  ;;  %v2955_v36 = vcombine.high %v1467_v19, %v1467_v19  ;;  %v2962_v55 = vrot.slane %v1467_v19, %v11479_v14 }
 0x24d   : > { %v10114_v59 = vsel %vm9980_vm11, %v9871_v23, %v10113_v32  ;;  %v1883_v15 = vcombine.high %v1881_v39, %v1881_v39  ;;  %v4700_v11 = vrot.slane %v4699_v1, 4  ;;  %v4713_v28 = vsel %vm4334_vm3, %v1881_v39, -inf }
 0x24e   : > { %v10218_v20 = vpack.c.b16 %v10114_v59, %v10114_v59  ;;  %v4706_v48 = vsel %vm4334_vm3, %v1882_v13, -inf  ;;  %v4714_v4 = vrot.slane %v4713_v28, 4  ;;  %v2969_v35 = vrot.slane %v2955_v36, %v11479_v14 }
 0x24f   : > { %v4701_v62 = vmax.f32 %v4699_v1, %v4700_v11  ;;  %v4707_v10 = vrot.slane %v4706_v48, 4  ;;  %v4720_v18 = vsel %vm4334_vm3, %v1883_v15, -inf  ;;  %v2970_v60 = vcombine.high %v2962_v55, %v2962_v55 }
 0x250   : > { %10283 = vst.msk [vmem:[%s11900_s4 + $0x4c] sm:$0xf] %vm10263_vm12, %v10218_v20  ;;  %v4715_v49 = vmax.f32 %v4713_v28, %v4714_v4  ;;  %v4721_v63 = vrot.slane %v4720_v18, 4  ;;  %v2971_v34 = vcombine.high %v2969_v35, %v2969_v35  ;;  %v6491_v26 = vsel %vm4334_vm3, %v2962_v55, -inf  ;;  %v14820_v28 = vld [vmem:[#allocation8_spill] sm:$0xff] }
 0x251   : > { %v4702_v47 = vrot.slane %v4701_v62, 2  ;;  %v4708_v17 = vmax.f32 %v4706_v48, %v4707_v10  ;;  %v6492_v52 = vrot.slane %v6491_v26, 4  ;;  %v6498_v57 = vsel %vm4334_vm3, %v2970_v60, -inf }
 0x252   : > { %v4716_v24 = vrot.slane %v4715_v49, 2  ;;  %v4722_v54 = vmax.f32 %v4720_v18, %v4721_v63  ;;  %v6499_v53 = vrot.slane %v6498_v57, 4  ;;  %v6505_v56 = vsel %vm4334_vm3, %v2969_v35, -inf }
 0x253   : > { %v4703_v2 = vmax.f32 %v4701_v62, %v4702_v47  ;;  %v4709_v6 = vrot.slane %v4708_v17, 2  ;;  %v6493_v38 = vmax.f32 %v6491_v26, %v6492_v52  ;;  %v6506_v43 = vrot.slane %v6505_v56, 4  ;;  %v14821_v62 = vld [vmem:[#allocation3_spill] sm:$0xff] }
 0x254   : > { %v4717_v21 = vmax.f32 %v4715_v49, %v4716_v24  ;;  %v4723_v51 = vrot.slane %v4722_v54, 2  ;;  %v6500_v46 = vmax.f32 %v6498_v57, %v6499_v53  ;;  %v6512_v5 = vsel %vm4334_vm3, %v2971_v34, -inf  ;;  %v14822_v49 = vld [vmem:[#allocation2_spill] sm:$0xff] }
 0x255   : > { %v4704_v25 = vrot.slane %v4703_v2, 1  ;;  %v4710_v50 = vmax.f32 %v4708_v17, %v4709_v6  ;;  %v6494_v45 = vrot.slane %v6493_v38, 2  ;;  %v6507_v0 = vmax.f32 %v6505_v56, %v6506_v43  ;;  %v14823_v17 = vld [vmem:[#allocation4_spill] sm:$0xff] }
 0x256   : > { %v4718_v27 = vrot.slane %v4717_v21, 1  ;;  %v4724_v61 = vmax.f32 %v4722_v54, %v4723_v51  ;;  %v6501_v3 = vrot.slane %v6500_v46, 2  ;;  %v6513_v8 = vrot.slane %v6512_v5, 4  ;;  %v14824_v51 = vld [vmem:[#allocation5_spill] sm:$0xff] }
 0x257   : > { %v4705_v44 = vmax.f32 %v4703_v2, %v4704_v25  ;;  %v4711_v19 = vrot.slane %v4710_v50, 1  ;;  %v6495_v23 = vmax.f32 %v6493_v38, %v6494_v45  ;;  %v6508_v32 = vrot.slane %v6507_v0, 2 }
 0x258   : > { %v4719_v39 = vmax.f32 %v4717_v21, %v4718_v27  ;;  %v4725_v22 = vrot.slane %v4724_v61, 1  ;;  %v6502_v13 = vmax.f32 %v6500_v46, %v6501_v3  ;;  %v6514_v1 = vmax.f32 %v6512_v5, %v6513_v8  ;;  %v14826_v3 = vld [vmem:[#allocation12_spill] sm:$0xff] }
 0x259   : > { %v4712_v36 = vmax.f32 %v4710_v50, %v4711_v19  ;;  %v7981_v55 = vsel %vm7919_vm4, %v4705_v44, -inf  ;;  %v6496_v59 = vrot.slane %v6495_v23, 1  ;;  %v6509_v15 = vmax.f32 %v6507_v0, %v6508_v32  ;;  %v14825_v50 = vld [vmem:[#allocation11_spill] sm:$0xff] }
 0x25a   : > { %v4726_v11 = vmax.f32 %v4724_v61, %v4725_v22  ;;  %v7982_v20 = vmax.f32 %v14820_v28, %v7981_v55  ;;  %v7987_v48 = vsel %vm7919_vm4, %v4719_v39, -inf  ;;  %v6503_v4 = vrot.slane %v6502_v13, 1  ;;  %v12372_v22 = vpop.f32.mrb[22].mxu1 }
 0x25b   : > { %v7984_v35 = vsel %vm7919_vm4, %v4712_v36, -inf  ;;  %v7988_v10 = vmax.f32 %v14821_v62, %v7987_v48  ;;  %v6497_v18 = vmax.f32 %v6495_v23, %v6496_v59  ;;  %v6510_v60 = vrot.slane %v6509_v15, 1 }
 0x25c   : > { %v7985_v63 = vmax.f32 %v14822_v49, %v7984_v35  ;;  %v7990_v34 = vsel %vm7919_vm4, %v4726_v11, -inf  ;;  %v10770_v26 = vpack.c.bf16 %v7982_v20, %v7982_v20  ;;  %v6504_v47 = vmax.f32 %v6502_v13, %v6503_v4  ;;  %v14827_v4 = vld [vmem:[#allocation13_spill] sm:$0xff] }
 0x25d   : > { %v7991_v52 = vmax.f32 %v14823_v17, %v7990_v34  ;;  %v10772_v57 = vpack.c.bf16 %v7988_v10, %v7988_v10  ;;  %v6511_v24 = vmax.f32 %v6509_v15, %v6510_v60  ;;  %v6515_v54 = vrot.slane %v6514_v1, 2 }
 0x25e   : > { %v10771_v53 = vpack.c.bf16 %v7985_v63, %v7985_v63  ;;  %v9732_v56 = vunpack.c.l.b16 %v10770_v26  ;;  %v8365_v2 = vsel %vm7919_vm4, %v6497_v18, -inf  ;;  %v8368_v6 = vsel %vm7919_vm4, %v6504_v47, -inf }
 0x25f   : > { %v10773_v38 = vpack.c.bf16 %v7991_v52, %v7991_v52  ;;  %v9734_v43 = vunpack.c.l.b16 %v10772_v57  ;;  %v6516_v21 = vmax.f32 %v6514_v1, %v6515_v54  ;;  %v8366_v46 = vmax.f32 %v14824_v51, %v8365_v2  ;;  %v14828_v54 = vld [vmem:[#allocation9_spill] sm:$0xff] }
 0x260   : > { %v9733_v5 = vunpack.c.l.b16 %v10771_v53  ;;  %v9992_v25 = vsel %vm9974_vm8, %v9732_v56, %v12309_v41  ;;  %v8369_v45 = vmax.f32 %v14825_v50, %v8368_v6  ;;  %v8371_v0 = vsel %vm7919_vm4, %v6511_v24, -inf }
 0x261   : > { %v9735_v27 = vunpack.c.l.b16 %v10773_v38  ;;  %v6517_v61 = vrot.slane %v6516_v21, 1  ;;  %v8372_v8 = vmax.f32 %v14826_v3, %v8371_v0  ;;  %v10898_v44 = vpack.c.bf16 %v8366_v46, %v8366_v46  ;;  %v14829_v38 = vld [vmem:[#allocation10_spill] sm:$0xff] }
 0x262   : > { %v9993_v19 = vsel %vm9976_vm9, %v9733_v5, %v9992_v25  ;;  %v10899_v23 = vpack.c.bf16 %v8369_v45, %v8369_v45  ;;  %v1952_v32 = vcombine.high %v12328_v30, %v12328_v30  ;;  %v1959_v39 = vrot.slane %v12328_v30, %v11479_v14 }
 0x263   : > { %v9994_v41 = vsel %vm9978_vm10, %v9734_v43, %v9993_v19  ;;  %v6518_v13 = vmax.f32 %v6516_v21, %v6517_v61  ;;  %v10900_v1 = vpack.c.bf16 %v8372_v8, %v8372_v8  ;;  %v9860_v36 = vunpack.c.l.b16 %v10898_v44 }
 0x264   : > { %v9995_v55 = vsel %vm9980_vm11, %v9735_v27, %v9994_v41  ;;  %v9861_v59 = vunpack.c.l.b16 %v10899_v23  ;;  %v1966_v15 = vrot.slane %v1952_v32, %v11479_v14  ;;  %v1967_v11 = vcombine.high %v1959_v39, %v1959_v39  ;;  %v12398_v23 = vpop.f32.mrb[23].mxu0 }
 0x265   : > { %v10201_v28 = vpack.c.b16 %v9995_v55, %v9995_v55  ;;  %v8374_v20 = vsel %vm7919_vm4, %v6518_v13, -inf  ;;  %v9862_v48 = vunpack.c.l.b16 %v10900_v1  ;;  %v10104_v30 = vsel %vm9974_vm8, %v9860_v36, %v12321_v7 }
 0x266   : > { %v8375_v35 = vmax.f32 %v14827_v4, %v8374_v20  ;;  %v10105_v62 = vsel %vm9976_vm9, %v9861_v59, %v10104_v30  ;;  %v1968_v10 = vcombine.high %v1966_v15, %v1966_v15  ;;  %v4839_v18 = vsel %vm4334_vm3, %v1959_v39, -inf }
 0x267   : > { %10266 = vst.msk [vmem:[%s11900_s4 + $0x8] sm:$0xf] %vm10263_vm12, %v10201_v28  ;;  %v10106_v60 = vsel %vm9978_vm10, %v9862_v48, %v10105_v62  ;;  %v4840_v49 = vrot.slane %v4839_v18, 4  ;;  %v4846_v63 = vsel %vm4334_vm3, %v1967_v11, -inf  ;;  %v4853_v34 = vsel %vm4334_vm3, %v1966_v15, -inf }
 0x268   : > { %v10901_v26 = vpack.c.bf16 %v8375_v35, %v8375_v35  ;;  %v4847_v47 = vrot.slane %v4846_v63, 4  ;;  %v4854_v17 = vrot.slane %v4853_v34, 4  ;;  %v4860_v7 = vsel %vm4334_vm3, %v1968_v10, -inf }
 0x269   : > { %v4841_v52 = vmax.f32 %v4839_v18, %v4840_v49  ;;  %v4861_v57 = vrot.slane %v4860_v7, 4  ;;  %v1472_v24 = vmax.f32 %v12334_v58, 0.0  ;;  %v944_v53 = vadd.f32 %v12139_v42, %v14828_v54 }
 0x26a   : > { %v9863_v56 = vunpack.c.l.b16 %v10901_v26  ;;  %v4848_v2 = vmax.f32 %v4846_v63, %v4847_v47  ;;  %v4855_v6 = vmax.f32 %v4853_v34, %v4854_v17  ;;  %v1200_v43 = vadd.f32 %v12139_v42, %v14829_v38  ;;  %v12422_v38 = vld [vmem:[%s14780_s2] ss:$0 sm:$0xff] }
 0x26b   : > { %v4842_v21 = vrot.slane %v4841_v52, 2  ;;  %v4862_v51 = vmax.f32 %v4860_v7, %v4861_v57  ;;  %v3040_v46 = vcombine.high %v1472_v24, %v1472_v24  ;;  %v3047_v5 = vrot.slane %v1472_v24, %v11479_v14 }
 0x26c   : > { %v10107_v25 = vsel %vm9980_vm11, %v9863_v56, %v10106_v60  ;;  %v4849_v50 = vrot.slane %v4848_v2, 2  ;;  %v4856_v45 = vrot.slane %v4855_v6, 2  ;;  %v1406_v58 = vmax.f32 %v944_v53, 0.0 }
 0x26d   : > { %v10217_v0 = vpack.c.b16 %v10107_v25, %v10107_v25  ;;  %v4843_v27 = vmax.f32 %v4841_v52, %v4842_v21  ;;  %v4863_v61 = vrot.slane %v4862_v51, 2  ;;  %v3054_v3 = vrot.slane %v3040_v46, %v11479_v14  ;;  %v14830_v21 = vld [vmem:[#allocation14_spill] sm:$0xff] }
 0x26e   : > { %v4850_v8 = vmax.f32 %v4848_v2, %v4849_v50  ;;  %v4857_v44 = vmax.f32 %v4855_v6, %v4856_v45  ;;  %v3055_v19 = vcombine.high %v3047_v5, %v3047_v5  ;;  %v6631_v42 = vsel %vm4334_vm3, %v3047_v5, -inf }
 0x26f   : > { %10282 = vst.msk [vmem:[%s11900_s4 + $0x48] sm:$0xf] %vm10263_vm12, %v10217_v0  ;;  %v4844_v32 = vrot.slane %v4843_v27, 1  ;;  %v4864_v39 = vmax.f32 %v4862_v51, %v4863_v61  ;;  %v3056_v41 = vcombine.high %v3054_v3, %v3054_v3  ;;  %v6632_v13 = vrot.slane %v6631_v42, 4 }
 0x270   : > { %v4851_v1 = vrot.slane %v4850_v8, 1  ;;  %v4858_v36 = vrot.slane %v4857_v44, 1  ;;  %v6638_v55 = vsel %vm4334_vm3, %v3055_v19, -inf  ;;  %v6645_v59 = vsel %vm4334_vm3, %v3054_v3, -inf }
 0x271   : > { %v4845_v15 = vmax.f32 %v4843_v27, %v4844_v32  ;;  %v4865_v11 = vrot.slane %v4864_v39, 1  ;;  %v6633_v28 = vmax.f32 %v6631_v42, %v6632_v13  ;;  %v6639_v20 = vrot.slane %v6638_v55, 4 }
 0x272   : > { %v4852_v48 = vmax.f32 %v4850_v8, %v4851_v1  ;;  %v4859_v30 = vmax.f32 %v4857_v44, %v4858_v36  ;;  %v6646_v4 = vrot.slane %v6645_v59, 4  ;;  %v6652_v35 = vsel %vm4334_vm3, %v3056_v41, -inf }
 0x273   : > { %v4866_v62 = vmax.f32 %v4864_v39, %v4865_v11  ;;  %v12406_v10 = vsel %vm7919_vm4, %v4845_v15, -inf  ;;  %v6634_v18 = vrot.slane %v6633_v28, 2  ;;  %v6640_v60 = vmax.f32 %v6638_v55, %v6639_v20 }
 0x274   : > { %v12409_v49 = vsel %vm7919_vm4, %v4852_v48, -inf  ;;  %v12412_v63 = vsel %vm7919_vm4, %v4859_v30, -inf  ;;  %v6647_v34 = vmax.f32 %v6645_v59, %v6646_v4  ;;  %v6653_v26 = vrot.slane %v6652_v35, 4 }
 0x275   : > { %v12415_v47 = vsel %vm7919_vm4, %v4866_v62, -inf  ;;  %v6635_v17 = vmax.f32 %v6633_v28, %v6634_v18  ;;  %v6641_v7 = vrot.slane %v6640_v60, 2  ;;  %v1918_v52 = vcombine.high %v1406_v58, %v1406_v58 }
 0x276   : > { %v6648_v57 = vrot.slane %v6647_v34, 2  ;;  %v6654_v24 = vmax.f32 %v6652_v35, %v6653_v26  ;;  %v1925_v54 = vrot.slane %v1406_v58, %v11479_v14  ;;  %v1470_v53 = vmax.f32 %v1200_v43, 0.0 }
 0x277   : > { %v6636_v56 = vrot.slane %v6635_v17, 1  ;;  %v6642_v2 = vmax.f32 %v6640_v60, %v6641_v7  ;;  %v1932_v6 = vrot.slane %v1918_v52, %v11479_v14  ;;  %v955_v51 = vadd.f32 %v12422_v38, %v14830_v21 }
 0x278   : > { %v6649_v46 = vmax.f32 %v6647_v34, %v6648_v57  ;;  %v6655_v5 = vrot.slane %v6654_v24, 2  ;;  %v1933_v25 = vcombine.high %v1925_v54, %v1925_v54  ;;  %v4783_v50 = vsel %vm4334_vm3, %v1925_v54, -inf }
 0x279   : > { %v6637_v45 = vmax.f32 %v6635_v17, %v6636_v56  ;;  %v6643_v58 = vrot.slane %v6642_v2, 1  ;;  %v1934_v43 = vcombine.high %v1932_v6, %v1932_v6  ;;  %v4784_v0 = vrot.slane %v4783_v50, 4  ;;  %v12444_v17 = vpop.f32.mrb[23].mxu1 }
 0x27a   : > { %v6650_v27 = vrot.slane %v6649_v46, 1  ;;  %v6656_v61 = vmax.f32 %v6654_v24, %v6655_v5  ;;  %v4790_v3 = vsel %vm4334_vm3, %v1933_v25, -inf  ;;  %v4797_v8 = vsel %vm4334_vm3, %v1932_v6, -inf }
 0x27b   : > { %v6644_v44 = vmax.f32 %v6642_v2, %v6643_v58  ;;  %v12430_v19 = vsel %vm7919_vm4, %v6637_v45, -inf  ;;  %v4785_v42 = vmax.f32 %v4783_v50, %v4784_v0  ;;  %v4791_v32 = vrot.slane %v4790_v3, 4 }
 0x27c   : > { %v6651_v39 = vmax.f32 %v6649_v46, %v6650_v27  ;;  %v6657_v41 = vrot.slane %v6656_v61, 1  ;;  %v4798_v13 = vrot.slane %v4797_v8, 4  ;;  %v4804_v1 = vsel %vm4334_vm3, %v1934_v43, -inf }
 0x27d   : > { %v12434_v36 = vsel %vm7919_vm4, %v6644_v44, -inf  ;;  %v4786_v55 = vrot.slane %v4785_v42, 2  ;;  %v4792_v59 = vmax.f32 %v4790_v3, %v4791_v32  ;;  %v4805_v15 = vrot.slane %v4804_v1, 4 }
 0x27e   : > { %v6658_v11 = vmax.f32 %v6656_v61, %v6657_v41  ;;  %v12437_v28 = vsel %vm7919_vm4, %v6651_v39, -inf  ;;  %v4799_v20 = vmax.f32 %v4797_v8, %v4798_v13  ;;  %v3006_v48 = vcombine.high %v1470_v53, %v1470_v53 }
 0x27f   : > { %v4787_v30 = vmax.f32 %v4785_v42, %v4786_v55  ;;  %v4793_v4 = vrot.slane %v4792_v59, 2  ;;  %v4806_v35 = vmax.f32 %v4804_v1, %v4805_v15  ;;  %v3013_v62 = vrot.slane %v1470_v53, %v11479_v14 }
 0x280   : > { %v12441_v18 = vsel %vm7919_vm4, %v6658_v11, -inf  ;;  %v4800_v60 = vrot.slane %v4799_v20, 2  ;;  %v3020_v34 = vrot.slane %v3006_v48, %v11479_v14  ;;  %v1409_v26 = vmax.f32 %v955_v51, 0.0 }
 0x281   : > { %v4788_v7 = vrot.slane %v4787_v30, 1  ;;  %v4794_v52 = vmax.f32 %v4792_v59, %v4793_v4  ;;  %v4807_v57 = vrot.slane %v4806_v35, 2  ;;  %v3021_v24 = vcombine.high %v3013_v62, %v3013_v62 }
 0x282   : > { %v4801_v54 = vmax.f32 %v4799_v20, %v4800_v60  ;;  %v3022_v56 = vcombine.high %v3020_v34, %v3020_v34  ;;  %v6575_v2 = vsel %vm4334_vm3, %v3013_v62, -inf  ;;  %v6589_v6 = vsel %vm4334_vm3, %v3020_v34, -inf }
 0x283   : > { %v4789_v53 = vmax.f32 %v4787_v30, %v4788_v7  ;;  %v4795_v21 = vrot.slane %v4794_v52, 1  ;;  %v4808_v46 = vmax.f32 %v4806_v35, %v4807_v57  ;;  %v6576_v5 = vrot.slane %v6575_v2, 4 }
 0x284   : > { %v4802_v25 = vrot.slane %v4801_v54, 1  ;;  %v6582_v50 = vsel %vm4334_vm3, %v3021_v24, -inf  ;;  %v6590_v51 = vrot.slane %v6589_v6, 4  ;;  %v6596_v45 = vsel %vm4334_vm3, %v3022_v56, -inf }
 0x285   : > { %v4796_v58 = vmax.f32 %v4794_v52, %v4795_v21  ;;  %v4809_v43 = vrot.slane %v4808_v46, 1  ;;  %v12451_v0 = vsel %vm7919_vm4, %v4789_v53, -inf  ;;  %v6577_v27 = vmax.f32 %v6575_v2, %v6576_v5 }
 0x286   : > { %v4803_v61 = vmax.f32 %v4801_v54, %v4802_v25  ;;  %v6583_v3 = vrot.slane %v6582_v50, 4  ;;  %v6591_v8 = vmax.f32 %v6589_v6, %v6590_v51  ;;  %v6597_v44 = vrot.slane %v6596_v45, 4  ;;  %v12470_v25 = vpop.f32.mrb[24].mxu0 }
 0x287   : > { %v4810_v42 = vmax.f32 %v4808_v46, %v4809_v43  ;;  %v12454_v32 = vsel %vm7919_vm4, %v4796_v58, -inf  ;;  %v6578_v39 = vrot.slane %v6577_v27, 2  ;;  %v1969_v41 = vcombine.high %v1409_v26, %v1409_v26 }
 0x288   : > { %v12457_v13 = vsel %vm7919_vm4, %v4803_v61, -inf  ;;  %v6584_v1 = vmax.f32 %v6582_v50, %v6583_v3  ;;  %v6592_v55 = vrot.slane %v6591_v8, 2  ;;  %v6598_v59 = vmax.f32 %v6596_v45, %v6597_v44 }
 0x289   : > { %v12460_v15 = vsel %vm7919_vm4, %v4810_v42, -inf  ;;  %v6579_v11 = vmax.f32 %v6577_v27, %v6578_v39  ;;  %v1976_v20 = vrot.slane %v1409_v26, %v11479_v14  ;;  %v1983_v48 = vrot.slane %v1969_v41, %v11479_v14 }
 0x28a   : > { %v6585_v30 = vrot.slane %v6584_v1, 2  ;;  %v6593_v4 = vmax.f32 %v6591_v8, %v6592_v55  ;;  %v6599_v35 = vrot.slane %v6598_v59, 2  ;;  %v1211_v62 = vadd.f32 %v12422_v38, %v12181_v12 }
 0x28b   : > { %v6580_v60 = vrot.slane %v6579_v11, 1  ;;  %v1984_v34 = vcombine.high %v1976_v20, %v1976_v20  ;;  %v1985_v7 = vcombine.high %v1983_v48, %v1983_v48  ;;  %v4867_v52 = vsel %vm4334_vm3, %v1976_v20, -inf }
 0x28c   : > { %v6586_v57 = vmax.f32 %v6584_v1, %v6585_v30  ;;  %v6594_v24 = vrot.slane %v6593_v4, 1  ;;  %v6600_v54 = vmax.f32 %v6598_v59, %v6599_v35  ;;  %v4868_v56 = vrot.slane %v4867_v52, 4 }
 0x28d   : > { %v6581_v2 = vmax.f32 %v6579_v11, %v6580_v60  ;;  %v4874_v26 = vsel %vm4334_vm3, %v1984_v34, -inf  ;;  %v4881_v6 = vsel %vm4334_vm3, %v1983_v48, -inf  ;;  %v4888_v53 = vsel %vm4334_vm3, %v1985_v7, -inf }
 0x28e   : > { %v6587_v21 = vrot.slane %v6586_v57, 1  ;;  %v6595_v46 = vmax.f32 %v6593_v4, %v6594_v24  ;;  %v6601_v5 = vrot.slane %v6600_v54, 1  ;;  %v4869_v12 = vmax.f32 %v4867_v52, %v4868_v56 }
 0x28f   : > { %v12473_v50 = vsel %vm7919_vm4, %v6581_v2, -inf  ;;  %v4875_v51 = vrot.slane %v4874_v26, 4  ;;  %v4882_v45 = vrot.slane %v4881_v6, 4  ;;  %v4889_v58 = vrot.slane %v4888_v53, 4 }
 0x290   : > { %v6588_v43 = vmax.f32 %v6586_v57, %v6587_v21  ;;  %v6602_v27 = vmax.f32 %v6600_v54, %v6601_v5  ;;  %v12476_v61 = vsel %vm7919_vm4, %v6595_v46, -inf  ;;  %v4870_v3 = vrot.slane %v4869_v12, 2 }
 0x291   : > { %v4876_v8 = vmax.f32 %v4874_v26, %v4875_v51  ;;  %v4883_v44 = vmax.f32 %v4881_v6, %v4882_v45  ;;  %v4890_v42 = vmax.f32 %v4888_v53, %v4889_v58  ;;  %v1473_v39 = vmax.f32 %v1211_v62, 0.0 }
 0x292   : > { %v12479_v41 = vsel %vm7919_vm4, %v6588_v43, -inf  ;;  %v12482_v1 = vsel %vm7919_vm4, %v6602_v27, -inf  ;;  %v4871_v55 = vmax.f32 %v4869_v12, %v4870_v3  ;;  %v947_v59 = vadd.f32 %v12422_v38, %v12206_v9 }
 0x293   : > { %v4877_v11 = vrot.slane %v4876_v8, 2  ;;  %v4884_v20 = vrot.slane %v4883_v44, 2  ;;  %v4891_v48 = vrot.slane %v4890_v42, 2  ;;  %v3057_v30 = vcombine.high %v1473_v39, %v1473_v39 }
 0x294   : > { %v4872_v4 = vrot.slane %v4871_v55, 1  ;;  %v3064_v35 = vrot.slane %v1473_v39, %v11479_v14  ;;  %v1407_v60 = vmax.f32 %v947_v59, 0.0  ;;  %v1203_v62 = vadd.f32 %v12422_v38, %v12221_v33 }
 0x295   : > { %v4878_v34 = vmax.f32 %v4876_v8, %v4877_v11  ;;  %v4885_v7 = vmax.f32 %v4883_v44, %v4884_v20  ;;  %v4892_v52 = vmax.f32 %v4890_v42, %v4891_v48  ;;  %v3071_v57 = vrot.slane %v3057_v30, %v11479_v14  ;;  %v12508_v30 = vpop.f32.mrb[24].mxu1 }
 0x296   : > { %v4873_v24 = vmax.f32 %v4871_v55, %v4872_v4  ;;  %v3072_v54 = vcombine.high %v3064_v35, %v3064_v35  ;;  %v6659_v9 = vsel %vm4334_vm3, %v3064_v35, -inf  ;;  %v1935_v56 = vcombine.high %v1407_v60, %v1407_v60  ;;  %14831 = vst [vmem:[#allocation6_spill] sm:$0xff] %v12508_v30 }
 0x297   : > { %v4879_v2 = vrot.slane %v4878_v34, 1  ;;  %v4886_v26 = vrot.slane %v4885_v7, 1  ;;  %v4893_v6 = vrot.slane %v4892_v52, 1  ;;  %v3073_v53 = vcombine.high %v3071_v57, %v3071_v57 }
 0x298   : > { %v12492_v21 = vsel %vm7919_vm4, %v4873_v24, -inf  ;;  %v6660_v46 = vrot.slane %v6659_v9, 4  ;;  %v6666_v33 = vsel %vm4334_vm3, %v3072_v54, -inf  ;;  %v6673_v5 = vsel %vm4334_vm3, %v3071_v57, -inf }
 0x299   : > { %v4880_v12 = vmax.f32 %v4878_v34, %v4879_v2  ;;  %v4887_v51 = vmax.f32 %v4885_v7, %v4886_v26  ;;  %v4894_v45 = vmax.f32 %v4892_v52, %v4893_v6  ;;  %v6667_v58 = vrot.slane %v6666_v33, 4 }
 0x29a   : > { %v6661_v43 = vmax.f32 %v6659_v9, %v6660_v46  ;;  %v6674_v27 = vrot.slane %v6673_v5, 4  ;;  %v6680_v3 = vsel %vm4334_vm3, %v3073_v53, -inf  ;;  %v1942_v8 = vrot.slane %v1407_v60, %v11479_v14 }
 0x29b   : > { %v12499_v44 = vsel %vm7919_vm4, %v4880_v12, -inf  ;;  %v12502_v42 = vsel %vm7919_vm4, %v4887_v51, -inf  ;;  %v12505_v39 = vsel %vm7919_vm4, %v4894_v45, -inf  ;;  %v6668_v55 = vmax.f32 %v6666_v33, %v6667_v58 }
 0x29c   : > { %v6662_v59 = vrot.slane %v6661_v43, 2  ;;  %v6675_v11 = vmax.f32 %v6673_v5, %v6674_v27  ;;  %v6681_v20 = vrot.slane %v6680_v3, 4  ;;  %v1949_v48 = vrot.slane %v1935_v56, %v11479_v14 }
 0x29d   : > { %v6669_v4 = vrot.slane %v6668_v55, 2  ;;  %v1950_v35 = vcombine.high %v1942_v8, %v1942_v8  ;;  %v4811_v60 = vsel %vm4334_vm3, %v1942_v8, -inf  ;;  %v1471_v34 = vmax.f32 %v1203_v62, 0.0 }
 0x29e   : > { %v6663_v7 = vmax.f32 %v6661_v43, %v6662_v59  ;;  %v6676_v52 = vrot.slane %v6675_v11, 2  ;;  %v6682_v57 = vmax.f32 %v6680_v3, %v6681_v20  ;;  %v1951_v24 = vcombine.high %v1949_v48, %v1949_v48 }
 0x29f   : > { %v6670_v54 = vmax.f32 %v6668_v55, %v6669_v4  ;;  %v4812_v9 = vrot.slane %v4811_v60, 4  ;;  %v4818_v2 = vsel %vm4334_vm3, %v1950_v35, -inf  ;;  %v4825_v26 = vsel %vm4334_vm3, %v1949_v48, -inf  ;;  %v12517_v4 = vpop.f32.mrb[25].mxu0 }
 0x2a0   : > { %v6664_v6 = vrot.slane %v6663_v7, 1  ;;  %v6677_v53 = vmax.f32 %v6675_v11, %v6676_v52  ;;  %v6683_v56 = vrot.slane %v6682_v57, 2  ;;  %v4819_v46 = vrot.slane %v4818_v2, 4  ;;  %14832 = vst [vmem:[#allocation7_spill] sm:$0xff] %v12517_v4 }
 0x2a1   : > { %v6671_v33 = vrot.slane %v6670_v54, 1  ;;  %v4813_v5 = vmax.f32 %v4811_v60, %v4812_v9  ;;  %v4826_v12 = vrot.slane %v4825_v26, 4  ;;  %v4832_v51 = vsel %vm4334_vm3, %v1951_v24, -inf }
 0x2a2   : > { %v6665_v62 = vmax.f32 %v6663_v7, %v6664_v6  ;;  %v6678_v45 = vrot.slane %v6677_v53, 1  ;;  %v6684_v58 = vmax.f32 %v6682_v57, %v6683_v56  ;;  %v4820_v43 = vmax.f32 %v4818_v2, %v4819_v46 }
 0x2a3   : > { %v6672_v27 = vmax.f32 %v6670_v54, %v6671_v33  ;;  %v4814_v3 = vrot.slane %v4813_v5, 2  ;;  %v4827_v8 = vmax.f32 %v4825_v26, %v4826_v12  ;;  %v4833_v55 = vrot.slane %v4832_v51, 4 }
 0x2a4   : > { %v6679_v59 = vmax.f32 %v6677_v53, %v6678_v45  ;;  %v6685_v20 = vrot.slane %v6684_v58, 1  ;;  %v12515_v48 = vsel %vm7919_vm4, %v6665_v62, -inf  ;;  %v4821_v11 = vrot.slane %v4820_v43, 2 }
 0x2a5   : > { %v12520_v35 = vsel %vm7919_vm4, %v6672_v27, -inf  ;;  %v4815_v60 = vmax.f32 %v4813_v5, %v4814_v3  ;;  %v4828_v7 = vrot.slane %v4827_v8, 2  ;;  %v4834_v52 = vmax.f32 %v4832_v51, %v4833_v55 }
 0x2a6   : > { %v6686_v57 = vmax.f32 %v6684_v58, %v6685_v20  ;;  %v12523_v24 = vsel %vm7919_vm4, %v6679_v59, -inf  ;;  %v4822_v54 = vmax.f32 %v4820_v43, %v4821_v11  ;;  %v3023_v9 = vcombine.high %v1471_v34, %v1471_v34 }
 0x2a7   : > { %v4816_v2 = vrot.slane %v4815_v60, 1  ;;  %v4829_v26 = vmax.f32 %v4827_v8, %v4828_v7  ;;  %v4835_v6 = vrot.slane %v4834_v52, 2  ;;  %v3030_v53 = vrot.slane %v1471_v34, %v11479_v14 }
 0x2a8   : > { %v12527_v56 = vsel %vm7919_vm4, %v6686_v57, -inf  ;;  %v4823_v46 = vrot.slane %v4822_v54, 1  ;;  %v3037_v33 = vrot.slane %v3023_v9, %v11479_v14  ;;  %v968_v5 = vadd.f32 %v12422_v38, %v12247_v29 }
 0x2a9   : > { %v4817_v12 = vmax.f32 %v4815_v60, %v4816_v2  ;;  %v4830_v51 = vrot.slane %v4829_v26, 1  ;;  %v4836_v62 = vmax.f32 %v4834_v52, %v4835_v6  ;;  %v3038_v45 = vcombine.high %v3030_v53, %v3030_v53 }
 0x2aa   : > { %v4824_v58 = vmax.f32 %v4822_v54, %v4823_v46  ;;  %v3039_v43 = vcombine.high %v3037_v33, %v3037_v33  ;;  %v6603_v27 = vsel %vm4334_vm3, %v3030_v53, -inf  ;;  %v6617_v3 = vsel %vm4334_vm3, %v3037_v33, -inf }
 0x2ab   : > { %v4831_v34 = vmax.f32 %v4829_v26, %v4830_v51  ;;  %v4837_v8 = vrot.slane %v4836_v62, 1  ;;  %v12535_v55 = vsel %vm7919_vm4, %v4817_v12, -inf  ;;  %v6604_v59 = vrot.slane %v6603_v27, 4 }
 0x2ac   : > { %v12538_v20 = vsel %vm7919_vm4, %v4824_v58, -inf  ;;  %v6610_v29 = vsel %vm4334_vm3, %v3038_v45, -inf  ;;  %v6618_v11 = vrot.slane %v6617_v3, 4  ;;  %v6624_v60 = vsel %vm4334_vm3, %v3039_v43, -inf  ;;  %v12553_v43 = vpop.f32.mrb[25].mxu1 }
 0x2ad   : > { %v4838_v7 = vmax.f32 %v4836_v62, %v4837_v8  ;;  %v12543_v52 = vsel %vm7919_vm4, %v4831_v34, -inf  ;;  %v6605_v57 = vmax.f32 %v6603_v27, %v6604_v59  ;;  %v6611_v54 = vrot.slane %v6610_v29, 4  ;;  %14834 = vst [vmem:[#allocation3_spill] sm:$0xff] %v12553_v43 }
 0x2ae   : > { %v6619_v9 = vmax.f32 %v6617_v3, %v6618_v11  ;;  %v6625_v2 = vrot.slane %v6624_v60, 4  ;;  %v1412_v26 = vmax.f32 %v968_v5, 0.0  ;;  %v1224_v6 = vadd.f32 %v12422_v38, %v12262_v37 }
 0x2af   : > { %v12548_v53 = vsel %vm7919_vm4, %v4838_v7, -inf  ;;  %v6606_v46 = vrot.slane %v6605_v57, 2  ;;  %v6612_v33 = vmax.f32 %v6610_v29, %v6611_v54  ;;  %v960_v12 = vadd.f32 %v12422_v38, %v12279_v16 }
 0x2b0   : > { %14833 = vst [vmem:[#allocation8_spill] sm:$0xff] %v12548_v53  ;;  %v6620_v51 = vrot.slane %v6619_v9, 2  ;;  %v6626_v62 = vmax.f32 %v6624_v60, %v6625_v2  ;;  %v2020_v45 = vcombine.high %v1412_v26, %v1412_v26  ;;  %v2027_v58 = vrot.slane %v1412_v26, %v11479_v14 }
 0x2b1   : > { %v6607_v27 = vmax.f32 %v6605_v57, %v6606_v46  ;;  %v6613_v5 = vrot.slane %v6612_v33, 2  ;;  %v1476_v3 = vmax.f32 %v1224_v6, 0.0  ;;  %v12555_v34 = vmax.f32 %v960_v12, 0.0 }
 0x2b2   : > { %v6621_v37 = vmax.f32 %v6619_v9, %v6620_v51  ;;  %v6627_v8 = vrot.slane %v6626_v62, 2  ;;  %v2034_v59 = vrot.slane %v2020_v45, %v11479_v14  ;;  %v2035_v29 = vcombine.high %v2027_v58, %v2027_v58 }
 0x2b3   : > { %v6608_v11 = vrot.slane %v6607_v27, 1  ;;  %v6614_v7 = vmax.f32 %v6612_v33, %v6613_v5  ;;  %v4951_v16 = vsel %vm4334_vm3, %v2027_v58, -inf  ;;  %v3108_v60 = vcombine.high %v1476_v3, %v1476_v3 }
 0x2b4   : > { %v6622_v54 = vrot.slane %v6621_v37, 1  ;;  %v6628_v2 = vmax.f32 %v6626_v62, %v6627_v8  ;;  %v2036_v26 = vcombine.high %v2034_v59, %v2034_v59  ;;  %v4952_v4 = vrot.slane %v4951_v16, 4  ;;  %v12565_v62 = vpop.f32.mrb[26].mxu0 }
 0x2b5   : > { %v6609_v43 = vmax.f32 %v6607_v27, %v6608_v11  ;;  %v6615_v57 = vrot.slane %v6614_v7, 1  ;;  %v4958_v6 = vsel %vm4334_vm3, %v2035_v29, -inf  ;;  %v4965_v46 = vsel %vm4334_vm3, %v2034_v59, -inf  ;;  %14836 = vst [vmem:[#allocation4_spill] sm:$0xff] %v12565_v62 }
 0x2b6   : > { %v6623_v9 = vmax.f32 %v6621_v37, %v6622_v54  ;;  %v6629_v12 = vrot.slane %v6628_v2, 1  ;;  %v4953_v51 = vmax.f32 %v4951_v16, %v4952_v4  ;;  %v4959_v45 = vrot.slane %v4958_v6, 4 }
 0x2b7   : > { %v6616_v30 = vmax.f32 %v6614_v7, %v6615_v57  ;;  %v12562_v33 = vsel %vm7919_vm4, %v6609_v43, -inf  ;;  %v4966_v58 = vrot.slane %v4965_v46, 4  ;;  %v4972_v5 = vsel %vm4334_vm3, %v2036_v26, -inf }
 0x2b8   : > { %14835 = vst [vmem:[#allocation2_spill] sm:$0xff] %v12562_v33  ;;  %v6630_v8 = vmax.f32 %v6628_v2, %v6629_v12  ;;  %v12568_v27 = vsel %vm7919_vm4, %v6623_v9, -inf  ;;  %v4954_v29 = vrot.slane %v4953_v51, 2  ;;  %v4960_v11 = vmax.f32 %v4958_v6, %v4959_v45 }
 0x2b9   : > { %14837 = vst [vmem:[#allocation5_spill] sm:$0xff] %v12568_v27  ;;  %v12571_v37 = vsel %vm7919_vm4, %v6616_v30, -inf  ;;  %v4967_v4 = vmax.f32 %v4965_v46, %v4966_v58  ;;  %v4973_v59 = vrot.slane %v4972_v5, 4  ;;  %v3115_v7 = vrot.slane %v1476_v3, %v11479_v14 }
 0x2ba   : > { %14838 = vst [vmem:[#allocation11_spill] sm:$0xff] %v12571_v37  ;;  %v12575_v43 = vsel %vm7919_vm4, %v6630_v8, -inf  ;;  %v4955_v16 = vmax.f32 %v4953_v51, %v4954_v29  ;;  %v4961_v54 = vrot.slane %v4960_v11, 2  ;;  %v3122_v26 = vrot.slane %v3108_v60, %v11479_v14 }
 0x2bb   : > { %14839 = vst [vmem:[#allocation12_spill] sm:$0xff] %v12575_v43  ;;  %v4968_v2 = vrot.slane %v4967_v4, 2  ;;  %v4974_v57 = vmax.f32 %v4972_v5, %v4973_v59  ;;  %v3123_v9 = vcombine.high %v3115_v7, %v3115_v7  ;;  %v6743_v12 = vsel %vm4334_vm3, %v3115_v7, -inf }
 0x2bc   : > { %v4956_v6 = vrot.slane %v4955_v16, 1  ;;  %v4962_v45 = vmax.f32 %v4960_v11, %v4961_v54  ;;  %v3124_v30 = vcombine.high %v3122_v26, %v3122_v26  ;;  %v6744_v62 = vrot.slane %v6743_v12, 4 }
 0x2bd   : > { %v4969_v46 = vmax.f32 %v4967_v4, %v4968_v2  ;;  %v4975_v58 = vrot.slane %v4974_v57, 2  ;;  %v6750_v3 = vsel %vm4334_vm3, %v3123_v9, -inf  ;;  %v6757_v8 = vsel %vm4334_vm3, %v3122_v26, -inf }
 0x2be   : > { %v4957_v43 = vmax.f32 %v4955_v16, %v4956_v6  ;;  %v4963_v51 = vrot.slane %v4962_v45, 1  ;;  %v6745_v29 = vmax.f32 %v6743_v12, %v6744_v62  ;;  %v6751_v27 = vrot.slane %v6750_v3, 4 }
 0x2bf   : > { %v4970_v60 = vrot.slane %v4969_v46, 1  ;;  %v4976_v37 = vmax.f32 %v4974_v57, %v4975_v58  ;;  %v6758_v5 = vrot.slane %v6757_v8, 4  ;;  %v6764_v59 = vsel %vm4334_vm3, %v3124_v30, -inf  ;;  %v12587_v58 = vpop.f32.mrb[26].mxu1 }
 0x2c0   : > { %v4964_v7 = vmax.f32 %v4962_v45, %v4963_v51  ;;  %v8041_v11 = vsel %vm7919_vm4, %v4957_v43, -inf  ;;  %v6746_v54 = vrot.slane %v6745_v29, 2  ;;  %v6752_v33 = vmax.f32 %v6750_v3, %v6751_v27 }
 0x2c1   : > { %v4971_v4 = vmax.f32 %v4969_v46, %v4970_v60  ;;  %v4977_v2 = vrot.slane %v4976_v37, 1  ;;  %v8042_v9 = vmax.f32 %v12406_v10, %v8041_v11  ;;  %v6759_v53 = vmax.f32 %v6757_v8, %v6758_v5 }
 0x2c2   : > { %v8044_v16 = vsel %vm7919_vm4, %v4964_v7, -inf  ;;  %v6747_v26 = vmax.f32 %v6745_v29, %v6746_v54  ;;  %v6753_v62 = vrot.slane %v6752_v33, 2  ;;  %v6765_v12 = vrot.slane %v6764_v59, 4 }
 0x2c3   : > { %v4978_v6 = vmax.f32 %v4976_v37, %v4977_v2  ;;  %v8045_v57 = vmax.f32 %v12409_v49, %v8044_v16  ;;  %v8047_v30 = vsel %vm7919_vm4, %v4971_v4, -inf  ;;  %v10790_v45 = vpack.c.bf16 %v8042_v9, %v8042_v9 }
 0x2c4   : > { %v8048_v27 = vmax.f32 %v12412_v63, %v8047_v30  ;;  %v6748_v43 = vrot.slane %v6747_v26, 1  ;;  %v6754_v46 = vmax.f32 %v6752_v33, %v6753_v62  ;;  %v6760_v3 = vrot.slane %v6759_v53, 2 }
 0x2c5   : > { %v8050_v10 = vsel %vm7919_vm4, %v4978_v6, -inf  ;;  %v10791_v8 = vpack.c.bf16 %v8045_v57, %v8045_v57  ;;  %v9752_v51 = vunpack.c.l.b16 %v10790_v45  ;;  %v6766_v29 = vmax.f32 %v6764_v59, %v6765_v12  ;;  %v12605_v57 = vpop.f32.mrb[27].mxu0 }
 0x2c6   : > { %v8051_v60 = vmax.f32 %v12415_v47, %v8050_v10  ;;  %v10792_v37 = vpack.c.bf16 %v8048_v27, %v8048_v27  ;;  %v6749_v5 = vmax.f32 %v6747_v26, %v6748_v43  ;;  %v6755_v49 = vrot.slane %v6754_v46, 1 }
 0x2c7   : > { %v9753_v7 = vunpack.c.l.b16 %v10791_v8  ;;  %v6761_v11 = vmax.f32 %v6759_v53, %v6760_v3  ;;  %v6767_v54 = vrot.slane %v6766_v29, 2  ;;  %v1986_v4 = vcombine.high %v12555_v34, %v12555_v34 }
 0x2c8   : > { %v10793_v63 = vpack.c.bf16 %v8051_v60, %v8051_v60  ;;  %v9754_v2 = vunpack.c.l.b16 %v10792_v37  ;;  %v6756_v33 = vmax.f32 %v6754_v46, %v6755_v49  ;;  %v8425_v9 = vsel %vm7919_vm4, %v6749_v5, -inf }
 0x2c9   : > { %v10010_v16 = vsel %vm9968_vm5, %v9753_v7, %v9752_v51  ;;  %v6762_v62 = vrot.slane %v6761_v11, 1  ;;  %v6768_v59 = vmax.f32 %v6766_v29, %v6767_v54  ;;  %v8426_v47 = vmax.f32 %v12430_v19, %v8425_v9 }
 0x2ca   : > { %v12597_v12 = vunpack.c.l.b16 %v10793_v63  ;;  %v12600_v26 = vsel %vm9970_vm6, %v9754_v2, %v10010_v16  ;;  %v8428_v53 = vsel %vm7919_vm4, %v6756_v33, -inf  ;;  %v1993_v6 = vrot.slane %v12555_v34, %v11479_v14 }
 0x2cb   : > { %v6763_v30 = vmax.f32 %v6761_v11, %v6762_v62  ;;  %v6769_v45 = vrot.slane %v6768_v59, 1  ;;  %v8429_v27 = vmax.f32 %v12434_v36, %v8428_v53  ;;  %v10918_v43 = vpack.c.bf16 %v8426_v47, %v8426_v47 }
 0x2cc   : > { %v2000_v46 = vrot.slane %v1986_v4, %v11479_v14  ;;  %v2001_v19 = vcombine.high %v1993_v6, %v1993_v6  ;;  %v4895_v3 = vsel %vm4334_vm3, %v1993_v6, -inf  ;;  %v1216_v10 = vadd.f32 %v12422_v38, %v12312_v40 }
 0x2cd   : > { %v6770_v8 = vmax.f32 %v6768_v59, %v6769_v45  ;;  %v8431_v51 = vsel %vm7919_vm4, %v6763_v30, -inf  ;;  %v10919_v29 = vpack.c.bf16 %v8429_v27, %v8429_v27  ;;  %v9880_v34 = vunpack.c.l.b16 %v10918_v43 }
 0x2ce   : > { %v8432_v60 = vmax.f32 %v12437_v28, %v8431_v51  ;;  %v2002_v37 = vcombine.high %v2000_v46, %v2000_v46  ;;  %v4896_v5 = vrot.slane %v4895_v3, 4  ;;  %v4902_v36 = vsel %vm4334_vm3, %v2001_v19, -inf }
 0x2cf   : > { %v8434_v49 = vsel %vm7919_vm4, %v6770_v8, -inf  ;;  %v9881_v7 = vunpack.c.l.b16 %v10919_v29  ;;  %v4903_v11 = vrot.slane %v4902_v36, 4  ;;  %v4909_v54 = vsel %vm4334_vm3, %v2000_v46, -inf }
 0x2d0   : > { %v8435_v4 = vmax.f32 %v12441_v18, %v8434_v49  ;;  %v10920_v40 = vpack.c.bf16 %v8432_v60, %v8432_v60  ;;  %v4897_v63 = vmax.f32 %v4895_v3, %v4896_v5  ;;  %v4910_v2 = vrot.slane %v4909_v54, 4  ;;  %v12630_v5 = vpop.f32.mrb[27].mxu1 }
 0x2d1   : > { %v10122_v33 = vsel %vm9968_vm5, %v9881_v7, %v9880_v34  ;;  %v4904_v9 = vmax.f32 %v4902_v36, %v4903_v11  ;;  %v4916_v28 = vsel %vm4334_vm3, %v2002_v37, -inf  ;;  %v1474_v16 = vmax.f32 %v1216_v10, 0.0 }
 0x2d2   : > { %v10921_v62 = vpack.c.bf16 %v8435_v4, %v8435_v4  ;;  %v9882_v59 = vunpack.c.l.b16 %v10920_v40  ;;  %v4898_v47 = vrot.slane %v4897_v63, 2  ;;  %v4911_v53 = vmax.f32 %v4909_v54, %v4910_v2 }
 0x2d3   : > { %v4905_v6 = vrot.slane %v4904_v9, 2  ;;  %v4917_v30 = vrot.slane %v4916_v28, 4  ;;  %v3074_v45 = vcombine.high %v1474_v16, %v1474_v16  ;;  %v3081_v27 = vrot.slane %v1474_v16, %v11479_v14 }
 0x2d4   : > { %v12621_v43 = vunpack.c.l.b16 %v10921_v62  ;;  %v12624_v18 = vsel %vm9970_vm6, %v9882_v59, %v10122_v33  ;;  %v4899_v46 = vmax.f32 %v4897_v63, %v4898_v47  ;;  %v4912_v19 = vrot.slane %v4911_v53, 2 }
 0x2d5   : > { %v4906_v3 = vmax.f32 %v4904_v9, %v4905_v6  ;;  %v4918_v8 = vmax.f32 %v4916_v28, %v4917_v30  ;;  %v3088_v10 = vrot.slane %v3074_v45, %v11479_v14  ;;  %v3089_v51 = vcombine.high %v3081_v27, %v3081_v27 }
 0x2d6   : > { %v4900_v29 = vrot.slane %v4899_v46, 1  ;;  %v4913_v34 = vmax.f32 %v4911_v53, %v4912_v19  ;;  %v6687_v60 = vsel %vm4334_vm3, %v3081_v27, -inf  ;;  %v971_v37 = vadd.f32 %v12422_v38, %v12349_v31 }
 0x2d7   : > { %v4907_v36 = vrot.slane %v4906_v3, 1  ;;  %v4919_v49 = vrot.slane %v4918_v8, 2  ;;  %v3090_v7 = vcombine.high %v3088_v10, %v3088_v10  ;;  %v6688_v11 = vrot.slane %v6687_v60, 4 }
 0x2d8   : > { %v4901_v54 = vmax.f32 %v4899_v46, %v4900_v29  ;;  %v4914_v4 = vrot.slane %v4913_v34, 1  ;;  %v6694_v40 = vsel %vm4334_vm3, %v3089_v51, -inf  ;;  %v6701_v63 = vsel %vm4334_vm3, %v3088_v10, -inf }
 0x2d9   : > { %v4908_v2 = vmax.f32 %v4906_v3, %v4907_v36  ;;  %v4920_v33 = vmax.f32 %v4918_v8, %v4919_v49  ;;  %v6689_v9 = vmax.f32 %v6687_v60, %v6688_v11  ;;  %v6695_v28 = vrot.slane %v6694_v40, 4 }
 0x2da   : > { %v4915_v16 = vmax.f32 %v4913_v34, %v4914_v4  ;;  %v8017_v62 = vsel %vm7919_vm4, %v4901_v54, -inf  ;;  %v6702_v31 = vrot.slane %v6701_v63, 4  ;;  %v6708_v59 = vsel %vm4334_vm3, %v3090_v7, -inf }
 0x2db   : > { %v4921_v47 = vrot.slane %v4920_v33, 1  ;;  %v8018_v53 = vmax.f32 %v12451_v0, %v8017_v62  ;;  %v8020_v6 = vsel %vm7919_vm4, %v4908_v2, -inf  ;;  %v6690_v30 = vrot.slane %v6689_v9, 2 }
 0x2dc   : > { %v8021_v45 = vmax.f32 %v12454_v32, %v8020_v6  ;;  %v8023_v27 = vsel %vm7919_vm4, %v4915_v16, -inf  ;;  %v6696_v46 = vmax.f32 %v6694_v40, %v6695_v28  ;;  %v6703_v19 = vmax.f32 %v6701_v63, %v6702_v31  ;;  %v12644_v31 = vpop.f32.mrb[28].mxu0 }
 0x2dd   : > { %v4922_v3 = vmax.f32 %v4920_v33, %v4921_v47  ;;  %v8024_v8 = vmax.f32 %v12457_v13, %v8023_v27  ;;  %v10782_v10 = vpack.c.bf16 %v8018_v53, %v8018_v53  ;;  %v6691_v51 = vmax.f32 %v6689_v9, %v6690_v30 }
 0x2de   : > { %v10783_v29 = vpack.c.bf16 %v8021_v45, %v8021_v45  ;;  %v6697_v34 = vrot.slane %v6696_v46, 2  ;;  %v6704_v60 = vrot.slane %v6703_v19, 2  ;;  %v6709_v36 = vrot.slane %v6708_v59, 4 }
 0x2df   : > { %v8026_v0 = vsel %vm7919_vm4, %v4922_v3, -inf  ;;  %v10784_v49 = vpack.c.bf16 %v8024_v8, %v8024_v8  ;;  %v9744_v7 = vunpack.c.l.b16 %v10782_v10  ;;  %v6692_v11 = vrot.slane %v6691_v51, 1 }
 0x2e0   : > { %v8027_v32 = vmax.f32 %v12460_v15, %v8026_v0  ;;  %v9745_v54 = vunpack.c.l.b16 %v10783_v29  ;;  %v6698_v4 = vmax.f32 %v6696_v46, %v6697_v34  ;;  %v6705_v40 = vmax.f32 %v6703_v19, %v6704_v60 }
 0x2e1   : > { %v9746_v63 = vunpack.c.l.b16 %v10784_v49  ;;  %v6693_v2 = vmax.f32 %v6691_v51, %v6692_v11  ;;  %v6710_v33 = vmax.f32 %v6708_v59, %v6709_v36  ;;  %v1413_v13 = vmax.f32 %v971_v37, 0.0 }
 0x2e2   : > { %v10785_v28 = vpack.c.bf16 %v8027_v32, %v8027_v32  ;;  %v10003_v9 = vsel %vm9968_vm5, %v9745_v54, %v9744_v7  ;;  %v6699_v16 = vrot.slane %v6698_v4, 1  ;;  %v6706_v62 = vrot.slane %v6705_v40, 1 }
 0x2e3   : > { %v12647_v47 = vsel %vm9970_vm6, %v9746_v63, %v10003_v9  ;;  %v6711_v53 = vrot.slane %v6710_v33, 2  ;;  %v8401_v15 = vsel %vm7919_vm4, %v6693_v2, -inf  ;;  %v2037_v6 = vcombine.high %v1413_v13, %v1413_v13 }
 0x2e4   : > { %v12650_v30 = vunpack.c.l.b16 %v10785_v28  ;;  %v6700_v45 = vmax.f32 %v6698_v4, %v6699_v16  ;;  %v6707_v27 = vmax.f32 %v6705_v40, %v6706_v62  ;;  %v8402_v37 = vmax.f32 %v12473_v50, %v8401_v15  ;;  %v12668_v4 = vpop.f32.mrb[28].mxu1 }
 0x2e5   : > { %v6712_v59 = vmax.f32 %v6710_v33, %v6711_v53  ;;  %v2044_v46 = vrot.slane %v1413_v13, %v11479_v14  ;;  %v2051_v19 = vrot.slane %v2037_v6, %v11479_v14  ;;  %v12658_v3 = vsel %vm9972_vm7, %v12597_v12, %v12600_v26 }
 0x2e6   : > { %v8404_v8 = vsel %vm7919_vm4, %v6700_v45, -inf  ;;  %v8407_v10 = vsel %vm7919_vm4, %v6707_v27, -inf  ;;  %v10910_v51 = vpack.c.bf16 %v8402_v37, %v8402_v37  ;;  %v1227_v29 = vadd.f32 %v12422_v38, %v12372_v22 }
 0x2e7   : > { %v6713_v34 = vrot.slane %v6712_v59, 1  ;;  %v8405_v50 = vmax.f32 %v12479_v41, %v8404_v8  ;;  %v8408_v60 = vmax.f32 %v12476_v61, %v8407_v10  ;;  %v2052_v36 = vcombine.high %v2044_v46, %v2044_v46 }
 0x2e8   : > { %v9872_v0 = vunpack.c.l.b16 %v10910_v51  ;;  %v2053_v49 = vcombine.high %v2051_v19, %v2051_v19  ;;  %v4979_v7 = vsel %vm4334_vm3, %v2044_v46, -inf  ;;  %v4993_v12 = vsel %vm4334_vm3, %v2051_v19, -inf }
 0x2e9   : > { %v6714_v26 = vmax.f32 %v6712_v59, %v6713_v34  ;;  %v10911_v11 = vpack.c.bf16 %v8405_v50, %v8405_v50  ;;  %v10912_v32 = vpack.c.bf16 %v8408_v60, %v8408_v60  ;;  %v4980_v54 = vrot.slane %v4979_v7, 4 }
 0x2ea   : > { %v4986_v22 = vsel %vm4334_vm3, %v2052_v36, -inf  ;;  %v4994_v38 = vrot.slane %v4993_v12, 4  ;;  %v5000_v41 = vsel %vm4334_vm3, %v2053_v49, -inf  ;;  %v1477_v40 = vmax.f32 %v1227_v29, 0.0 }
 0x2eb   : > { %v8410_v61 = vsel %vm7919_vm4, %v6714_v26, -inf  ;;  %v9873_v63 = vunpack.c.l.b16 %v10911_v11  ;;  %v9874_v2 = vunpack.c.l.b16 %v10912_v32  ;;  %v4981_v33 = vmax.f32 %v4979_v7, %v4980_v54 }
 0x2ec   : > { %v8411_v13 = vmax.f32 %v12482_v1, %v8410_v61  ;;  %v4987_v28 = vrot.slane %v4986_v22, 4  ;;  %v4995_v9 = vmax.f32 %v4993_v12, %v4994_v38  ;;  %v5001_v16 = vrot.slane %v5000_v41, 4 }
 0x2ed   : > { %v10115_v62 = vsel %vm9968_vm5, %v9873_v63, %v9872_v0  ;;  %v4982_v53 = vrot.slane %v4981_v33, 2  ;;  %v3125_v15 = vcombine.high %v1477_v40, %v1477_v40  ;;  %v3132_v6 = vrot.slane %v1477_v40, %v11479_v14 }
 0x2ee   : > { %v10913_v45 = vpack.c.bf16 %v8411_v13, %v8411_v13  ;;  %v12677_v27 = vsel %vm9970_vm6, %v9874_v2, %v10115_v62  ;;  %v4988_v37 = vmax.f32 %v4986_v22, %v4987_v28  ;;  %v4996_v59 = vrot.slane %v4995_v9, 2 }
 0x2ef   : > { %v4983_v46 = vmax.f32 %v4981_v33, %v4982_v53  ;;  %v5002_v19 = vmax.f32 %v5000_v41, %v5001_v16  ;;  %v3139_v8 = vrot.slane %v3125_v15, %v11479_v14  ;;  %v3140_v1 = vcombine.high %v3132_v6, %v3132_v6 }
 0x2f0   : > { %v12680_v10 = vunpack.c.l.b16 %v10913_v45  ;;  %v4989_v51 = vrot.slane %v4988_v37, 2  ;;  %v4997_v29 = vmax.f32 %v4995_v9, %v4996_v59  ;;  %v6771_v34 = vsel %vm4334_vm3, %v3132_v6, -inf }
 0x2f1   : > { %v4984_v50 = vrot.slane %v4983_v46, 1  ;;  %v5003_v60 = vrot.slane %v5002_v19, 2  ;;  %v3141_v36 = vcombine.high %v3139_v8, %v3139_v8  ;;  %v6772_v0 = vrot.slane %v6771_v34, 4 }
 0x2f2   : > { %v4990_v49 = vmax.f32 %v4988_v37, %v4989_v51  ;;  %v4998_v7 = vrot.slane %v4997_v29, 1  ;;  %v6778_v12 = vsel %vm4334_vm3, %v3140_v1, -inf  ;;  %v6785_v26 = vsel %vm4334_vm3, %v3139_v8, -inf  ;;  %v12690_v37 = vpop.f32.mrb[29].mxu0 }
 0x2f3   : > { %v4985_v11 = vmax.f32 %v4983_v46, %v4984_v50  ;;  %v5004_v32 = vmax.f32 %v5002_v19, %v5003_v60  ;;  %v6773_v54 = vmax.f32 %v6771_v34, %v6772_v0  ;;  %v6779_v22 = vrot.slane %v6778_v12, 4 }
 0x2f4   : > { %v4991_v38 = vrot.slane %v4990_v49, 1  ;;  %v4999_v41 = vmax.f32 %v4997_v29, %v4998_v7  ;;  %v6786_v40 = vrot.slane %v6785_v26, 4  ;;  %v6792_v61 = vsel %vm4334_vm3, %v3141_v36, -inf }
 0x2f5   : > { %v5005_v63 = vrot.slane %v5004_v32, 1  ;;  %v8053_v2 = vsel %vm7919_vm4, %v4985_v11, -inf  ;;  %v6774_v33 = vrot.slane %v6773_v54, 2  ;;  %v6780_v13 = vmax.f32 %v6778_v12, %v6779_v22 }
 0x2f6   : > { %v4992_v28 = vmax.f32 %v4990_v49, %v4991_v38  ;;  %v8054_v9 = vmax.f32 %v12492_v21, %v8053_v2  ;;  %v8059_v16 = vsel %vm7919_vm4, %v4999_v41, -inf  ;;  %v6787_v62 = vmax.f32 %v6785_v26, %v6786_v40 }
 0x2f7   : > { %v5006_v53 = vmax.f32 %v5004_v32, %v5005_v63  ;;  %v8060_v15 = vmax.f32 %v12502_v42, %v8059_v16  ;;  %v6775_v6 = vmax.f32 %v6773_v54, %v6774_v33  ;;  %v6781_v45 = vrot.slane %v6780_v13, 2 }
 0x2f8   : > { %v8056_v59 = vsel %vm7919_vm4, %v4992_v28, -inf  ;;  %v10794_v46 = vpack.c.bf16 %v8054_v9, %v8054_v9  ;;  %v6788_v19 = vrot.slane %v6787_v62, 2  ;;  %v6793_v8 = vrot.slane %v6792_v61, 4 }
 0x2f9   : > { %v8057_v1 = vmax.f32 %v12499_v44, %v8056_v59  ;;  %v8062_v51 = vsel %vm7919_vm4, %v5006_v53, -inf  ;;  %v10796_v21 = vpack.c.bf16 %v8060_v15, %v8060_v15  ;;  %v6776_v29 = vrot.slane %v6775_v6, 1 }
 0x2fa   : > { %v8063_v34 = vmax.f32 %v12505_v39, %v8062_v51  ;;  %v9756_v50 = vunpack.c.l.b16 %v10794_v46  ;;  %v6782_v60 = vmax.f32 %v6780_v13, %v6781_v45  ;;  %v6789_v42 = vmax.f32 %v6787_v62, %v6788_v19 }
 0x2fb   : > { %v10795_v36 = vpack.c.bf16 %v8057_v1, %v8057_v1  ;;  %v9758_v0 = vunpack.c.l.b16 %v10796_v21  ;;  %v6777_v49 = vmax.f32 %v6775_v6, %v6776_v29  ;;  %v6794_v7 = vmax.f32 %v6792_v61, %v6793_v8 }
 0x2fc   : > { %v10797_v12 = vpack.c.bf16 %v8063_v34, %v8063_v34  ;;  %v10013_v26 = vsel %vm9974_vm8, %v9756_v50, %v12658_v3  ;;  %v6783_v11 = vrot.slane %v6782_v60, 1  ;;  %v6790_v32 = vrot.slane %v6789_v42, 1  ;;  %v12707_v3 = vld [vmem:[%s14780_s2] ss:$0 sm:$0xff] }
 0x2fd   : > { %v9757_v44 = vunpack.c.l.b16 %v10795_v36  ;;  %v6795_v54 = vrot.slane %v6794_v7, 2  ;;  %v8437_v22 = vsel %vm7919_vm4, %v6777_v49, -inf  ;;  %v10124_v39 = vsel %vm9972_vm7, %v12621_v43, %v12624_v18 }
 0x2fe   : > { %v9759_v38 = vunpack.c.l.b16 %v10797_v12  ;;  %v6784_v41 = vmax.f32 %v6782_v60, %v6783_v11  ;;  %v6791_v40 = vmax.f32 %v6789_v42, %v6790_v32  ;;  %v8438_v63 = vmax.f32 %v12515_v48, %v8437_v22 }
 0x2ff   : > { %v10014_v61 = vsel %vm9976_vm9, %v9757_v44, %v10013_v26  ;;  %v6796_v2 = vmax.f32 %v6794_v7, %v6795_v54  ;;  %v963_v33 = vadd.f32 %v12707_v3, %v12398_v23  ;;  %v12714_v43 = vsel %vm9972_vm7, %v12650_v30, %v12647_v47  ;;  %v12724_v30 = vpop.f32.mrb[29].mxu1 }
 0x300   : > { %v10015_v18 = vsel %vm9978_vm10, %v9758_v0, %v10014_v61  ;;  %v8440_v48 = vsel %vm7919_vm4, %v6784_v41, -inf  ;;  %v8443_v13 = vsel %vm7919_vm4, %v6791_v40, -inf  ;;  %v10922_v28 = vpack.c.bf16 %v8438_v63, %v8438_v63 }
 0x301   : > { %v10016_v9 = vsel %vm9980_vm11, %v9759_v38, %v10015_v18  ;;  %v6797_v16 = vrot.slane %v6796_v2, 1  ;;  %v8441_v62 = vmax.f32 %v12520_v35, %v8440_v48  ;;  %v8444_v23 = vmax.f32 %v12523_v24, %v8443_v13 }
 0x302   : > { %v10204_v53 = vpack.c.b16 %v10016_v9, %v10016_v9  ;;  %v9884_v15 = vunpack.c.l.b16 %v10922_v28  ;;  %v1411_v6 = vmax.f32 %v963_v33, 0.0  ;;  %v1219_v47 = vadd.f32 %v12707_v3, %v12444_v17 }
 0x303   : > { %v6798_v45 = vmax.f32 %v6796_v2, %v6797_v16  ;;  %v10923_v59 = vpack.c.bf16 %v8441_v62, %v8441_v62  ;;  %v10924_v46 = vpack.c.bf16 %v8444_v23, %v8444_v23  ;;  %v12729_v19 = vsel %vm9972_vm7, %v12680_v10, %v12677_v27 }
 0x304   : > { %10269 = vst.msk [vmem:[%s11900_s4 + $0x14] sm:$0xf] %vm10263_vm12, %v10204_v53  ;;  %v10125_v35 = vsel %vm9974_vm8, %v9884_v15, %v10124_v39  ;;  %v2003_v24 = vcombine.high %v1411_v6, %v1411_v6  ;;  %v2010_v8 = vrot.slane %v1411_v6, %v11479_v14  ;;  %v1475_v1 = vmax.f32 %v1219_v47, 0.0 }
 0x305   : > { %v8446_v17 = vsel %vm7919_vm4, %v6798_v45, -inf  ;;  %v9885_v51 = vunpack.c.l.b16 %v10923_v59  ;;  %v9886_v21 = vunpack.c.l.b16 %v10924_v46  ;;  %v12738_v29 = vadd.f32 %v12707_v3, %v12470_v25 }
 0x306   : > { %v8447_v34 = vmax.f32 %v12527_v56, %v8446_v17  ;;  %v2017_v27 = vrot.slane %v2003_v24, %v11479_v14  ;;  %v2018_v10 = vcombine.high %v2010_v8, %v2010_v8  ;;  %v4923_v50 = vsel %vm4334_vm3, %v2010_v8, -inf  ;;  %v12757_v8 = vpop.f32.mrb[30].mxu0 }
 0x307   : > { %v10126_v60 = vsel %vm9976_vm9, %v9885_v51, %v10125_v35  ;;  %v4924_v42 = vrot.slane %v4923_v50, 4  ;;  %v3091_v36 = vcombine.high %v1475_v1, %v1475_v1  ;;  %v3098_v0 = vrot.slane %v1475_v1, %v11479_v14 }
 0x308   : > { %v10925_v49 = vpack.c.bf16 %v8447_v34, %v8447_v34  ;;  %v10127_v7 = vsel %vm9978_vm10, %v9886_v21, %v10126_v60  ;;  %v2019_v12 = vcombine.high %v2017_v27, %v2017_v27  ;;  %v4930_v25 = vsel %vm4334_vm3, %v2018_v10, -inf }
 0x309   : > { %v4925_v26 = vmax.f32 %v4923_v50, %v4924_v42  ;;  %v4931_v11 = vrot.slane %v4930_v25, 4  ;;  %v4937_v56 = vsel %vm4334_vm3, %v2017_v27, -inf  ;;  %v3105_v32 = vrot.slane %v3091_v36, %v11479_v14 }
 0x30a   : > { %v9887_v44 = vunpack.c.l.b16 %v10925_v49  ;;  %v4938_v54 = vrot.slane %v4937_v56, 4  ;;  %v4944_v22 = vsel %vm4334_vm3, %v2019_v12, -inf  ;;  %v3106_v39 = vcombine.high %v3098_v0, %v3098_v0 }
 0x30b   : > { %v4926_v38 = vrot.slane %v4925_v26, 2  ;;  %v4932_v41 = vmax.f32 %v4930_v25, %v4931_v11  ;;  %v4945_v40 = vrot.slane %v4944_v22, 4  ;;  %v3107_v63 = vcombine.high %v3105_v32, %v3105_v32 }
 0x30c   : > { %v10128_v61 = vsel %vm9980_vm11, %v9887_v44, %v10127_v7  ;;  %v4939_v2 = vmax.f32 %v4937_v56, %v4938_v54  ;;  %v6715_v33 = vsel %vm4334_vm3, %v3098_v0, -inf  ;;  %v6722_v18 = vsel %vm4334_vm3, %v3106_v39, -inf }
 0x30d   : > { %v10220_v48 = vpack.c.b16 %v10128_v61, %v10128_v61  ;;  %v4927_v13 = vmax.f32 %v4925_v26, %v4926_v38  ;;  %v4933_v28 = vrot.slane %v4932_v41, 2  ;;  %v4946_v9 = vmax.f32 %v4944_v22, %v4945_v40 }
 0x30e   : > { %v4940_v16 = vrot.slane %v4939_v2, 2  ;;  %v6716_v62 = vrot.slane %v6715_v33, 4  ;;  %v6723_v23 = vrot.slane %v6722_v18, 4  ;;  %v6729_v53 = vsel %vm4334_vm3, %v3105_v32, -inf }
 0x30f   : > { %10285 = vst.msk [vmem:[%s11900_s4 + $0x54] sm:$0xf] %vm10263_vm12, %v10220_v48  ;;  %v4928_v15 = vrot.slane %v4927_v13, 1  ;;  %v4934_v6 = vmax.f32 %v4932_v41, %v4933_v28  ;;  %v4947_v47 = vrot.slane %v4946_v9, 2  ;;  %v6730_v45 = vrot.slane %v6729_v53, 4 }
 0x310   : > { %v4941_v59 = vmax.f32 %v4939_v2, %v4940_v16  ;;  %v6717_v46 = vmax.f32 %v6715_v33, %v6716_v62  ;;  %v6724_v35 = vmax.f32 %v6722_v18, %v6723_v23  ;;  %v6736_v24 = vsel %vm4334_vm3, %v3107_v63, -inf }
 0x311   : > { %v4929_v1 = vmax.f32 %v4927_v13, %v4928_v15  ;;  %v4935_v17 = vrot.slane %v4934_v6, 1  ;;  %v4948_v51 = vmax.f32 %v4946_v9, %v4947_v47  ;;  %v6731_v21 = vmax.f32 %v6729_v53, %v6730_v45  ;;  %v14841_v15 = vld [vmem:[#allocation2_spill] sm:$0xff] }
 0x312   : > { %v4942_v34 = vrot.slane %v4941_v59, 1  ;;  %v6718_v27 = vrot.slane %v6717_v46, 2  ;;  %v6725_v10 = vrot.slane %v6724_v35, 2  ;;  %v6737_v50 = vrot.slane %v6736_v24, 4 }
 0x313   : > { %v4936_v60 = vmax.f32 %v4934_v6, %v4935_v17  ;;  %v4949_v42 = vrot.slane %v4948_v51, 1  ;;  %v8029_v36 = vsel %vm7919_vm4, %v4929_v1, -inf  ;;  %v6732_v0 = vrot.slane %v6731_v21, 2 }
 0x314   : > { %v4943_v49 = vmax.f32 %v4941_v59, %v4942_v34  ;;  %v8030_v7 = vmax.f32 %v12535_v55, %v8029_v36  ;;  %v6719_v12 = vmax.f32 %v6717_v46, %v6718_v27  ;;  %v6726_v25 = vmax.f32 %v6724_v35, %v6725_v10  ;;  %v14840_v55 = vld [vmem:[#allocation8_spill] sm:$0xff]  ;;  %v14842_v46 = vld [vmem:[#allocation11_spill] sm:$0xff] }
 0x315   : > { %v4950_v26 = vmax.f32 %v4948_v51, %v4949_v42  ;;  %v8032_v11 = vsel %vm7919_vm4, %v4936_v60, -inf  ;;  %v6733_v56 = vmax.f32 %v6731_v21, %v6732_v0  ;;  %v6738_v32 = vmax.f32 %v6736_v24, %v6737_v50  ;;  %v14843_v51 = vld [vmem:[#allocation5_spill] sm:$0xff]  ;;  %v14844_v50 = vld [vmem:[#allocation6_spill] sm:$0xff] }
 0x316   : > { %v8033_v44 = vmax.f32 %v12538_v20, %v8032_v11  ;;  %v8035_v54 = vsel %vm7919_vm4, %v4943_v49, -inf  ;;  %v10786_v22 = vpack.c.bf16 %v8030_v7, %v8030_v7  ;;  %v6720_v39 = vrot.slane %v6719_v12, 1  ;;  %v12781_v7 = vpop.f32.mrb[30].mxu1 }
 0x317   : > { %v8036_v38 = vmax.f32 %v12543_v52, %v8035_v54  ;;  %v8038_v41 = vsel %vm7919_vm4, %v4950_v26, -inf  ;;  %v6727_v40 = vrot.slane %v6726_v25, 1  ;;  %v6734_v63 = vrot.slane %v6733_v56, 1 }
 0x318   : > { %v8039_v61 = vmax.f32 %v14840_v55, %v8038_v41  ;;  %v10787_v2 = vpack.c.bf16 %v8033_v44, %v8033_v44  ;;  %v9748_v33 = vunpack.c.l.b16 %v10786_v22  ;;  %v6721_v18 = vmax.f32 %v6719_v12, %v6720_v39  ;;  %v14845_v44 = vld [vmem:[#allocation7_spill] sm:$0xff]  ;;  %v14846_v22 = vld [vmem:[#allocation12_spill] sm:$0xff] }
 0x319   : > { %v10788_v48 = vpack.c.bf16 %v8036_v38, %v8036_v38  ;;  %v6728_v13 = vmax.f32 %v6726_v25, %v6727_v40  ;;  %v6735_v28 = vmax.f32 %v6733_v56, %v6734_v63  ;;  %v6739_v9 = vrot.slane %v6738_v32, 2 }
 0x31a   : > { %v10789_v20 = vpack.c.bf16 %v8039_v61, %v8039_v61  ;;  %v9749_v16 = vunpack.c.l.b16 %v10787_v2  ;;  %v10006_v62 = vsel %vm9974_vm8, %v9748_v33, %v12714_v43  ;;  %v8413_v52 = vsel %vm7919_vm4, %v6721_v18, -inf }
 0x31b   : > { %v9750_v23 = vunpack.c.l.b16 %v10788_v48  ;;  %v6740_v53 = vmax.f32 %v6738_v32, %v6739_v9  ;;  %v8414_v6 = vmax.f32 %v14841_v15, %v8413_v52  ;;  %v8416_v47 = vsel %vm7919_vm4, %v6728_v13, -inf }
 0x31c   : > { %v9751_v45 = vunpack.c.l.b16 %v10789_v20  ;;  %v10007_v59 = vsel %vm9976_vm9, %v9749_v16, %v10006_v62  ;;  %v8417_v35 = vmax.f32 %v14842_v46, %v8416_v47  ;;  %v8419_v24 = vsel %vm7919_vm4, %v6735_v28, -inf }
 0x31d   : > { %v10008_v1 = vsel %vm9978_vm10, %v9750_v23, %v10007_v59  ;;  %v6741_v17 = vrot.slane %v6740_v53, 1  ;;  %v8420_v43 = vmax.f32 %v14843_v51, %v8419_v24  ;;  %v10914_v21 = vpack.c.bf16 %v8414_v6, %v8414_v6  ;;  %v12805_v24 = vpop.f32.mrb[31].mxu0 }
 0x31e   : > { %v10009_v34 = vsel %vm9980_vm11, %v9751_v45, %v10008_v1  ;;  %v10915_v27 = vpack.c.bf16 %v8417_v35, %v8417_v35  ;;  %v1416_v10 = vmax.f32 %v12738_v29, 0.0  ;;  %v1240_v60 = vadd.f32 %v12707_v3, %v14844_v50 }
 0x31f   : > { %v10203_v42 = vpack.c.b16 %v10009_v34, %v10009_v34  ;;  %v6742_v36 = vmax.f32 %v6740_v53, %v6741_v17  ;;  %v10916_v0 = vpack.c.bf16 %v8420_v43, %v8420_v43  ;;  %v9876_v49 = vunpack.c.l.b16 %v10914_v21 }
 0x320   : > { %v9877_v12 = vunpack.c.l.b16 %v10915_v27  ;;  %v2088_v25 = vcombine.high %v1416_v10, %v1416_v10  ;;  %v2095_v26 = vrot.slane %v1416_v10, %v11479_v14  ;;  %v1480_v11 = vmax.f32 %v1240_v60, 0.0 }
 0x321   : > { %10268 = vst.msk [vmem:[%s11900_s4 + $0x10] sm:$0xf] %vm10263_vm12, %v10203_v42  ;;  %v8422_v56 = vsel %vm7919_vm4, %v6742_v36, -inf  ;;  %v9878_v32 = vunpack.c.l.b16 %v10916_v0  ;;  %v10118_v29 = vsel %vm9974_vm8, %v9876_v49, %v12729_v19  ;;  %v12791_v54 = vadd.f32 %v12707_v3, %v14845_v44 }
 0x322   : > { %v8423_v39 = vmax.f32 %v14846_v22, %v8422_v56  ;;  %v10119_v38 = vsel %vm9976_vm9, %v9877_v12, %v10118_v29  ;;  %v2102_v41 = vrot.slane %v2088_v25, %v11479_v14  ;;  %v2103_v40 = vcombine.high %v2095_v26, %v2095_v26 }
 0x323   : > { %v10120_v63 = vsel %vm9978_vm10, %v9878_v32, %v10119_v38  ;;  %v5063_v55 = vsel %vm4334_vm3, %v2095_v26, -inf  ;;  %v3176_v61 = vcombine.high %v1480_v11, %v1480_v11  ;;  %v3183_v2 = vrot.slane %v1480_v11, %v11479_v14 }
 0x324   : > { %v10917_v33 = vpack.c.bf16 %v8423_v39, %v8423_v39  ;;  %v2104_v19 = vcombine.high %v2102_v41, %v2102_v41  ;;  %v5064_v18 = vrot.slane %v5063_v55, 4  ;;  %v5070_v48 = vsel %vm4334_vm3, %v2103_v40, -inf }
 0x325   : > { %v5071_v13 = vrot.slane %v5070_v48, 4  ;;  %v5077_v28 = vsel %vm4334_vm3, %v2102_v41, -inf  ;;  %v3190_v9 = vrot.slane %v3176_v61, %v11479_v14  ;;  %v3191_v20 = vcombine.high %v3183_v2, %v3183_v2 }
 0x326   : > { %v9879_v16 = vunpack.c.l.b16 %v10917_v33  ;;  %v5065_v62 = vmax.f32 %v5063_v55, %v5064_v18  ;;  %v5078_v52 = vrot.slane %v5077_v28, 4  ;;  %v5084_v23 = vsel %vm4334_vm3, %v2104_v19, -inf }
 0x327   : > { %v5072_v53 = vmax.f32 %v5070_v48, %v5071_v13  ;;  %v5085_v15 = vrot.slane %v5084_v23, 4  ;;  %v3192_v6 = vcombine.high %v3190_v9, %v3190_v9  ;;  %v6855_v47 = vsel %vm4334_vm3, %v3183_v2, -inf }
 0x328   : > { %v10121_v45 = vsel %vm9980_vm11, %v9879_v16, %v10120_v63  ;;  %v5066_v59 = vrot.slane %v5065_v62, 2  ;;  %v5079_v46 = vmax.f32 %v5077_v28, %v5078_v52  ;;  %v6856_v35 = vrot.slane %v6855_v47, 4 }
 0x329   : > { %v10219_v1 = vpack.c.b16 %v10121_v45, %v10121_v45  ;;  %v5073_v17 = vrot.slane %v5072_v53, 2  ;;  %v5086_v51 = vmax.f32 %v5084_v23, %v5085_v15  ;;  %v6862_v43 = vsel %vm4334_vm3, %v3191_v20, -inf }
 0x32a   : > { %v5067_v21 = vmax.f32 %v5065_v62, %v5066_v59  ;;  %v5080_v34 = vrot.slane %v5079_v46, 2  ;;  %v6857_v27 = vmax.f32 %v6855_v47, %v6856_v35  ;;  %v6863_v10 = vrot.slane %v6862_v43, 4 }
 0x32b   : > { %10284 = vst.msk [vmem:[%s11900_s4 + $0x50] sm:$0xf] %vm10263_vm12, %v10219_v1  ;;  %v5074_v50 = vmax.f32 %v5072_v53, %v5073_v17  ;;  %v5087_v60 = vrot.slane %v5086_v51, 2  ;;  %v6869_v42 = vsel %vm4334_vm3, %v3190_v9, -inf  ;;  %v6876_v36 = vsel %vm4334_vm3, %v3192_v6, -inf  ;;  %v14847_v53 = vld [vmem:[#allocation3_spill] sm:$0xff] }
 0x32c   : > { %v5068_v0 = vrot.slane %v5067_v21, 1  ;;  %v5081_v49 = vmax.f32 %v5079_v46, %v5080_v34  ;;  %v6858_v12 = vrot.slane %v6857_v27, 2  ;;  %v6864_v25 = vmax.f32 %v6862_v43, %v6863_v10  ;;  %v14848_v17 = vld [vmem:[#allocation4_spill] sm:$0xff] }
 0x32d   : > { %v5075_v26 = vrot.slane %v5074_v50, 1  ;;  %v5088_v11 = vmax.f32 %v5086_v51, %v5087_v60  ;;  %v6870_v56 = vrot.slane %v6869_v42, 4  ;;  %v6877_v32 = vrot.slane %v6876_v36, 4 }
 0x32e   : > { %v5069_v29 = vmax.f32 %v5067_v21, %v5068_v0  ;;  %v5082_v44 = vrot.slane %v5081_v49, 1  ;;  %v6859_v22 = vmax.f32 %v6857_v27, %v6858_v12  ;;  %v6865_v39 = vrot.slane %v6864_v25, 2 }
 0x32f   : > { %v5076_v38 = vmax.f32 %v5074_v50, %v5075_v26  ;;  %v5089_v41 = vrot.slane %v5088_v11, 1  ;;  %v6871_v40 = vmax.f32 %v6869_v42, %v6870_v56  ;;  %v6878_v63 = vmax.f32 %v6876_v36, %v6877_v32 }
 0x330   : > { %v5083_v55 = vmax.f32 %v5081_v49, %v5082_v44  ;;  %v12813_v61 = vsel %vm7919_vm4, %v5069_v29, -inf  ;;  %v6860_v2 = vrot.slane %v6859_v22, 1  ;;  %v6866_v33 = vmax.f32 %v6864_v25, %v6865_v39 }
 0x331   : > { %v5090_v19 = vmax.f32 %v5088_v11, %v5089_v41  ;;  %v12816_v18 = vsel %vm7919_vm4, %v5076_v38, -inf  ;;  %v6872_v48 = vrot.slane %v6871_v40, 2  ;;  %v6879_v13 = vrot.slane %v6878_v63, 2 }
 0x332   : > { %v12819_v28 = vsel %vm7919_vm4, %v5083_v55, -inf  ;;  %v6861_v9 = vmax.f32 %v6859_v22, %v6860_v2  ;;  %v6867_v20 = vrot.slane %v6866_v33, 1  ;;  %v1414_v16 = vmax.f32 %v12791_v54, 0.0 }
 0x333   : > { %v12823_v62 = vsel %vm7919_vm4, %v5090_v19, -inf  ;;  %v6873_v52 = vmax.f32 %v6871_v40, %v6872_v48  ;;  %v6880_v23 = vmax.f32 %v6878_v63, %v6879_v13  ;;  %v1232_v15 = vadd.f32 %v12707_v3, %v14847_v53  ;;  %v12852_v40 = vpop.f32.mrb[31].mxu1 }
 0x334   : > { %v6868_v6 = vmax.f32 %v6866_v33, %v6867_v20  ;;  %v12828_v47 = vsel %vm7919_vm4, %v6861_v9, -inf  ;;  %v2054_v45 = vcombine.high %v1414_v16, %v1414_v16  ;;  %v2061_v59 = vrot.slane %v1414_v16, %v11479_v14 }
 0x335   : > { %v6874_v46 = vrot.slane %v6873_v52, 1  ;;  %v6881_v35 = vrot.slane %v6880_v23, 1  ;;  %v1478_v1 = vmax.f32 %v1232_v15, 0.0  ;;  %v12833_v54 = vadd.f32 %v12707_v3, %v14848_v17 }
 0x336   : > { %v12836_v51 = vsel %vm7919_vm4, %v6868_v6, -inf  ;;  %v2068_v43 = vrot.slane %v2054_v45, %v11479_v14  ;;  %v2069_v21 = vcombine.high %v2061_v59, %v2061_v59  ;;  %v5007_v34 = vsel %vm4334_vm3, %v2061_v59, -inf }
 0x337   : > { %v6875_v27 = vmax.f32 %v6873_v52, %v6874_v46  ;;  %v6882_v10 = vmax.f32 %v6880_v23, %v6881_v35  ;;  %v5008_v50 = vrot.slane %v5007_v34, 4  ;;  %v3142_v60 = vcombine.high %v1478_v1, %v1478_v1 }
 0x338   : > { %v2070_v42 = vcombine.high %v2068_v43, %v2068_v43  ;;  %v5014_v36 = vsel %vm4334_vm3, %v2069_v21, -inf  ;;  %v5021_v0 = vsel %vm4334_vm3, %v2068_v43, -inf  ;;  %v3149_v49 = vrot.slane %v1478_v1, %v11479_v14 }
 0x339   : > { %v12844_v12 = vsel %vm7919_vm4, %v6875_v27, -inf  ;;  %v12847_v25 = vsel %vm7919_vm4, %v6882_v10, -inf  ;;  %v5009_v26 = vmax.f32 %v5007_v34, %v5008_v50  ;;  %v5015_v11 = vrot.slane %v5014_v36, 4 }
 0x33a   : > { %v5022_v56 = vrot.slane %v5021_v0, 4  ;;  %v5028_v32 = vsel %vm4334_vm3, %v2070_v42, -inf  ;;  %v3156_v29 = vrot.slane %v3142_v60, %v11479_v14  ;;  %v3157_v44 = vcombine.high %v3149_v49, %v3149_v49 }
 0x33b   : > { %v5010_v22 = vrot.slane %v5009_v26, 2  ;;  %v5016_v39 = vmax.f32 %v5014_v36, %v5015_v11  ;;  %v5029_v38 = vrot.slane %v5028_v32, 4  ;;  %v6799_v41 = vsel %vm4334_vm3, %v3149_v49, -inf }
 0x33c   : > { %v5023_v63 = vmax.f32 %v5021_v0, %v5022_v56  ;;  %v3158_v55 = vcombine.high %v3156_v29, %v3156_v29  ;;  %v6800_v2 = vrot.slane %v6799_v41, 4  ;;  %v6806_v33 = vsel %vm4334_vm3, %v3157_v44, -inf }
 0x33d   : > { %v5011_v19 = vmax.f32 %v5009_v26, %v5010_v22  ;;  %v5017_v48 = vrot.slane %v5016_v39, 2  ;;  %v5030_v13 = vmax.f32 %v5028_v32, %v5029_v38  ;;  %v6807_v9 = vrot.slane %v6806_v33, 4 }
 0x33e   : > { %v5024_v20 = vrot.slane %v5023_v63, 2  ;;  %v6801_v16 = vmax.f32 %v6799_v41, %v6800_v2  ;;  %v6813_v52 = vsel %vm4334_vm3, %v3156_v29, -inf  ;;  %v6820_v23 = vsel %vm4334_vm3, %v3158_v55, -inf }
 0x33f   : > { %v5012_v53 = vrot.slane %v5011_v19, 1  ;;  %v5018_v15 = vmax.f32 %v5016_v39, %v5017_v48  ;;  %v5031_v6 = vrot.slane %v5030_v13, 2  ;;  %v6808_v45 = vmax.f32 %v6806_v33, %v6807_v9 }
 0x340   : > { %v5025_v59 = vmax.f32 %v5023_v63, %v5024_v20  ;;  %v6802_v46 = vrot.slane %v6801_v16, 2  ;;  %v6814_v35 = vrot.slane %v6813_v52, 4  ;;  %v6821_v1 = vrot.slane %v6820_v23, 4 }
 0x341   : > { %v5013_v17 = vmax.f32 %v5011_v19, %v5012_v53  ;;  %v5019_v43 = vrot.slane %v5018_v15, 1  ;;  %v5032_v21 = vmax.f32 %v5030_v13, %v5031_v6  ;;  %v6809_v34 = vrot.slane %v6808_v45, 2 }
 0x342   : > { %v5026_v27 = vrot.slane %v5025_v59, 1  ;;  %v6803_v10 = vmax.f32 %v6801_v16, %v6802_v46  ;;  %v6815_v50 = vmax.f32 %v6813_v52, %v6814_v35  ;;  %v6822_v60 = vmax.f32 %v6820_v23, %v6821_v1 }
 0x343   : > { %v5020_v42 = vmax.f32 %v5018_v15, %v5019_v43  ;;  %v5033_v36 = vrot.slane %v5032_v21, 1  ;;  %v12858_v0 = vsel %vm7919_vm4, %v5013_v17, -inf  ;;  %v6810_v49 = vmax.f32 %v6808_v45, %v6809_v34  ;;  %v12881_v15 = vpop.f32.mrb[32].mxu0 }
 0x344   : > { %v5027_v26 = vmax.f32 %v5025_v59, %v5026_v27  ;;  %v6804_v11 = vrot.slane %v6803_v10, 1  ;;  %v6816_v56 = vrot.slane %v6815_v50, 2  ;;  %v6823_v32 = vrot.slane %v6822_v60, 2  ;;  %14849 = vst [vmem:[#allocation13_spill] sm:$0xff] %v12881_v15 }
 0x345   : > { %v5034_v29 = vmax.f32 %v5032_v21, %v5033_v36  ;;  %v12861_v44 = vsel %vm7919_vm4, %v5020_v42, -inf  ;;  %v6811_v22 = vrot.slane %v6810_v49, 1  ;;  %v1417_v39 = vmax.f32 %v12833_v54, 0.0 }
 0x346   : > { %v12865_v38 = vsel %vm7919_vm4, %v5027_v26, -inf  ;;  %v6805_v41 = vmax.f32 %v6803_v10, %v6804_v11  ;;  %v6817_v63 = vmax.f32 %v6815_v50, %v6816_v56  ;;  %v6824_v55 = vmax.f32 %v6822_v60, %v6823_v32 }
 0x347   : > { %v12868_v2 = vsel %vm7919_vm4, %v5034_v29, -inf  ;;  %v6812_v33 = vmax.f32 %v6810_v49, %v6811_v22  ;;  %v2105_v19 = vcombine.high %v1417_v39, %v1417_v39  ;;  %v2112_v48 = vrot.slane %v1417_v39, %v11479_v14 }
 0x348   : > { %v6818_v13 = vrot.slane %v6817_v63, 1  ;;  %v6825_v9 = vrot.slane %v6824_v55, 1  ;;  %v12872_v20 = vsel %vm7919_vm4, %v6805_v41, -inf  ;;  %v1243_v54 = vadd.f32 %v12707_v3, %v12587_v58 }
 0x349   : > { %v12877_v16 = vsel %vm7919_vm4, %v6812_v33, -inf  ;;  %v2119_v52 = vrot.slane %v2105_v19, %v11479_v14  ;;  %v2120_v23 = vcombine.high %v2112_v48, %v2112_v48  ;;  %v5091_v53 = vsel %vm4334_vm3, %v2112_v48, -inf }
 0x34a   : > { %v6819_v6 = vmax.f32 %v6817_v63, %v6818_v13  ;;  %v6826_v45 = vmax.f32 %v6824_v55, %v6825_v9  ;;  %v5092_v59 = vrot.slane %v5091_v53, 4  ;;  %v1481_v46 = vmax.f32 %v1243_v54, 0.0 }
 0x34b   : > { %v2121_v35 = vcombine.high %v2119_v52, %v2119_v52  ;;  %v5098_v1 = vsel %vm4334_vm3, %v2120_v23, -inf  ;;  %v5105_v17 = vsel %vm4334_vm3, %v2119_v52, -inf  ;;  %v979_v58 = vadd.f32 %v12707_v3, %v12605_v57 }
 0x34c   : > { %v12888_v43 = vsel %vm7919_vm4, %v6819_v6, -inf  ;;  %v12891_v21 = vsel %vm7919_vm4, %v6826_v45, -inf  ;;  %v5093_v34 = vmax.f32 %v5091_v53, %v5092_v59  ;;  %v5099_v27 = vrot.slane %v5098_v1, 4 }
 0x34d   : > { %v5106_v10 = vrot.slane %v5105_v17, 4  ;;  %v5112_v50 = vsel %vm4334_vm3, %v2121_v35, -inf  ;;  %v3193_v60 = vcombine.high %v1481_v46, %v1481_v46  ;;  %v3200_v42 = vrot.slane %v1481_v46, %v11479_v14 }
 0x34e   : > { %v5094_v36 = vrot.slane %v5093_v34, 2  ;;  %v5100_v49 = vmax.f32 %v5098_v1, %v5099_v27  ;;  %v5113_v26 = vrot.slane %v5112_v50, 4  ;;  %v1415_v11 = vmax.f32 %v979_v58, 0.0 }
 0x34f   : > { %v5107_v56 = vmax.f32 %v5105_v17, %v5106_v10  ;;  %v3207_v57 = vrot.slane %v3193_v60, %v11479_v14  ;;  %v3208_v32 = vcombine.high %v3200_v42, %v3200_v42  ;;  %v6883_v29 = vsel %vm4334_vm3, %v3200_v42, -inf }
 0x350   : > { %v5095_v22 = vmax.f32 %v5093_v34, %v5094_v36  ;;  %v5101_v39 = vrot.slane %v5100_v49, 2  ;;  %v5114_v41 = vmax.f32 %v5112_v50, %v5113_v26  ;;  %v6884_v63 = vrot.slane %v6883_v29, 4 }
 0x351   : > { %v5108_v55 = vrot.slane %v5107_v56, 2  ;;  %v3209_v33 = vcombine.high %v3207_v57, %v3207_v57  ;;  %v6890_v19 = vsel %vm4334_vm3, %v3208_v32, -inf  ;;  %v6897_v48 = vsel %vm4334_vm3, %v3207_v57, -inf }
 0x352   : > { %v5096_v13 = vrot.slane %v5095_v22, 1  ;;  %v5102_v9 = vmax.f32 %v5100_v49, %v5101_v39  ;;  %v5115_v54 = vrot.slane %v5114_v41, 2  ;;  %v6885_v52 = vmax.f32 %v6883_v29, %v6884_v63 }
 0x353   : > { %v5109_v23 = vmax.f32 %v5107_v56, %v5108_v55  ;;  %v6891_v53 = vrot.slane %v6890_v19, 4  ;;  %v6898_v6 = vrot.slane %v6897_v48, 4  ;;  %v6904_v45 = vsel %vm4334_vm3, %v3209_v33, -inf  ;;  %v12909_v33 = vpop.f32.mrb[32].mxu1 }
 0x354   : > { %v5097_v59 = vmax.f32 %v5095_v22, %v5096_v13  ;;  %v5103_v46 = vrot.slane %v5102_v9, 1  ;;  %v5116_v35 = vmax.f32 %v5114_v41, %v5115_v54  ;;  %v6886_v1 = vrot.slane %v6885_v52, 2  ;;  %14850 = vst [vmem:[#allocation9_spill] sm:$0xff] %v12909_v33 }
 0x355   : > { %v5110_v17 = vrot.slane %v5109_v23, 1  ;;  %v6892_v58 = vmax.f32 %v6890_v19, %v6891_v53  ;;  %v6899_v34 = vmax.f32 %v6897_v48, %v6898_v6  ;;  %v6905_v27 = vrot.slane %v6904_v45, 4 }
 0x356   : > { %v5104_v10 = vmax.f32 %v5102_v9, %v5103_v46  ;;  %v5117_v50 = vrot.slane %v5116_v35, 1  ;;  %v12901_v60 = vsel %vm7919_vm4, %v5097_v59, -inf  ;;  %v6887_v42 = vmax.f32 %v6885_v52, %v6886_v1 }
 0x357   : > { %v5111_v36 = vmax.f32 %v5109_v23, %v5110_v17  ;;  %v6893_v49 = vrot.slane %v6892_v58, 2  ;;  %v6900_v26 = vrot.slane %v6899_v34, 2  ;;  %v6906_v56 = vmax.f32 %v6904_v45, %v6905_v27 }
 0x358   : > { %v5118_v57 = vmax.f32 %v5116_v35, %v5117_v50  ;;  %v12904_v32 = vsel %vm7919_vm4, %v5104_v10, -inf  ;;  %v6888_v29 = vrot.slane %v6887_v42, 1  ;;  %v2071_v22 = vcombine.high %v1415_v11, %v1415_v11 }
 0x359   : > { %v12907_v39 = vsel %vm7919_vm4, %v5111_v36, -inf  ;;  %v6894_v41 = vmax.f32 %v6892_v58, %v6893_v49  ;;  %v6901_v63 = vmax.f32 %v6899_v34, %v6900_v26  ;;  %v6907_v55 = vrot.slane %v6906_v56, 2  ;;  %v12931_v49 = vpop.f32.mrb[33].mxu0 }
 0x35a   : > { %v12912_v19 = vsel %vm7919_vm4, %v5118_v57, -inf  ;;  %v6889_v48 = vmax.f32 %v6887_v42, %v6888_v29  ;;  %v2078_v13 = vrot.slane %v1415_v11, %v11479_v14  ;;  %v2085_v9 = vrot.slane %v2071_v22, %v11479_v14  ;;  %14851 = vst [vmem:[#allocation10_spill] sm:$0xff] %v12931_v49 }
 0x35b   : > { %v6895_v54 = vrot.slane %v6894_v41, 1  ;;  %v6902_v52 = vrot.slane %v6901_v63, 1  ;;  %v6908_v23 = vmax.f32 %v6906_v56, %v6907_v55  ;;  %v1235_v53 = vadd.f32 %v12707_v3, %v12630_v5 }
 0x35c   : > { %v12919_v6 = vsel %vm7919_vm4, %v6889_v48, -inf  ;;  %v2086_v45 = vcombine.high %v2078_v13, %v2078_v13  ;;  %v2087_v59 = vcombine.high %v2085_v9, %v2085_v9  ;;  %v5035_v46 = vsel %vm4334_vm3, %v2078_v13, -inf }
 0x35d   : > { %v6896_v35 = vmax.f32 %v6894_v41, %v6895_v54  ;;  %v6903_v1 = vmax.f32 %v6901_v63, %v6902_v52  ;;  %v6909_v17 = vrot.slane %v6908_v23, 1  ;;  %v5036_v58 = vrot.slane %v5035_v46, 4 }
 0x35e   : > { %v5042_v11 = vsel %vm4334_vm3, %v2086_v45, -inf  ;;  %v5049_v34 = vsel %vm4334_vm3, %v2085_v9, -inf  ;;  %v5056_v27 = vsel %vm4334_vm3, %v2087_v59, -inf  ;;  %v1479_v10 = vmax.f32 %v1235_v53, 0.0 }
 0x35f   : > { %v6910_v50 = vmax.f32 %v6908_v23, %v6909_v17  ;;  %v12926_v5 = vsel %vm7919_vm4, %v6896_v35, -inf  ;;  %v12929_v42 = vsel %vm7919_vm4, %v6903_v1, -inf  ;;  %v5037_v36 = vmax.f32 %v5035_v46, %v5036_v58 }
 0x360   : > { %v5043_v26 = vrot.slane %v5042_v11, 4  ;;  %v5050_v56 = vrot.slane %v5049_v34, 4  ;;  %v5057_v57 = vrot.slane %v5056_v27, 4  ;;  %v3159_v29 = vcombine.high %v1479_v10, %v1479_v10 }
 0x361   : > { %v12934_v22 = vsel %vm7919_vm4, %v6910_v50, -inf  ;;  %v5038_v41 = vrot.slane %v5037_v36, 2  ;;  %v3166_v63 = vrot.slane %v1479_v10, %v11479_v14  ;;  %v1000_v55 = vadd.f32 %v12707_v3, %v12644_v31 }
 0x362   : > { %v5044_v48 = vmax.f32 %v5042_v11, %v5043_v26  ;;  %v5051_v13 = vmax.f32 %v5049_v34, %v5050_v56  ;;  %v5058_v9 = vmax.f32 %v5056_v27, %v5057_v57  ;;  %v3173_v54 = vrot.slane %v3159_v29, %v11479_v14 }
 0x363   : > { %v5039_v52 = vmax.f32 %v5037_v36, %v5038_v41  ;;  %v3174_v23 = vcombine.high %v3166_v63, %v3166_v63  ;;  %v6827_v53 = vsel %vm4334_vm3, %v3166_v63, -inf  ;;  %v1420_v45 = vmax.f32 %v1000_v55, 0.0 }
 0x364   : > { %v5045_v59 = vrot.slane %v5044_v48, 2  ;;  %v5052_v46 = vrot.slane %v5051_v13, 2  ;;  %v5059_v35 = vrot.slane %v5058_v9, 2  ;;  %v3175_v1 = vcombine.high %v3173_v54, %v3173_v54 }
 0x365   : > { %v5040_v17 = vrot.slane %v5039_v52, 1  ;;  %v6828_v58 = vrot.slane %v6827_v53, 4  ;;  %v6834_v10 = vsel %vm4334_vm3, %v3174_v23, -inf  ;;  %v6841_v31 = vsel %vm4334_vm3, %v3173_v54, -inf }
 0x366   : > { %v5046_v11 = vmax.f32 %v5044_v48, %v5045_v59  ;;  %v5053_v34 = vmax.f32 %v5051_v13, %v5052_v46  ;;  %v5060_v27 = vmax.f32 %v5058_v9, %v5059_v35  ;;  %v6835_v50 = vrot.slane %v6834_v10, 4 }
 0x367   : > { %v5041_v26 = vmax.f32 %v5039_v52, %v5040_v17  ;;  %v6829_v36 = vmax.f32 %v6827_v53, %v6828_v58  ;;  %v6842_v56 = vrot.slane %v6841_v31, 4  ;;  %v6848_v57 = vsel %vm4334_vm3, %v3175_v1, -inf }
 0x368   : > { %v5047_v29 = vrot.slane %v5046_v11, 1  ;;  %v5054_v41 = vrot.slane %v5053_v34, 1  ;;  %v5061_v63 = vrot.slane %v5060_v27, 1  ;;  %v6836_v55 = vmax.f32 %v6834_v10, %v6835_v50  ;;  %v12956_v10 = vpop.f32.mrb[33].mxu1 }
 0x369   : > { %v12945_v49 = vsel %vm7919_vm4, %v5041_v26, -inf  ;;  %v6830_v33 = vrot.slane %v6829_v36, 2  ;;  %v6843_v23 = vmax.f32 %v6841_v31, %v6842_v56  ;;  %v6849_v15 = vrot.slane %v6848_v57, 4  ;;  %14852 = vst [vmem:[#allocation14_spill] sm:$0xff] %v12956_v10 }
 0x36a   : > { %v5048_v54 = vmax.f32 %v5046_v11, %v5047_v29  ;;  %v5055_v48 = vmax.f32 %v5053_v34, %v5054_v41  ;;  %v5062_v13 = vmax.f32 %v5060_v27, %v5061_v63  ;;  %v6837_v9 = vrot.slane %v6836_v55, 2 }
 0x36b   : > { %v6831_v59 = vmax.f32 %v6829_v36, %v6830_v33  ;;  %v6844_v52 = vrot.slane %v6843_v23, 2  ;;  %v6850_v53 = vmax.f32 %v6848_v57, %v6849_v15  ;;  %v2156_v46 = vcombine.high %v1420_v45, %v1420_v45 }
 0x36c   : > { %v12948_v35 = vsel %vm7919_vm4, %v5048_v54, -inf  ;;  %v12951_v1 = vsel %vm7919_vm4, %v5055_v48, -inf  ;;  %v12954_v17 = vsel %vm7919_vm4, %v5062_v13, -inf  ;;  %v6838_v58 = vmax.f32 %v6836_v55, %v6837_v9 }
 0x36d   : > { %v6832_v31 = vrot.slane %v6831_v59, 1  ;;  %v6845_v11 = vmax.f32 %v6843_v23, %v6844_v52  ;;  %v6851_v34 = vrot.slane %v6850_v53, 2  ;;  %v2163_v33 = vrot.slane %v1420_v45, %v11479_v14  ;;  %v12974_v52 = vpop.f32.mrb[34].mxu0 }
 0x36e   : > { %v6839_v27 = vrot.slane %v6838_v58, 1  ;;  %v2170_v15 = vrot.slane %v2156_v46, %v11479_v14  ;;  %v1256_v50 = vadd.f32 %v12707_v3, %v12668_v4  ;;  %v992_v26 = vadd.f32 %v12707_v3, %v12690_v37  ;;  %14854 = vst [vmem:[#allocation2_spill] sm:$0xff] %v12974_v52 }
 0x36f   : > { %v6833_v36 = vmax.f32 %v6831_v59, %v6832_v31  ;;  %v6846_v56 = vrot.slane %v6845_v11, 1  ;;  %v6852_v57 = vmax.f32 %v6850_v53, %v6851_v34  ;;  %v2171_v29 = vcombine.high %v2163_v33, %v2163_v33 }
 0x370   : > { %v6840_v41 = vmax.f32 %v6838_v58, %v6839_v27  ;;  %v2172_v63 = vcombine.high %v2170_v15, %v2170_v15  ;;  %v5175_v55 = vsel %vm4334_vm3, %v2163_v33, -inf  ;;  %v5189_v23 = vsel %vm4334_vm3, %v2170_v15, -inf }
 0x371   : > { %v6847_v45 = vmax.f32 %v6845_v11, %v6846_v56  ;;  %v6853_v54 = vrot.slane %v6852_v57, 1  ;;  %v12967_v48 = vsel %vm7919_vm4, %v6833_v36, -inf  ;;  %v5176_v13 = vrot.slane %v5175_v55, 4 }
 0x372   : > { %v12970_v4 = vsel %vm7919_vm4, %v6840_v41, -inf  ;;  %v5182_v37 = vsel %vm4334_vm3, %v2171_v29, -inf  ;;  %v5190_v9 = vrot.slane %v5189_v23, 4  ;;  %v5196_v59 = vsel %vm4334_vm3, %v2172_v63, -inf }
 0x373   : > { %14853 = vst [vmem:[#allocation8_spill] sm:$0xff] %v12970_v4  ;;  %v6854_v53 = vmax.f32 %v6852_v57, %v6853_v54  ;;  %v12977_v46 = vsel %vm7919_vm4, %v6847_v45, -inf  ;;  %v5177_v58 = vmax.f32 %v5175_v55, %v5176_v13  ;;  %v5183_v31 = vrot.slane %v5182_v37, 4 }
 0x374   : > { %14855 = vst [vmem:[#allocation11_spill] sm:$0xff] %v12977_v46  ;;  %v5191_v11 = vmax.f32 %v5189_v23, %v5190_v9  ;;  %v5197_v34 = vrot.slane %v5196_v59, 4  ;;  %v1484_v33 = vmax.f32 %v1256_v50, 0.0  ;;  %v1418_v27 = vmax.f32 %v992_v26, 0.0 }
 0x375   : > { %v12980_v15 = vsel %vm7919_vm4, %v6854_v53, -inf  ;;  %v5178_v36 = vrot.slane %v5177_v58, 2  ;;  %v5184_v56 = vmax.f32 %v5182_v37, %v5183_v31  ;;  %v12984_v29 = vadd.f32 %v12707_v3, %v12724_v30 }
 0x376   : > { %14856 = vst [vmem:[#allocation5_spill] sm:$0xff] %v12980_v15  ;;  %v5192_v41 = vrot.slane %v5191_v11, 2  ;;  %v5198_v57 = vmax.f32 %v5196_v59, %v5197_v34  ;;  %v3244_v63 = vcombine.high %v1484_v33, %v1484_v33  ;;  %v3251_v45 = vrot.slane %v1484_v33, %v11479_v14 }
 0x377   : > { %v5179_v55 = vmax.f32 %v5177_v58, %v5178_v36  ;;  %v5185_v54 = vrot.slane %v5184_v56, 2  ;;  %v2122_v23 = vcombine.high %v1418_v27, %v1418_v27  ;;  %v12988_v50 = vrot.slane %v1418_v27, %v11479_v14 }
 0x378   : > { %v5193_v26 = vmax.f32 %v5191_v11, %v5192_v41  ;;  %v5199_v13 = vrot.slane %v5198_v57, 2  ;;  %v3258_v9 = vrot.slane %v3244_v63, %v11479_v14  ;;  %v3259_v37 = vcombine.high %v3251_v45, %v3251_v45 }
 0x379   : > { %v5180_v53 = vrot.slane %v5179_v55, 1  ;;  %v5186_v31 = vmax.f32 %v5184_v56, %v5185_v54  ;;  %v6967_v3 = vsel %vm4334_vm3, %v3251_v45, -inf  ;;  %v12993_v30 = vrot.slane %v2122_v23, %v11479_v14 }
 0x37a   : > { %v5194_v59 = vrot.slane %v5193_v26, 1  ;;  %v5200_v34 = vmax.f32 %v5198_v57, %v5199_v13  ;;  %v3260_v58 = vcombine.high %v3258_v9, %v3258_v9  ;;  %v6968_v33 = vrot.slane %v6967_v3, 4 }
 0x37b   : > { %v5181_v36 = vmax.f32 %v5179_v55, %v5180_v53  ;;  %v5187_v52 = vrot.slane %v5186_v31, 1  ;;  %v6974_v27 = vsel %vm4334_vm3, %v3259_v37, -inf  ;;  %v6981_v11 = vsel %vm4334_vm3, %v3258_v9, -inf  ;;  %v13001_v53 = vpop.f32.mrb[34].mxu1 }
 0x37c   : > { %v5195_v41 = vmax.f32 %v5193_v26, %v5194_v59  ;;  %v5201_v63 = vrot.slane %v5200_v34, 1  ;;  %v6969_v10 = vmax.f32 %v6967_v3, %v6968_v33  ;;  %v6975_v15 = vrot.slane %v6974_v27, 4  ;;  %14857 = vst [vmem:[#allocation6_spill] sm:$0xff] %v13001_v53 }
 0x37d   : > { %v5188_v56 = vmax.f32 %v5186_v31, %v5187_v52  ;;  %v8089_v45 = vsel %vm7919_vm4, %v5181_v36, -inf  ;;  %v6982_v54 = vrot.slane %v6981_v11, 4  ;;  %v6988_v23 = vsel %vm4334_vm3, %v3260_v58, -inf }
 0x37e   : > { %v5202_v46 = vmax.f32 %v5200_v34, %v5201_v63  ;;  %v8090_v57 = vmax.f32 %v12813_v61, %v8089_v45  ;;  %v8095_v55 = vsel %vm7919_vm4, %v5195_v41, -inf  ;;  %v6970_v13 = vrot.slane %v6969_v10, 2 }
 0x37f   : > { %v8092_v9 = vsel %vm7919_vm4, %v5188_v56, -inf  ;;  %v8096_v26 = vmax.f32 %v12819_v28, %v8095_v55  ;;  %v6976_v37 = vmax.f32 %v6974_v27, %v6975_v15  ;;  %v6983_v3 = vmax.f32 %v6981_v11, %v6982_v54 }
 0x380   : > { %v8093_v52 = vmax.f32 %v12816_v18, %v8092_v9  ;;  %v8098_v31 = vsel %vm7919_vm4, %v5202_v46, -inf  ;;  %v10806_v59 = vpack.c.bf16 %v8090_v57, %v8090_v57  ;;  %v6971_v58 = vmax.f32 %v6969_v10, %v6970_v13 }
 0x381   : > { %v8099_v34 = vmax.f32 %v12823_v62, %v8098_v31  ;;  %v10808_v61 = vpack.c.bf16 %v8096_v26, %v8096_v26  ;;  %v6977_v33 = vrot.slane %v6976_v37, 2  ;;  %v6984_v36 = vrot.slane %v6983_v3, 2 }
 0x382   : > { %v10807_v41 = vpack.c.bf16 %v8093_v52, %v8093_v52  ;;  %v9768_v63 = vunpack.c.l.b16 %v10806_v59  ;;  %v6972_v45 = vrot.slane %v6971_v58, 1  ;;  %v6989_v53 = vrot.slane %v6988_v23, 4 }
 0x383   : > { %v10809_v56 = vpack.c.bf16 %v8099_v34, %v8099_v34  ;;  %v9770_v4 = vunpack.c.l.b16 %v10808_v61  ;;  %v6978_v28 = vmax.f32 %v6976_v37, %v6977_v33  ;;  %v6985_v15 = vmax.f32 %v6983_v3, %v6984_v36  ;;  %v13025_v34 = vpop.f32.mrb[35].mxu0 }
 0x384   : > { %v9769_v27 = vunpack.c.l.b16 %v10807_v41  ;;  %v6973_v11 = vmax.f32 %v6971_v58, %v6972_v45  ;;  %v6990_v18 = vmax.f32 %v6988_v23, %v6989_v53  ;;  %v2137_v46 = vcombine.high %v12988_v50, %v12988_v50 }
 0x385   : > { %v13010_v10 = vunpack.c.l.b16 %v10809_v56  ;;  %v6979_v62 = vrot.slane %v6978_v28, 1  ;;  %v6986_v54 = vrot.slane %v6985_v15, 1  ;;  %v2138_v57 = vcombine.high %v12993_v30, %v12993_v30 }
 0x386   : > { %v10024_v55 = vsel %vm9968_vm5, %v9769_v27, %v9768_v63  ;;  %v6991_v13 = vrot.slane %v6990_v18, 2  ;;  %v8473_v9 = vsel %vm7919_vm4, %v6973_v11, -inf  ;;  %v5119_v26 = vsel %vm4334_vm3, %v12988_v50, -inf }
 0x387   : > { %v13019_v23 = vsel %vm9970_vm6, %v9770_v4, %v10024_v55  ;;  %v6980_v53 = vmax.f32 %v6978_v28, %v6979_v62  ;;  %v6987_v37 = vmax.f32 %v6985_v15, %v6986_v54  ;;  %v8474_v3 = vmax.f32 %v12828_v47, %v8473_v9 }
 0x388   : > { %v6992_v52 = vmax.f32 %v6990_v18, %v6991_v13  ;;  %v5120_v31 = vrot.slane %v5119_v26, 4  ;;  %v5126_v59 = vsel %vm4334_vm3, %v2137_v46, -inf  ;;  %v5133_v58 = vsel %vm4334_vm3, %v12993_v30, -inf }
 0x389   : > { %v8476_v61 = vsel %vm7919_vm4, %v6980_v53, -inf  ;;  %v8479_v50 = vsel %vm7919_vm4, %v6987_v37, -inf  ;;  %v10934_v33 = vpack.c.bf16 %v8474_v3, %v8474_v3  ;;  %v5127_v4 = vrot.slane %v5126_v59, 4 }
 0x38a   : > { %v6993_v36 = vrot.slane %v6992_v52, 1  ;;  %v8477_v41 = vmax.f32 %v12836_v51, %v8476_v61  ;;  %v8480_v47 = vmax.f32 %v12844_v12, %v8479_v50  ;;  %v5121_v63 = vmax.f32 %v5119_v26, %v5120_v31 }
 0x38b   : > { %v9896_v45 = vunpack.c.l.b16 %v10934_v33  ;;  %v5128_v56 = vmax.f32 %v5126_v59, %v5127_v4  ;;  %v5134_v28 = vrot.slane %v5133_v58, 4  ;;  %v5140_v15 = vsel %vm4334_vm3, %v2138_v57, -inf }
 0x38c   : > { %v6994_v30 = vmax.f32 %v6992_v52, %v6993_v36  ;;  %v10935_v27 = vpack.c.bf16 %v8477_v41, %v8477_v41  ;;  %v10936_v11 = vpack.c.bf16 %v8480_v47, %v8480_v47  ;;  %v5122_v18 = vrot.slane %v5121_v63, 2 }
 0x38d   : > { %v5129_v46 = vrot.slane %v5128_v56, 2  ;;  %v5135_v62 = vmax.f32 %v5133_v58, %v5134_v28  ;;  %v5141_v54 = vrot.slane %v5140_v15, 4  ;;  %v1482_v55 = vmax.f32 %v12984_v29, 0.0  ;;  %v13037_v58 = vpop.f32.mrb[35].mxu1 }
 0x38e   : > { %v8482_v13 = vsel %vm7919_vm4, %v6994_v30, -inf  ;;  %v9897_v51 = vunpack.c.l.b16 %v10935_v27  ;;  %v9898_v9 = vunpack.c.l.b16 %v10936_v11  ;;  %v5123_v12 = vmax.f32 %v5121_v63, %v5122_v18 }
 0x38f   : > { %v8483_v26 = vmax.f32 %v12847_v25, %v8482_v13  ;;  %v5130_v53 = vmax.f32 %v5128_v56, %v5129_v46  ;;  %v5136_v37 = vrot.slane %v5135_v62, 2  ;;  %v5142_v3 = vmax.f32 %v5140_v15, %v5141_v54 }
 0x390   : > { %v10136_v57 = vsel %vm9968_vm5, %v9897_v51, %v9896_v45  ;;  %v5124_v52 = vrot.slane %v5123_v12, 1  ;;  %v3210_v31 = vcombine.high %v1482_v55, %v1482_v55  ;;  %v3217_v59 = vrot.slane %v1482_v55, %v11479_v14 }
 0x391   : > { %v10937_v61 = vpack.c.bf16 %v8483_v26, %v8483_v26  ;;  %v13040_v29 = vsel %vm9970_vm6, %v9898_v9, %v10136_v57  ;;  %v5131_v50 = vrot.slane %v5130_v53, 1  ;;  %v5137_v33 = vmax.f32 %v5135_v62, %v5136_v37 }
 0x392   : > { %v5125_v4 = vmax.f32 %v5123_v12, %v5124_v52  ;;  %v5143_v36 = vrot.slane %v5142_v3, 2  ;;  %v3224_v25 = vrot.slane %v3210_v31, %v11479_v14  ;;  %v3225_v41 = vcombine.high %v3217_v59, %v3217_v59 }
 0x393   : > { %v13043_v47 = vunpack.c.l.b16 %v10937_v61  ;;  %v5132_v63 = vmax.f32 %v5130_v53, %v5131_v50  ;;  %v5138_v45 = vrot.slane %v5137_v33, 1  ;;  %v6911_v56 = vsel %vm4334_vm3, %v3217_v59, -inf }
 0x394   : > { %v5144_v28 = vmax.f32 %v5142_v3, %v5143_v36  ;;  %v8065_v15 = vsel %vm7919_vm4, %v5125_v4, -inf  ;;  %v3226_v30 = vcombine.high %v3224_v25, %v3224_v25  ;;  %v6912_v27 = vrot.slane %v6911_v56, 4 }
 0x395   : > { %v5139_v11 = vmax.f32 %v5137_v33, %v5138_v45  ;;  %v8066_v18 = vmax.f32 %v12858_v0, %v8065_v15  ;;  %v8068_v46 = vsel %vm7919_vm4, %v5132_v63, -inf  ;;  %v6918_v62 = vsel %vm4334_vm3, %v3225_v41, -inf }
 0x396   : > { %v5145_v54 = vrot.slane %v5144_v28, 1  ;;  %v8069_v55 = vmax.f32 %v12861_v44, %v8068_v46  ;;  %v6913_v13 = vmax.f32 %v6911_v56, %v6912_v27  ;;  %v6919_v51 = vrot.slane %v6918_v62, 4 }
 0x397   : > { %v8071_v9 = vsel %vm7919_vm4, %v5139_v11, -inf  ;;  %v10798_v12 = vpack.c.bf16 %v8066_v18, %v8066_v18  ;;  %v6925_v26 = vsel %vm4334_vm3, %v3224_v25, -inf  ;;  %v6932_v53 = vsel %vm4334_vm3, %v3226_v30, -inf }
 0x398   : > { %v5146_v37 = vmax.f32 %v5144_v28, %v5145_v54  ;;  %v8072_v3 = vmax.f32 %v12865_v38, %v8071_v9  ;;  %v10799_v0 = vpack.c.bf16 %v8069_v55, %v8069_v55  ;;  %v6914_v57 = vrot.slane %v6913_v13, 2  ;;  %v13061_v28 = vld [vmem:[%s14780_s2] ss:$0 sm:$0xff] }
 0x399   : > { %v9760_v52 = vunpack.c.l.b16 %v10798_v12  ;;  %v6920_v31 = vmax.f32 %v6918_v62, %v6919_v51  ;;  %v6926_v59 = vrot.slane %v6925_v26, 4  ;;  %v6933_v61 = vrot.slane %v6932_v53, 4 }
 0x39a   : > { %v8074_v44 = vsel %vm7919_vm4, %v5146_v37, -inf  ;;  %v10800_v50 = vpack.c.bf16 %v8072_v3, %v8072_v3  ;;  %v9761_v33 = vunpack.c.l.b16 %v10799_v0  ;;  %v6915_v4 = vmax.f32 %v6913_v13, %v6914_v57  ;;  %v13079_v37 = vpop.f32.mrb[36].mxu0 }
 0x39b   : > { %v8075_v36 = vmax.f32 %v12868_v2, %v8074_v44  ;;  %v6921_v41 = vrot.slane %v6920_v31, 2  ;;  %v6927_v25 = vmax.f32 %v6925_v26, %v6926_v59  ;;  %v6934_v63 = vmax.f32 %v6932_v53, %v6933_v61 }
 0x39c   : > { %v9762_v45 = vunpack.c.l.b16 %v10800_v50  ;;  %v10017_v56 = vsel %vm9968_vm5, %v9761_v33, %v9760_v52  ;;  %v6916_v38 = vrot.slane %v6915_v4, 1  ;;  %v1003_v15 = vadd.f32 %v13061_v28, %v12757_v8 }
 0x39d   : > { %v10801_v30 = vpack.c.bf16 %v8075_v36, %v8075_v36  ;;  %v6922_v27 = vmax.f32 %v6920_v31, %v6921_v41  ;;  %v6928_v11 = vrot.slane %v6927_v25, 2  ;;  %v6935_v18 = vrot.slane %v6934_v63, 2 }
 0x39e   : > { %v13066_v2 = vsel %vm9970_vm6, %v9762_v45, %v10017_v56  ;;  %v6917_v46 = vmax.f32 %v6915_v4, %v6916_v38  ;;  %v1421_v62 = vmax.f32 %v1003_v15, 0.0  ;;  %v13071_v54 = vsel %vm9972_vm7, %v13010_v10, %v13019_v23  ;;  %v13085_v4 = vpop.f32.mrb[36].mxu1 }
 0x39f   : > { %v13073_v55 = vunpack.c.l.b16 %v10801_v30  ;;  %v6923_v13 = vrot.slane %v6922_v27, 1  ;;  %v6929_v51 = vmax.f32 %v6927_v25, %v6928_v11  ;;  %v6936_v9 = vmax.f32 %v6934_v63, %v6935_v18 }
 0x3a0   : > { %v8449_v8 = vsel %vm7919_vm4, %v6917_v46, -inf  ;;  %v2173_v12 = vcombine.high %v1421_v62, %v1421_v62  ;;  %v2180_v26 = vrot.slane %v1421_v62, %v11479_v14  ;;  %v1259_v53 = vadd.f32 %v13061_v28, %v12781_v7 }
 0x3a1   : > { %v6924_v3 = vmax.f32 %v6922_v27, %v6923_v13  ;;  %v6930_v0 = vrot.slane %v6929_v51, 1  ;;  %v6937_v57 = vrot.slane %v6936_v9, 1  ;;  %v8450_v10 = vmax.f32 %v12872_v20, %v8449_v8 }
 0x3a2   : > { %v2187_v23 = vrot.slane %v2173_v12, %v11479_v14  ;;  %v2188_v52 = vcombine.high %v2180_v26, %v2180_v26  ;;  %v5203_v31 = vsel %vm4334_vm3, %v2180_v26, -inf  ;;  %v1485_v59 = vmax.f32 %v1259_v53, 0.0 }
 0x3a3   : > { %v6931_v61 = vmax.f32 %v6929_v51, %v6930_v0  ;;  %v6938_v44 = vmax.f32 %v6936_v9, %v6937_v57  ;;  %v8452_v50 = vsel %vm7919_vm4, %v6924_v3, -inf  ;;  %v10926_v33 = vpack.c.bf16 %v8450_v10, %v8450_v10 }
 0x3a4   : > { %v8453_v7 = vmax.f32 %v12877_v16, %v8452_v50  ;;  %v2189_v36 = vcombine.high %v2187_v23, %v2187_v23  ;;  %v5204_v41 = vrot.slane %v5203_v31, 4  ;;  %v5210_v25 = vsel %vm4334_vm3, %v2188_v52, -inf }
 0x3a5   : > { %v8455_v20 = vsel %vm7919_vm4, %v6931_v61, -inf  ;;  %v8458_v63 = vsel %vm7919_vm4, %v6938_v44, -inf  ;;  %v9888_v45 = vunpack.c.l.b16 %v10926_v33  ;;  %v5211_v56 = vrot.slane %v5210_v25, 4 }
 0x3a6   : > { %v8456_v38 = vmax.f32 %v12888_v43, %v8455_v20  ;;  %v8459_v15 = vmax.f32 %v12891_v21, %v8458_v63  ;;  %v10927_v30 = vpack.c.bf16 %v8453_v7, %v8453_v7  ;;  %v5205_v27 = vmax.f32 %v5203_v31, %v5204_v41 }
 0x3a7   : > { %v5212_v11 = vmax.f32 %v5210_v25, %v5211_v56  ;;  %v5217_v18 = vsel %vm4334_vm3, %v2187_v23, -inf  ;;  %v5224_v16 = vsel %vm4334_vm3, %v2189_v36, -inf  ;;  %v3261_v46 = vcombine.high %v1485_v59, %v1485_v59 }
 0x3a8   : > { %v10928_v62 = vpack.c.bf16 %v8456_v38, %v8456_v38  ;;  %v10929_v13 = vpack.c.bf16 %v8459_v15, %v8459_v15  ;;  %v9889_v51 = vunpack.c.l.b16 %v10927_v30  ;;  %v5206_v9 = vrot.slane %v5205_v27, 2 }
 0x3a9   : > { %v5213_v8 = vrot.slane %v5212_v11, 2  ;;  %v5218_v12 = vrot.slane %v5217_v18, 4  ;;  %v5225_v26 = vrot.slane %v5224_v16, 4  ;;  %v3268_v53 = vrot.slane %v1485_v59, %v11479_v14 }
 0x3aa   : > { %v9890_v43 = vunpack.c.l.b16 %v10928_v62  ;;  %v13096_v3 = vunpack.c.l.b16 %v10929_v13  ;;  %v10129_v21 = vsel %vm9968_vm5, %v9889_v51, %v9888_v45  ;;  %v5207_v0 = vmax.f32 %v5205_v27, %v5206_v9 }
 0x3ab   : > { %v5214_v57 = vmax.f32 %v5212_v11, %v5213_v8  ;;  %v5219_v10 = vmax.f32 %v5217_v18, %v5218_v12  ;;  %v5226_v23 = vmax.f32 %v5224_v16, %v5225_v26  ;;  %v3275_v52 = vrot.slane %v3261_v46, %v11479_v14  ;;  %v13111_v26 = vpop.f32.mrb[37].mxu0 }
 0x3ac   : > { %v13101_v31 = vsel %vm9970_vm6, %v9890_v43, %v10129_v21  ;;  %v5208_v61 = vrot.slane %v5207_v0, 1  ;;  %v3276_v44 = vcombine.high %v3268_v53, %v3268_v53  ;;  %v6995_v50 = vsel %vm4334_vm3, %v3268_v53, -inf }
 0x3ad   : > { %v5215_v33 = vrot.slane %v5214_v57, 1  ;;  %v5220_v59 = vrot.slane %v5219_v10, 2  ;;  %v5227_v7 = vrot.slane %v5226_v23, 2  ;;  %v3277_v36 = vcombine.high %v3275_v52, %v3275_v52 }
 0x3ae   : > { %v5209_v41 = vmax.f32 %v5207_v0, %v5208_v61  ;;  %v6996_v25 = vrot.slane %v6995_v50, 4  ;;  %v7002_v20 = vsel %vm4334_vm3, %v3276_v44, -inf  ;;  %v7009_v63 = vsel %vm4334_vm3, %v3275_v52, -inf }
 0x3af   : > { %v5216_v45 = vmax.f32 %v5214_v57, %v5215_v33  ;;  %v5221_v56 = vmax.f32 %v5219_v10, %v5220_v59  ;;  %v5228_v38 = vmax.f32 %v5226_v23, %v5227_v7  ;;  %v7003_v15 = vrot.slane %v7002_v20, 4 }
 0x3b0   : > { %v8101_v30 = vsel %vm7919_vm4, %v5209_v41, -inf  ;;  %v6997_v27 = vmax.f32 %v6995_v50, %v6996_v25  ;;  %v7010_v11 = vrot.slane %v7009_v63, 4  ;;  %v7016_v18 = vsel %vm4334_vm3, %v3277_v36, -inf }
 0x3b1   : > { %v5222_v16 = vrot.slane %v5221_v56, 1  ;;  %v5229_v46 = vrot.slane %v5228_v38, 1  ;;  %v8102_v62 = vmax.f32 %v12901_v60, %v8101_v30  ;;  %v8104_v13 = vsel %vm7919_vm4, %v5216_v45, -inf }
 0x3b2   : > { %v8105_v51 = vmax.f32 %v12904_v32, %v8104_v13  ;;  %v6998_v9 = vrot.slane %v6997_v27, 2  ;;  %v7004_v8 = vmax.f32 %v7002_v20, %v7003_v15  ;;  %v7011_v12 = vmax.f32 %v7009_v63, %v7010_v11 }
 0x3b3   : > { %v5223_v53 = vmax.f32 %v5221_v56, %v5222_v16  ;;  %v5230_v43 = vmax.f32 %v5228_v38, %v5229_v46  ;;  %v10810_v21 = vpack.c.bf16 %v8102_v62, %v8102_v62  ;;  %v7017_v0 = vrot.slane %v7016_v18, 4 }
 0x3b4   : > { %v10811_v57 = vpack.c.bf16 %v8105_v51, %v8105_v51  ;;  %v6999_v10 = vmax.f32 %v6997_v27, %v6998_v9  ;;  %v7005_v23 = vrot.slane %v7004_v8, 2  ;;  %v7012_v52 = vrot.slane %v7011_v12, 2 }
 0x3b5   : > { %v8107_v61 = vsel %vm7919_vm4, %v5223_v53, -inf  ;;  %v8110_v60 = vsel %vm7919_vm4, %v5230_v43, -inf  ;;  %v9772_v44 = vunpack.c.l.b16 %v10810_v21  ;;  %v7018_v50 = vmax.f32 %v7016_v18, %v7017_v0 }
 0x3b6   : > { %v8108_v32 = vmax.f32 %v12907_v39, %v8107_v61  ;;  %v8111_v33 = vmax.f32 %v12912_v19, %v8110_v60  ;;  %v9773_v59 = vunpack.c.l.b16 %v10811_v57  ;;  %v7000_v7 = vrot.slane %v6999_v10, 1 }
 0x3b7   : > { %v10027_v36 = vsel %vm9974_vm8, %v9772_v44, %v13071_v54  ;;  %v7006_v41 = vmax.f32 %v7004_v8, %v7005_v23  ;;  %v7013_v25 = vmax.f32 %v7011_v12, %v7012_v52  ;;  %v7019_v20 = vrot.slane %v7018_v50, 2 }
 0x3b8   : > { %v10812_v63 = vpack.c.bf16 %v8108_v32, %v8108_v32  ;;  %v10813_v45 = vpack.c.bf16 %v8111_v33, %v8111_v33  ;;  %v10028_v56 = vsel %vm9976_vm9, %v9773_v59, %v10027_v36  ;;  %v7001_v38 = vmax.f32 %v6999_v10, %v7000_v7 }
 0x3b9   : > { %v7007_v15 = vrot.slane %v7006_v41, 1  ;;  %v7014_v30 = vrot.slane %v7013_v25, 1  ;;  %v7020_v27 = vmax.f32 %v7018_v50, %v7019_v20  ;;  %v10138_v39 = vsel %vm9972_vm7, %v13043_v47, %v13040_v29 }
 0x3ba   : > { %v9774_v19 = vunpack.c.l.b16 %v10812_v63  ;;  %v9775_v11 = vunpack.c.l.b16 %v10813_v45  ;;  %v8485_v18 = vsel %vm7919_vm4, %v7001_v38, -inf  ;;  %v995_v54 = vadd.f32 %v13061_v28, %v12805_v24 }
 0x3bb   : > { %v7008_v16 = vmax.f32 %v7006_v41, %v7007_v15  ;;  %v7015_v46 = vmax.f32 %v7013_v25, %v7014_v30  ;;  %v7021_v62 = vrot.slane %v7020_v27, 1  ;;  %v8486_v13 = vmax.f32 %v12919_v6, %v8485_v18  ;;  %v13138_v6 = vpop.f32.mrb[37].mxu1 }
 0x3bc   : > { %v10029_v51 = vsel %vm9978_vm10, %v9774_v19, %v10028_v56  ;;  %v1419_v9 = vmax.f32 %v995_v54, 0.0  ;;  %v13131_v29 = vsel %vm9972_vm7, %v13073_v55, %v13066_v2  ;;  %v1251_v47 = vadd.f32 %v13061_v28, %v12852_v40 }
 0x3bd   : > { %v10030_v8 = vsel %vm9980_vm11, %v9775_v11, %v10029_v51  ;;  %v7022_v24 = vmax.f32 %v7020_v27, %v7021_v62  ;;  %v8488_v12 = vsel %vm7919_vm4, %v7008_v16, -inf  ;;  %v8491_v53 = vsel %vm7919_vm4, %v7015_v46, -inf }
 0x3be   : > { %v10206_v43 = vpack.c.b16 %v10030_v8, %v10030_v8  ;;  %v8489_v21 = vmax.f32 %v12926_v5, %v8488_v12  ;;  %v8492_v0 = vmax.f32 %v12929_v42, %v8491_v53  ;;  %v10938_v57 = vpack.c.bf16 %v8486_v13, %v8486_v13 }
 0x3bf   : > { %v8494_v2 = vsel %vm7919_vm4, %v7022_v24, -inf  ;;  %v2139_v55 = vcombine.high %v1419_v9, %v1419_v9  ;;  %v2146_v40 = vrot.slane %v1419_v9, %v11479_v14  ;;  %v1483_v10 = vmax.f32 %v1251_v47, 0.0 }
 0x3c0   : > { %10271 = vst.msk [vmem:[%s11900_s4 + $0x1c] sm:$0xf] %vm10263_vm12, %v10206_v43  ;;  %v8495_v23 = vmax.f32 %v12934_v22, %v8494_v2  ;;  %v10939_v52 = vpack.c.bf16 %v8489_v21, %v8489_v21  ;;  %v10940_v61 = vpack.c.bf16 %v8492_v0, %v8492_v0  ;;  %v9900_v60 = vunpack.c.l.b16 %v10938_v57 }
 0x3c1   : > { %v2153_v44 = vrot.slane %v2139_v55, %v11479_v14  ;;  %v2154_v50 = vcombine.high %v2146_v40, %v2146_v40  ;;  %v5147_v5 = vsel %vm4334_vm3, %v2146_v40, -inf  ;;  %v3227_v42 = vcombine.high %v1483_v10, %v1483_v10 }
 0x3c2   : > { %v10941_v32 = vpack.c.bf16 %v8495_v23, %v8495_v23  ;;  %v9901_v33 = vunpack.c.l.b16 %v10939_v52  ;;  %v9902_v59 = vunpack.c.l.b16 %v10940_v61  ;;  %v10139_v7 = vsel %vm9974_vm8, %v9900_v60, %v10138_v39 }
 0x3c3   : > { %v2155_v36 = vcombine.high %v2153_v44, %v2153_v44  ;;  %v5148_v41 = vrot.slane %v5147_v5, 4  ;;  %v5154_v25 = vsel %vm4334_vm3, %v2154_v50, -inf  ;;  %v5161_v22 = vsel %vm4334_vm3, %v2153_v44, -inf }
 0x3c4   : > { %v9903_v20 = vunpack.c.l.b16 %v10941_v32  ;;  %v10140_v63 = vsel %vm9976_vm9, %v9901_v33, %v10139_v7  ;;  %v5155_v45 = vrot.slane %v5154_v25, 4  ;;  %v5162_v56 = vrot.slane %v5161_v22, 4  ;;  %v13164_v32 = vpop.f32.mrb[38].mxu0 }
 0x3c5   : > { %v10141_v38 = vsel %vm9978_vm10, %v9902_v59, %v10140_v63  ;;  %v5149_v15 = vmax.f32 %v5147_v5, %v5148_v41  ;;  %v5168_v30 = vsel %vm4334_vm3, %v2155_v36, -inf  ;;  %v3234_v27 = vrot.slane %v1483_v10, %v11479_v14 }
 0x3c6   : > { %v10142_v39 = vsel %vm9980_vm11, %v9903_v20, %v10141_v38  ;;  %v5156_v19 = vmax.f32 %v5154_v25, %v5155_v45  ;;  %v5163_v11 = vmax.f32 %v5161_v22, %v5162_v56  ;;  %v5169_v18 = vrot.slane %v5168_v30, 4 }
 0x3c7   : > { %v10222_v54 = vpack.c.b16 %v10142_v39, %v10142_v39  ;;  %v5150_v16 = vrot.slane %v5149_v15, 2  ;;  %v3241_v46 = vrot.slane %v3227_v42, %v11479_v14  ;;  %v3242_v62 = vcombine.high %v3234_v27, %v3234_v27 }
 0x3c8   : > { %v5157_v13 = vrot.slane %v5156_v19, 2  ;;  %v5164_v51 = vrot.slane %v5163_v11, 2  ;;  %v5170_v9 = vmax.f32 %v5168_v30, %v5169_v18  ;;  %v6939_v47 = vsel %vm4334_vm3, %v3234_v27, -inf }
 0x3c9   : > { %10287 = vst.msk [vmem:[%s11900_s4 + $0x5c] sm:$0xf] %vm10263_vm12, %v10222_v54  ;;  %v5151_v8 = vmax.f32 %v5149_v15, %v5150_v16  ;;  %v3243_v24 = vcombine.high %v3241_v46, %v3241_v46  ;;  %v6940_v12 = vrot.slane %v6939_v47, 4  ;;  %v6946_v53 = vsel %vm4334_vm3, %v3242_v62, -inf }
 0x3ca   : > { %v5158_v43 = vmax.f32 %v5156_v19, %v5157_v13  ;;  %v5165_v21 = vmax.f32 %v5163_v11, %v5164_v51  ;;  %v5171_v0 = vrot.slane %v5170_v9, 2  ;;  %v6947_v57 = vrot.slane %v6946_v53, 4 }
 0x3cb   : > { %v5152_v2 = vrot.slane %v5151_v8, 1  ;;  %v6941_v55 = vmax.f32 %v6939_v47, %v6940_v12  ;;  %v6953_v40 = vsel %vm4334_vm3, %v3241_v46, -inf  ;;  %v6960_v10 = vsel %vm4334_vm3, %v3243_v24, -inf }
 0x3cc   : > { %v5159_v23 = vrot.slane %v5158_v43, 1  ;;  %v5166_v52 = vrot.slane %v5165_v21, 1  ;;  %v5172_v61 = vmax.f32 %v5170_v9, %v5171_v0  ;;  %v6948_v60 = vmax.f32 %v6946_v53, %v6947_v57 }
 0x3cd   : > { %v5153_v44 = vmax.f32 %v5151_v8, %v5152_v2  ;;  %v6942_v50 = vrot.slane %v6941_v55, 2  ;;  %v6954_v5 = vrot.slane %v6953_v40, 4  ;;  %v6961_v42 = vrot.slane %v6960_v10, 4 }
 0x3ce   : > { %v5160_v33 = vmax.f32 %v5158_v43, %v5159_v23  ;;  %v5167_v59 = vmax.f32 %v5165_v21, %v5166_v52  ;;  %v5173_v7 = vrot.slane %v5172_v61, 1  ;;  %v6949_v36 = vrot.slane %v6948_v60, 2  ;;  %v14858_v52 = vld [vmem:[#allocation8_spill] sm:$0xff] }
 0x3cf   : > { %v8077_v41 = vsel %vm7919_vm4, %v5153_v44, -inf  ;;  %v6943_v25 = vmax.f32 %v6941_v55, %v6942_v50  ;;  %v6955_v22 = vmax.f32 %v6953_v40, %v6954_v5  ;;  %v6962_v20 = vmax.f32 %v6960_v10, %v6961_v42  ;;  %v14859_v44 = vld [vmem:[#allocation13_spill] sm:$0xff] }
 0x3d0   : > { %v5174_v63 = vmax.f32 %v5172_v61, %v5173_v7  ;;  %v8078_v45 = vmax.f32 %v12945_v49, %v8077_v41  ;;  %v8080_v56 = vsel %vm7919_vm4, %v5160_v33, -inf  ;;  %v8083_v38 = vsel %vm7919_vm4, %v5167_v59, -inf  ;;  %v14860_v42 = vld [vmem:[#allocation9_spill] sm:$0xff]  ;;  %v14861_v59 = vld [vmem:[#allocation11_spill] sm:$0xff] }
 0x3d1   : > { %v8081_v15 = vmax.f32 %v12948_v35, %v8080_v56  ;;  %v8084_v30 = vmax.f32 %v12951_v1, %v8083_v38  ;;  %v6944_v27 = vrot.slane %v6943_v25, 1  ;;  %v6950_v39 = vmax.f32 %v6948_v60, %v6949_v36  ;;  %v14862_v36 = vld [vmem:[#allocation5_spill] sm:$0xff]  ;;  %v14864_v38 = vld [vmem:[#allocation14_spill] sm:$0xff] }
 0x3d2   : > { %v8086_v19 = vsel %vm7919_vm4, %v5174_v63, -inf  ;;  %v10802_v11 = vpack.c.bf16 %v8078_v45, %v8078_v45  ;;  %v6956_v18 = vrot.slane %v6955_v22, 2  ;;  %v6963_v54 = vrot.slane %v6962_v20, 2  ;;  %v14863_v45 = vld [vmem:[#allocation10_spill] sm:$0xff] }
 0x3d3   : > { %v8087_v16 = vmax.f32 %v12954_v17, %v8086_v19  ;;  %v10803_v46 = vpack.c.bf16 %v8081_v15, %v8081_v15  ;;  %v10804_v62 = vpack.c.bf16 %v8084_v30, %v8084_v30  ;;  %v6945_v49 = vmax.f32 %v6943_v25, %v6944_v27 }
 0x3d4   : > { %v9764_v13 = vunpack.c.l.b16 %v10802_v11  ;;  %v6951_v51 = vrot.slane %v6950_v39, 1  ;;  %v6957_v9 = vmax.f32 %v6955_v22, %v6956_v18  ;;  %v6964_v47 = vmax.f32 %v6962_v20, %v6963_v54 }
 0x3d5   : > { %v10805_v8 = vpack.c.bf16 %v8087_v16, %v8087_v16  ;;  %v9765_v35 = vunpack.c.l.b16 %v10803_v46  ;;  %v9766_v24 = vunpack.c.l.b16 %v10804_v62  ;;  %v8461_v1 = vsel %vm7919_vm4, %v6945_v49, -inf }
 0x3d6   : > { %v10020_v12 = vsel %vm9974_vm8, %v9764_v13, %v13131_v29  ;;  %v6952_v53 = vmax.f32 %v6950_v39, %v6951_v51  ;;  %v6958_v43 = vrot.slane %v6957_v9, 1  ;;  %v6965_v21 = vrot.slane %v6964_v47, 1 }
 0x3d7   : > { %v9767_v0 = vunpack.c.l.b16 %v10805_v8  ;;  %v10021_v17 = vsel %vm9976_vm9, %v9765_v35, %v10020_v12  ;;  %v8462_v57 = vmax.f32 %v12967_v48, %v8461_v1  ;;  %v10131_v2 = vsel %vm9972_vm7, %v13096_v3, %v13101_v31  ;;  %v13188_v48 = vpop.f32.mrb[38].mxu1 }
 0x3d8   : > { %v10022_v55 = vsel %vm9978_vm10, %v9766_v24, %v10021_v17  ;;  %v6959_v40 = vmax.f32 %v6957_v9, %v6958_v43  ;;  %v6966_v10 = vmax.f32 %v6964_v47, %v6965_v21  ;;  %v8464_v23 = vsel %vm7919_vm4, %v6952_v53, -inf }
 0x3d9   : > { %v10023_v29 = vsel %vm9980_vm11, %v9767_v0, %v10022_v55  ;;  %v8465_v61 = vmax.f32 %v14858_v52, %v8464_v23  ;;  %v10930_v60 = vpack.c.bf16 %v8462_v57, %v8462_v57  ;;  %v1016_v50 = vadd.f32 %v13061_v28, %v14859_v44 }
 0x3da   : > { %v10205_v5 = vpack.c.b16 %v10023_v29, %v10023_v29  ;;  %v8467_v3 = vsel %vm7919_vm4, %v6959_v40, -inf  ;;  %v8470_v31 = vsel %vm7919_vm4, %v6966_v10, -inf  ;;  %v1272_v33 = vadd.f32 %v13061_v28, %v14860_v42 }
 0x3db   : > { %v8468_v7 = vmax.f32 %v14861_v59, %v8467_v3  ;;  %v8471_v41 = vmax.f32 %v14862_v36, %v8470_v31  ;;  %v10931_v25 = vpack.c.bf16 %v8465_v61, %v8465_v61  ;;  %v9892_v22 = vunpack.c.l.b16 %v10930_v60 }
 0x3dc   : > { %10270 = vst.msk [vmem:[%s11900_s4 + $0x18] sm:$0xf] %vm10263_vm12, %v10205_v5  ;;  %v1424_v20 = vmax.f32 %v1016_v50, 0.0  ;;  %v1488_v63 = vmax.f32 %v1272_v33, 0.0  ;;  %v1008_v56 = vadd.f32 %v13061_v28, %v14863_v45  ;;  %v13202_v15 = vadd.f32 %v13061_v28, %v14864_v38 }
 0x3dd   : > { %v10932_v30 = vpack.c.bf16 %v8468_v7, %v8468_v7  ;;  %v10933_v27 = vpack.c.bf16 %v8471_v41, %v8471_v41  ;;  %v9893_v39 = vunpack.c.l.b16 %v10931_v25  ;;  %v10132_v19 = vsel %vm9974_vm8, %v9892_v22, %v10131_v2 }
 0x3de   : > { %v2224_v11 = vcombine.high %v1424_v20, %v1424_v20  ;;  %v2231_v18 = vrot.slane %v1424_v20, %v11479_v14  ;;  %v3312_v54 = vcombine.high %v1488_v63, %v1488_v63  ;;  %v3319_v16 = vrot.slane %v1488_v63, %v11479_v14  ;;  %v13224_v20 = vpop.f32.mrb[39].mxu0 }
 0x3df   : > { %v9894_v46 = vunpack.c.l.b16 %v10932_v30  ;;  %v9895_v62 = vunpack.c.l.b16 %v10933_v27  ;;  %v10133_v49 = vsel %vm9976_vm9, %v9893_v39, %v10132_v19  ;;  %v13208_v13 = vmax.f32 %v1008_v56, 0.0 }
 0x3e0   : > { %v2238_v51 = vrot.slane %v2224_v11, %v11479_v14  ;;  %v2239_v9 = vcombine.high %v2231_v18, %v2231_v18  ;;  %v5287_v47 = vsel %vm4334_vm3, %v2231_v18, -inf  ;;  %v3326_v8 = vrot.slane %v3312_v54, %v11479_v14 }
 0x3e1   : > { %v10134_v35 = vsel %vm9978_vm10, %v9894_v46, %v10133_v49  ;;  %v5288_v24 = vrot.slane %v5287_v47, 4  ;;  %v3327_v1 = vcombine.high %v3319_v16, %v3319_v16  ;;  %v7079_v12 = vsel %vm4334_vm3, %v3319_v16, -inf }
 0x3e2   : > { %v10135_v53 = vsel %vm9980_vm11, %v9895_v62, %v10134_v35  ;;  %v2240_v43 = vcombine.high %v2238_v51, %v2238_v51  ;;  %v5294_v21 = vsel %vm4334_vm3, %v2239_v9, -inf  ;;  %v5301_v0 = vsel %vm4334_vm3, %v2238_v51, -inf }
 0x3e3   : > { %v10221_v17 = vpack.c.b16 %v10135_v53, %v10135_v53  ;;  %v5289_v57 = vmax.f32 %v5287_v47, %v5288_v24  ;;  %v5295_v2 = vrot.slane %v5294_v21, 4  ;;  %v5302_v55 = vrot.slane %v5301_v0, 4 }
 0x3e4   : > { %v5308_v40 = vsel %vm4334_vm3, %v2240_v43, -inf  ;;  %v3328_v10 = vcombine.high %v3326_v8, %v3326_v8  ;;  %v7080_v23 = vrot.slane %v7079_v12, 4  ;;  %v7086_v29 = vsel %vm4334_vm3, %v3327_v1, -inf }
 0x3e5   : > { %10286 = vst.msk [vmem:[%s11900_s4 + $0x58] sm:$0xf] %vm10263_vm12, %v10221_v17  ;;  %v5290_v52 = vrot.slane %v5289_v57, 2  ;;  %v5296_v61 = vmax.f32 %v5294_v21, %v5295_v2  ;;  %v5303_v60 = vmax.f32 %v5301_v0, %v5302_v55  ;;  %v5309_v44 = vrot.slane %v5308_v40, 4 }
 0x3e6   : > { %v7081_v50 = vmax.f32 %v7079_v12, %v7080_v23  ;;  %v7087_v5 = vrot.slane %v7086_v29, 4  ;;  %v7093_v3 = vsel %vm4334_vm3, %v3326_v8, -inf  ;;  %v7100_v31 = vsel %vm4334_vm3, %v3328_v10, -inf }
 0x3e7   : > { %v5291_v42 = vmax.f32 %v5289_v57, %v5290_v52  ;;  %v5297_v33 = vrot.slane %v5296_v61, 2  ;;  %v5304_v59 = vrot.slane %v5303_v60, 2  ;;  %v5310_v7 = vmax.f32 %v5308_v40, %v5309_v44 }
 0x3e8   : > { %v7082_v36 = vrot.slane %v7081_v50, 2  ;;  %v7088_v41 = vmax.f32 %v7086_v29, %v7087_v5  ;;  %v7094_v25 = vrot.slane %v7093_v3, 4  ;;  %v7101_v22 = vrot.slane %v7100_v31, 4 }
 0x3e9   : > { %v5292_v63 = vrot.slane %v5291_v42, 1  ;;  %v5298_v45 = vmax.f32 %v5296_v61, %v5297_v33  ;;  %v5305_v56 = vmax.f32 %v5303_v60, %v5304_v59  ;;  %v5311_v38 = vrot.slane %v5310_v7, 2 }
 0x3ea   : > { %v7083_v30 = vmax.f32 %v7081_v50, %v7082_v36  ;;  %v7089_v27 = vrot.slane %v7088_v41, 2  ;;  %v7095_v39 = vmax.f32 %v7093_v3, %v7094_v25  ;;  %v7102_v19 = vmax.f32 %v7100_v31, %v7101_v22  ;;  %v14865_v50 = vld [vmem:[#allocation2_spill] sm:$0xff] }
 0x3eb   : > { %v5293_v11 = vmax.f32 %v5291_v42, %v5292_v63  ;;  %v5299_v18 = vrot.slane %v5298_v45, 1  ;;  %v5306_v54 = vrot.slane %v5305_v56, 1  ;;  %v5312_v16 = vmax.f32 %v5310_v7, %v5311_v38  ;;  %v13263_v63 = vpop.f32.mrb[39].mxu1 }
 0x3ec   : > { %v7084_v46 = vrot.slane %v7083_v30, 1  ;;  %v7090_v62 = vmax.f32 %v7088_v41, %v7089_v27  ;;  %v7096_v49 = vrot.slane %v7095_v39, 2  ;;  %v7103_v51 = vrot.slane %v7102_v19, 2 }
 0x3ed   : > { %v5300_v9 = vmax.f32 %v5298_v45, %v5299_v18  ;;  %v5307_v47 = vmax.f32 %v5305_v56, %v5306_v54  ;;  %v5313_v8 = vrot.slane %v5312_v16, 1  ;;  %v13227_v35 = vsel %vm7919_vm4, %v5293_v11, -inf }
 0x3ee   : > { %v7085_v24 = vmax.f32 %v7083_v30, %v7084_v46  ;;  %v7091_v1 = vrot.slane %v7090_v62, 1  ;;  %v7097_v12 = vmax.f32 %v7095_v39, %v7096_v49  ;;  %v7104_v53 = vmax.f32 %v7102_v19, %v7103_v51 }
 0x3ef   : > { %v5314_v43 = vmax.f32 %v5312_v16, %v5313_v8  ;;  %v13230_v21 = vsel %vm7919_vm4, %v5300_v9, -inf  ;;  %v13233_v0 = vsel %vm7919_vm4, %v5307_v47, -inf  ;;  %v2190_v17 = vcombine.high %v13208_v13, %v13208_v13 }
 0x3f0   : > { %v7092_v57 = vmax.f32 %v7090_v62, %v7091_v1  ;;  %v7098_v2 = vrot.slane %v7097_v12, 1  ;;  %v7105_v55 = vrot.slane %v7104_v53, 1  ;;  %v13238_v40 = vsel %vm7919_vm4, %v7085_v24, -inf }
 0x3f1   : > { %v13241_v10 = vsel %vm7919_vm4, %v5314_v43, -inf  ;;  %v2197_v23 = vrot.slane %v13208_v13, %v11479_v14  ;;  %v2204_v29 = vrot.slane %v2190_v17, %v11479_v14  ;;  %v1486_v52 = vmax.f32 %v13202_v15, 0.0 }
 0x3f2   : > { %v7099_v61 = vmax.f32 %v7097_v12, %v7098_v2  ;;  %v7106_v60 = vmax.f32 %v7104_v53, %v7105_v55  ;;  %v13248_v44 = vsel %vm7919_vm4, %v7092_v57, -inf  ;;  %v1019_v5 = vadd.f32 %v13061_v28, %v14865_v50 }
 0x3f3   : > { %v2205_v3 = vcombine.high %v2197_v23, %v2197_v23  ;;  %v2206_v31 = vcombine.high %v2204_v29, %v2204_v29  ;;  %v5231_v42 = vsel %vm4334_vm3, %v2197_v23, -inf  ;;  %v5245_v33 = vsel %vm4334_vm3, %v2204_v29, -inf }
 0x3f4   : > { %v13255_v13 = vsel %vm7919_vm4, %v7099_v61, -inf  ;;  %v13258_v59 = vsel %vm7919_vm4, %v7106_v60, -inf  ;;  %v5232_v15 = vrot.slane %v5231_v42, 4  ;;  %v5246_v7 = vrot.slane %v5245_v33, 4 }
 0x3f5   : > { %v5238_v36 = vsel %vm4334_vm3, %v2205_v3, -inf  ;;  %v5252_v41 = vsel %vm4334_vm3, %v2206_v31, -inf  ;;  %v3278_v25 = vcombine.high %v1486_v52, %v1486_v52  ;;  %v3285_v22 = vrot.slane %v1486_v52, %v11479_v14 }
 0x3f6   : > { %v5233_v45 = vmax.f32 %v5231_v42, %v5232_v15  ;;  %v5239_v56 = vrot.slane %v5238_v36, 4  ;;  %v5247_v38 = vmax.f32 %v5245_v33, %v5246_v7  ;;  %v5253_v30 = vrot.slane %v5252_v41, 4 }
 0x3f7   : > { %v3292_v27 = vrot.slane %v3278_v25, %v11479_v14  ;;  %v3293_v39 = vcombine.high %v3285_v22, %v3285_v22  ;;  %v7023_v19 = vsel %vm4334_vm3, %v3285_v22, -inf  ;;  %v1425_v11 = vmax.f32 %v1019_v5, 0.0 }
 0x3f8   : > { %v5234_v18 = vrot.slane %v5233_v45, 2  ;;  %v5240_v54 = vmax.f32 %v5238_v36, %v5239_v56  ;;  %v5248_v16 = vrot.slane %v5247_v38, 2  ;;  %v5254_v46 = vmax.f32 %v5252_v41, %v5253_v30 }
 0x3f9   : > { %v3294_v62 = vcombine.high %v3292_v27, %v3292_v27  ;;  %v7024_v49 = vrot.slane %v7023_v19, 4  ;;  %v7030_v51 = vsel %vm4334_vm3, %v3293_v39, -inf  ;;  %v7037_v9 = vsel %vm4334_vm3, %v3292_v27, -inf }
 0x3fa   : > { %v5235_v47 = vmax.f32 %v5233_v45, %v5234_v18  ;;  %v5241_v8 = vrot.slane %v5240_v54, 2  ;;  %v5249_v24 = vmax.f32 %v5247_v38, %v5248_v16  ;;  %v5255_v1 = vrot.slane %v5254_v46, 2 }
 0x3fb   : > { %v7025_v12 = vmax.f32 %v7023_v19, %v7024_v49  ;;  %v7031_v53 = vrot.slane %v7030_v51, 4  ;;  %v7038_v43 = vrot.slane %v7037_v9, 4  ;;  %v7044_v17 = vsel %vm4334_vm3, %v3294_v62, -inf }
 0x3fc   : > { %v5236_v57 = vrot.slane %v5235_v47, 1  ;;  %v5242_v2 = vmax.f32 %v5240_v54, %v5241_v8  ;;  %v5250_v55 = vrot.slane %v5249_v24, 1  ;;  %v5256_v23 = vmax.f32 %v5254_v46, %v5255_v1 }
 0x3fd   : > { %v7026_v29 = vrot.slane %v7025_v12, 2  ;;  %v7032_v52 = vmax.f32 %v7030_v51, %v7031_v53  ;;  %v7039_v61 = vmax.f32 %v7037_v9, %v7038_v43  ;;  %v7045_v60 = vrot.slane %v7044_v17, 4 }
 0x3fe   : > { %v5237_v50 = vmax.f32 %v5235_v47, %v5236_v57  ;;  %v5243_v5 = vrot.slane %v5242_v2, 1  ;;  %v5251_v3 = vmax.f32 %v5249_v24, %v5250_v55  ;;  %v5257_v31 = vrot.slane %v5256_v23, 1  ;;  %v14866_v47 = vld [vmem:[#allocation6_spill] sm:$0xff] }
 0x3ff   : > { %v7027_v42 = vmax.f32 %v7025_v12, %v7026_v29  ;;  %v7033_v33 = vrot.slane %v7032_v52, 2  ;;  %v7040_v15 = vrot.slane %v7039_v61, 2  ;;  %v7046_v7 = vmax.f32 %v7044_v17, %v7045_v60 }
 0x400   : > { %v5244_v36 = vmax.f32 %v5242_v2, %v5243_v5  ;;  %v5258_v41 = vmax.f32 %v5256_v23, %v5257_v31  ;;  %v13271_v25 = vsel %vm7919_vm4, %v5237_v50, -inf  ;;  %v13274_v22 = vsel %vm7919_vm4, %v5251_v3, -inf  ;;  %v13299_v5 = vpop.f32.mrb[40].mxu0 }
 0x401   : > { %v7028_v45 = vrot.slane %v7027_v42, 1  ;;  %v7034_v56 = vmax.f32 %v7032_v52, %v7033_v33  ;;  %v7041_v38 = vmax.f32 %v7039_v61, %v7040_v15  ;;  %v7047_v30 = vrot.slane %v7046_v7, 2  ;;  %14867 = vst [vmem:[#allocation7_spill] sm:$0xff] %v13299_v5 }
 0x402   : > { %v13277_v27 = vsel %vm7919_vm4, %v5244_v36, -inf  ;;  %v13280_v39 = vsel %vm7919_vm4, %v5258_v41, -inf  ;;  %v2241_v19 = vcombine.high %v1425_v11, %v1425_v11  ;;  %v2248_v18 = vrot.slane %v1425_v11, %v11479_v14 }
 0x403   : > { %v7029_v54 = vmax.f32 %v7027_v42, %v7028_v45  ;;  %v7035_v16 = vrot.slane %v7034_v56, 1  ;;  %v7042_v46 = vrot.slane %v7041_v38, 1  ;;  %v7048_v62 = vmax.f32 %v7046_v7, %v7047_v30 }
 0x404   : > { %v2255_v49 = vrot.slane %v2241_v19, %v11479_v14  ;;  %v2256_v51 = vcombine.high %v2248_v18, %v2248_v18  ;;  %v5315_v9 = vsel %vm4334_vm3, %v2248_v18, -inf  ;;  %v1275_v8 = vadd.f32 %v13061_v28, %v14866_v47 }
 0x405   : > { %v7036_v24 = vmax.f32 %v7034_v56, %v7035_v16  ;;  %v7043_v1 = vmax.f32 %v7041_v38, %v7042_v46  ;;  %v7049_v12 = vrot.slane %v7048_v62, 1  ;;  %v13288_v53 = vsel %vm7919_vm4, %v7029_v54, -inf }
 0x406   : > { %v2257_v43 = vcombine.high %v2255_v49, %v2255_v49  ;;  %v5316_v11 = vrot.slane %v5315_v9, 4  ;;  %v5322_v17 = vsel %vm4334_vm3, %v2256_v51, -inf  ;;  %v5329_v57 = vsel %vm4334_vm3, %v2255_v49, -inf }
 0x407   : > { %v7050_v2 = vmax.f32 %v7048_v62, %v7049_v12  ;;  %v13293_v55 = vsel %vm7919_vm4, %v7036_v24, -inf  ;;  %v13296_v23 = vsel %vm7919_vm4, %v7043_v1, -inf  ;;  %v5323_v29 = vrot.slane %v5322_v17, 4 }
 0x408   : > { %v5317_v52 = vmax.f32 %v5315_v9, %v5316_v11  ;;  %v5330_v61 = vrot.slane %v5329_v57, 4  ;;  %v5336_v60 = vsel %vm4334_vm3, %v2257_v43, -inf  ;;  %v1489_v50 = vmax.f32 %v1275_v8, 0.0 }
 0x409   : > { %v13302_v3 = vsel %vm7919_vm4, %v7050_v2, -inf  ;;  %v5324_v31 = vmax.f32 %v5322_v17, %v5323_v29  ;;  %v5337_v42 = vrot.slane %v5336_v60, 4  ;;  %v1011_v33 = vadd.f32 %v13061_v28, %v13025_v34 }
 0x40a   : > { %v5318_v15 = vrot.slane %v5317_v52, 2  ;;  %v5331_v7 = vmax.f32 %v5329_v57, %v5330_v61  ;;  %v3329_v36 = vcombine.high %v1489_v50, %v1489_v50  ;;  %v3336_v41 = vrot.slane %v1489_v50, %v11479_v14 }
 0x40b   : > { %v5325_v45 = vrot.slane %v5324_v31, 2  ;;  %v5338_v56 = vmax.f32 %v5336_v60, %v5337_v42  ;;  %v1423_v38 = vmax.f32 %v1011_v33, 0.0  ;;  %v13309_v30 = vadd.f32 %v13061_v28, %v13037_v58  ;;  %v13319_v42 = vpop.f32.mrb[40].mxu1 }
 0x40c   : > { %v5319_v19 = vmax.f32 %v5317_v52, %v5318_v15  ;;  %v5332_v18 = vrot.slane %v5331_v7, 2  ;;  %v3343_v54 = vrot.slane %v3329_v36, %v11479_v14  ;;  %v3344_v16 = vcombine.high %v3336_v41, %v3336_v41  ;;  %14868 = vst [vmem:[#allocation12_spill] sm:$0xff] %v13319_v42 }
 0x40d   : > { %v5326_v46 = vmax.f32 %v5324_v31, %v5325_v45  ;;  %v5339_v62 = vrot.slane %v5338_v56, 2  ;;  %v7107_v34 = vsel %vm4334_vm3, %v3336_v41, -inf  ;;  %v2207_v49 = vcombine.high %v1423_v38, %v1423_v38 }
 0x40e   : > { %v5320_v51 = vrot.slane %v5319_v19, 1  ;;  %v5333_v9 = vmax.f32 %v5331_v7, %v5332_v18  ;;  %v3345_v47 = vcombine.high %v3343_v54, %v3343_v54  ;;  %v7108_v8 = vrot.slane %v7107_v34, 4 }
 0x40f   : > { %v5327_v24 = vrot.slane %v5326_v46, 1  ;;  %v5340_v1 = vmax.f32 %v5338_v56, %v5339_v62  ;;  %v7114_v12 = vsel %vm4334_vm3, %v3344_v16, -inf  ;;  %v7121_v58 = vsel %vm4334_vm3, %v3343_v54, -inf }
 0x410   : > { %v5321_v28 = vmax.f32 %v5319_v19, %v5320_v51  ;;  %v5334_v43 = vrot.slane %v5333_v9, 1  ;;  %v7109_v11 = vmax.f32 %v7107_v34, %v7108_v8  ;;  %v7115_v17 = vrot.slane %v7114_v12, 4 }
 0x411   : > { %v5328_v57 = vmax.f32 %v5326_v46, %v5327_v24  ;;  %v5341_v2 = vrot.slane %v5340_v1, 1  ;;  %v7122_v29 = vrot.slane %v7121_v58, 4  ;;  %v7128_v52 = vsel %vm4334_vm3, %v3345_v47, -inf }
 0x412   : > { %v5335_v61 = vmax.f32 %v5333_v9, %v5334_v43  ;;  %v13317_v60 = vsel %vm7919_vm4, %v5321_v28, -inf  ;;  %v7110_v50 = vrot.slane %v7109_v11, 2  ;;  %v7116_v31 = vmax.f32 %v7114_v12, %v7115_v17 }
 0x413   : > { %v5342_v33 = vmax.f32 %v5340_v1, %v5341_v2  ;;  %v13322_v15 = vsel %vm7919_vm4, %v5328_v57, -inf  ;;  %v7123_v7 = vmax.f32 %v7121_v58, %v7122_v29  ;;  %v7129_v36 = vrot.slane %v7128_v52, 4 }
 0x414   : > { %v13325_v41 = vsel %vm7919_vm4, %v5335_v61, -inf  ;;  %v7111_v45 = vmax.f32 %v7109_v11, %v7110_v50  ;;  %v7117_v56 = vrot.slane %v7116_v31, 2  ;;  %v2214_v19 = vrot.slane %v1423_v38, %v11479_v14 }
 0x415   : > { %v13329_v18 = vsel %vm7919_vm4, %v5342_v33, -inf  ;;  %v7124_v54 = vrot.slane %v7123_v7, 2  ;;  %v7130_v16 = vmax.f32 %v7128_v52, %v7129_v36  ;;  %v2221_v46 = vrot.slane %v2207_v49, %v11479_v14 }
 0x416   : > { %v7112_v62 = vrot.slane %v7111_v45, 1  ;;  %v7118_v34 = vmax.f32 %v7116_v31, %v7117_v56  ;;  %v2222_v51 = vcombine.high %v2214_v19, %v2214_v19  ;;  %v5259_v9 = vsel %vm4334_vm3, %v2214_v19, -inf }
 0x417   : > { %v7125_v47 = vmax.f32 %v7123_v7, %v7124_v54  ;;  %v7131_v8 = vrot.slane %v7130_v16, 2  ;;  %v2223_v24 = vcombine.high %v2221_v46, %v2221_v46  ;;  %v5260_v1 = vrot.slane %v5259_v9, 4 }
 0x418   : > { %v7113_v12 = vmax.f32 %v7111_v45, %v7112_v62  ;;  %v7119_v58 = vrot.slane %v7118_v34, 1  ;;  %v5266_v38 = vsel %vm4334_vm3, %v2222_v51, -inf  ;;  %v5273_v28 = vsel %vm4334_vm3, %v2221_v46, -inf  ;;  %v13346_v62 = vpop.f32.mrb[41].mxu0 }
 0x419   : > { %v7126_v43 = vrot.slane %v7125_v47, 1  ;;  %v7132_v11 = vmax.f32 %v7130_v16, %v7131_v8  ;;  %v5261_v17 = vmax.f32 %v5259_v9, %v5260_v1  ;;  %v5267_v57 = vrot.slane %v5266_v38, 4  ;;  %14869 = vst [vmem:[#allocation3_spill] sm:$0xff] %v13346_v62 }
 0x41a   : > { %v7120_v49 = vmax.f32 %v7118_v34, %v7119_v58  ;;  %v13336_v2 = vsel %vm7919_vm4, %v7113_v12, -inf  ;;  %v5274_v29 = vrot.slane %v5273_v28, 4  ;;  %v5280_v52 = vsel %vm4334_vm3, %v2223_v24, -inf }
 0x41b   : > { %v7127_v61 = vmax.f32 %v7125_v47, %v7126_v43  ;;  %v7133_v50 = vrot.slane %v7132_v11, 1  ;;  %v5262_v31 = vrot.slane %v5261_v17, 2  ;;  %v5268_v33 = vmax.f32 %v5266_v38, %v5267_v57 }
 0x41c   : > { %v13340_v7 = vsel %vm7919_vm4, %v7120_v49, -inf  ;;  %v5275_v36 = vmax.f32 %v5273_v28, %v5274_v29  ;;  %v5281_v45 = vrot.slane %v5280_v52, 4  ;;  %v1487_v56 = vmax.f32 %v13309_v30, 0.0  ;;  %v13355_v30 = vld [vmem:[%s14780_s2] ss:$0 sm:$0xff] }
 0x41d   : > { %v7134_v19 = vmax.f32 %v7132_v11, %v7133_v50  ;;  %v13344_v54 = vsel %vm7919_vm4, %v7127_v61, -inf  ;;  %v5263_v16 = vmax.f32 %v5261_v17, %v5262_v31  ;;  %v5269_v46 = vrot.slane %v5268_v33, 2 }
 0x41e   : > { %v5276_v34 = vrot.slane %v5275_v36, 2  ;;  %v5282_v51 = vmax.f32 %v5280_v52, %v5281_v45  ;;  %v3295_v9 = vcombine.high %v1487_v56, %v1487_v56  ;;  %v3302_v47 = vrot.slane %v1487_v56, %v11479_v14 }
 0x41f   : > { %v13350_v8 = vsel %vm7919_vm4, %v7134_v19, -inf  ;;  %v5264_v24 = vrot.slane %v5263_v16, 1  ;;  %v5270_v1 = vmax.f32 %v5268_v33, %v5269_v46  ;;  %v1032_v12 = vadd.f32 %v13355_v30, %v13079_v37 }
 0x420   : > { %v5277_v58 = vmax.f32 %v5275_v36, %v5276_v34  ;;  %v5283_v38 = vrot.slane %v5282_v51, 2  ;;  %v3309_v28 = vrot.slane %v3295_v9, %v11479_v14  ;;  %v3310_v43 = vcombine.high %v3302_v47, %v3302_v47 }
 0x421   : > { %v5265_v11 = vmax.f32 %v5263_v16, %v5264_v24  ;;  %v5271_v17 = vrot.slane %v5270_v1, 1  ;;  %v7051_v57 = vsel %vm4334_vm3, %v3302_v47, -inf  ;;  %v1428_v49 = vmax.f32 %v1032_v12, 0.0 }
 0x422   : > { %v5278_v29 = vrot.slane %v5277_v58, 1  ;;  %v5284_v52 = vmax.f32 %v5282_v51, %v5283_v38  ;;  %v3311_v61 = vcombine.high %v3309_v28, %v3309_v28  ;;  %v7052_v50 = vrot.slane %v7051_v57, 4  ;;  %v13373_v38 = vpop.f32.mrb[41].mxu1 }
 0x423   : > { %v5272_v31 = vmax.f32 %v5270_v1, %v5271_v17  ;;  %v13362_v33 = vsel %vm7919_vm4, %v5265_v11, -inf  ;;  %v7058_v37 = vsel %vm4334_vm3, %v3310_v43, -inf  ;;  %v7065_v36 = vsel %vm4334_vm3, %v3309_v28, -inf  ;;  %14871 = vst [vmem:[#allocation8_spill] sm:$0xff] %v13373_v38 }
 0x424   : > { %v5279_v45 = vmax.f32 %v5277_v58, %v5278_v29  ;;  %v5285_v56 = vrot.slane %v5284_v52, 1  ;;  %v7053_v19 = vmax.f32 %v7051_v57, %v7052_v50  ;;  %v7059_v16 = vrot.slane %v7058_v37, 4 }
 0x425   : > { %v13367_v46 = vsel %vm7919_vm4, %v5272_v31, -inf  ;;  %v7066_v34 = vrot.slane %v7065_v36, 4  ;;  %v7072_v51 = vsel %vm4334_vm3, %v3311_v61, -inf  ;;  %v2292_v9 = vcombine.high %v1428_v49, %v1428_v49 }
 0x426   : > { %v5286_v47 = vmax.f32 %v5284_v52, %v5285_v56  ;;  %v13371_v24 = vsel %vm7919_vm4, %v5279_v45, -inf  ;;  %v7054_v1 = vrot.slane %v7053_v19, 2  ;;  %v7060_v12 = vmax.f32 %v7058_v37, %v7059_v16 }
 0x427   : > { %14870 = vst [vmem:[#allocation4_spill] sm:$0xff] %v13371_v24  ;;  %v7067_v28 = vmax.f32 %v7065_v36, %v7066_v34  ;;  %v7073_v58 = vrot.slane %v7072_v51, 4  ;;  %v2299_v43 = vrot.slane %v1428_v49, %v11479_v14  ;;  %v2306_v11 = vrot.slane %v2292_v9, %v11479_v14 }
 0x428   : > { %v13378_v17 = vsel %vm7919_vm4, %v5286_v47, -inf  ;;  %v7055_v57 = vmax.f32 %v7053_v19, %v7054_v1  ;;  %v7061_v29 = vrot.slane %v7060_v12, 2  ;;  %v1288_v52 = vadd.f32 %v13355_v30, %v13085_v4 }
 0x429   : > { %14872 = vst [vmem:[#allocation13_spill] sm:$0xff] %v13378_v17  ;;  %v7068_v61 = vrot.slane %v7067_v28, 2  ;;  %v7074_v50 = vmax.f32 %v7072_v51, %v7073_v58  ;;  %v2307_v31 = vcombine.high %v2299_v43, %v2299_v43  ;;  %v2308_v37 = vcombine.high %v2306_v11, %v2306_v11 }
 0x42a   : > { %v7056_v45 = vrot.slane %v7055_v57, 1  ;;  %v7062_v56 = vmax.f32 %v7060_v12, %v7061_v29  ;;  %v5399_v36 = vsel %vm4334_vm3, %v2299_v43, -inf  ;;  %v5413_v49 = vsel %vm4334_vm3, %v2306_v11, -inf }
 0x42b   : > { %v7069_v16 = vmax.f32 %v7067_v28, %v7068_v61  ;;  %v7075_v34 = vrot.slane %v7074_v50, 2  ;;  %v5400_v9 = vrot.slane %v5399_v36, 4  ;;  %v5406_v47 = vsel %vm4334_vm3, %v2307_v31, -inf }
 0x42c   : > { %v7057_v19 = vmax.f32 %v7055_v57, %v7056_v45  ;;  %v7063_v1 = vrot.slane %v7062_v56, 1  ;;  %v5407_v38 = vrot.slane %v5406_v47, 4  ;;  %v5414_v62 = vrot.slane %v5413_v49, 4 }
 0x42d   : > { %v7070_v4 = vrot.slane %v7069_v16, 1  ;;  %v7076_v42 = vmax.f32 %v7074_v50, %v7075_v34  ;;  %v5401_v51 = vmax.f32 %v5399_v36, %v5400_v9  ;;  %v5420_v58 = vsel %vm4334_vm3, %v2308_v37, -inf  ;;  %v13392_v50 = vpop.f32.mrb[42].mxu0 }
 0x42e   : > { %v7064_v5 = vmax.f32 %v7062_v56, %v7063_v1  ;;  %v13387_v12 = vsel %vm7919_vm4, %v7057_v19, -inf  ;;  %v5408_v43 = vmax.f32 %v5406_v47, %v5407_v38  ;;  %v5415_v11 = vmax.f32 %v5413_v49, %v5414_v62  ;;  %14873 = vst [vmem:[#allocation9_spill] sm:$0xff] %v13392_v50 }
 0x42f   : > { %v7071_v28 = vmax.f32 %v7069_v16, %v7070_v4  ;;  %v7077_v29 = vrot.slane %v7076_v42, 1  ;;  %v5402_v61 = vrot.slane %v5401_v51, 2  ;;  %v5421_v17 = vrot.slane %v5420_v58, 4 }
 0x430   : > { %v13390_v57 = vsel %vm7919_vm4, %v7064_v5, -inf  ;;  %v5409_v31 = vrot.slane %v5408_v43, 2  ;;  %v5416_v45 = vrot.slane %v5415_v11, 2  ;;  %v1492_v24 = vmax.f32 %v1288_v52, 0.0 }
 0x431   : > { %v7078_v36 = vmax.f32 %v7076_v42, %v7077_v29  ;;  %v13395_v37 = vsel %vm7919_vm4, %v7071_v28, -inf  ;;  %v5403_v56 = vmax.f32 %v5401_v51, %v5402_v61  ;;  %v5422_v34 = vmax.f32 %v5420_v58, %v5421_v17 }
 0x432   : > { %v5410_v38 = vmax.f32 %v5408_v43, %v5409_v31  ;;  %v5417_v62 = vmax.f32 %v5415_v11, %v5416_v45  ;;  %v3380_v49 = vcombine.high %v1492_v24, %v1492_v24  ;;  %v3387_v16 = vrot.slane %v1492_v24, %v11479_v14 }
 0x433   : > { %v13399_v9 = vsel %vm7919_vm4, %v7078_v36, -inf  ;;  %v5404_v5 = vrot.slane %v5403_v56, 1  ;;  %v5423_v47 = vrot.slane %v5422_v34, 2  ;;  %v1024_v52 = vadd.f32 %v13355_v30, %v13111_v26 }
 0x434   : > { %v5411_v19 = vrot.slane %v5410_v38, 1  ;;  %v5418_v42 = vrot.slane %v5417_v62, 1  ;;  %v3394_v1 = vrot.slane %v3380_v49, %v11479_v14  ;;  %v3395_v4 = vcombine.high %v3387_v16, %v3387_v16 }
 0x435   : > { %v5405_v51 = vmax.f32 %v5403_v56, %v5404_v5  ;;  %v5424_v17 = vmax.f32 %v5422_v34, %v5423_v47  ;;  %v7191_v58 = vsel %vm4334_vm3, %v3387_v16, -inf  ;;  %v1426_v43 = vmax.f32 %v1024_v52, 0.0  ;;  %v13413_v47 = vpop.f32.mrb[42].mxu1 }
 0x436   : > { %v5412_v11 = vmax.f32 %v5410_v38, %v5411_v19  ;;  %v5419_v24 = vmax.f32 %v5417_v62, %v5418_v42  ;;  %v3396_v28 = vcombine.high %v3394_v1, %v3394_v1  ;;  %v7192_v29 = vrot.slane %v7191_v58, 4  ;;  %14874 = vst [vmem:[#allocation11_spill] sm:$0xff] %v13413_v47 }
 0x437   : > { %v5425_v61 = vrot.slane %v5424_v17, 1  ;;  %v8137_v31 = vsel %vm7919_vm4, %v5405_v51, -inf  ;;  %v7198_v45 = vsel %vm4334_vm3, %v3395_v4, -inf  ;;  %v7205_v26 = vsel %vm4334_vm3, %v3394_v1, -inf }
 0x438   : > { %v8138_v36 = vmax.f32 %v13227_v35, %v8137_v31  ;;  %v8140_v49 = vsel %vm7919_vm4, %v5412_v11, -inf  ;;  %v8143_v56 = vsel %vm7919_vm4, %v5419_v24, -inf  ;;  %v7193_v34 = vmax.f32 %v7191_v58, %v7192_v29 }
 0x439   : > { %v5426_v16 = vmax.f32 %v5424_v17, %v5425_v61  ;;  %v8141_v38 = vmax.f32 %v13230_v21, %v8140_v49  ;;  %v8144_v62 = vmax.f32 %v13233_v0, %v8143_v56  ;;  %v7199_v5 = vrot.slane %v7198_v45, 4 }
 0x43a   : > { %v10822_v52 = vpack.c.bf16 %v8138_v36, %v8138_v36  ;;  %v7194_v19 = vrot.slane %v7193_v34, 2  ;;  %v7206_v42 = vrot.slane %v7205_v26, 4  ;;  %v7212_v1 = vsel %vm4334_vm3, %v3396_v28, -inf }
 0x43b   : > { %v8146_v35 = vsel %vm7919_vm4, %v5426_v16, -inf  ;;  %v10823_v4 = vpack.c.bf16 %v8141_v38, %v8141_v38  ;;  %v10824_v51 = vpack.c.bf16 %v8144_v62, %v8144_v62  ;;  %v7200_v11 = vmax.f32 %v7198_v45, %v7199_v5 }
 0x43c   : > { %v8147_v58 = vmax.f32 %v13241_v10, %v8146_v35  ;;  %v9784_v17 = vunpack.c.l.b16 %v10822_v52  ;;  %v7195_v24 = vmax.f32 %v7193_v34, %v7194_v19  ;;  %v7207_v21 = vmax.f32 %v7205_v26, %v7206_v42 }
 0x43d   : > { %v9785_v29 = vunpack.c.l.b16 %v10823_v4  ;;  %v9786_v0 = vunpack.c.l.b16 %v10824_v51  ;;  %v7201_v61 = vrot.slane %v7200_v11, 2  ;;  %v7213_v31 = vrot.slane %v7212_v1, 4 }
 0x43e   : > { %v10825_v49 = vpack.c.bf16 %v8147_v58, %v8147_v58  ;;  %v7196_v36 = vrot.slane %v7195_v24, 1  ;;  %v7208_v56 = vrot.slane %v7207_v21, 2  ;;  %v2258_v47 = vcombine.high %v1426_v43, %v1426_v43 }
 0x43f   : > { %v10038_v28 = vsel %vm9968_vm5, %v9785_v29, %v9784_v17  ;;  %v7202_v50 = vmax.f32 %v7200_v11, %v7201_v61  ;;  %v7214_v16 = vmax.f32 %v7212_v1, %v7213_v31  ;;  %v2265_v38 = vrot.slane %v1426_v43, %v11479_v14  ;;  %v13433_v29 = vpop.f32.mrb[43].mxu0 }
 0x440   : > { %v13420_v45 = vunpack.c.l.b16 %v10825_v49  ;;  %v13423_v10 = vsel %vm9970_vm6, %v9786_v0, %v10038_v28  ;;  %v7197_v26 = vmax.f32 %v7195_v24, %v7196_v36  ;;  %v7209_v34 = vmax.f32 %v7207_v21, %v7208_v56 }
 0x441   : > { %v7203_v62 = vrot.slane %v7202_v50, 1  ;;  %v7215_v5 = vrot.slane %v7214_v16, 2  ;;  %v2272_v52 = vrot.slane %v2258_v47, %v11479_v14  ;;  %v2273_v19 = vcombine.high %v2265_v38, %v2265_v38 }
 0x442   : > { %v7210_v42 = vrot.slane %v7209_v34, 1  ;;  %v8521_v35 = vsel %vm7919_vm4, %v7197_v26, -inf  ;;  %v5343_v4 = vsel %vm4334_vm3, %v2265_v38, -inf  ;;  %v1280_v43 = vadd.f32 %v13355_v30, %v13138_v6 }
 0x443   : > { %v7204_v1 = vmax.f32 %v7202_v50, %v7203_v62  ;;  %v7216_v51 = vmax.f32 %v7214_v16, %v7215_v5  ;;  %v8522_v11 = vmax.f32 %v13238_v40, %v8521_v35  ;;  %v2274_v58 = vcombine.high %v2272_v52, %v2272_v52 }
 0x444   : > { %v7211_v17 = vmax.f32 %v7209_v34, %v7210_v42  ;;  %v5344_v24 = vrot.slane %v5343_v4, 4  ;;  %v5350_v21 = vsel %vm4334_vm3, %v2273_v19, -inf  ;;  %v5357_v47 = vsel %vm4334_vm3, %v2272_v52, -inf }
 0x445   : > { %v7217_v0 = vrot.slane %v7216_v51, 1  ;;  %v8524_v61 = vsel %vm7919_vm4, %v7204_v1, -inf  ;;  %v10950_v31 = vpack.c.bf16 %v8522_v11, %v8522_v11  ;;  %v5351_v49 = vrot.slane %v5350_v21, 4 }
 0x446   : > { %v8525_v6 = vmax.f32 %v13248_v44, %v8524_v61  ;;  %v8527_v50 = vsel %vm7919_vm4, %v7211_v17, -inf  ;;  %v5345_v36 = vmax.f32 %v5343_v4, %v5344_v24  ;;  %v5358_v40 = vrot.slane %v5357_v47, 4 }
 0x447   : > { %v7218_v56 = vmax.f32 %v7216_v51, %v7217_v0  ;;  %v8528_v28 = vmax.f32 %v13255_v13, %v8527_v50  ;;  %v9912_v16 = vunpack.c.l.b16 %v10950_v31  ;;  %v5352_v38 = vmax.f32 %v5350_v21, %v5351_v49 }
 0x448   : > { %v10951_v26 = vpack.c.bf16 %v8525_v6, %v8525_v6  ;;  %v5346_v34 = vrot.slane %v5345_v36, 2  ;;  %v5359_v62 = vmax.f32 %v5357_v47, %v5358_v40  ;;  %v5364_v5 = vsel %vm4334_vm3, %v2274_v58, -inf  ;;  %v13443_v58 = vpop.f32.mrb[43].mxu1 }
 0x449   : > { %v8530_v52 = vsel %vm7919_vm4, %v7218_v56, -inf  ;;  %v10952_v19 = vpack.c.bf16 %v8528_v28, %v8528_v28  ;;  %v5353_v42 = vrot.slane %v5352_v38, 2  ;;  %v5365_v35 = vrot.slane %v5364_v5, 4 }
 0x44a   : > { %v8531_v44 = vmax.f32 %v13258_v59, %v8530_v52  ;;  %v9913_v1 = vunpack.c.l.b16 %v10951_v26  ;;  %v5347_v4 = vmax.f32 %v5345_v36, %v5346_v34  ;;  %v5360_v11 = vrot.slane %v5359_v62, 2 }
 0x44b   : > { %v9914_v51 = vunpack.c.l.b16 %v10952_v19  ;;  %v5354_v17 = vmax.f32 %v5352_v38, %v5353_v42  ;;  %v5366_v13 = vmax.f32 %v5364_v5, %v5365_v35  ;;  %v1490_v24 = vmax.f32 %v1280_v43, 0.0 }
 0x44c   : > { %v10953_v21 = vpack.c.bf16 %v8531_v44, %v8531_v44  ;;  %v10150_v0 = vsel %vm9968_vm5, %v9913_v1, %v9912_v16  ;;  %v5348_v47 = vrot.slane %v5347_v4, 1  ;;  %v5361_v61 = vmax.f32 %v5359_v62, %v5360_v11 }
 0x44d   : > { %v13446_v31 = vsel %vm9970_vm6, %v9914_v51, %v10150_v0  ;;  %v5355_v49 = vrot.slane %v5354_v17, 1  ;;  %v5367_v6 = vrot.slane %v5366_v13, 2  ;;  %v3346_v59 = vcombine.high %v1490_v24, %v1490_v24 }
 0x44e   : > { %v13448_v50 = vunpack.c.l.b16 %v10953_v21  ;;  %v5349_v36 = vmax.f32 %v5347_v4, %v5348_v47  ;;  %v5362_v40 = vrot.slane %v5361_v61, 1  ;;  %v3353_v56 = vrot.slane %v1490_v24, %v11479_v14 }
 0x44f   : > { %v5356_v43 = vmax.f32 %v5354_v17, %v5355_v49  ;;  %v5368_v28 = vmax.f32 %v5366_v13, %v5367_v6  ;;  %v3360_v16 = vrot.slane %v3346_v59, %v11479_v14  ;;  %v1035_v38 = vadd.f32 %v13355_v30, %v13164_v32 }
 0x450   : > { %v5363_v26 = vmax.f32 %v5361_v61, %v5362_v40  ;;  %v8113_v34 = vsel %vm7919_vm4, %v5349_v36, -inf  ;;  %v3361_v62 = vcombine.high %v3353_v56, %v3353_v56  ;;  %v7135_v5 = vsel %vm4334_vm3, %v3353_v56, -inf }
 0x451   : > { %v5369_v52 = vrot.slane %v5368_v28, 1  ;;  %v8114_v19 = vmax.f32 %v13271_v25, %v8113_v34  ;;  %v8116_v42 = vsel %vm7919_vm4, %v5356_v43, -inf  ;;  %v3362_v35 = vcombine.high %v3360_v16, %v3360_v16 }
 0x452   : > { %v8117_v44 = vmax.f32 %v13277_v27, %v8116_v42  ;;  %v8119_v1 = vsel %vm7919_vm4, %v5363_v26, -inf  ;;  %v7136_v4 = vrot.slane %v7135_v5, 4  ;;  %v7142_v11 = vsel %vm4334_vm3, %v3361_v62, -inf }
 0x453   : > { %v5370_v32 = vmax.f32 %v5368_v28, %v5369_v52  ;;  %v8120_v51 = vmax.f32 %v13274_v22, %v8119_v1  ;;  %v10814_v17 = vpack.c.bf16 %v8114_v19, %v8114_v19  ;;  %v7143_v13 = vrot.slane %v7142_v11, 4 }
 0x454   : > { %v10815_v24 = vpack.c.bf16 %v8117_v44, %v8117_v44  ;;  %v7137_v21 = vmax.f32 %v7135_v5, %v7136_v4  ;;  %v7149_v0 = vsel %vm4334_vm3, %v3360_v16, -inf  ;;  %v7156_v25 = vsel %vm4334_vm3, %v3362_v35, -inf }
 0x455   : > { %v8122_v47 = vsel %vm7919_vm4, %v5370_v32, -inf  ;;  %v10816_v61 = vpack.c.bf16 %v8120_v51, %v8120_v51  ;;  %v9776_v27 = vunpack.c.l.b16 %v10814_v17  ;;  %v7144_v49 = vmax.f32 %v7142_v11, %v7143_v13 }
 0x456   : > { %v8123_v6 = vmax.f32 %v13280_v39, %v8122_v47  ;;  %v9777_v59 = vunpack.c.l.b16 %v10815_v24  ;;  %v7138_v36 = vrot.slane %v7137_v21, 2  ;;  %v7150_v40 = vrot.slane %v7149_v0, 4 }
 0x457   : > { %v9778_v56 = vunpack.c.l.b16 %v10816_v61  ;;  %v7145_v22 = vrot.slane %v7144_v49, 2  ;;  %v7157_v43 = vrot.slane %v7156_v25, 4  ;;  %v1429_v28 = vmax.f32 %v1035_v38, 0.0 }
 0x458   : > { %v10817_v26 = vpack.c.bf16 %v8123_v6, %v8123_v6  ;;  %v10031_v34 = vsel %vm9968_vm5, %v9777_v59, %v9776_v27  ;;  %v7139_v16 = vmax.f32 %v7137_v21, %v7138_v36  ;;  %v7151_v62 = vmax.f32 %v7149_v0, %v7150_v40  ;;  %v13480_v21 = vpop.f32.mrb[44].mxu0 }
 0x459   : > { %v13468_v5 = vsel %vm9970_vm6, %v9778_v56, %v10031_v34  ;;  %v7146_v52 = vmax.f32 %v7144_v49, %v7145_v22  ;;  %v7158_v19 = vmax.f32 %v7156_v25, %v7157_v43  ;;  %v2309_v42 = vcombine.high %v1429_v28, %v1429_v28 }
 0x45a   : > { %v13470_v35 = vunpack.c.l.b16 %v10817_v26  ;;  %v7140_v39 = vrot.slane %v7139_v16, 1  ;;  %v7152_v44 = vrot.slane %v7151_v62, 2  ;;  %v2316_v1 = vrot.slane %v1429_v28, %v11479_v14  ;;  %v13488_v26 = vpop.f32.mrb[44].mxu1 }
 0x45b   : > { %v7147_v4 = vrot.slane %v7146_v52, 1  ;;  %v7159_v11 = vrot.slane %v7158_v19, 2  ;;  %v2323_v38 = vrot.slane %v2309_v42, %v11479_v14  ;;  %v13477_v32 = vsel %vm9972_vm7, %v13420_v45, %v13423_v10 }
 0x45c   : > { %v7141_v51 = vmax.f32 %v7139_v16, %v7140_v39  ;;  %v7153_v17 = vmax.f32 %v7151_v62, %v7152_v44  ;;  %v2324_v13 = vcombine.high %v2316_v1, %v2316_v1  ;;  %v5427_v24 = vsel %vm4334_vm3, %v2316_v1, -inf }
 0x45d   : > { %v7148_v0 = vmax.f32 %v7146_v52, %v7147_v4  ;;  %v7160_v25 = vmax.f32 %v7158_v19, %v7159_v11  ;;  %v2325_v47 = vcombine.high %v2323_v38, %v2323_v38  ;;  %v5428_v61 = vrot.slane %v5427_v24, 4 }
 0x45e   : > { %v7154_v27 = vrot.slane %v7153_v17, 1  ;;  %v8497_v49 = vsel %vm7919_vm4, %v7141_v51, -inf  ;;  %v5434_v6 = vsel %vm4334_vm3, %v2324_v13, -inf  ;;  %v5441_v59 = vsel %vm4334_vm3, %v2323_v38, -inf }
 0x45f   : > { %v7161_v45 = vrot.slane %v7160_v25, 1  ;;  %v8498_v10 = vmax.f32 %v13288_v53, %v8497_v49  ;;  %v8500_v36 = vsel %vm7919_vm4, %v7148_v0, -inf  ;;  %v5429_v40 = vmax.f32 %v5427_v24, %v5428_v61 }
 0x460   : > { %v7155_v56 = vmax.f32 %v7153_v17, %v7154_v27  ;;  %v8501_v22 = vmax.f32 %v13293_v55, %v8500_v36  ;;  %v5435_v43 = vrot.slane %v5434_v6, 4  ;;  %v5442_v28 = vrot.slane %v5441_v59, 4 }
 0x461   : > { %v7162_v34 = vmax.f32 %v7160_v25, %v7161_v45  ;;  %v10942_v16 = vpack.c.bf16 %v8498_v10, %v8498_v10  ;;  %v5430_v62 = vrot.slane %v5429_v40, 2  ;;  %v5448_v52 = vsel %vm4334_vm3, %v2325_v47, -inf }
 0x462   : > { %v8503_v19 = vsel %vm7919_vm4, %v7155_v56, -inf  ;;  %v10943_v42 = vpack.c.bf16 %v8501_v22, %v8501_v22  ;;  %v5436_v39 = vmax.f32 %v5434_v6, %v5435_v43  ;;  %v5443_v53 = vmax.f32 %v5441_v59, %v5442_v28 }
 0x463   : > { %v8504_v44 = vmax.f32 %v13296_v23, %v8503_v19  ;;  %v8506_v1 = vsel %vm7919_vm4, %v7162_v34, -inf  ;;  %v9904_v4 = vunpack.c.l.b16 %v10942_v16  ;;  %v5431_v55 = vmax.f32 %v5429_v40, %v5430_v62 }
 0x464   : > { %v8507_v11 = vmax.f32 %v13302_v3, %v8506_v1  ;;  %v9905_v38 = vunpack.c.l.b16 %v10943_v42  ;;  %v5437_v51 = vrot.slane %v5436_v39, 2  ;;  %v5444_v17 = vrot.slane %v5443_v53, 2  ;;  %v13519_v42 = vpop.f32.mrb[45].mxu0 }
 0x465   : > { %v10944_v13 = vpack.c.bf16 %v8504_v44, %v8504_v44  ;;  %v5432_v24 = vrot.slane %v5431_v55, 1  ;;  %v5449_v0 = vrot.slane %v5448_v52, 4  ;;  %v1291_v25 = vadd.f32 %v13355_v30, %v13188_v48 }
 0x466   : > { %v10945_v47 = vpack.c.bf16 %v8507_v11, %v8507_v11  ;;  %v10143_v61 = vsel %vm9968_vm5, %v9905_v38, %v9904_v4  ;;  %v5438_v27 = vmax.f32 %v5436_v39, %v5437_v51  ;;  %v5445_v23 = vmax.f32 %v5443_v53, %v5444_v17 }
 0x467   : > { %v9906_v49 = vunpack.c.l.b16 %v10944_v13  ;;  %v5433_v6 = vmax.f32 %v5431_v55, %v5432_v24  ;;  %v5450_v59 = vmax.f32 %v5448_v52, %v5449_v0  ;;  %v1493_v45 = vmax.f32 %v1291_v25, 0.0 }
 0x468   : > { %v13498_v10 = vunpack.c.l.b16 %v10945_v47  ;;  %v5439_v3 = vrot.slane %v5438_v27, 1  ;;  %v5446_v36 = vrot.slane %v5445_v23, 1  ;;  %v13503_v40 = vsel %vm9972_vm7, %v13448_v50, %v13446_v31 }
 0x469   : > { %v13506_v48 = vsel %vm9970_vm6, %v9906_v49, %v10143_v61  ;;  %v5451_v56 = vrot.slane %v5450_v59, 2  ;;  %v8149_v22 = vsel %vm7919_vm4, %v5433_v6, -inf  ;;  %v3397_v43 = vcombine.high %v1493_v45, %v1493_v45 }
 0x46a   : > { %v5440_v28 = vmax.f32 %v5438_v27, %v5439_v3  ;;  %v5447_v34 = vmax.f32 %v5445_v23, %v5446_v36  ;;  %v8150_v16 = vmax.f32 %v13317_v60, %v8149_v22  ;;  %v3404_v62 = vrot.slane %v1493_v45, %v11479_v14 }
 0x46b   : > { %v5452_v52 = vmax.f32 %v5450_v59, %v5451_v56  ;;  %v3411_v19 = vrot.slane %v3397_v43, %v11479_v14  ;;  %v1027_v31 = vadd.f32 %v13355_v30, %v13224_v20  ;;  %v13517_v50 = vsel %vm9972_vm7, %v13470_v35, %v13468_v5 }
 0x46c   : > { %v8152_v39 = vsel %vm7919_vm4, %v5440_v28, -inf  ;;  %v8155_v53 = vsel %vm7919_vm4, %v5447_v34, -inf  ;;  %v10826_v60 = vpack.c.bf16 %v8150_v16, %v8150_v16  ;;  %v3412_v44 = vcombine.high %v3404_v62, %v3404_v62 }
 0x46d   : > { %v5453_v1 = vrot.slane %v5452_v52, 1  ;;  %v8153_v4 = vmax.f32 %v13322_v15, %v8152_v39  ;;  %v8156_v55 = vmax.f32 %v13325_v41, %v8155_v53  ;;  %v3413_v11 = vcombine.high %v3411_v19, %v3411_v19 }
 0x46e   : > { %v9788_v20 = vunpack.c.l.b16 %v10826_v60  ;;  %v7219_v38 = vsel %vm4334_vm3, %v3404_v62, -inf  ;;  %v7226_v5 = vsel %vm4334_vm3, %v3412_v44, -inf  ;;  %v7233_v35 = vsel %vm4334_vm3, %v3411_v19, -inf }
 0x46f   : > { %v5454_v51 = vmax.f32 %v5452_v52, %v5453_v1  ;;  %v10827_v17 = vpack.c.bf16 %v8153_v4, %v8153_v4  ;;  %v10828_v13 = vpack.c.bf16 %v8156_v55, %v8156_v55  ;;  %v7220_v24 = vrot.slane %v7219_v38, 4 }
 0x470   : > { %v10041_v0 = vsel %vm9974_vm8, %v9788_v20, %v13477_v32  ;;  %v7227_v25 = vrot.slane %v7226_v5, 4  ;;  %v7234_v47 = vrot.slane %v7233_v35, 4  ;;  %v7240_v15 = vsel %vm4334_vm3, %v3413_v11, -inf }
 0x471   : > { %v8158_v41 = vsel %vm7919_vm4, %v5454_v51, -inf  ;;  %v9789_v61 = vunpack.c.l.b16 %v10827_v17  ;;  %v9790_v27 = vunpack.c.l.b16 %v10828_v13  ;;  %v7221_v23 = vmax.f32 %v7219_v38, %v7220_v24 }
 0x472   : > { %v8159_v49 = vmax.f32 %v13329_v18, %v8158_v41  ;;  %v7228_v6 = vmax.f32 %v7226_v5, %v7227_v25  ;;  %v7235_v59 = vmax.f32 %v7233_v35, %v7234_v47  ;;  %v7241_v45 = vrot.slane %v7240_v15, 4 }
 0x473   : > { %v10042_v3 = vsel %vm9976_vm9, %v9789_v61, %v10041_v0  ;;  %v7222_v36 = vrot.slane %v7221_v23, 2  ;;  %v1427_v56 = vmax.f32 %v1027_v31, 0.0  ;;  %v1283_v32 = vadd.f32 %v13355_v30, %v13263_v63  ;;  %v13548_v61 = vpop.f32.mrb[45].mxu1 }
 0x474   : > { %v10829_v22 = vpack.c.bf16 %v8159_v49, %v8159_v49  ;;  %v10043_v43 = vsel %vm9978_vm10, %v9790_v27, %v10042_v3  ;;  %v7229_v28 = vrot.slane %v7228_v6, 2  ;;  %v7236_v34 = vrot.slane %v7235_v59, 2 }
 0x475   : > { %v7223_v16 = vmax.f32 %v7221_v23, %v7222_v36  ;;  %v7242_v62 = vmax.f32 %v7240_v15, %v7241_v45  ;;  %v2275_v52 = vcombine.high %v1427_v56, %v1427_v56  ;;  %v2282_v18 = vrot.slane %v1427_v56, %v11479_v14 }
 0x476   : > { %v9791_v19 = vunpack.c.l.b16 %v10829_v22  ;;  %v7230_v39 = vmax.f32 %v7228_v6, %v7229_v28  ;;  %v7237_v53 = vmax.f32 %v7235_v59, %v7236_v34  ;;  %v13538_v60 = vmax.f32 %v1283_v32, 0.0 }
 0x477   : > { %v7224_v44 = vrot.slane %v7223_v16, 1  ;;  %v7243_v31 = vrot.slane %v7242_v62, 2  ;;  %v2289_v63 = vrot.slane %v2275_v52, %v11479_v14  ;;  %v2290_v1 = vcombine.high %v2282_v18, %v2282_v18 }
 0x478   : > { %v10044_v4 = vsel %vm9980_vm11, %v9791_v19, %v10043_v43  ;;  %v7231_v55 = vrot.slane %v7230_v39, 1  ;;  %v7238_v11 = vrot.slane %v7237_v53, 1  ;;  %v5371_v20 = vsel %vm4334_vm3, %v2282_v18, -inf }
 0x479   : > { %v10208_v38 = vpack.c.b16 %v10044_v4, %v10044_v4  ;;  %v7225_v5 = vmax.f32 %v7223_v16, %v7224_v44  ;;  %v7244_v35 = vmax.f32 %v7242_v62, %v7243_v31  ;;  %v2291_v51 = vcombine.high %v2289_v63, %v2289_v63 }
 0x47a   : > { %v7232_v17 = vmax.f32 %v7230_v39, %v7231_v55  ;;  %v7239_v13 = vmax.f32 %v7237_v53, %v7238_v11  ;;  %v5372_v24 = vrot.slane %v5371_v20, 4  ;;  %v5378_v0 = vsel %vm4334_vm3, %v2290_v1, -inf }
 0x47b   : > { %10273 = vst.msk [vmem:[%s11900_s4 + $0x24] sm:$0xf] %vm10263_vm12, %v10208_v38  ;;  %v7245_v25 = vrot.slane %v7244_v35, 1  ;;  %v8533_v47 = vsel %vm7919_vm4, %v7225_v5, -inf  ;;  %v5379_v15 = vrot.slane %v5378_v0, 4  ;;  %v5385_v41 = vsel %vm4334_vm3, %v2289_v63, -inf }
 0x47c   : > { %v8534_v27 = vmax.f32 %v13336_v2, %v8533_v47  ;;  %v8536_v23 = vsel %vm7919_vm4, %v7232_v17, -inf  ;;  %v8539_v49 = vsel %vm7919_vm4, %v7239_v13, -inf  ;;  %v5373_v6 = vmax.f32 %v5371_v20, %v5372_v24 }
 0x47d   : > { %v7246_v59 = vmax.f32 %v7244_v35, %v7245_v25  ;;  %v8537_v45 = vmax.f32 %v13340_v7, %v8536_v23  ;;  %v8540_v3 = vmax.f32 %v13344_v54, %v8539_v49  ;;  %v5380_v36 = vmax.f32 %v5378_v0, %v5379_v15 }
 0x47e   : > { %v10954_v56 = vpack.c.bf16 %v8534_v27, %v8534_v27  ;;  %v5374_v32 = vrot.slane %v5373_v6, 2  ;;  %v5386_v22 = vrot.slane %v5385_v41, 4  ;;  %v5392_v43 = vsel %vm4334_vm3, %v2291_v51, -inf }
 0x47f   : > { %v8542_v28 = vsel %vm7919_vm4, %v7246_v59, -inf  ;;  %v10955_v34 = vpack.c.bf16 %v8537_v45, %v8537_v45  ;;  %v10956_v2 = vpack.c.bf16 %v8540_v3, %v8540_v3  ;;  %v5381_v16 = vrot.slane %v5380_v36, 2 }
 0x480   : > { %v8543_v62 = vmax.f32 %v13350_v8, %v8542_v28  ;;  %v9916_v52 = vunpack.c.l.b16 %v10954_v56  ;;  %v5375_v18 = vmax.f32 %v5373_v6, %v5374_v32  ;;  %v5387_v19 = vmax.f32 %v5385_v41, %v5386_v22 }
 0x481   : > { %v9917_v39 = vunpack.c.l.b16 %v10955_v34  ;;  %v9918_v7 = vunpack.c.l.b16 %v10956_v2  ;;  %v5382_v53 = vmax.f32 %v5380_v36, %v5381_v16  ;;  %v5393_v54 = vrot.slane %v5392_v43, 4 }
 0x482   : > { %v10957_v44 = vpack.c.bf16 %v8543_v62, %v8543_v62  ;;  %v10153_v31 = vsel %vm9974_vm8, %v9916_v52, %v13503_v40  ;;  %v5376_v63 = vrot.slane %v5375_v18, 1  ;;  %v5388_v1 = vrot.slane %v5387_v19, 2 }
 0x483   : > { %v10154_v4 = vsel %vm9976_vm9, %v9917_v39, %v10153_v31  ;;  %v5383_v55 = vrot.slane %v5382_v53, 1  ;;  %v5394_v11 = vmax.f32 %v5392_v43, %v5393_v54  ;;  %v3363_v8 = vcombine.high %v13538_v60, %v13538_v60  ;;  %v14876_v54 = vld [vmem:[#allocation13_spill] sm:$0xff] }
 0x484   : > { %v9919_v20 = vunpack.c.l.b16 %v10957_v44  ;;  %v10155_v38 = vsel %vm9978_vm10, %v9918_v7, %v10154_v4  ;;  %v5377_v5 = vmax.f32 %v5375_v18, %v5376_v63  ;;  %v5389_v35 = vmax.f32 %v5387_v19, %v5388_v1 }
 0x485   : > { %v5384_v51 = vmax.f32 %v5382_v53, %v5383_v55  ;;  %v5395_v17 = vrot.slane %v5394_v11, 2  ;;  %v3370_v40 = vrot.slane %v13538_v60, %v11479_v14  ;;  %v3377_v13 = vrot.slane %v3363_v8, %v11479_v14  ;;  %v14877_v8 = vld [vmem:[#allocation7_spill] sm:$0xff] }
 0x486   : > { %v10156_v24 = vsel %vm9980_vm11, %v9919_v20, %v10155_v38  ;;  %v5390_v0 = vrot.slane %v5389_v35, 1  ;;  %v8125_v25 = vsel %vm7919_vm4, %v5377_v5, -inf  ;;  %v13572_v47 = vsel %vm9972_vm7, %v13498_v10, %v13506_v48  ;;  %v13581_v48 = vpop.f32.mrb[46].mxu0 }
 0x487   : > { %v10224_v15 = vpack.c.b16 %v10156_v24, %v10156_v24  ;;  %v5396_v41 = vmax.f32 %v5394_v11, %v5395_v17  ;;  %v8126_v27 = vmax.f32 %v13362_v33, %v8125_v25  ;;  %v8128_v23 = vsel %vm7919_vm4, %v5384_v51, -inf  ;;  %v14878_v51 = vld [vmem:[#allocation12_spill] sm:$0xff] }
 0x488   : > { %v5391_v49 = vmax.f32 %v5389_v35, %v5390_v0  ;;  %v8129_v60 = vmax.f32 %v13367_v46, %v8128_v23  ;;  %v3378_v6 = vcombine.high %v3370_v40, %v3370_v40  ;;  %v3379_v59 = vcombine.high %v3377_v13, %v3377_v13  ;;  %v14875_v46 = vld [vmem:[#allocation4_spill] sm:$0xff] }
 0x489   : > { %10289 = vst.msk [vmem:[%s11900_s4 + $0x64] sm:$0xf] %vm10263_vm12, %v10224_v15  ;;  %v5397_v45 = vrot.slane %v5396_v41, 1  ;;  %v10818_v3 = vpack.c.bf16 %v8126_v27, %v8126_v27  ;;  %v7163_v36 = vsel %vm4334_vm3, %v3370_v40, -inf  ;;  %v7177_v10 = vsel %vm4334_vm3, %v3377_v13, -inf }
 0x48a   : > { %v8131_v56 = vsel %vm7919_vm4, %v5391_v49, -inf  ;;  %v10819_v33 = vpack.c.bf16 %v8129_v60, %v8129_v60  ;;  %v7164_v32 = vrot.slane %v7163_v36, 4  ;;  %v7170_v22 = vsel %vm4334_vm3, %v3378_v6, -inf }
 0x48b   : > { %v5398_v43 = vmax.f32 %v5396_v41, %v5397_v45  ;;  %v8132_v28 = vmax.f32 %v14875_v46, %v8131_v56  ;;  %v9780_v34 = vunpack.c.l.b16 %v10818_v3  ;;  %v7171_v2 = vrot.slane %v7170_v22, 4  ;;  %v13599_v3 = vpop.f32.mrb[46].mxu1 }
 0x48c   : > { %v9781_v16 = vunpack.c.l.b16 %v10819_v33  ;;  %v7165_v62 = vmax.f32 %v7163_v36, %v7164_v32  ;;  %v7178_v52 = vrot.slane %v7177_v10, 4  ;;  %v7184_v18 = vsel %vm4334_vm3, %v3379_v59, -inf }
 0x48d   : > { %v8134_v19 = vsel %vm7919_vm4, %v5398_v43, -inf  ;;  %v10820_v39 = vpack.c.bf16 %v8132_v28, %v8132_v28  ;;  %v10034_v7 = vsel %vm9974_vm8, %v9780_v34, %v13517_v50  ;;  %v7172_v53 = vmax.f32 %v7170_v22, %v7171_v2 }
 0x48e   : > { %v8135_v44 = vmax.f32 %v14876_v54, %v8134_v19  ;;  %v10035_v31 = vsel %vm9976_vm9, %v9781_v16, %v10034_v7  ;;  %v7166_v63 = vrot.slane %v7165_v62, 2  ;;  %v7179_v1 = vmax.f32 %v7177_v10, %v7178_v52 }
 0x48f   : > { %v9782_v4 = vunpack.c.l.b16 %v10820_v39  ;;  %v7173_v55 = vrot.slane %v7172_v53, 2  ;;  %v7185_v11 = vrot.slane %v7184_v18, 4  ;;  %v1048_v20 = vadd.f32 %v13355_v30, %v14877_v8 }
 0x490   : > { %v10821_v38 = vpack.c.bf16 %v8135_v44, %v8135_v44  ;;  %v7167_v5 = vmax.f32 %v7165_v62, %v7166_v63  ;;  %v7180_v35 = vrot.slane %v7179_v1, 2  ;;  %v1304_v17 = vadd.f32 %v13355_v30, %v14878_v51 }
 0x491   : > { %v10036_v50 = vsel %vm9978_vm10, %v9782_v4, %v10035_v31  ;;  %v7174_v40 = vmax.f32 %v7172_v53, %v7173_v55  ;;  %v7186_v13 = vmax.f32 %v7184_v18, %v7185_v11  ;;  %v1432_v24 = vmax.f32 %v1048_v20, 0.0 }
 0x492   : > { %v9783_v0 = vunpack.c.l.b16 %v10821_v38  ;;  %v7168_v25 = vrot.slane %v7167_v5, 1  ;;  %v7181_v15 = vmax.f32 %v7179_v1, %v7180_v35  ;;  %v1496_v41 = vmax.f32 %v1304_v17, 0.0 }
 0x493   : > { %v7175_v27 = vrot.slane %v7174_v40, 1  ;;  %v7187_v23 = vrot.slane %v7186_v13, 2  ;;  %v2360_v49 = vcombine.high %v1432_v24, %v1432_v24  ;;  %v2367_v60 = vrot.slane %v1432_v24, %v11479_v14 }
 0x494   : > { %v10037_v6 = vsel %vm9980_vm11, %v9783_v0, %v10036_v50  ;;  %v7169_v59 = vmax.f32 %v7167_v5, %v7168_v25  ;;  %v7182_v45 = vrot.slane %v7181_v15, 1  ;;  %v3448_v30 = vcombine.high %v1496_v41, %v1496_v41 }
 0x495   : > { %v10207_v36 = vpack.c.b16 %v10037_v6, %v10037_v6  ;;  %v7176_v10 = vmax.f32 %v7174_v40, %v7175_v27  ;;  %v7188_v56 = vmax.f32 %v7186_v13, %v7187_v23  ;;  %v2374_v33 = vrot.slane %v2360_v49, %v11479_v14 }
 0x496   : > { %v7183_v32 = vmax.f32 %v7181_v15, %v7182_v45  ;;  %v8509_v22 = vsel %vm7919_vm4, %v7169_v59, -inf  ;;  %v2375_v43 = vcombine.high %v2367_v60, %v2367_v60  ;;  %v5511_v46 = vsel %vm4334_vm3, %v2367_v60, -inf }
 0x497   : > { %10272 = vst.msk [vmem:[%s11900_s4 + $0x20] sm:$0xf] %vm10263_vm12, %v10207_v36  ;;  %v7189_v28 = vrot.slane %v7188_v56, 1  ;;  %v8510_v34 = vmax.f32 %v13387_v12, %v8509_v22  ;;  %v8512_v2 = vsel %vm7919_vm4, %v7176_v10, -inf  ;;  %v2376_v16 = vcombine.high %v2374_v33, %v2374_v33 }
 0x498   : > { %v8513_v62 = vmax.f32 %v13390_v57, %v8512_v2  ;;  %v8515_v52 = vsel %vm7919_vm4, %v7183_v32, -inf  ;;  %v5512_v18 = vrot.slane %v5511_v46, 4  ;;  %v5518_v19 = vsel %vm4334_vm3, %v2375_v43, -inf }
 0x499   : > { %v7190_v39 = vmax.f32 %v7188_v56, %v7189_v28  ;;  %v8516_v7 = vmax.f32 %v13395_v37, %v8515_v52  ;;  %v10946_v53 = vpack.c.bf16 %v8510_v34, %v8510_v34  ;;  %v5519_v54 = vrot.slane %v5518_v19, 4  ;;  %v13629_v34 = vpop.f32.mrb[47].mxu0 }
 0x49a   : > { %v10947_v44 = vpack.c.bf16 %v8513_v62, %v8513_v62  ;;  %v5513_v31 = vmax.f32 %v5511_v46, %v5512_v18  ;;  %v5525_v63 = vsel %vm4334_vm3, %v2374_v33, -inf  ;;  %v5532_v12 = vsel %vm4334_vm3, %v2376_v16, -inf }
 0x49b   : > { %v8518_v1 = vsel %vm7919_vm4, %v7190_v39, -inf  ;;  %v10948_v4 = vpack.c.bf16 %v8516_v7, %v8516_v7  ;;  %v9908_v57 = vunpack.c.l.b16 %v10946_v53  ;;  %v5520_v55 = vmax.f32 %v5518_v19, %v5519_v54  ;;  %v13640_v7 = vld [vmem:[%s14780_s2] ss:$0 sm:$0xff]  ;;  %v14879_v53 = vld [vmem:[#allocation3_spill] sm:$0xff] }
 0x49c   : > { %v8519_v11 = vmax.f32 %v13399_v9, %v8518_v1  ;;  %v9909_v8 = vunpack.c.l.b16 %v10947_v44  ;;  %v5514_v20 = vrot.slane %v5513_v31, 2  ;;  %v5526_v38 = vrot.slane %v5525_v63, 4 }
 0x49d   : > { %v9910_v5 = vunpack.c.l.b16 %v10948_v4  ;;  %v10146_v37 = vsel %vm9974_vm8, %v9908_v57, %v13572_v47  ;;  %v5521_v35 = vrot.slane %v5520_v55, 2  ;;  %v5533_v51 = vrot.slane %v5532_v12, 4 }
 0x49e   : > { %v10949_v17 = vpack.c.bf16 %v8519_v11, %v8519_v11  ;;  %v10147_v50 = vsel %vm9976_vm9, %v9909_v8, %v10146_v37  ;;  %v5515_v40 = vmax.f32 %v5513_v31, %v5514_v20  ;;  %v5527_v13 = vmax.f32 %v5525_v63, %v5526_v38 }
 0x49f   : > { %v10148_v24 = vsel %vm9978_vm10, %v9910_v5, %v10147_v50  ;;  %v5522_v0 = vmax.f32 %v5520_v55, %v5521_v35  ;;  %v5534_v25 = vmax.f32 %v5532_v12, %v5533_v51  ;;  %v3455_v9 = vrot.slane %v1496_v41, %v11479_v14  ;;  %v14880_v55 = vld [vmem:[#allocation8_spill] sm:$0xff] }
 0x4a0   : > { %v9911_v15 = vunpack.c.l.b16 %v10949_v17  ;;  %v5516_v27 = vrot.slane %v5515_v40, 1  ;;  %v5528_v23 = vrot.slane %v5527_v13, 2  ;;  %v3462_v49 = vrot.slane %v3448_v30, %v11479_v14 }
 0x4a1   : > { %v5523_v60 = vrot.slane %v5522_v0, 1  ;;  %v5535_v47 = vrot.slane %v5534_v25, 2  ;;  %v3463_v6 = vcombine.high %v3455_v9, %v3455_v9  ;;  %v7303_v59 = vsel %vm4334_vm3, %v3455_v9, -inf }
 0x4a2   : > { %v10149_v45 = vsel %vm9980_vm11, %v9911_v15, %v10148_v24  ;;  %v5517_v36 = vmax.f32 %v5515_v40, %v5516_v27  ;;  %v5529_v10 = vmax.f32 %v5527_v13, %v5528_v23  ;;  %v3464_v56 = vcombine.high %v3462_v49, %v3462_v49  ;;  %v14881_v24 = vld [vmem:[#allocation9_spill] sm:$0xff] }
 0x4a3   : > { %v10223_v33 = vpack.c.b16 %v10149_v45, %v10149_v45  ;;  %v5524_v32 = vmax.f32 %v5522_v0, %v5523_v60  ;;  %v5536_v22 = vmax.f32 %v5534_v25, %v5535_v47  ;;  %v7304_v41 = vrot.slane %v7303_v59, 4 }
 0x4a4   : > { %v5530_v43 = vrot.slane %v5529_v10, 1  ;;  %v13625_v46 = vsel %vm7919_vm4, %v5517_v36, -inf  ;;  %v7310_v30 = vsel %vm4334_vm3, %v3463_v6, -inf  ;;  %v7317_v28 = vsel %vm4334_vm3, %v3462_v49, -inf }
 0x4a5   : > { %10288 = vst.msk [vmem:[%s11900_s4 + $0x60] sm:$0xf] %vm10263_vm12, %v10223_v33  ;;  %v5537_v2 = vrot.slane %v5536_v22, 1  ;;  %v13634_v16 = vsel %vm7919_vm4, %v5524_v32, -inf  ;;  %v7305_v62 = vmax.f32 %v7303_v59, %v7304_v41  ;;  %v7311_v52 = vrot.slane %v7310_v30, 4 }
 0x4a6   : > { %v5531_v18 = vmax.f32 %v5529_v10, %v5530_v43  ;;  %v7318_v19 = vrot.slane %v7317_v28, 4  ;;  %v7324_v39 = vsel %vm4334_vm3, %v3464_v56, -inf  ;;  %v1040_v54 = vadd.f32 %v13640_v7, %v14879_v53 }
 0x4a7   : > { %v5538_v44 = vmax.f32 %v5536_v22, %v5537_v2  ;;  %v7306_v31 = vrot.slane %v7305_v62, 2  ;;  %v7312_v63 = vmax.f32 %v7310_v30, %v7311_v52  ;;  %v7325_v12 = vrot.slane %v7324_v39, 4 }
 0x4a8   : > { %v13645_v1 = vsel %vm7919_vm4, %v5531_v18, -inf  ;;  %v7319_v4 = vmax.f32 %v7317_v28, %v7318_v19  ;;  %v1430_v57 = vmax.f32 %v1040_v54, 0.0  ;;  %v1296_v11 = vadd.f32 %v13640_v7, %v14880_v55  ;;  %v13669_v54 = vpop.f32.mrb[47].mxu1 }
 0x4a9   : > { %v13650_v8 = vsel %vm7919_vm4, %v5538_v44, -inf  ;;  %v7307_v20 = vmax.f32 %v7305_v62, %v7306_v31  ;;  %v7313_v38 = vrot.slane %v7312_v63, 2  ;;  %v7326_v5 = vmax.f32 %v7324_v39, %v7325_v12 }
 0x4aa   : > { %v7320_v37 = vrot.slane %v7319_v4, 2  ;;  %v2326_v35 = vcombine.high %v1430_v57, %v1430_v57  ;;  %v2333_v51 = vrot.slane %v1430_v57, %v11479_v14  ;;  %v1494_v17 = vmax.f32 %v1296_v11, 0.0 }
 0x4ab   : > { %v7308_v50 = vrot.slane %v7307_v20, 1  ;;  %v7314_v40 = vmax.f32 %v7312_v63, %v7313_v38  ;;  %v7327_v13 = vrot.slane %v7326_v5, 2  ;;  %v1051_v0 = vadd.f32 %v13640_v7, %v14881_v24 }
 0x4ac   : > { %v7321_v25 = vmax.f32 %v7319_v4, %v7320_v37  ;;  %v2340_v9 = vrot.slane %v2326_v35, %v11479_v14  ;;  %v2341_v15 = vcombine.high %v2333_v51, %v2333_v51  ;;  %v5455_v27 = vsel %vm4334_vm3, %v2333_v51, -inf }
 0x4ad   : > { %v7309_v23 = vmax.f32 %v7307_v20, %v7308_v50  ;;  %v7315_v49 = vrot.slane %v7314_v40, 1  ;;  %v7328_v60 = vmax.f32 %v7326_v5, %v7327_v13  ;;  %v5456_v47 = vrot.slane %v5455_v27, 4 }
 0x4ae   : > { %v7322_v6 = vrot.slane %v7321_v25, 1  ;;  %v2342_v59 = vcombine.high %v2340_v9, %v2340_v9  ;;  %v5462_v45 = vsel %vm4334_vm3, %v2341_v15, -inf  ;;  %v5469_v36 = vsel %vm4334_vm3, %v2340_v9, -inf }
 0x4af   : > { %v7316_v10 = vmax.f32 %v7314_v40, %v7315_v49  ;;  %v7329_v56 = vrot.slane %v7328_v60, 1  ;;  %v13660_v33 = vsel %vm7919_vm4, %v7309_v23, -inf  ;;  %v5457_v32 = vmax.f32 %v5455_v27, %v5456_v47 }
 0x4b0   : > { %v7323_v22 = vmax.f32 %v7321_v25, %v7322_v6  ;;  %v5463_v41 = vrot.slane %v5462_v45, 4  ;;  %v5470_v43 = vrot.slane %v5469_v36, 4  ;;  %v5476_v30 = vsel %vm4334_vm3, %v2342_v59, -inf }
 0x4b1   : > { %v7330_v28 = vmax.f32 %v7328_v60, %v7329_v56  ;;  %v13664_v2 = vsel %vm7919_vm4, %v7316_v10, -inf  ;;  %v5458_v62 = vrot.slane %v5457_v32, 2  ;;  %v5477_v52 = vrot.slane %v5476_v30, 4 }
 0x4b2   : > { %v13667_v18 = vsel %vm7919_vm4, %v7323_v22, -inf  ;;  %v5464_v19 = vmax.f32 %v5462_v45, %v5463_v41  ;;  %v5471_v39 = vmax.f32 %v5469_v36, %v5470_v43  ;;  %v3414_v53 = vcombine.high %v1494_v17, %v1494_v17 }
 0x4b3   : > { %v13672_v44 = vsel %vm7919_vm4, %v7330_v28, -inf  ;;  %v5459_v31 = vmax.f32 %v5457_v32, %v5458_v62  ;;  %v5478_v63 = vmax.f32 %v5476_v30, %v5477_v52  ;;  %v3421_v12 = vrot.slane %v1494_v17, %v11479_v14 }
 0x4b4   : > { %v5465_v4 = vrot.slane %v5464_v19, 2  ;;  %v5472_v57 = vrot.slane %v5471_v39, 2  ;;  %v3428_v55 = vrot.slane %v3414_v53, %v11479_v14  ;;  %v1433_v11 = vmax.f32 %v1051_v0, 0.0 }
 0x4b5   : > { %v5460_v20 = vrot.slane %v5459_v31, 1  ;;  %v5479_v38 = vrot.slane %v5478_v63, 2  ;;  %v3429_v5 = vcombine.high %v3421_v12, %v3421_v12  ;;  %v7247_v37 = vsel %vm4334_vm3, %v3421_v12, -inf  ;;  %v14882_v12 = vld [vmem:[#allocation11_spill] sm:$0xff] }
 0x4b6   : > { %v5466_v35 = vmax.f32 %v5464_v19, %v5465_v4  ;;  %v5473_v51 = vmax.f32 %v5471_v39, %v5472_v57  ;;  %v3430_v50 = vcombine.high %v3428_v55, %v3428_v55  ;;  %v7248_v40 = vrot.slane %v7247_v37, 4 }
 0x4b7   : > { %v5461_v13 = vmax.f32 %v5459_v31, %v5460_v20  ;;  %v5480_v24 = vmax.f32 %v5478_v63, %v5479_v38  ;;  %v7254_v25 = vsel %vm4334_vm3, %v3429_v5, -inf  ;;  %v7261_v17 = vsel %vm4334_vm3, %v3428_v55, -inf }
 0x4b8   : > { %v5467_v9 = vrot.slane %v5466_v35, 1  ;;  %v5474_v15 = vrot.slane %v5473_v51, 1  ;;  %v7249_v27 = vmax.f32 %v7247_v37, %v7248_v40  ;;  %v7255_v23 = vrot.slane %v7254_v25, 4 }
 0x4b9   : > { %v5481_v0 = vrot.slane %v5480_v24, 1  ;;  %v13680_v49 = vsel %vm7919_vm4, %v5461_v13, -inf  ;;  %v7262_v60 = vrot.slane %v7261_v17, 4  ;;  %v7268_v47 = vsel %vm4334_vm3, %v3430_v50, -inf }
 0x4ba   : > { %v5468_v6 = vmax.f32 %v5466_v35, %v5467_v9  ;;  %v5475_v59 = vmax.f32 %v5473_v51, %v5474_v15  ;;  %v7250_v45 = vrot.slane %v7249_v27, 2  ;;  %v7256_v36 = vmax.f32 %v7254_v25, %v7255_v23 }
 0x4bb   : > { %v5482_v10 = vmax.f32 %v5480_v24, %v5481_v0  ;;  %v7263_v56 = vmax.f32 %v7261_v17, %v7262_v60  ;;  %v7269_v32 = vrot.slane %v7268_v47, 4  ;;  %v2377_v22 = vcombine.high %v1433_v11, %v1433_v11 }
 0x4bc   : > { %v13684_v41 = vsel %vm7919_vm4, %v5468_v6, -inf  ;;  %v13687_v43 = vsel %vm7919_vm4, %v5475_v59, -inf  ;;  %v7251_v30 = vmax.f32 %v7249_v27, %v7250_v45  ;;  %v7257_v28 = vrot.slane %v7256_v36, 2  ;;  %v13706_v45 = vpop.f32.mrb[48].mxu0 }
 0x4bd   : > { %v13690_v62 = vsel %vm7919_vm4, %v5482_v10, -inf  ;;  %v7264_v52 = vrot.slane %v7263_v56, 2  ;;  %v7270_v19 = vmax.f32 %v7268_v47, %v7269_v32  ;;  %v2384_v39 = vrot.slane %v1433_v11, %v11479_v14  ;;  %14883 = vst [vmem:[#allocation5_spill] sm:$0xff] %v13706_v45 }
 0x4be   : > { %v7252_v53 = vrot.slane %v7251_v30, 1  ;;  %v7258_v31 = vmax.f32 %v7256_v36, %v7257_v28  ;;  %v2391_v63 = vrot.slane %v2377_v22, %v11479_v14  ;;  %v1307_v4 = vadd.f32 %v13640_v7, %v14882_v12 }
 0x4bf   : > { %v7265_v57 = vmax.f32 %v7263_v56, %v7264_v52  ;;  %v7271_v55 = vrot.slane %v7270_v19, 2  ;;  %v2392_v20 = vcombine.high %v2384_v39, %v2384_v39  ;;  %v5539_v38 = vsel %vm4334_vm3, %v2384_v39, -inf }
 0x4c0   : > { %v7253_v5 = vmax.f32 %v7251_v30, %v7252_v53  ;;  %v7259_v37 = vrot.slane %v7258_v31, 1  ;;  %v2393_v35 = vcombine.high %v2391_v63, %v2391_v63  ;;  %v5540_v51 = vrot.slane %v5539_v38, 4 }
 0x4c1   : > { %v7266_v50 = vrot.slane %v7265_v57, 1  ;;  %v7272_v40 = vmax.f32 %v7270_v19, %v7271_v55  ;;  %v5546_v11 = vsel %vm4334_vm3, %v2392_v20, -inf  ;;  %v5553_v13 = vsel %vm4334_vm3, %v2391_v63, -inf }
 0x4c2   : > { %v7260_v24 = vmax.f32 %v7258_v31, %v7259_v37  ;;  %v13700_v25 = vsel %vm7919_vm4, %v7253_v5, -inf  ;;  %v5541_v17 = vmax.f32 %v5539_v38, %v5540_v51  ;;  %v5547_v9 = vrot.slane %v5546_v11, 4 }
 0x4c3   : > { %v7267_v15 = vmax.f32 %v7265_v57, %v7266_v50  ;;  %v7273_v27 = vrot.slane %v7272_v40, 1  ;;  %v5554_v23 = vrot.slane %v5553_v13, 4  ;;  %v5560_v0 = vsel %vm4334_vm3, %v2393_v35, -inf }
 0x4c4   : > { %v13704_v60 = vsel %vm7919_vm4, %v7260_v24, -inf  ;;  %v5542_v47 = vrot.slane %v5541_v17, 2  ;;  %v5548_v6 = vmax.f32 %v5546_v11, %v5547_v9  ;;  %v5561_v59 = vrot.slane %v5560_v0, 4 }
 0x4c5   : > { %v7274_v36 = vmax.f32 %v7272_v40, %v7273_v27  ;;  %v13709_v10 = vsel %vm7919_vm4, %v7267_v15, -inf  ;;  %v5555_v56 = vmax.f32 %v5553_v13, %v5554_v23  ;;  %v1497_v32 = vmax.f32 %v1307_v4, 0.0 }
 0x4c6   : > { %v5543_v22 = vmax.f32 %v5541_v17, %v5542_v47  ;;  %v5549_v30 = vrot.slane %v5548_v6, 2  ;;  %v5562_v28 = vmax.f32 %v5560_v0, %v5561_v59  ;;  %v1043_v52 = vadd.f32 %v13640_v7, %v13433_v29 }
 0x4c7   : > { %v13714_v19 = vsel %vm7919_vm4, %v7274_v36, -inf  ;;  %v5556_v39 = vrot.slane %v5555_v56, 2  ;;  %v3465_v53 = vcombine.high %v1497_v32, %v1497_v32  ;;  %v3472_v31 = vrot.slane %v1497_v32, %v11479_v14 }
 0x4c8   : > { %v5544_v63 = vrot.slane %v5543_v22, 1  ;;  %v5550_v12 = vmax.f32 %v5548_v6, %v5549_v30  ;;  %v5563_v57 = vrot.slane %v5562_v28, 2  ;;  %v1431_v55 = vmax.f32 %v1043_v52, 0.0 }
 0x4c9   : > { %v5557_v20 = vmax.f32 %v5555_v56, %v5556_v39  ;;  %v3479_v4 = vrot.slane %v3465_v53, %v11479_v14  ;;  %v3480_v38 = vcombine.high %v3472_v31, %v3472_v31  ;;  %v7331_v5 = vsel %vm4334_vm3, %v3472_v31, -inf }
 0x4ca   : > { %v5545_v37 = vmax.f32 %v5543_v22, %v5544_v63  ;;  %v5551_v35 = vrot.slane %v5550_v12, 1  ;;  %v5564_v29 = vmax.f32 %v5562_v28, %v5563_v57  ;;  %v7332_v51 = vrot.slane %v7331_v5, 4  ;;  %v13735_v63 = vpop.f32.mrb[48].mxu1 }
 0x4cb   : > { %v5558_v50 = vrot.slane %v5557_v20, 1  ;;  %v3481_v40 = vcombine.high %v3479_v4, %v3479_v4  ;;  %v7338_v11 = vsel %vm4334_vm3, %v3480_v38, -inf  ;;  %v7345_v13 = vsel %vm4334_vm3, %v3479_v4, -inf  ;;  %14884 = vst [vmem:[#allocation10_spill] sm:$0xff] %v13735_v63 }
 0x4cc   : > { %v5552_v24 = vmax.f32 %v5550_v12, %v5551_v35  ;;  %v5565_v17 = vrot.slane %v5564_v29, 1  ;;  %v13722_v9 = vsel %vm7919_vm4, %v5545_v37, -inf  ;;  %v7333_v15 = vmax.f32 %v7331_v5, %v7332_v51 }
 0x4cd   : > { %v5559_v27 = vmax.f32 %v5557_v20, %v5558_v50  ;;  %v7339_v23 = vrot.slane %v7338_v11, 4  ;;  %v7346_v0 = vrot.slane %v7345_v13, 4  ;;  %v7352_v47 = vsel %vm4334_vm3, %v3481_v40, -inf }
 0x4ce   : > { %v5566_v6 = vmax.f32 %v5564_v29, %v5565_v17  ;;  %v13726_v59 = vsel %vm7919_vm4, %v5552_v24, -inf  ;;  %v7334_v36 = vrot.slane %v7333_v15, 2  ;;  %v7353_v56 = vrot.slane %v7352_v47, 4 }
 0x4cf   : > { %v13729_v32 = vsel %vm7919_vm4, %v5559_v27, -inf  ;;  %v7340_v22 = vmax.f32 %v7338_v11, %v7339_v23  ;;  %v7347_v30 = vmax.f32 %v7345_v13, %v7346_v0  ;;  %v2343_v28 = vcombine.high %v1431_v55, %v1431_v55 }
 0x4d0   : > { %v13732_v52 = vsel %vm7919_vm4, %v5566_v6, -inf  ;;  %v7335_v39 = vmax.f32 %v7333_v15, %v7334_v36  ;;  %v7354_v53 = vmax.f32 %v7352_v47, %v7353_v56  ;;  %v2350_v31 = vrot.slane %v1431_v55, %v11479_v14 }
 0x4d1   : > { %v7341_v12 = vrot.slane %v7340_v22, 2  ;;  %v7348_v57 = vrot.slane %v7347_v30, 2  ;;  %v2357_v20 = vrot.slane %v2343_v28, %v11479_v14  ;;  %v1299_v4 = vadd.f32 %v13640_v7, %v13443_v58 }
 0x4d2   : > { %v7336_v38 = vrot.slane %v7335_v39, 1  ;;  %v7355_v5 = vrot.slane %v7354_v53, 2  ;;  %v2358_v37 = vcombine.high %v2350_v31, %v2350_v31  ;;  %v5483_v35 = vsel %vm4334_vm3, %v2350_v31, -inf }
 0x4d3   : > { %v7342_v29 = vmax.f32 %v7340_v22, %v7341_v12  ;;  %v7349_v51 = vmax.f32 %v7347_v30, %v7348_v57  ;;  %v2359_v50 = vcombine.high %v2357_v20, %v2357_v20  ;;  %v5484_v40 = vrot.slane %v5483_v35, 4  ;;  %v13747_v12 = vpop.f32.mrb[49].mxu0 }
 0x4d4   : > { %v7337_v11 = vmax.f32 %v7335_v39, %v7336_v38  ;;  %v7356_v55 = vmax.f32 %v7354_v53, %v7355_v5  ;;  %v5490_v13 = vsel %vm4334_vm3, %v2358_v37, -inf  ;;  %v5497_v24 = vsel %vm4334_vm3, %v2357_v20, -inf  ;;  %14885 = vst [vmem:[#allocation14_spill] sm:$0xff] %v13747_v12 }
 0x4d5   : > { %v7343_v17 = vrot.slane %v7342_v29, 1  ;;  %v7350_v15 = vrot.slane %v7349_v51, 1  ;;  %v5485_v27 = vmax.f32 %v5483_v35, %v5484_v40  ;;  %v5491_v23 = vrot.slane %v5490_v13, 4 }
 0x4d6   : > { %v7357_v58 = vrot.slane %v7356_v55, 1  ;;  %v13744_v0 = vsel %vm7919_vm4, %v7337_v11, -inf  ;;  %v5498_v47 = vrot.slane %v5497_v24, 4  ;;  %v5504_v6 = vsel %vm4334_vm3, %v2359_v50, -inf }
 0x4d7   : > { %v7344_v36 = vmax.f32 %v7342_v29, %v7343_v17  ;;  %v7351_v56 = vmax.f32 %v7349_v51, %v7350_v15  ;;  %v5486_v22 = vrot.slane %v5485_v27, 2  ;;  %v5492_v30 = vmax.f32 %v5490_v13, %v5491_v23 }
 0x4d8   : > { %v7358_v28 = vmax.f32 %v7356_v55, %v7357_v58  ;;  %v5499_v39 = vmax.f32 %v5497_v24, %v5498_v47  ;;  %v5505_v53 = vrot.slane %v5504_v6, 4  ;;  %v1495_v31 = vmax.f32 %v1299_v4, 0.0 }
 0x4d9   : > { %v13750_v57 = vsel %vm7919_vm4, %v7344_v36, -inf  ;;  %v13753_v20 = vsel %vm7919_vm4, %v7351_v56, -inf  ;;  %v5487_v38 = vmax.f32 %v5485_v27, %v5486_v22  ;;  %v5493_v5 = vrot.slane %v5492_v30, 2 }
 0x4da   : > { %v13756_v37 = vsel %vm7919_vm4, %v7358_v28, -inf  ;;  %v5500_v35 = vrot.slane %v5499_v39, 2  ;;  %v5506_v29 = vmax.f32 %v5504_v6, %v5505_v53  ;;  %v3431_v51 = vcombine.high %v1495_v31, %v1495_v31 }
 0x4db   : > { %v5488_v50 = vrot.slane %v5487_v38, 1  ;;  %v5494_v40 = vmax.f32 %v5492_v30, %v5493_v5  ;;  %v3438_v4 = vrot.slane %v1495_v31, %v11479_v14  ;;  %v1064_v11 = vadd.f32 %v13640_v7, %v13480_v21 }
 0x4dc   : > { %v5501_v55 = vmax.f32 %v5499_v39, %v5500_v35  ;;  %v5507_v13 = vrot.slane %v5506_v29, 2  ;;  %v3445_v24 = vrot.slane %v3431_v51, %v11479_v14  ;;  %v1320_v17 = vadd.f32 %v13640_v7, %v13488_v26 }
 0x4dd   : > { %v5489_v15 = vmax.f32 %v5487_v38, %v5488_v50  ;;  %v5495_v27 = vrot.slane %v5494_v40, 1  ;;  %v3446_v23 = vcombine.high %v3438_v4, %v3438_v4  ;;  %v7275_v58 = vsel %vm4334_vm3, %v3438_v4, -inf }
 0x4de   : > { %v5502_v47 = vrot.slane %v5501_v55, 1  ;;  %v5508_v6 = vmax.f32 %v5506_v29, %v5507_v13  ;;  %v3447_v36 = vcombine.high %v3445_v24, %v3445_v24  ;;  %v7276_v56 = vrot.slane %v7275_v58, 4  ;;  %v13777_v13 = vpop.f32.mrb[49].mxu1 }
 0x4df   : > { %v5496_v22 = vmax.f32 %v5494_v40, %v5495_v27  ;;  %v13766_v30 = vsel %vm7919_vm4, %v5489_v15, -inf  ;;  %v7282_v21 = vsel %vm4334_vm3, %v3446_v23, -inf  ;;  %v7289_v28 = vsel %vm4334_vm3, %v3445_v24, -inf  ;;  %14886 = vst [vmem:[#allocation2_spill] sm:$0xff] %v13777_v13 }
 0x4e0   : > { %v5503_v39 = vmax.f32 %v5501_v55, %v5502_v47  ;;  %v5509_v53 = vrot.slane %v5508_v6, 1  ;;  %v7277_v26 = vmax.f32 %v7275_v58, %v7276_v56  ;;  %v7283_v31 = vrot.slane %v7282_v21, 4 }
 0x4e1   : > { %v13771_v38 = vsel %vm7919_vm4, %v5496_v22, -inf  ;;  %v7290_v5 = vrot.slane %v7289_v28, 4  ;;  %v7296_v35 = vsel %vm4334_vm3, %v3447_v36, -inf  ;;  %v1436_v29 = vmax.f32 %v1064_v11, 0.0 }
 0x4e2   : > { %v5510_v51 = vmax.f32 %v5508_v6, %v5509_v53  ;;  %v13775_v50 = vsel %vm7919_vm4, %v5503_v39, -inf  ;;  %v7278_v40 = vrot.slane %v7277_v26, 2  ;;  %v7284_v4 = vmax.f32 %v7282_v21, %v7283_v31 }
 0x4e3   : > { %v7291_v24 = vmax.f32 %v7289_v28, %v7290_v5  ;;  %v7297_v55 = vrot.slane %v7296_v35, 4  ;;  %v2428_v15 = vcombine.high %v1436_v29, %v1436_v29  ;;  %v2435_v27 = vrot.slane %v1436_v29, %v11479_v14 }
 0x4e4   : > { %v13781_v23 = vsel %vm7919_vm4, %v5510_v51, -inf  ;;  %v7279_v58 = vmax.f32 %v7277_v26, %v7278_v40  ;;  %v7285_v47 = vrot.slane %v7284_v4, 2  ;;  %v1500_v36 = vmax.f32 %v1320_v17, 0.0 }
 0x4e5   : > { %v7292_v11 = vrot.slane %v7291_v24, 2  ;;  %v7298_v6 = vmax.f32 %v7296_v35, %v7297_v55  ;;  %v2442_v56 = vrot.slane %v2428_v15, %v11479_v14  ;;  %v2443_v22 = vcombine.high %v2435_v27, %v2435_v27 }
 0x4e6   : > { %v7280_v39 = vrot.slane %v7279_v58, 1  ;;  %v7286_v21 = vmax.f32 %v7284_v4, %v7285_v47  ;;  %v5623_v53 = vsel %vm4334_vm3, %v2435_v27, -inf  ;;  %v3516_v28 = vcombine.high %v1500_v36, %v1500_v36 }
 0x4e7   : > { %v7293_v31 = vmax.f32 %v7291_v24, %v7292_v11  ;;  %v7299_v5 = vrot.slane %v7298_v6, 2  ;;  %v2444_v13 = vcombine.high %v2442_v56, %v2442_v56  ;;  %v5624_v29 = vrot.slane %v5623_v53, 4 }
 0x4e8   : > { %v7281_v12 = vmax.f32 %v7279_v58, %v7280_v39  ;;  %v7287_v51 = vrot.slane %v7286_v21, 1  ;;  %v5630_v26 = vsel %vm4334_vm3, %v2443_v22, -inf  ;;  %v5637_v17 = vsel %vm4334_vm3, %v2442_v56, -inf }
 0x4e9   : > { %v7294_v40 = vrot.slane %v7293_v31, 1  ;;  %v7300_v35 = vmax.f32 %v7298_v6, %v7299_v5  ;;  %v5625_v55 = vmax.f32 %v5623_v53, %v5624_v29  ;;  %v5631_v15 = vrot.slane %v5630_v26, 4  ;;  %v13795_v53 = vpop.f32.mrb[50].mxu0 }
 0x4ea   : > { %v7288_v63 = vmax.f32 %v7286_v21, %v7287_v51  ;;  %v13788_v4 = vsel %vm7919_vm4, %v7281_v12, -inf  ;;  %v5638_v27 = vrot.slane %v5637_v17, 4  ;;  %v5644_v24 = vsel %vm4334_vm3, %v2444_v13, -inf  ;;  %14889 = vst [vmem:[#allocation13_spill] sm:$0xff] %v13795_v53 }
 0x4eb   : > { %14887 = vst [vmem:[#allocation6_spill] sm:$0xff] %v13788_v4  ;;  %v7295_v47 = vmax.f32 %v7293_v31, %v7294_v40  ;;  %v7301_v11 = vrot.slane %v7300_v35, 1  ;;  %v5626_v45 = vrot.slane %v5625_v55, 2  ;;  %v5632_v58 = vmax.f32 %v5630_v26, %v5631_v15  ;;  %v13811_v4 = vpop.f32.mrb[50].mxu1 }
 0x4ec   : > { %v13792_v39 = vsel %vm7919_vm4, %v7288_v63, -inf  ;;  %v5639_v22 = vmax.f32 %v5637_v17, %v5638_v27  ;;  %v5645_v56 = vrot.slane %v5644_v24, 4  ;;  %v3523_v6 = vrot.slane %v1500_v36, %v11479_v14 }
 0x4ed   : > { %14888 = vst [vmem:[#allocation4_spill] sm:$0xff] %v13792_v39  ;;  %v7302_v21 = vmax.f32 %v7300_v35, %v7301_v11  ;;  %v13798_v12 = vsel %vm7919_vm4, %v7295_v47, -inf  ;;  %v5627_v5 = vmax.f32 %v5625_v55, %v5626_v45  ;;  %v5633_v29 = vrot.slane %v5632_v58, 2 }
 0x4ee   : > { %14890 = vst [vmem:[#allocation7_spill] sm:$0xff] %v13798_v12  ;;  %v5640_v13 = vrot.slane %v5639_v22, 2  ;;  %v5646_v31 = vmax.f32 %v5644_v24, %v5645_v56  ;;  %v3530_v51 = vrot.slane %v3516_v28, %v11479_v14  ;;  %v3531_v26 = vcombine.high %v3523_v6, %v3523_v6 }
 0x4ef   : > { %v13802_v63 = vsel %vm7919_vm4, %v7302_v21, -inf  ;;  %v5628_v17 = vrot.slane %v5627_v5, 1  ;;  %v5634_v40 = vmax.f32 %v5632_v58, %v5633_v29  ;;  %v7415_v36 = vsel %vm4334_vm3, %v3523_v6, -inf }
 0x4f0   : > { %14891 = vst [vmem:[#allocation12_spill] sm:$0xff] %v13802_v63  ;;  %v5641_v15 = vmax.f32 %v5639_v22, %v5640_v13  ;;  %v5647_v27 = vrot.slane %v5646_v31, 2  ;;  %v3532_v35 = vcombine.high %v3530_v51, %v3530_v51  ;;  %v7416_v11 = vrot.slane %v7415_v36, 4 }
 0x4f1   : > { %v5629_v47 = vmax.f32 %v5627_v5, %v5628_v17  ;;  %v5635_v53 = vrot.slane %v5634_v40, 1  ;;  %v7422_v45 = vsel %vm4334_vm3, %v3531_v26, -inf  ;;  %v7429_v55 = vsel %vm4334_vm3, %v3530_v51, -inf }
 0x4f2   : > { %v5642_v24 = vrot.slane %v5641_v15, 1  ;;  %v5648_v28 = vmax.f32 %v5646_v31, %v5647_v27  ;;  %v7417_v56 = vmax.f32 %v7415_v36, %v7416_v11  ;;  %v7423_v12 = vrot.slane %v7422_v45, 4 }
 0x4f3   : > { %v5636_v21 = vmax.f32 %v5634_v40, %v5635_v53  ;;  %v8185_v63 = vsel %vm7919_vm4, %v5629_v47, -inf  ;;  %v7430_v58 = vrot.slane %v7429_v55, 4  ;;  %v7436_v6 = vsel %vm4334_vm3, %v3532_v35, -inf }
 0x4f4   : > { %v5643_v22 = vmax.f32 %v5641_v15, %v5642_v24  ;;  %v5649_v29 = vrot.slane %v5648_v28, 1  ;;  %v8186_v13 = vmax.f32 %v13625_v46, %v8185_v63  ;;  %v7418_v5 = vrot.slane %v7417_v56, 2 }
 0x4f5   : > { %v8188_v17 = vsel %vm7919_vm4, %v5636_v21, -inf  ;;  %v7424_v26 = vmax.f32 %v7422_v45, %v7423_v12  ;;  %v7431_v39 = vmax.f32 %v7429_v55, %v7430_v58  ;;  %v7437_v51 = vrot.slane %v7436_v6, 4 }
 0x4f6   : > { %v5650_v31 = vmax.f32 %v5648_v28, %v5649_v29  ;;  %v8189_v53 = vmax.f32 %v13634_v16, %v8188_v17  ;;  %v8191_v40 = vsel %vm7919_vm4, %v5643_v22, -inf  ;;  %v10838_v36 = vpack.c.bf16 %v8186_v13, %v8186_v13 }
 0x4f7   : > { %v8192_v27 = vmax.f32 %v13645_v1, %v8191_v40  ;;  %v7419_v15 = vmax.f32 %v7417_v56, %v7418_v5  ;;  %v7425_v35 = vrot.slane %v7424_v26, 2  ;;  %v7432_v11 = vrot.slane %v7431_v39, 2 }
 0x4f8   : > { %v8194_v46 = vsel %vm7919_vm4, %v5650_v31, -inf  ;;  %v10839_v63 = vpack.c.bf16 %v8189_v53, %v8189_v53  ;;  %v9800_v47 = vunpack.c.l.b16 %v10838_v36  ;;  %v7438_v12 = vmax.f32 %v7436_v6, %v7437_v51 }
 0x4f9   : > { %v8195_v45 = vmax.f32 %v13650_v8, %v8194_v46  ;;  %v10840_v55 = vpack.c.bf16 %v8192_v27, %v8192_v27  ;;  %v7420_v24 = vrot.slane %v7419_v15, 1  ;;  %v7426_v28 = vmax.f32 %v7424_v26, %v7425_v35 }
 0x4fa   : > { %v9801_v21 = vunpack.c.l.b16 %v10839_v63  ;;  %v7433_v16 = vmax.f32 %v7431_v39, %v7432_v11  ;;  %v7439_v58 = vrot.slane %v7438_v12, 2  ;;  %v1056_v22 = vadd.f32 %v13640_v7, %v13519_v42 }
 0x4fb   : > { %v10841_v1 = vpack.c.bf16 %v8195_v45, %v8195_v45  ;;  %v9802_v56 = vunpack.c.l.b16 %v10840_v55  ;;  %v7421_v29 = vmax.f32 %v7419_v15, %v7420_v24  ;;  %v7427_v13 = vrot.slane %v7426_v28, 1  ;;  %v13832_v45 = vpop.f32.mrb[51].mxu0 }
 0x4fc   : > { %v10052_v5 = vsel %vm9968_vm5, %v9801_v21, %v9800_v47  ;;  %v7434_v17 = vrot.slane %v7433_v16, 1  ;;  %v7440_v31 = vmax.f32 %v7438_v12, %v7439_v58  ;;  %v1434_v6 = vmax.f32 %v1056_v22, 0.0 }
 0x4fd   : > { %v9803_v51 = vunpack.c.l.b16 %v10841_v1  ;;  %v10053_v8 = vsel %vm9970_vm6, %v9802_v56, %v10052_v5  ;;  %v7428_v53 = vmax.f32 %v7426_v28, %v7427_v13  ;;  %v8569_v26 = vsel %vm7919_vm4, %v7421_v29, -inf }
 0x4fe   : > { %v7435_v39 = vmax.f32 %v7433_v16, %v7434_v17  ;;  %v7441_v40 = vrot.slane %v7440_v31, 1  ;;  %v8570_v36 = vmax.f32 %v13660_v33, %v8569_v26  ;;  %v2394_v42 = vcombine.high %v1434_v6, %v1434_v6 }
 0x4ff   : > { %v8572_v27 = vsel %vm7919_vm4, %v7428_v53, -inf  ;;  %v2401_v15 = vrot.slane %v1434_v6, %v11479_v14  ;;  %v1312_v35 = vadd.f32 %v13640_v7, %v13548_v61  ;;  %v1067_v11 = vadd.f32 %v13640_v7, %v13581_v48 }
 0x500   : > { %v7442_v46 = vmax.f32 %v7440_v31, %v7441_v40  ;;  %v8573_v63 = vmax.f32 %v13664_v2, %v8572_v27  ;;  %v8575_v47 = vsel %vm7919_vm4, %v7435_v39, -inf  ;;  %v10966_v12 = vpack.c.bf16 %v8570_v36, %v8570_v36 }
 0x501   : > { %v8576_v33 = vmax.f32 %v13667_v18, %v8575_v47  ;;  %v2408_v55 = vrot.slane %v2394_v42, %v11479_v14  ;;  %v2409_v24 = vcombine.high %v2401_v15, %v2401_v15  ;;  %v5567_v28 = vsel %vm4334_vm3, %v2401_v15, -inf }
 0x502   : > { %v8578_v61 = vsel %vm7919_vm4, %v7442_v46, -inf  ;;  %v10967_v21 = vpack.c.bf16 %v8573_v63, %v8573_v63  ;;  %v9928_v16 = vunpack.c.l.b16 %v10966_v12  ;;  %v5568_v48 = vrot.slane %v5567_v28, 4  ;;  %v13848_v12 = vpop.f32.mrb[51].mxu1 }
 0x503   : > { %v8579_v58 = vmax.f32 %v13672_v44, %v8578_v61  ;;  %v10968_v2 = vpack.c.bf16 %v8576_v33, %v8576_v33  ;;  %v2410_v22 = vcombine.high %v2408_v55, %v2408_v55  ;;  %v5574_v1 = vsel %vm4334_vm3, %v2409_v24, -inf }
 0x504   : > { %v9929_v56 = vunpack.c.l.b16 %v10967_v21  ;;  %v5569_v29 = vmax.f32 %v5567_v28, %v5568_v48  ;;  %v5575_v13 = vrot.slane %v5574_v1, 4  ;;  %v5581_v18 = vsel %vm4334_vm3, %v2408_v55, -inf }
 0x505   : > { %v10969_v5 = vpack.c.bf16 %v8579_v58, %v8579_v58  ;;  %v9930_v17 = vunpack.c.l.b16 %v10968_v2  ;;  %v5582_v31 = vrot.slane %v5581_v18, 4  ;;  %v5588_v6 = vsel %vm4334_vm3, %v2410_v22, -inf }
 0x506   : > { %v10164_v53 = vsel %vm9968_vm5, %v9929_v56, %v9928_v16  ;;  %v5570_v26 = vrot.slane %v5569_v29, 2  ;;  %v5576_v39 = vmax.f32 %v5574_v1, %v5575_v13  ;;  %v5589_v40 = vrot.slane %v5588_v6, 4 }
 0x507   : > { %v13843_v44 = vunpack.c.l.b16 %v10969_v5  ;;  %v13846_v36 = vsel %vm9970_vm6, %v9930_v17, %v10164_v53  ;;  %v5583_v42 = vmax.f32 %v5581_v18, %v5582_v31  ;;  %v1498_v27 = vmax.f32 %v1312_v35, 0.0 }
 0x508   : > { %v5571_v15 = vmax.f32 %v5569_v29, %v5570_v26  ;;  %v5577_v46 = vrot.slane %v5576_v39, 2  ;;  %v5590_v63 = vmax.f32 %v5588_v6, %v5589_v40  ;;  %v1437_v47 = vmax.f32 %v1067_v11, 0.0 }
 0x509   : > { %v5584_v33 = vrot.slane %v5583_v42, 2  ;;  %v3482_v55 = vcombine.high %v1498_v27, %v1498_v27  ;;  %v3489_v24 = vrot.slane %v1498_v27, %v11479_v14  ;;  %v13852_v28 = vsel %vm9972_vm7, %v9803_v51, %v10053_v8 }
 0x50a   : > { %v5572_v61 = vrot.slane %v5571_v15, 1  ;;  %v5578_v21 = vmax.f32 %v5576_v39, %v5577_v46  ;;  %v5591_v16 = vrot.slane %v5590_v63, 2  ;;  %v2445_v48 = vcombine.high %v1437_v47, %v1437_v47 }
 0x50b   : > { %v5585_v58 = vmax.f32 %v5583_v42, %v5584_v33  ;;  %v3496_v35 = vrot.slane %v3482_v55, %v11479_v14  ;;  %v3497_v2 = vcombine.high %v3489_v24, %v3489_v24  ;;  %v7359_v22 = vsel %vm4334_vm3, %v3489_v24, -inf }
 0x50c   : > { %v5573_v11 = vmax.f32 %v5571_v15, %v5572_v61  ;;  %v5579_v1 = vrot.slane %v5578_v21, 1  ;;  %v5592_v56 = vmax.f32 %v5590_v63, %v5591_v16  ;;  %v7360_v29 = vrot.slane %v7359_v22, 4 }
 0x50d   : > { %v5586_v13 = vrot.slane %v5585_v58, 1  ;;  %v3498_v18 = vcombine.high %v3496_v35, %v3496_v35  ;;  %v7366_v5 = vsel %vm4334_vm3, %v3497_v2, -inf  ;;  %v7373_v51 = vsel %vm4334_vm3, %v3496_v35, -inf }
 0x50e   : > { %v5580_v8 = vmax.f32 %v5578_v21, %v5579_v1  ;;  %v5593_v17 = vrot.slane %v5592_v56, 1  ;;  %v8161_v31 = vsel %vm7919_vm4, %v5573_v11, -inf  ;;  %v7361_v6 = vmax.f32 %v7359_v22, %v7360_v29 }
 0x50f   : > { %v5587_v53 = vmax.f32 %v5585_v58, %v5586_v13  ;;  %v8162_v26 = vmax.f32 %v13680_v49, %v8161_v31  ;;  %v7367_v39 = vrot.slane %v7366_v5, 4  ;;  %v7374_v40 = vrot.slane %v7373_v51, 4 }
 0x510   : > { %v5594_v42 = vmax.f32 %v5592_v56, %v5593_v17  ;;  %v8164_v27 = vsel %vm7919_vm4, %v5580_v8, -inf  ;;  %v7362_v15 = vrot.slane %v7361_v6, 2  ;;  %v7380_v46 = vsel %vm4334_vm3, %v3498_v18, -inf }
 0x511   : > { %v8165_v63 = vmax.f32 %v13684_v41, %v8164_v27  ;;  %v8167_v33 = vsel %vm7919_vm4, %v5587_v53, -inf  ;;  %v10830_v55 = vpack.c.bf16 %v8162_v26, %v8162_v26  ;;  %v7368_v24 = vmax.f32 %v7366_v5, %v7367_v39  ;;  %v13876_v27 = vpop.f32.mrb[52].mxu0 }
 0x512   : > { %v8168_v61 = vmax.f32 %v13687_v43, %v8167_v33  ;;  %v8170_v21 = vsel %vm7919_vm4, %v5594_v42, -inf  ;;  %v7363_v16 = vmax.f32 %v7361_v6, %v7362_v15  ;;  %v7375_v49 = vmax.f32 %v7373_v51, %v7374_v40 }
 0x513   : > { %v8171_v58 = vmax.f32 %v13690_v62, %v8170_v21  ;;  %v10831_v35 = vpack.c.bf16 %v8165_v63, %v8165_v63  ;;  %v9792_v2 = vunpack.c.l.b16 %v10830_v55  ;;  %v7369_v22 = vrot.slane %v7368_v24, 2 }
 0x514   : > { %v10832_v11 = vpack.c.bf16 %v8168_v61, %v8168_v61  ;;  %v7364_v1 = vrot.slane %v7363_v16, 1  ;;  %v7376_v56 = vrot.slane %v7375_v49, 2  ;;  %v7381_v29 = vrot.slane %v7380_v46, 4 }
 0x515   : > { %v10833_v41 = vpack.c.bf16 %v8171_v58, %v8171_v58  ;;  %v9793_v13 = vunpack.c.l.b16 %v10831_v35  ;;  %v7370_v18 = vmax.f32 %v7368_v24, %v7369_v22  ;;  %v2452_v5 = vrot.slane %v1437_v47, %v11479_v14  ;;  %v13885_v22 = vpop.f32.mrb[52].mxu1 }
 0x516   : > { %v9794_v8 = vunpack.c.l.b16 %v10832_v11  ;;  %v7365_v43 = vmax.f32 %v7363_v16, %v7364_v1  ;;  %v7377_v17 = vmax.f32 %v7375_v49, %v7376_v56  ;;  %v7382_v31 = vmax.f32 %v7380_v46, %v7381_v29 }
 0x517   : > { %v13868_v6 = vunpack.c.l.b16 %v10833_v41  ;;  %v10045_v62 = vsel %vm9968_vm5, %v9793_v13, %v9792_v2  ;;  %v7371_v51 = vrot.slane %v7370_v18, 1  ;;  %v2459_v53 = vrot.slane %v2445_v48, %v11479_v14 }
 0x518   : > { %v13873_v26 = vsel %vm9970_vm6, %v9794_v8, %v10045_v62  ;;  %v7378_v39 = vrot.slane %v7377_v17, 1  ;;  %v7383_v40 = vrot.slane %v7382_v31, 2  ;;  %v8545_v42 = vsel %vm7919_vm4, %v7365_v43, -inf }
 0x519   : > { %v7372_v47 = vmax.f32 %v7370_v18, %v7371_v51  ;;  %v8546_v15 = vmax.f32 %v13700_v25, %v8545_v42  ;;  %v2460_v46 = vcombine.high %v2452_v5, %v2452_v5  ;;  %v2461_v63 = vcombine.high %v2459_v53, %v2459_v53 }
 0x51a   : > { %v7379_v33 = vmax.f32 %v7377_v17, %v7378_v39  ;;  %v7384_v55 = vmax.f32 %v7382_v31, %v7383_v40  ;;  %v5651_v24 = vsel %vm4334_vm3, %v2452_v5, -inf  ;;  %v5665_v48 = vsel %vm4334_vm3, %v2459_v53, -inf }
 0x51b   : > { %v8548_v61 = vsel %vm7919_vm4, %v7372_v47, -inf  ;;  %v10958_v21 = vpack.c.bf16 %v8546_v15, %v8546_v15  ;;  %v5652_v16 = vrot.slane %v5651_v24, 4  ;;  %v5658_v49 = vsel %vm4334_vm3, %v2460_v46, -inf }
 0x51c   : > { %v7385_v58 = vrot.slane %v7384_v55, 1  ;;  %v8549_v35 = vmax.f32 %v13704_v60, %v8548_v61  ;;  %v8551_v2 = vsel %vm7919_vm4, %v7379_v33, -inf  ;;  %v5659_v25 = vrot.slane %v5658_v49, 4 }
 0x51d   : > { %v8552_v11 = vmax.f32 %v13709_v10, %v8551_v2  ;;  %v9920_v1 = vunpack.c.l.b16 %v10958_v21  ;;  %v5653_v56 = vmax.f32 %v5651_v24, %v5652_v16  ;;  %v5666_v29 = vrot.slane %v5665_v48, 4 }
 0x51e   : > { %v7386_v41 = vmax.f32 %v7384_v55, %v7385_v58  ;;  %v10959_v13 = vpack.c.bf16 %v8549_v35, %v8549_v35  ;;  %v5660_v18 = vmax.f32 %v5658_v49, %v5659_v25  ;;  %v5672_v5 = vsel %vm4334_vm3, %v2461_v63, -inf }
 0x51f   : > { %v10960_v8 = vpack.c.bf16 %v8552_v11, %v8552_v11  ;;  %v5654_v43 = vrot.slane %v5653_v56, 2  ;;  %v5667_v17 = vmax.f32 %v5665_v48, %v5666_v29  ;;  %v5673_v31 = vrot.slane %v5672_v5, 4 }
 0x520   : > { %v8554_v60 = vsel %vm7919_vm4, %v7386_v41, -inf  ;;  %v9921_v62 = vunpack.c.l.b16 %v10959_v13  ;;  %v5661_v51 = vrot.slane %v5660_v18, 2  ;;  %v1323_v53 = vadd.f32 %v13640_v7, %v13599_v3  ;;  %v13911_v41 = vld [vmem:[%s14780_s2] ss:$0 sm:$0xff] }
 0x521   : > { %v8555_v10 = vmax.f32 %v13714_v19, %v8554_v60  ;;  %v9922_v39 = vunpack.c.l.b16 %v10960_v8  ;;  %v5655_v40 = vmax.f32 %v5653_v56, %v5654_v43  ;;  %v5668_v42 = vrot.slane %v5667_v17, 2 }
 0x522   : > { %v10157_v47 = vsel %vm9968_vm5, %v9921_v62, %v9920_v1  ;;  %v5662_v15 = vmax.f32 %v5660_v18, %v5661_v51  ;;  %v5674_v46 = vmax.f32 %v5672_v5, %v5673_v31  ;;  %v1501_v63 = vmax.f32 %v1323_v53, 0.0 }
 0x523   : > { %v10961_v33 = vpack.c.bf16 %v8555_v10, %v8555_v10  ;;  %v13895_v55 = vsel %vm9970_vm6, %v9922_v39, %v10157_v47  ;;  %v5656_v24 = vrot.slane %v5655_v40, 1  ;;  %v5669_v48 = vmax.f32 %v5667_v17, %v5668_v42 }
 0x524   : > { %v5663_v61 = vrot.slane %v5662_v15, 1  ;;  %v5675_v21 = vrot.slane %v5674_v46, 2  ;;  %v3533_v16 = vcombine.high %v1501_v63, %v1501_v63  ;;  %v3540_v3 = vrot.slane %v1501_v63, %v11479_v14 }
 0x525   : > { %v13898_v7 = vunpack.c.l.b16 %v10961_v33  ;;  %v5657_v19 = vmax.f32 %v5655_v40, %v5656_v24  ;;  %v5670_v49 = vrot.slane %v5669_v48, 1  ;;  %v13903_v58 = vsel %vm9972_vm7, %v13843_v44, %v13846_v36  ;;  %v13915_v44 = vpop.f32.mrb[53].mxu0 }
 0x526   : > { %v5664_v35 = vmax.f32 %v5662_v15, %v5663_v61  ;;  %v5676_v2 = vmax.f32 %v5674_v46, %v5675_v21  ;;  %v3547_v25 = vrot.slane %v3533_v16, %v11479_v14  ;;  %v3548_v11 = vcombine.high %v3540_v3, %v3540_v3 }
 0x527   : > { %v5671_v1 = vmax.f32 %v5669_v48, %v5670_v49  ;;  %v8197_v56 = vsel %vm7919_vm4, %v5657_v19, -inf  ;;  %v7443_v29 = vsel %vm4334_vm3, %v3540_v3, -inf  ;;  %v1059_v13 = vadd.f32 %v13911_v41, %v13629_v34 }
 0x528   : > { %v5677_v36 = vrot.slane %v5676_v2, 1  ;;  %v8198_v18 = vmax.f32 %v13722_v9, %v8197_v56  ;;  %v8200_v5 = vsel %vm7919_vm4, %v5664_v35, -inf  ;;  %v3549_v8 = vcombine.high %v3547_v25, %v3547_v25 }
 0x529   : > { %v8201_v43 = vmax.f32 %v13726_v59, %v8200_v5  ;;  %v8203_v17 = vsel %vm7919_vm4, %v5671_v1, -inf  ;;  %v7444_v31 = vrot.slane %v7443_v29, 4  ;;  %v7450_v60 = vsel %vm4334_vm3, %v3548_v11, -inf }
 0x52a   : > { %v5678_v62 = vmax.f32 %v5676_v2, %v5677_v36  ;;  %v8204_v51 = vmax.f32 %v13729_v32, %v8203_v17  ;;  %v10842_v53 = vpack.c.bf16 %v8198_v18, %v8198_v18  ;;  %v7451_v34 = vrot.slane %v7450_v60, 4 }
 0x52b   : > { %v10843_v10 = vpack.c.bf16 %v8201_v43, %v8201_v43  ;;  %v7445_v39 = vmax.f32 %v7443_v29, %v7444_v31  ;;  %v7457_v40 = vsel %vm4334_vm3, %v3547_v25, -inf  ;;  %v7464_v9 = vsel %vm4334_vm3, %v3549_v8, -inf }
 0x52c   : > { %v8206_v42 = vsel %vm7919_vm4, %v5678_v62, -inf  ;;  %v10844_v47 = vpack.c.bf16 %v8204_v51, %v8204_v51  ;;  %v9804_v59 = vunpack.c.l.b16 %v10842_v53  ;;  %v7452_v15 = vmax.f32 %v7450_v60, %v7451_v34 }
 0x52d   : > { %v8207_v46 = vmax.f32 %v13732_v52, %v8206_v42  ;;  %v9805_v63 = vunpack.c.l.b16 %v10843_v10  ;;  %v7446_v33 = vrot.slane %v7445_v39, 2  ;;  %v7458_v24 = vrot.slane %v7457_v40, 4 }
 0x52e   : > { %v9806_v48 = vunpack.c.l.b16 %v10844_v47  ;;  %v10055_v32 = vsel %vm9974_vm8, %v9804_v59, %v13852_v28  ;;  %v7453_v61 = vrot.slane %v7452_v15, 2  ;;  %v7465_v21 = vrot.slane %v7464_v9, 4 }
 0x52f   : > { %v10845_v16 = vpack.c.bf16 %v8207_v46, %v8207_v46  ;;  %v10056_v3 = vsel %vm9976_vm9, %v9805_v63, %v10055_v32  ;;  %v7447_v19 = vmax.f32 %v7445_v39, %v7446_v33  ;;  %v7459_v49 = vmax.f32 %v7457_v40, %v7458_v24 }
 0x530   : > { %v10057_v35 = vsel %vm9978_vm10, %v9806_v48, %v10056_v3  ;;  %v7454_v2 = vmax.f32 %v7452_v15, %v7453_v61  ;;  %v7466_v25 = vmax.f32 %v7464_v9, %v7465_v21  ;;  %v1435_v11 = vmax.f32 %v1059_v13, 0.0 }
 0x531   : > { %v9807_v52 = vunpack.c.l.b16 %v10845_v16  ;;  %v7448_v1 = vrot.slane %v7447_v19, 1  ;;  %v7460_v56 = vrot.slane %v7459_v49, 2  ;;  %v13934_v29 = vsel %vm9972_vm7, %v13868_v6, %v13873_v26 }
 0x532   : > { %v7455_v28 = vrot.slane %v7454_v2, 1  ;;  %v7467_v36 = vrot.slane %v7466_v25, 2  ;;  %v2411_v18 = vcombine.high %v1435_v11, %v1435_v11  ;;  %v2418_v5 = vrot.slane %v1435_v11, %v11479_v14 }
 0x533   : > { %v10058_v8 = vsel %vm9980_vm11, %v9807_v52, %v10057_v35  ;;  %v7449_v43 = vmax.f32 %v7447_v19, %v7448_v1  ;;  %v7461_v17 = vmax.f32 %v7459_v49, %v7460_v56  ;;  %v1315_v13 = vadd.f32 %v13911_v41, %v13669_v54  ;;  %v13947_v54 = vpop.f32.mrb[53].mxu1 }
 0x534   : > { %v10210_v31 = vpack.c.b16 %v10058_v8, %v10058_v8  ;;  %v7456_v60 = vmax.f32 %v7454_v2, %v7455_v28  ;;  %v7468_v62 = vmax.f32 %v7466_v25, %v7467_v36  ;;  %v2425_v51 = vrot.slane %v2411_v18, %v11479_v14 }
 0x535   : > { %v7462_v6 = vrot.slane %v7461_v17, 1  ;;  %v8581_v26 = vsel %vm7919_vm4, %v7449_v43, -inf  ;;  %v2426_v53 = vcombine.high %v2418_v5, %v2418_v5  ;;  %v5595_v34 = vsel %vm4334_vm3, %v2418_v5, -inf }
 0x536   : > { %10275 = vst.msk [vmem:[%s11900_s4 + $0x2c] sm:$0xf] %vm10263_vm12, %v10210_v31  ;;  %v7469_v10 = vrot.slane %v7468_v62, 1  ;;  %v8582_v39 = vmax.f32 %v13744_v0, %v8581_v26  ;;  %v8584_v40 = vsel %vm7919_vm4, %v7456_v60, -inf  ;;  %v2427_v9 = vcombine.high %v2425_v51, %v2425_v51 }
 0x537   : > { %v7463_v42 = vmax.f32 %v7461_v17, %v7462_v6  ;;  %v8585_v47 = vmax.f32 %v13750_v57, %v8584_v40  ;;  %v5596_v59 = vrot.slane %v5595_v34, 4  ;;  %v5602_v15 = vsel %vm4334_vm3, %v2426_v53, -inf }
 0x538   : > { %v7470_v46 = vmax.f32 %v7468_v62, %v7469_v10  ;;  %v10970_v63 = vpack.c.bf16 %v8582_v39, %v8582_v39  ;;  %v5603_v33 = vrot.slane %v5602_v15, 4  ;;  %v5609_v24 = vsel %vm4334_vm3, %v2425_v51, -inf }
 0x539   : > { %v8587_v48 = vsel %vm7919_vm4, %v7463_v42, -inf  ;;  %v10971_v32 = vpack.c.bf16 %v8585_v47, %v8585_v47  ;;  %v5597_v0 = vmax.f32 %v5595_v34, %v5596_v59  ;;  %v5610_v61 = vrot.slane %v5609_v24, 4 }
 0x53a   : > { %v8588_v21 = vmax.f32 %v13753_v20, %v8587_v48  ;;  %v8590_v16 = vsel %vm7919_vm4, %v7470_v46, -inf  ;;  %v9932_v3 = vunpack.c.l.b16 %v10970_v63  ;;  %v5604_v19 = vmax.f32 %v5602_v15, %v5603_v33 }
 0x53b   : > { %v8591_v57 = vmax.f32 %v13756_v37, %v8590_v16  ;;  %v9933_v49 = vunpack.c.l.b16 %v10971_v32  ;;  %v5598_v35 = vrot.slane %v5597_v0, 2  ;;  %v5611_v2 = vmax.f32 %v5609_v24, %v5610_v61 }
 0x53c   : > { %v10972_v25 = vpack.c.bf16 %v8588_v21, %v8588_v21  ;;  %v10167_v11 = vsel %vm9974_vm8, %v9932_v3, %v13903_v58  ;;  %v5605_v52 = vrot.slane %v5604_v19, 2  ;;  %v5616_v1 = vsel %vm4334_vm3, %v2427_v9, -inf  ;;  %v13979_v3 = vpop.f32.mrb[54].mxu0 }
 0x53d   : > { %v10973_v56 = vpack.c.bf16 %v8591_v57, %v8591_v57  ;;  %v10168_v28 = vsel %vm9976_vm9, %v9933_v49, %v10167_v11  ;;  %v5599_v20 = vmax.f32 %v5597_v0, %v5598_v35  ;;  %v5612_v36 = vrot.slane %v5611_v2, 2 }
 0x53e   : > { %v9934_v18 = vunpack.c.l.b16 %v10972_v25  ;;  %v5606_v5 = vmax.f32 %v5604_v19, %v5605_v52  ;;  %v5617_v8 = vrot.slane %v5616_v1, 4  ;;  %v1499_v43 = vmax.f32 %v1315_v13, 0.0 }
 0x53f   : > { %v9935_v37 = vunpack.c.l.b16 %v10973_v56  ;;  %v5600_v17 = vrot.slane %v5599_v20, 1  ;;  %v5613_v31 = vmax.f32 %v5611_v2, %v5612_v36  ;;  %v13963_v60 = vsel %vm9972_vm7, %v13898_v7, %v13895_v55 }
 0x540   : > { %v10169_v58 = vsel %vm9978_vm10, %v9934_v18, %v10168_v28  ;;  %v5607_v62 = vrot.slane %v5606_v5, 1  ;;  %v5618_v51 = vmax.f32 %v5616_v1, %v5617_v8  ;;  %v3499_v6 = vcombine.high %v1499_v43, %v1499_v43 }
 0x541   : > { %v10170_v26 = vsel %vm9980_vm11, %v9935_v37, %v10169_v58  ;;  %v5601_v53 = vmax.f32 %v5599_v20, %v5600_v17  ;;  %v5614_v34 = vrot.slane %v5613_v31, 1  ;;  %v3506_v13 = vrot.slane %v1499_v43, %v11479_v14  ;;  %v14892_v58 = vld [vmem:[#allocation5_spill] sm:$0xff] }
 0x542   : > { %v10226_v10 = vpack.c.b16 %v10170_v26, %v10170_v26  ;;  %v5608_v39 = vmax.f32 %v5606_v5, %v5607_v62  ;;  %v5619_v40 = vrot.slane %v5618_v51, 2  ;;  %v3513_v9 = vrot.slane %v3499_v6, %v11479_v14 }
 0x543   : > { %v5615_v42 = vmax.f32 %v5613_v31, %v5614_v34  ;;  %v8173_v55 = vsel %vm7919_vm4, %v5601_v53, -inf  ;;  %v3514_v7 = vcombine.high %v3506_v13, %v3506_v13  ;;  %v7387_v47 = vsel %vm4334_vm3, %v3506_v13, -inf  ;;  %v14893_v53 = vld [vmem:[#allocation10_spill] sm:$0xff] }
 0x544   : > { %10291 = vst.msk [vmem:[%s11900_s4 + $0x6c] sm:$0xf] %vm10263_vm12, %v10226_v10  ;;  %v5620_v59 = vmax.f32 %v5618_v51, %v5619_v40  ;;  %v8174_v15 = vmax.f32 %v13766_v30, %v8173_v55  ;;  %v8176_v46 = vsel %vm7919_vm4, %v5608_v39, -inf  ;;  %v3515_v63 = vcombine.high %v3513_v9, %v3513_v9  ;;  %v14894_v10 = vld [vmem:[#allocation14_spill] sm:$0xff] }
 0x545   : > { %v8177_v33 = vmax.f32 %v13771_v38, %v8176_v46  ;;  %v8179_v24 = vsel %vm7919_vm4, %v5615_v42, -inf  ;;  %v7388_v48 = vrot.slane %v7387_v47, 4  ;;  %v7394_v32 = vsel %vm4334_vm3, %v3514_v7, -inf  ;;  %v13997_v7 = vpop.f32.mrb[54].mxu1 }
 0x546   : > { %v5621_v0 = vrot.slane %v5620_v59, 1  ;;  %v8180_v61 = vmax.f32 %v13775_v50, %v8179_v24  ;;  %v10834_v21 = vpack.c.bf16 %v8174_v15, %v8174_v15  ;;  %v7395_v16 = vrot.slane %v7394_v32, 4 }
 0x547   : > { %v10835_v19 = vpack.c.bf16 %v8177_v33, %v8177_v33  ;;  %v7389_v57 = vmax.f32 %v7387_v47, %v7388_v48  ;;  %v7401_v30 = vsel %vm4334_vm3, %v3513_v9, -inf  ;;  %v7408_v49 = vsel %vm4334_vm3, %v3515_v63, -inf }
 0x548   : > { %v5622_v35 = vmax.f32 %v5620_v59, %v5621_v0  ;;  %v10836_v38 = vpack.c.bf16 %v8180_v61, %v8180_v61  ;;  %v9796_v2 = vunpack.c.l.b16 %v10834_v21  ;;  %v7396_v25 = vmax.f32 %v7394_v32, %v7395_v16  ;;  %v14895_v61 = vld [vmem:[#allocation6_spill] sm:$0xff] }
 0x549   : > { %v9797_v11 = vunpack.c.l.b16 %v10835_v19  ;;  %v7390_v52 = vrot.slane %v7389_v57, 2  ;;  %v7402_v1 = vrot.slane %v7401_v30, 4  ;;  %v7409_v56 = vrot.slane %v7408_v49, 4 }
 0x54a   : > { %v8182_v50 = vsel %vm7919_vm4, %v5622_v35, -inf  ;;  %v9798_v28 = vunpack.c.l.b16 %v10836_v38  ;;  %v10048_v20 = vsel %vm9974_vm8, %v9796_v2, %v13934_v29  ;;  %v7397_v36 = vrot.slane %v7396_v25, 2 }
 0x54b   : > { %v8183_v18 = vmax.f32 %v13781_v23, %v8182_v50  ;;  %v10049_v5 = vsel %vm9976_vm9, %v9797_v11, %v10048_v20  ;;  %v7391_v8 = vmax.f32 %v7389_v57, %v7390_v52  ;;  %v7403_v43 = vmax.f32 %v7401_v30, %v7402_v1  ;;  %v14896_v57 = vld [vmem:[#allocation4_spill] sm:$0xff] }
 0x54c   : > { %v10050_v37 = vsel %vm9978_vm10, %v9798_v28, %v10049_v5  ;;  %v7398_v17 = vmax.f32 %v7396_v25, %v7397_v36  ;;  %v7410_v31 = vmax.f32 %v7408_v49, %v7409_v56  ;;  %v1080_v62 = vadd.f32 %v13911_v41, %v14892_v58  ;;  %v14897_v28 = vld [vmem:[#allocation7_spill] sm:$0xff] }
 0x54d   : > { %v10837_v51 = vpack.c.bf16 %v8183_v18, %v8183_v18  ;;  %v7392_v6 = vrot.slane %v7391_v8, 1  ;;  %v7404_v26 = vrot.slane %v7403_v43, 2  ;;  %v1336_v29 = vadd.f32 %v13911_v41, %v14893_v53 }
 0x54e   : > { %v7399_v34 = vrot.slane %v7398_v17, 1  ;;  %v7411_v13 = vrot.slane %v7410_v31, 2  ;;  %v1440_v23 = vmax.f32 %v1080_v62, 0.0  ;;  %v13995_v39 = vadd.f32 %v13911_v41, %v14894_v10 }
 0x54f   : > { %v9799_v40 = vunpack.c.l.b16 %v10837_v51  ;;  %v7393_v9 = vmax.f32 %v7391_v8, %v7392_v6  ;;  %v7405_v42 = vmax.f32 %v7403_v43, %v7404_v26  ;;  %v1504_v55 = vmax.f32 %v1336_v29, 0.0  ;;  %v14898_v8 = vld [vmem:[#allocation12_spill] sm:$0xff] }
 0x550   : > { %v7400_v47 = vmax.f32 %v7398_v17, %v7399_v34  ;;  %v7412_v59 = vmax.f32 %v7410_v31, %v7411_v13  ;;  %v2496_v15 = vcombine.high %v1440_v23, %v1440_v23  ;;  %v2503_v46 = vrot.slane %v1440_v23, %v11479_v14 }
 0x551   : > { %v10051_v63 = vsel %vm9980_vm11, %v9799_v40, %v10050_v37  ;;  %v7406_v33 = vrot.slane %v7405_v42, 1  ;;  %v8557_v24 = vsel %vm7919_vm4, %v7393_v9, -inf  ;;  %v3584_v48 = vcombine.high %v1504_v55, %v1504_v55 }
 0x552   : > { %v10209_v32 = vpack.c.b16 %v10051_v63, %v10051_v63  ;;  %v7413_v0 = vrot.slane %v7412_v59, 1  ;;  %v8558_v21 = vmax.f32 %v14895_v61, %v8557_v24  ;;  %v8560_v16 = vsel %vm7919_vm4, %v7400_v47, -inf }
 0x553   : > { %v7407_v19 = vmax.f32 %v7405_v42, %v7406_v33  ;;  %v8561_v30 = vmax.f32 %v14896_v57, %v8560_v16  ;;  %v2510_v49 = vrot.slane %v2496_v15, %v11479_v14  ;;  %v2511_v35 = vcombine.high %v2503_v46, %v2503_v46 }
 0x554   : > { %10274 = vst.msk [vmem:[%s11900_s4 + $0x28] sm:$0xf] %vm10263_vm12, %v10209_v32  ;;  %v7414_v38 = vmax.f32 %v7412_v59, %v7413_v0  ;;  %v10962_v2 = vpack.c.bf16 %v8558_v21, %v8558_v21  ;;  %v5735_v25 = vsel %vm4334_vm3, %v2503_v46, -inf  ;;  %v3591_v11 = vrot.slane %v1504_v55, %v11479_v14 }
 0x555   : > { %v8563_v52 = vsel %vm7919_vm4, %v7407_v19, -inf  ;;  %v10963_v1 = vpack.c.bf16 %v8561_v30, %v8561_v30  ;;  %v2512_v56 = vcombine.high %v2510_v49, %v2510_v49  ;;  %v5736_v50 = vrot.slane %v5735_v25, 4 }
 0x556   : > { %v8564_v20 = vmax.f32 %v14897_v28, %v8563_v52  ;;  %v8566_v36 = vsel %vm7919_vm4, %v7414_v38, -inf  ;;  %v9924_v18 = vunpack.c.l.b16 %v10962_v2  ;;  %v5742_v5 = vsel %vm4334_vm3, %v2511_v35, -inf }
 0x557   : > { %v8567_v43 = vmax.f32 %v14898_v8, %v8566_v36  ;;  %v9925_v37 = vunpack.c.l.b16 %v10963_v1  ;;  %v5737_v17 = vmax.f32 %v5735_v25, %v5736_v50  ;;  %v5743_v31 = vrot.slane %v5742_v5, 4  ;;  %v14028_v25 = vpop.f32.mrb[55].mxu0 }
 0x558   : > { %v10964_v58 = vpack.c.bf16 %v8564_v20, %v8564_v20  ;;  %v10160_v62 = vsel %vm9974_vm8, %v9924_v18, %v13963_v60  ;;  %v5749_v51 = vsel %vm4334_vm3, %v2510_v49, -inf  ;;  %v5756_v6 = vsel %vm4334_vm3, %v2512_v56, -inf }
 0x559   : > { %v10965_v26 = vpack.c.bf16 %v8567_v43, %v8567_v43  ;;  %v10161_v53 = vsel %vm9976_vm9, %v9925_v37, %v10160_v62  ;;  %v5738_v29 = vrot.slane %v5737_v17, 2  ;;  %v5744_v34 = vmax.f32 %v5742_v5, %v5743_v31 }
 0x55a   : > { %v9926_v13 = vunpack.c.l.b16 %v10964_v58  ;;  %v5750_v23 = vrot.slane %v5749_v51, 4  ;;  %v5757_v10 = vrot.slane %v5756_v6, 4  ;;  %v3598_v40 = vrot.slane %v3584_v48, %v11479_v14 }
 0x55b   : > { %v9927_v9 = vunpack.c.l.b16 %v10965_v26  ;;  %v5739_v42 = vmax.f32 %v5737_v17, %v5738_v29  ;;  %v5745_v55 = vrot.slane %v5744_v34, 2  ;;  %v3599_v47 = vcombine.high %v3591_v11, %v3591_v11 }
 0x55c   : > { %v10162_v60 = vsel %vm9978_vm10, %v9926_v13, %v10161_v53  ;;  %v5751_v59 = vmax.f32 %v5749_v51, %v5750_v23  ;;  %v5758_v15 = vmax.f32 %v5756_v6, %v5757_v10  ;;  %v3600_v46 = vcombine.high %v3598_v40, %v3598_v40 }
 0x55d   : > { %v10163_v63 = vsel %vm9980_vm11, %v9927_v9, %v10162_v60  ;;  %v5740_v33 = vrot.slane %v5739_v42, 1  ;;  %v5746_v24 = vmax.f32 %v5744_v34, %v5745_v55  ;;  %v7527_v32 = vsel %vm4334_vm3, %v3591_v11, -inf }
 0x55e   : > { %v10225_v0 = vpack.c.b16 %v10163_v63, %v10163_v63  ;;  %v5752_v61 = vrot.slane %v5751_v59, 2  ;;  %v5759_v21 = vrot.slane %v5758_v15, 2  ;;  %v7528_v48 = vrot.slane %v7527_v32, 4 }
 0x55f   : > { %v5741_v16 = vmax.f32 %v5739_v42, %v5740_v33  ;;  %v5747_v19 = vrot.slane %v5746_v24, 1  ;;  %v7534_v57 = vsel %vm4334_vm3, %v3599_v47, -inf  ;;  %v7541_v30 = vsel %vm4334_vm3, %v3598_v40, -inf  ;;  %v14899_v47 = vld [vmem:[#allocation2_spill] sm:$0xff] }
 0x560   : > { %10290 = vst.msk [vmem:[%s11900_s4 + $0x68] sm:$0xf] %vm10263_vm12, %v10225_v0  ;;  %v5753_v49 = vmax.f32 %v5751_v59, %v5752_v61  ;;  %v5760_v35 = vmax.f32 %v5758_v15, %v5759_v21  ;;  %v7529_v38 = vmax.f32 %v7527_v32, %v7528_v48  ;;  %v7535_v2 = vrot.slane %v7534_v57, 4 }
 0x561   : > { %v5748_v52 = vmax.f32 %v5746_v24, %v5747_v19  ;;  %v14031_v11 = vsel %vm7919_vm4, %v5741_v16, -inf  ;;  %v7542_v1 = vrot.slane %v7541_v30, 4  ;;  %v7548_v56 = vsel %vm4334_vm3, %v3600_v46, -inf }
 0x562   : > { %v5754_v50 = vrot.slane %v5753_v49, 1  ;;  %v5761_v28 = vrot.slane %v5760_v35, 1  ;;  %v7530_v20 = vrot.slane %v7529_v38, 2  ;;  %v7536_v36 = vmax.f32 %v7534_v57, %v7535_v2 }
 0x563   : > { %v14035_v18 = vsel %vm7919_vm4, %v5748_v52, -inf  ;;  %v7543_v5 = vmax.f32 %v7541_v30, %v7542_v1  ;;  %v7549_v8 = vrot.slane %v7548_v56, 4  ;;  %v1438_v43 = vmax.f32 %v13995_v39, 0.0  ;;  %v14061_v1 = vpop.f32.mrb[55].mxu1 }
 0x564   : > { %v5755_v37 = vmax.f32 %v5753_v49, %v5754_v50  ;;  %v5762_v17 = vmax.f32 %v5760_v35, %v5761_v28  ;;  %v7531_v31 = vmax.f32 %v7529_v38, %v7530_v20  ;;  %v7537_v58 = vrot.slane %v7536_v36, 2 }
 0x565   : > { %v7544_v62 = vrot.slane %v7543_v5, 2  ;;  %v7550_v51 = vmax.f32 %v7548_v56, %v7549_v8  ;;  %v2462_v6 = vcombine.high %v1438_v43, %v1438_v43  ;;  %v2469_v26 = vrot.slane %v1438_v43, %v11479_v14  ;;  %v14900_v43 = vld [vmem:[#allocation13_spill] sm:$0xff] }
 0x566   : > { %v14040_v53 = vsel %vm7919_vm4, %v5755_v37, -inf  ;;  %v14043_v29 = vsel %vm7919_vm4, %v5762_v17, -inf  ;;  %v7532_v34 = vrot.slane %v7531_v31, 1  ;;  %v7538_v13 = vmax.f32 %v7536_v36, %v7537_v58 }
 0x567   : > { %v7545_v23 = vmax.f32 %v7543_v5, %v7544_v62  ;;  %v7551_v10 = vrot.slane %v7550_v51, 2  ;;  %v2476_v39 = vrot.slane %v2462_v6, %v11479_v14  ;;  %v2477_v40 = vcombine.high %v2469_v26, %v2469_v26 }
 0x568   : > { %v7533_v9 = vmax.f32 %v7531_v31, %v7532_v34  ;;  %v7539_v42 = vrot.slane %v7538_v13, 1  ;;  %v5679_v55 = vsel %vm4334_vm3, %v2469_v26, -inf  ;;  %v1328_v60 = vadd.f32 %v13911_v41, %v14899_v47 }
 0x569   : > { %v7546_v59 = vrot.slane %v7545_v23, 1  ;;  %v7552_v15 = vmax.f32 %v7550_v51, %v7551_v10  ;;  %v2478_v46 = vcombine.high %v2476_v39, %v2476_v39  ;;  %v5680_v63 = vrot.slane %v5679_v55, 4 }
 0x56a   : > { %v7540_v33 = vmax.f32 %v7538_v13, %v7539_v42  ;;  %v14050_v24 = vsel %vm7919_vm4, %v7533_v9, -inf  ;;  %v5686_v32 = vsel %vm4334_vm3, %v2477_v40, -inf  ;;  %v5693_v0 = vsel %vm4334_vm3, %v2476_v39, -inf }
 0x56b   : > { %v7547_v61 = vmax.f32 %v7545_v23, %v7546_v59  ;;  %v7553_v21 = vrot.slane %v7552_v15, 1  ;;  %v5681_v48 = vmax.f32 %v5679_v55, %v5680_v63  ;;  %v5687_v16 = vrot.slane %v5686_v32, 4 }
 0x56c   : > { %v14055_v19 = vsel %vm7919_vm4, %v7540_v33, -inf  ;;  %v5694_v57 = vrot.slane %v5693_v0, 4  ;;  %v5700_v30 = vsel %vm4334_vm3, %v2478_v46, -inf  ;;  %v1502_v49 = vmax.f32 %v1328_v60, 0.0 }
 0x56d   : > { %v7554_v35 = vmax.f32 %v7552_v15, %v7553_v21  ;;  %v14059_v38 = vsel %vm7919_vm4, %v7547_v61, -inf  ;;  %v5682_v2 = vrot.slane %v5681_v48, 2  ;;  %v5688_v52 = vmax.f32 %v5686_v32, %v5687_v16 }
 0x56e   : > { %v5695_v56 = vmax.f32 %v5693_v0, %v5694_v57  ;;  %v5701_v50 = vrot.slane %v5700_v30, 4  ;;  %v3550_v28 = vcombine.high %v1502_v49, %v1502_v49  ;;  %v3557_v20 = vrot.slane %v1502_v49, %v11479_v14 }
 0x56f   : > { %v14065_v36 = vsel %vm7919_vm4, %v7554_v35, -inf  ;;  %v5683_v5 = vmax.f32 %v5681_v48, %v5682_v2  ;;  %v5689_v8 = vrot.slane %v5688_v52, 2  ;;  %v1083_v37 = vadd.f32 %v13911_v41, %v14900_v43 }
 0x570   : > { %v5696_v17 = vrot.slane %v5695_v56, 2  ;;  %v5702_v31 = vmax.f32 %v5700_v30, %v5701_v50  ;;  %v3564_v58 = vrot.slane %v3550_v28, %v11479_v14  ;;  %v3565_v62 = vcombine.high %v3557_v20, %v3557_v20 }
 0x571   : > { %v5684_v51 = vrot.slane %v5683_v5, 1  ;;  %v5690_v6 = vmax.f32 %v5688_v52, %v5689_v8  ;;  %v7471_v26 = vsel %vm4334_vm3, %v3557_v20, -inf  ;;  %v1441_v34 = vmax.f32 %v1083_v37, 0.0 }
 0x572   : > { %v5697_v13 = vmax.f32 %v5695_v56, %v5696_v17  ;;  %v5703_v23 = vrot.slane %v5702_v31, 2  ;;  %v3566_v10 = vcombine.high %v3564_v58, %v3564_v58  ;;  %v7472_v39 = vrot.slane %v7471_v26, 4 }
 0x573   : > { %v5685_v40 = vmax.f32 %v5683_v5, %v5684_v51  ;;  %v5691_v9 = vrot.slane %v5690_v6, 1  ;;  %v7478_v42 = vsel %vm4334_vm3, %v3565_v62, -inf  ;;  %v7485_v55 = vsel %vm4334_vm3, %v3564_v58, -inf }
 0x574   : > { %v5698_v47 = vrot.slane %v5697_v13, 1  ;;  %v5704_v60 = vmax.f32 %v5702_v31, %v5703_v23  ;;  %v7473_v59 = vmax.f32 %v7471_v26, %v7472_v39  ;;  %v7479_v15 = vrot.slane %v7478_v42, 4 }
 0x575   : > { %v5692_v46 = vmax.f32 %v5690_v6, %v5691_v9  ;;  %v14074_v63 = vsel %vm7919_vm4, %v5685_v40, -inf  ;;  %v7486_v33 = vrot.slane %v7485_v55, 4  ;;  %v7492_v32 = vsel %vm4334_vm3, %v3566_v10, -inf }
 0x576   : > { %v5699_v0 = vmax.f32 %v5697_v13, %v5698_v47  ;;  %v5705_v61 = vrot.slane %v5704_v60, 1  ;;  %v7474_v21 = vrot.slane %v7473_v59, 2  ;;  %v7480_v48 = vmax.f32 %v7478_v42, %v7479_v15 }
 0x577   : > { %v14078_v16 = vsel %vm7919_vm4, %v5692_v46, -inf  ;;  %v7487_v57 = vmax.f32 %v7485_v55, %v7486_v33  ;;  %v7493_v30 = vrot.slane %v7492_v32, 4  ;;  %v2513_v49 = vcombine.high %v1441_v34, %v1441_v34 }
 0x578   : > { %v5706_v35 = vmax.f32 %v5704_v60, %v5705_v61  ;;  %v14081_v2 = vsel %vm7919_vm4, %v5699_v0, -inf  ;;  %v7475_v52 = vmax.f32 %v7473_v59, %v7474_v21  ;;  %v7481_v56 = vrot.slane %v7480_v48, 2  ;;  %v14100_v61 = vpop.f32.mrb[56].mxu0 }
 0x579   : > { %v7488_v50 = vrot.slane %v7487_v57, 2  ;;  %v7494_v28 = vmax.f32 %v7492_v32, %v7493_v30  ;;  %v2520_v20 = vrot.slane %v1441_v34, %v11479_v14  ;;  %v2527_v5 = vrot.slane %v2513_v49, %v11479_v14 }
 0x57a   : > { %v14086_v8 = vsel %vm7919_vm4, %v5706_v35, -inf  ;;  %v7476_v43 = vrot.slane %v7475_v52, 1  ;;  %v7482_v37 = vmax.f32 %v7480_v48, %v7481_v56  ;;  %v1339_v17 = vadd.f32 %v13911_v41, %v13811_v4 }
 0x57b   : > { %v7489_v31 = vmax.f32 %v7487_v57, %v7488_v50  ;;  %v7495_v58 = vrot.slane %v7494_v28, 2  ;;  %v2528_v62 = vcombine.high %v2520_v20, %v2520_v20  ;;  %v2529_v51 = vcombine.high %v2527_v5, %v2527_v5 }
 0x57c   : > { %v7477_v6 = vmax.f32 %v7475_v52, %v7476_v43  ;;  %v7483_v26 = vrot.slane %v7482_v37, 1  ;;  %v5763_v13 = vsel %vm4334_vm3, %v2520_v20, -inf  ;;  %v5777_v34 = vsel %vm4334_vm3, %v2527_v5, -inf }
 0x57d   : > { %v7490_v23 = vrot.slane %v7489_v31, 1  ;;  %v7496_v10 = vmax.f32 %v7494_v28, %v7495_v58  ;;  %v5764_v39 = vrot.slane %v5763_v13, 4  ;;  %v5770_v40 = vsel %vm4334_vm3, %v2528_v62, -inf }
 0x57e   : > { %v7484_v9 = vmax.f32 %v7482_v37, %v7483_v26  ;;  %v14094_v42 = vsel %vm7919_vm4, %v7477_v6, -inf  ;;  %v5771_v4 = vrot.slane %v5770_v40, 4  ;;  %v5778_v55 = vrot.slane %v5777_v34, 4 }
 0x57f   : > { %v7491_v47 = vmax.f32 %v7489_v31, %v7490_v23  ;;  %v7497_v60 = vrot.slane %v7496_v10, 1  ;;  %v5765_v59 = vmax.f32 %v5763_v13, %v5764_v39  ;;  %v5784_v15 = vsel %vm4334_vm3, %v2529_v51, -inf }
 0x580   : > { %v14098_v46 = vsel %vm7919_vm4, %v7484_v9, -inf  ;;  %v5772_v33 = vmax.f32 %v5770_v40, %v5771_v4  ;;  %v5779_v32 = vmax.f32 %v5777_v34, %v5778_v55  ;;  %v5785_v0 = vrot.slane %v5784_v15, 4 }
 0x581   : > { %v7498_v21 = vmax.f32 %v7496_v10, %v7497_v60  ;;  %v14103_v48 = vsel %vm7919_vm4, %v7491_v47, -inf  ;;  %v5766_v57 = vrot.slane %v5765_v59, 2  ;;  %v1505_v30 = vmax.f32 %v1339_v17, 0.0 }
 0x582   : > { %v5773_v49 = vrot.slane %v5772_v33, 2  ;;  %v5780_v35 = vrot.slane %v5779_v32, 2  ;;  %v5786_v52 = vmax.f32 %v5784_v15, %v5785_v0  ;;  %v1075_v56 = vadd.f32 %v13911_v41, %v13832_v45 }
 0x583   : > { %v14108_v50 = vsel %vm7919_vm4, %v7498_v21, -inf  ;;  %v5767_v28 = vmax.f32 %v5765_v59, %v5766_v57  ;;  %v3601_v20 = vcombine.high %v1505_v30, %v1505_v30  ;;  %v3608_v5 = vrot.slane %v1505_v30, %v11479_v14 }
 0x584   : > { %v5774_v43 = vmax.f32 %v5772_v33, %v5773_v49  ;;  %v5781_v37 = vmax.f32 %v5779_v32, %v5780_v35  ;;  %v5787_v31 = vrot.slane %v5786_v52, 2  ;;  %v1439_v58 = vmax.f32 %v1075_v56, 0.0  ;;  %v14119_v32 = vpop.f32.mrb[56].mxu1 }
 0x585   : > { %v5768_v62 = vrot.slane %v5767_v28, 1  ;;  %v3615_v17 = vrot.slane %v3601_v20, %v11479_v14  ;;  %v3616_v51 = vcombine.high %v3608_v5, %v3608_v5  ;;  %v7555_v6 = vsel %vm4334_vm3, %v3608_v5, -inf  ;;  %14901 = vst [vmem:[#allocation3_spill] sm:$0xff] %v14119_v32 }
 0x586   : > { %v5775_v26 = vrot.slane %v5774_v43, 1  ;;  %v5782_v13 = vrot.slane %v5781_v37, 1  ;;  %v5788_v45 = vmax.f32 %v5786_v52, %v5787_v31  ;;  %v7556_v34 = vrot.slane %v7555_v6, 4 }
 0x587   : > { %v5769_v23 = vmax.f32 %v5767_v28, %v5768_v62  ;;  %v3617_v10 = vcombine.high %v3615_v17, %v3615_v17  ;;  %v7562_v39 = vsel %vm4334_vm3, %v3616_v51, -inf  ;;  %v7569_v40 = vsel %vm4334_vm3, %v3615_v17, -inf }
 0x588   : > { %v5776_v9 = vmax.f32 %v5774_v43, %v5775_v26  ;;  %v5783_v4 = vmax.f32 %v5781_v37, %v5782_v13  ;;  %v5789_v55 = vrot.slane %v5788_v45, 1  ;;  %v7557_v47 = vmax.f32 %v7555_v6, %v7556_v34 }
 0x589   : > { %v14116_v60 = vsel %vm7919_vm4, %v5769_v23, -inf  ;;  %v7563_v59 = vrot.slane %v7562_v39, 4  ;;  %v7570_v15 = vrot.slane %v7569_v40, 4  ;;  %v7576_v33 = vsel %vm4334_vm3, %v3617_v10, -inf }
 0x58a   : > { %v5790_v0 = vmax.f32 %v5788_v45, %v5789_v55  ;;  %v14122_v21 = vsel %vm7919_vm4, %v5776_v9, -inf  ;;  %v14125_v57 = vsel %vm7919_vm4, %v5783_v4, -inf  ;;  %v7558_v30 = vrot.slane %v7557_v47, 2 }
 0x58b   : > { %v7564_v49 = vmax.f32 %v7562_v39, %v7563_v59  ;;  %v7571_v35 = vmax.f32 %v7569_v40, %v7570_v15  ;;  %v7577_v52 = vrot.slane %v7576_v33, 4  ;;  %v2479_v56 = vcombine.high %v1439_v58, %v1439_v58 }
 0x58c   : > { %v14128_v28 = vsel %vm7919_vm4, %v5790_v0, -inf  ;;  %v7559_v20 = vmax.f32 %v7557_v47, %v7558_v30  ;;  %v2486_v5 = vrot.slane %v1439_v58, %v11479_v14  ;;  %v1331_v43 = vadd.f32 %v13911_v41, %v13848_v12 }
 0x58d   : > { %v7565_v37 = vrot.slane %v7564_v49, 2  ;;  %v7572_v31 = vrot.slane %v7571_v35, 2  ;;  %v7578_v62 = vmax.f32 %v7576_v33, %v7577_v52  ;;  %v2493_v17 = vrot.slane %v2479_v56, %v11479_v14 }
 0x58e   : > { %v7560_v51 = vrot.slane %v7559_v20, 1  ;;  %v2494_v6 = vcombine.high %v2486_v5, %v2486_v5  ;;  %v5707_v26 = vsel %vm4334_vm3, %v2486_v5, -inf  ;;  %v1503_v13 = vmax.f32 %v1331_v43, 0.0 }
 0x58f   : > { %v7566_v45 = vmax.f32 %v7564_v49, %v7565_v37  ;;  %v7573_v34 = vmax.f32 %v7571_v35, %v7572_v31  ;;  %v7579_v23 = vrot.slane %v7578_v62, 2  ;;  %v2495_v10 = vcombine.high %v2493_v17, %v2493_v17 }
 0x590   : > { %v7561_v39 = vmax.f32 %v7559_v20, %v7560_v51  ;;  %v5708_v40 = vrot.slane %v5707_v26, 4  ;;  %v5714_v58 = vsel %vm4334_vm3, %v2494_v6, -inf  ;;  %v5721_v12 = vsel %vm4334_vm3, %v2493_v17, -inf  ;;  %v14147_v51 = vpop.f32.mrb[57].mxu0 }
 0x591   : > { %v7567_v9 = vrot.slane %v7566_v45, 1  ;;  %v7574_v4 = vrot.slane %v7573_v34, 1  ;;  %v7580_v55 = vmax.f32 %v7578_v62, %v7579_v23  ;;  %v5715_v47 = vrot.slane %v5714_v58, 4  ;;  %14902 = vst [vmem:[#allocation8_spill] sm:$0xff] %v14147_v51 }
 0x592   : > { %v14138_v59 = vsel %vm7919_vm4, %v7561_v39, -inf  ;;  %v5709_v15 = vmax.f32 %v5707_v26, %v5708_v40  ;;  %v5722_v33 = vrot.slane %v5721_v12, 4  ;;  %v5728_v0 = vsel %vm4334_vm3, %v2495_v10, -inf }
 0x593   : > { %v7568_v30 = vmax.f32 %v7566_v45, %v7567_v9  ;;  %v7575_v49 = vmax.f32 %v7573_v34, %v7574_v4  ;;  %v7581_v35 = vrot.slane %v7580_v55, 1  ;;  %v5716_v52 = vmax.f32 %v5714_v58, %v5715_v47 }
 0x594   : > { %v5710_v56 = vrot.slane %v5709_v15, 2  ;;  %v5723_v20 = vmax.f32 %v5721_v12, %v5722_v33  ;;  %v5729_v5 = vrot.slane %v5728_v0, 4  ;;  %v3567_v43 = vcombine.high %v1503_v13, %v1503_v13 }
 0x595   : > { %v7582_v37 = vmax.f32 %v7580_v55, %v7581_v35  ;;  %v14142_v31 = vsel %vm7919_vm4, %v7568_v30, -inf  ;;  %v14145_v62 = vsel %vm7919_vm4, %v7575_v49, -inf  ;;  %v5717_v17 = vrot.slane %v5716_v52, 2 }
 0x596   : > { %v5711_v6 = vmax.f32 %v5709_v15, %v5710_v56  ;;  %v5724_v26 = vrot.slane %v5723_v20, 2  ;;  %v5730_v45 = vmax.f32 %v5728_v0, %v5729_v5  ;;  %v3574_v34 = vrot.slane %v1503_v13, %v11479_v14 }
 0x597   : > { %v14151_v23 = vsel %vm7919_vm4, %v7582_v37, -inf  ;;  %v5718_v10 = vmax.f32 %v5716_v52, %v5717_v17  ;;  %v3581_v39 = vrot.slane %v3567_v43, %v11479_v14  ;;  %v1096_v40 = vadd.f32 %v13911_v41, %v13876_v27 }
 0x598   : > { %v5712_v58 = vrot.slane %v5711_v6, 1  ;;  %v5725_v12 = vmax.f32 %v5723_v20, %v5724_v26  ;;  %v5731_v9 = vrot.slane %v5730_v45, 2  ;;  %v3582_v4 = vcombine.high %v3574_v34, %v3574_v34 }
 0x599   : > { %v5719_v55 = vrot.slane %v5718_v10, 1  ;;  %v3583_v47 = vcombine.high %v3581_v39, %v3581_v39  ;;  %v7499_v15 = vsel %vm4334_vm3, %v3574_v34, -inf  ;;  %v7513_v33 = vsel %vm4334_vm3, %v3581_v39, -inf }
 0x59a   : > { %v5713_v13 = vmax.f32 %v5711_v6, %v5712_v58  ;;  %v5726_v0 = vrot.slane %v5725_v12, 1  ;;  %v5732_v30 = vmax.f32 %v5730_v45, %v5731_v9  ;;  %v7500_v49 = vrot.slane %v7499_v15, 4 }
 0x59b   : > { %v5720_v35 = vmax.f32 %v5718_v10, %v5719_v55  ;;  %v7506_v52 = vsel %vm4334_vm3, %v3582_v4, -inf  ;;  %v7514_v56 = vrot.slane %v7513_v33, 4  ;;  %v7520_v27 = vsel %vm4334_vm3, %v3583_v47, -inf  ;;  %v14171_v47 = vpop.f32.mrb[57].mxu1 }
 0x59c   : > { %v5727_v5 = vmax.f32 %v5725_v12, %v5726_v0  ;;  %v5733_v20 = vrot.slane %v5732_v30, 1  ;;  %v14161_v43 = vsel %vm7919_vm4, %v5713_v13, -inf  ;;  %v7501_v37 = vmax.f32 %v7499_v15, %v7500_v49  ;;  %14903 = vst [vmem:[#allocation9_spill] sm:$0xff] %v14171_v47 }
 0x59d   : > { %v14164_v17 = vsel %vm7919_vm4, %v5720_v35, -inf  ;;  %v7507_v26 = vrot.slane %v7506_v52, 4  ;;  %v7515_v6 = vmax.f32 %v7513_v33, %v7514_v56  ;;  %v7521_v34 = vrot.slane %v7520_v27, 4 }
 0x59e   : > { %v5734_v45 = vmax.f32 %v5732_v30, %v5733_v20  ;;  %v14167_v10 = vsel %vm7919_vm4, %v5727_v5, -inf  ;;  %v7502_v39 = vrot.slane %v7501_v37, 2  ;;  %v1444_v58 = vmax.f32 %v1096_v40, 0.0 }
 0x59f   : > { %v7508_v9 = vmax.f32 %v7506_v52, %v7507_v26  ;;  %v7516_v4 = vrot.slane %v7515_v6, 2  ;;  %v7522_v12 = vmax.f32 %v7520_v27, %v7521_v34  ;;  %v1352_v55 = vadd.f32 %v13911_v41, %v13885_v22 }
 0x5a0   : > { %v14174_v15 = vsel %vm7919_vm4, %v5734_v45, -inf  ;;  %v7503_v13 = vmax.f32 %v7501_v37, %v7502_v39  ;;  %v2564_v33 = vcombine.high %v1444_v58, %v1444_v58  ;;  %v2571_v0 = vrot.slane %v1444_v58, %v11479_v14 }
 0x5a1   : > { %14904 = vst [vmem:[#allocation11_spill] sm:$0xff] %v14174_v15  ;;  %v7509_v30 = vrot.slane %v7508_v9, 2  ;;  %v7517_v49 = vmax.f32 %v7515_v6, %v7516_v4  ;;  %v7523_v35 = vrot.slane %v7522_v12, 2  ;;  %v1508_v56 = vmax.f32 %v1352_v55, 0.0 }
 0x5a2   : > { %v7504_v40 = vrot.slane %v7503_v13, 1  ;;  %v2578_v52 = vrot.slane %v2564_v33, %v11479_v14  ;;  %v2579_v27 = vcombine.high %v2571_v0, %v2571_v0  ;;  %v5847_v5 = vsel %vm4334_vm3, %v2571_v0, -inf }
 0x5a3   : > { %v7510_v22 = vmax.f32 %v7508_v9, %v7509_v30  ;;  %v7518_v41 = vrot.slane %v7517_v49, 1  ;;  %v7524_v20 = vmax.f32 %v7522_v12, %v7523_v35  ;;  %v5848_v26 = vrot.slane %v5847_v5, 4 }
 0x5a4   : > { %v7505_v34 = vmax.f32 %v7503_v13, %v7504_v40  ;;  %v2580_v45 = vcombine.high %v2578_v52, %v2578_v52  ;;  %v5854_v37 = vsel %vm4334_vm3, %v2579_v27, -inf  ;;  %v5861_v39 = vsel %vm4334_vm3, %v2578_v52, -inf }
 0x5a5   : > { %v7511_v58 = vrot.slane %v7510_v22, 1  ;;  %v7519_v6 = vmax.f32 %v7517_v49, %v7518_v41  ;;  %v7525_v4 = vrot.slane %v7524_v20, 1  ;;  %v5849_v55 = vmax.f32 %v5847_v5, %v5848_v26  ;;  %v14188_v49 = vpop.f32.mrb[58].mxu0 }
 0x5a6   : > { %v14182_v47 = vsel %vm7919_vm4, %v7505_v34, -inf  ;;  %v5855_v33 = vrot.slane %v5854_v37, 4  ;;  %v5862_v51 = vrot.slane %v5861_v39, 4  ;;  %v5868_v9 = vsel %vm4334_vm3, %v2580_v45, -inf  ;;  %14907 = vst [vmem:[#allocation14_spill] sm:$0xff] %v14188_v49 }
 0x5a7   : > { %14905 = vst [vmem:[#allocation5_spill] sm:$0xff] %v14182_v47  ;;  %v7512_v0 = vmax.f32 %v7510_v22, %v7511_v58  ;;  %v7526_v12 = vmax.f32 %v7524_v20, %v7525_v4  ;;  %v14186_v13 = vsel %vm7919_vm4, %v7519_v6, -inf  ;;  %v5850_v30 = vrot.slane %v5849_v55, 2  ;;  %v14202_v6 = vld [vmem:[%s14780_s2] ss:$0 sm:$0xff] }
 0x5a8   : > { %14906 = vst [vmem:[#allocation10_spill] sm:$0xff] %v14186_v13  ;;  %v5856_v35 = vmax.f32 %v5854_v37, %v5855_v33  ;;  %v5863_v40 = vmax.f32 %v5861_v39, %v5862_v51  ;;  %v5869_v52 = vrot.slane %v5868_v9, 4  ;;  %v3652_v27 = vcombine.high %v1508_v56, %v1508_v56 }
 0x5a9   : > { %v14191_v5 = vsel %vm7919_vm4, %v7512_v0, -inf  ;;  %v14194_v41 = vsel %vm7919_vm4, %v7526_v12, -inf  ;;  %v5851_v26 = vmax.f32 %v5849_v55, %v5850_v30  ;;  %v3659_v22 = vrot.slane %v1508_v56, %v11479_v14 }
 0x5aa   : > { %14908 = vst [vmem:[#allocation6_spill] sm:$0xff] %v14191_v5  ;;  %14909 = vst [vmem:[#allocation4_spill] sm:$0xff] %v14194_v41  ;;  %v5857_v20 = vrot.slane %v5856_v35, 2  ;;  %v5864_v34 = vrot.slane %v5863_v40, 2  ;;  %v5870_v45 = vmax.f32 %v5868_v9, %v5869_v52  ;;  %v3666_v58 = vrot.slane %v3652_v27, %v11479_v14 }
 0x5ab   : > { %v5852_v37 = vrot.slane %v5851_v26, 1  ;;  %v3667_v51 = vcombine.high %v3659_v22, %v3659_v22  ;;  %v7639_v39 = vsel %vm4334_vm3, %v3659_v22, -inf  ;;  %v1088_v4 = vadd.f32 %v14202_v6, %v13915_v44 }
 0x5ac   : > { %v5858_v55 = vmax.f32 %v5856_v35, %v5857_v20  ;;  %v5865_v33 = vmax.f32 %v5863_v40, %v5864_v34  ;;  %v5871_v56 = vrot.slane %v5870_v45, 2  ;;  %v3668_v0 = vcombine.high %v3666_v58, %v3666_v58 }
 0x5ad   : > { %v5853_v12 = vmax.f32 %v5851_v26, %v5852_v37  ;;  %v7640_v9 = vrot.slane %v7639_v39, 4  ;;  %v7646_v30 = vsel %vm4334_vm3, %v3667_v51, -inf  ;;  %v7653_v52 = vsel %vm4334_vm3, %v3666_v58, -inf }
 0x5ae   : > { %v5859_v27 = vrot.slane %v5858_v55, 1  ;;  %v5866_v22 = vrot.slane %v5865_v33, 1  ;;  %v5872_v49 = vmax.f32 %v5870_v45, %v5871_v56  ;;  %v7647_v41 = vrot.slane %v7646_v30, 4 }
 0x5af   : > { %v8233_v13 = vsel %vm7919_vm4, %v5853_v12, -inf  ;;  %v7641_v5 = vmax.f32 %v7639_v39, %v7640_v9  ;;  %v7654_v47 = vrot.slane %v7653_v52, 4  ;;  %v7660_v44 = vsel %vm4334_vm3, %v3668_v0, -inf  ;;  %v14213_v12 = vpop.f32.mrb[58].mxu1 }
 0x5b0   : > { %v5860_v35 = vmax.f32 %v5858_v55, %v5859_v27  ;;  %v5867_v40 = vmax.f32 %v5865_v33, %v5866_v22  ;;  %v5873_v20 = vrot.slane %v5872_v49, 1  ;;  %v8234_v26 = vmax.f32 %v14031_v11, %v8233_v13 }
 0x5b1   : > { %v7642_v34 = vrot.slane %v7641_v5, 2  ;;  %v7648_v37 = vmax.f32 %v7646_v30, %v7647_v41  ;;  %v7655_v51 = vmax.f32 %v7653_v52, %v7654_v47  ;;  %v7661_v32 = vrot.slane %v7660_v44, 4 }
 0x5b2   : > { %v5874_v58 = vmax.f32 %v5872_v49, %v5873_v20  ;;  %v8236_v15 = vsel %vm7919_vm4, %v5860_v35, -inf  ;;  %v8239_v45 = vsel %vm7919_vm4, %v5867_v40, -inf  ;;  %v10854_v56 = vpack.c.bf16 %v8234_v26, %v8234_v26 }
 0x5b3   : > { %v8237_v39 = vmax.f32 %v14035_v18, %v8236_v15  ;;  %v8240_v55 = vmax.f32 %v14040_v53, %v8239_v45  ;;  %v7643_v33 = vmax.f32 %v7641_v5, %v7642_v34  ;;  %v7649_v0 = vrot.slane %v7648_v37, 2 }
 0x5b4   : > { %v8242_v11 = vsel %vm7919_vm4, %v5874_v58, -inf  ;;  %v9816_v13 = vunpack.c.l.b16 %v10854_v56  ;;  %v7656_v41 = vrot.slane %v7655_v51, 2  ;;  %v7662_v47 = vmax.f32 %v7660_v44, %v7661_v32 }
 0x5b5   : > { %v8243_v49 = vmax.f32 %v14043_v29, %v8242_v11  ;;  %v10855_v9 = vpack.c.bf16 %v8237_v39, %v8237_v39  ;;  %v10856_v30 = vpack.c.bf16 %v8240_v55, %v8240_v55  ;;  %v7644_v52 = vrot.slane %v7643_v33, 1 }
 0x5b6   : > { %v7650_v27 = vmax.f32 %v7648_v37, %v7649_v0  ;;  %v7657_v22 = vmax.f32 %v7655_v51, %v7656_v41  ;;  %v7663_v35 = vrot.slane %v7662_v47, 2  ;;  %v1442_v40 = vmax.f32 %v1088_v4, 0.0 }
 0x5b7   : > { %v10857_v20 = vpack.c.bf16 %v8243_v49, %v8243_v49  ;;  %v9817_v18 = vunpack.c.l.b16 %v10855_v9  ;;  %v9818_v15 = vunpack.c.l.b16 %v10856_v30  ;;  %v7645_v53 = vmax.f32 %v7643_v33, %v7644_v52 }
 0x5b8   : > { %v7651_v5 = vrot.slane %v7650_v27, 1  ;;  %v7658_v26 = vrot.slane %v7657_v22, 1  ;;  %v7664_v34 = vmax.f32 %v7662_v47, %v7663_v35  ;;  %v2530_v58 = vcombine.high %v1442_v40, %v1442_v40 }
 0x5b9   : > { %v9819_v45 = vunpack.c.l.b16 %v10857_v20  ;;  %v10066_v32 = vsel %vm9968_vm5, %v9817_v18, %v9816_v13  ;;  %v8617_v29 = vsel %vm7919_vm4, %v7645_v53, -inf  ;;  %v2537_v44 = vrot.slane %v1442_v40, %v11479_v14  ;;  %v14233_v40 = vpop.f32.mrb[59].mxu0 }
 0x5ba   : > { %v10067_v37 = vsel %vm9970_vm6, %v9818_v15, %v10066_v32  ;;  %v7652_v51 = vmax.f32 %v7650_v27, %v7651_v5  ;;  %v7659_v56 = vmax.f32 %v7657_v22, %v7658_v26  ;;  %v7665_v4 = vrot.slane %v7664_v34, 1 }
 0x5bb   : > { %v8618_v39 = vmax.f32 %v14050_v24, %v8617_v29  ;;  %v2544_v55 = vrot.slane %v2530_v58, %v11479_v14  ;;  %v2545_v33 = vcombine.high %v2537_v44, %v2537_v44  ;;  %v5791_v0 = vsel %vm4334_vm3, %v2537_v44, -inf }
 0x5bc   : > { %v7666_v11 = vmax.f32 %v7664_v34, %v7665_v4  ;;  %v8620_v41 = vsel %vm7919_vm4, %v7652_v51, -inf  ;;  %v8623_v13 = vsel %vm7919_vm4, %v7659_v56, -inf  ;;  %v5792_v47 = vrot.slane %v5791_v0, 4 }
 0x5bd   : > { %v8621_v49 = vmax.f32 %v14055_v19, %v8620_v41  ;;  %v8624_v9 = vmax.f32 %v14059_v38, %v8623_v13  ;;  %v10982_v30 = vpack.c.bf16 %v8618_v39, %v8618_v39  ;;  %v2546_v52 = vcombine.high %v2544_v55, %v2544_v55 }
 0x5be   : > { %v8626_v27 = vsel %vm7919_vm4, %v7666_v11, -inf  ;;  %v5793_v24 = vmax.f32 %v5791_v0, %v5792_v47  ;;  %v5798_v22 = vsel %vm4334_vm3, %v2545_v33, -inf  ;;  %v5805_v35 = vsel %vm4334_vm3, %v2544_v55, -inf  ;;  %v14244_v0 = vpop.f32.mrb[59].mxu1 }
 0x5bf   : > { %v8627_v20 = vmax.f32 %v14065_v36, %v8626_v27  ;;  %v10983_v18 = vpack.c.bf16 %v8621_v49, %v8621_v49  ;;  %v10984_v15 = vpack.c.bf16 %v8624_v9, %v8624_v9  ;;  %v9944_v53 = vunpack.c.l.b16 %v10982_v30 }
 0x5c0   : > { %v5794_v5 = vrot.slane %v5793_v24, 2  ;;  %v5799_v19 = vrot.slane %v5798_v22, 4  ;;  %v5806_v26 = vrot.slane %v5805_v35, 4  ;;  %v5812_v38 = vsel %vm4334_vm3, %v2546_v52, -inf }
 0x5c1   : > { %v10985_v34 = vpack.c.bf16 %v8627_v20, %v8627_v20  ;;  %v9945_v58 = vunpack.c.l.b16 %v10983_v18  ;;  %v9946_v32 = vunpack.c.l.b16 %v10984_v15  ;;  %v5813_v29 = vrot.slane %v5812_v38, 4 }
 0x5c2   : > { %v5795_v44 = vmax.f32 %v5793_v24, %v5794_v5  ;;  %v5800_v51 = vmax.f32 %v5798_v22, %v5799_v19  ;;  %v5807_v56 = vmax.f32 %v5805_v35, %v5806_v26  ;;  %v1344_v4 = vadd.f32 %v14202_v6, %v13947_v54 }
 0x5c3   : > { %v14239_v39 = vunpack.c.l.b16 %v10985_v34  ;;  %v10178_v36 = vsel %vm9968_vm5, %v9945_v58, %v9944_v53  ;;  %v5814_v55 = vmax.f32 %v5812_v38, %v5813_v29  ;;  %v1099_v33 = vadd.f32 %v14202_v6, %v13979_v3 }
 0x5c4   : > { %v14247_v11 = vsel %vm9970_vm6, %v9946_v32, %v10178_v36  ;;  %v5796_v41 = vrot.slane %v5795_v44, 1  ;;  %v5801_v13 = vrot.slane %v5800_v51, 2  ;;  %v5808_v47 = vrot.slane %v5807_v56, 2 }
 0x5c5   : > { %v5815_v49 = vrot.slane %v5814_v55, 2  ;;  %v1506_v9 = vmax.f32 %v1344_v4, 0.0  ;;  %v1445_v30 = vmax.f32 %v1099_v33, 0.0  ;;  %v14250_v54 = vsel %vm9972_vm7, %v9819_v45, %v10067_v37 }
 0x5c6   : > { %v5797_v52 = vmax.f32 %v5795_v44, %v5796_v41  ;;  %v5802_v27 = vmax.f32 %v5800_v51, %v5801_v13  ;;  %v5809_v24 = vmax.f32 %v5807_v56, %v5808_v47  ;;  %v14254_v3 = vadd.f32 %v14202_v6, %v13997_v7 }
 0x5c7   : > { %v5816_v22 = vmax.f32 %v5814_v55, %v5815_v49  ;;  %v3618_v35 = vcombine.high %v1506_v9, %v1506_v9  ;;  %v3625_v20 = vrot.slane %v1506_v9, %v11479_v14  ;;  %v2581_v18 = vcombine.high %v1445_v30, %v1445_v30 }
 0x5c8   : > { %v5803_v15 = vrot.slane %v5802_v27, 1  ;;  %v5810_v53 = vrot.slane %v5809_v24, 1  ;;  %v8209_v5 = vsel %vm7919_vm4, %v5797_v52, -inf  ;;  %v2588_v19 = vrot.slane %v1445_v30, %v11479_v14 }
 0x5c9   : > { %v5817_v45 = vrot.slane %v5816_v22, 1  ;;  %v8210_v37 = vmax.f32 %v14074_v63, %v8209_v5  ;;  %v3632_v26 = vrot.slane %v3618_v35, %v11479_v14  ;;  %v3633_v38 = vcombine.high %v3625_v20, %v3625_v20 }
 0x5ca   : > { %v5804_v34 = vmax.f32 %v5802_v27, %v5803_v15  ;;  %v5811_v7 = vmax.f32 %v5809_v24, %v5810_v53  ;;  %v7583_v58 = vsel %vm4334_vm3, %v3625_v20, -inf  ;;  %v2595_v32 = vrot.slane %v2581_v18, %v11479_v14 }
 0x5cb   : > { %v5818_v29 = vmax.f32 %v5816_v22, %v5817_v45  ;;  %v10846_v44 = vpack.c.bf16 %v8210_v37, %v8210_v37  ;;  %v3634_v51 = vcombine.high %v3632_v26, %v3632_v26  ;;  %v7584_v56 = vrot.slane %v7583_v58, 4 }
 0x5cc   : > { %v8212_v4 = vsel %vm7919_vm4, %v5804_v34, -inf  ;;  %v8215_v36 = vsel %vm7919_vm4, %v5811_v7, -inf  ;;  %v7590_v55 = vsel %vm4334_vm3, %v3633_v38, -inf  ;;  %v7597_v63 = vsel %vm4334_vm3, %v3632_v26, -inf }
 0x5cd   : > { %v8213_v33 = vmax.f32 %v14078_v16, %v8212_v4  ;;  %v8216_v41 = vmax.f32 %v14081_v2, %v8215_v36  ;;  %v8218_v13 = vsel %vm7919_vm4, %v5818_v29, -inf  ;;  %v9808_v47 = vunpack.c.l.b16 %v10846_v44 }
 0x5ce   : > { %v8219_v49 = vmax.f32 %v14086_v8, %v8218_v13  ;;  %v7585_v9 = vmax.f32 %v7583_v58, %v7584_v56  ;;  %v7591_v30 = vrot.slane %v7590_v55, 4  ;;  %v7598_v52 = vrot.slane %v7597_v63, 4 }
 0x5cf   : > { %v10847_v27 = vpack.c.bf16 %v8213_v33, %v8213_v33  ;;  %v10848_v24 = vpack.c.bf16 %v8216_v41, %v8216_v41  ;;  %v7604_v22 = vsel %vm4334_vm3, %v3634_v51, -inf  ;;  %v2596_v35 = vcombine.high %v2588_v19, %v2588_v19  ;;  %v14281_v41 = vpop.f32.mrb[60].mxu0 }
 0x5d0   : > { %v10849_v20 = vpack.c.bf16 %v8219_v49, %v8219_v49  ;;  %v7586_v18 = vrot.slane %v7585_v9, 2  ;;  %v7592_v15 = vmax.f32 %v7590_v55, %v7591_v30  ;;  %v7599_v53 = vmax.f32 %v7597_v63, %v7598_v52 }
 0x5d1   : > { %v9809_v16 = vunpack.c.l.b16 %v10847_v27  ;;  %v9810_v5 = vunpack.c.l.b16 %v10848_v24  ;;  %v7605_v2 = vrot.slane %v7604_v22, 4  ;;  %v2597_v45 = vcombine.high %v2595_v32, %v2595_v32 }
 0x5d2   : > { %v14272_v37 = vunpack.c.l.b16 %v10849_v20  ;;  %v7587_v26 = vmax.f32 %v7585_v9, %v7586_v18  ;;  %v7593_v8 = vrot.slane %v7592_v15, 2  ;;  %v7600_v38 = vrot.slane %v7599_v53, 2 }
 0x5d3   : > { %v10059_v34 = vsel %vm9968_vm5, %v9809_v16, %v9808_v47  ;;  %v7606_v7 = vmax.f32 %v7604_v22, %v7605_v2  ;;  %v5875_v58 = vsel %vm4334_vm3, %v2588_v19, -inf  ;;  %v5882_v29 = vsel %vm4334_vm3, %v2596_v35, -inf  ;;  %v14283_v19 = vpop.f32.mrb[60].mxu1 }
 0x5d4   : > { %v14278_v44 = vsel %vm9970_vm6, %v9810_v5, %v10059_v34  ;;  %v7588_v51 = vrot.slane %v7587_v26, 1  ;;  %v7594_v56 = vmax.f32 %v7592_v15, %v7593_v8  ;;  %v7601_v4 = vmax.f32 %v7599_v53, %v7600_v38 }
 0x5d5   : > { %v7607_v36 = vrot.slane %v7606_v7, 2  ;;  %v5876_v55 = vrot.slane %v5875_v58, 4  ;;  %v5883_v63 = vrot.slane %v5882_v29, 4  ;;  %v5889_v33 = vsel %vm4334_vm3, %v2595_v32, -inf }
 0x5d6   : > { %v7589_v13 = vmax.f32 %v7587_v26, %v7588_v51  ;;  %v7595_v47 = vrot.slane %v7594_v56, 1  ;;  %v7602_v49 = vrot.slane %v7601_v4, 1  ;;  %v5890_v9 = vrot.slane %v5889_v33, 4 }
 0x5d7   : > { %v7608_v30 = vmax.f32 %v7606_v7, %v7607_v36  ;;  %v5877_v52 = vmax.f32 %v5875_v58, %v5876_v55  ;;  %v5884_v27 = vmax.f32 %v5882_v29, %v5883_v63  ;;  %v5896_v24 = vsel %vm4334_vm3, %v2597_v45, -inf }
 0x5d8   : > { %v7596_v22 = vmax.f32 %v7594_v56, %v7595_v47  ;;  %v7603_v35 = vmax.f32 %v7601_v4, %v7602_v49  ;;  %v8593_v20 = vsel %vm7919_vm4, %v7589_v13, -inf  ;;  %v5891_v18 = vmax.f32 %v5889_v33, %v5890_v9 }
 0x5d9   : > { %v7609_v15 = vrot.slane %v7608_v30, 1  ;;  %v8594_v32 = vmax.f32 %v14094_v42, %v8593_v20  ;;  %v5878_v53 = vrot.slane %v5877_v52, 2  ;;  %v5885_v16 = vrot.slane %v5884_v27, 2 }
 0x5da   : > { %v8596_v5 = vsel %vm7919_vm4, %v7596_v22, -inf  ;;  %v8599_v2 = vsel %vm7919_vm4, %v7603_v35, -inf  ;;  %v5892_v26 = vrot.slane %v5891_v18, 2  ;;  %v5897_v8 = vrot.slane %v5896_v24, 4 }
 0x5db   : > { %v7610_v38 = vmax.f32 %v7608_v30, %v7609_v15  ;;  %v8597_v34 = vmax.f32 %v14098_v46, %v8596_v5  ;;  %v8600_v45 = vmax.f32 %v14103_v48, %v8599_v2  ;;  %v10974_v7 = vpack.c.bf16 %v8594_v32, %v8594_v32 }
 0x5dc   : > { %v5879_v58 = vmax.f32 %v5877_v52, %v5878_v53  ;;  %v5886_v29 = vmax.f32 %v5884_v27, %v5885_v16  ;;  %v5893_v51 = vmax.f32 %v5891_v18, %v5892_v26  ;;  %v5898_v56 = vmax.f32 %v5896_v24, %v5897_v8 }
 0x5dd   : > { %v8602_v42 = vsel %vm7919_vm4, %v7610_v38, -inf  ;;  %v10975_v4 = vpack.c.bf16 %v8597_v34, %v8597_v34  ;;  %v10976_v36 = vpack.c.bf16 %v8600_v45, %v8600_v45  ;;  %v9936_v55 = vunpack.c.l.b16 %v10974_v7 }
 0x5de   : > { %v8603_v63 = vmax.f32 %v14108_v50, %v8602_v42  ;;  %v5880_v33 = vrot.slane %v5879_v58, 1  ;;  %v5887_v13 = vrot.slane %v5886_v29, 1  ;;  %v5894_v47 = vrot.slane %v5893_v51, 1 }
 0x5df   : > { %v9937_v49 = vunpack.c.l.b16 %v10975_v4  ;;  %v9938_v9 = vunpack.c.l.b16 %v10976_v36  ;;  %v5899_v46 = vrot.slane %v5898_v56, 2  ;;  %v1509_v48 = vmax.f32 %v14254_v3, 0.0 }
 0x5e0   : > { %v10977_v30 = vpack.c.bf16 %v8603_v63, %v8603_v63  ;;  %v5881_v52 = vmax.f32 %v5879_v58, %v5880_v33  ;;  %v5888_v27 = vmax.f32 %v5886_v29, %v5887_v13  ;;  %v5895_v22 = vmax.f32 %v5893_v51, %v5894_v47  ;;  %v14306_v51 = vpop.f32.mrb[61].mxu0 }
 0x5e1   : > { %v10171_v24 = vsel %vm9968_vm5, %v9937_v49, %v9936_v55  ;;  %v5900_v35 = vmax.f32 %v5898_v56, %v5899_v46  ;;  %v3669_v20 = vcombine.high %v1509_v48, %v1509_v48  ;;  %v3676_v18 = vrot.slane %v1509_v48, %v11479_v14 }
 0x5e2   : > { %v9939_v15 = vunpack.c.l.b16 %v10977_v30  ;;  %v10172_v50 = vsel %vm9970_vm6, %v9938_v9, %v10171_v24  ;;  %v8245_v32 = vsel %vm7919_vm4, %v5881_v52, -inf  ;;  %v8248_v53 = vsel %vm7919_vm4, %v5888_v27, -inf }
 0x5e3   : > { %v5901_v16 = vrot.slane %v5900_v35, 1  ;;  %v8246_v3 = vmax.f32 %v14116_v60, %v8245_v32  ;;  %v8249_v5 = vmax.f32 %v14122_v21, %v8248_v53  ;;  %v8251_v2 = vsel %vm7919_vm4, %v5895_v22, -inf }
 0x5e4   : > { %v8252_v26 = vmax.f32 %v14125_v57, %v8251_v2  ;;  %v3683_v8 = vrot.slane %v3669_v20, %v11479_v14  ;;  %v3684_v38 = vcombine.high %v3676_v18, %v3676_v18  ;;  %v7667_v34 = vsel %vm4334_vm3, %v3676_v18, -inf }
 0x5e5   : > { %v5902_v45 = vmax.f32 %v5900_v35, %v5901_v16  ;;  %v10858_v7 = vpack.c.bf16 %v8246_v3, %v8246_v3  ;;  %v10859_v58 = vpack.c.bf16 %v8249_v5, %v8249_v5  ;;  %v7668_v29 = vrot.slane %v7667_v34, 4 }
 0x5e6   : > { %v10860_v56 = vpack.c.bf16 %v8252_v26, %v8252_v26  ;;  %v3685_v42 = vcombine.high %v3683_v8, %v3683_v8  ;;  %v7674_v60 = vsel %vm4334_vm3, %v3684_v38, -inf  ;;  %v7681_v21 = vsel %vm4334_vm3, %v3683_v8, -inf }
 0x5e7   : > { %v8254_v4 = vsel %vm7919_vm4, %v5902_v45, -inf  ;;  %v9820_v57 = vunpack.c.l.b16 %v10858_v7  ;;  %v9821_v36 = vunpack.c.l.b16 %v10859_v58  ;;  %v7669_v55 = vmax.f32 %v7667_v34, %v7668_v29  ;;  %v14334_v29 = vpop.f32.mrb[61].mxu1 }
 0x5e8   : > { %v8255_v63 = vmax.f32 %v14128_v28, %v8254_v4  ;;  %v9822_v33 = vunpack.c.l.b16 %v10860_v56  ;;  %v7675_v13 = vrot.slane %v7674_v60, 4  ;;  %v7682_v47 = vrot.slane %v7681_v21, 4 }
 0x5e9   : > { %v10069_v49 = vsel %vm9974_vm8, %v9820_v57, %v14250_v54  ;;  %v7670_v9 = vrot.slane %v7669_v55, 2  ;;  %v7688_v46 = vsel %vm4334_vm3, %v3685_v42, -inf  ;;  %v10180_v48 = vsel %vm9972_vm7, %v14239_v39, %v14247_v11 }
 0x5ea   : > { %v10861_v30 = vpack.c.bf16 %v8255_v63, %v8255_v63  ;;  %v10070_v52 = vsel %vm9976_vm9, %v9821_v36, %v10069_v49  ;;  %v7676_v27 = vmax.f32 %v7674_v60, %v7675_v13  ;;  %v7683_v22 = vmax.f32 %v7681_v21, %v7682_v47 }
 0x5eb   : > { %v10071_v28 = vsel %vm9978_vm10, %v9822_v33, %v10070_v52  ;;  %v7671_v24 = vmax.f32 %v7669_v55, %v7670_v9  ;;  %v7689_v35 = vrot.slane %v7688_v46, 4  ;;  %v1091_v20 = vadd.f32 %v14202_v6, %v14028_v25 }
 0x5ec   : > { %v9823_v54 = vunpack.c.l.b16 %v10861_v30  ;;  %v7677_v18 = vrot.slane %v7676_v27, 2  ;;  %v7684_v32 = vrot.slane %v7683_v22, 2  ;;  %v14325_v53 = vsel %vm9972_vm7, %v14272_v37, %v14278_v44 }
 0x5ed   : > { %v7672_v39 = vrot.slane %v7671_v24, 1  ;;  %v7690_v11 = vmax.f32 %v7688_v46, %v7689_v35  ;;  %v1443_v16 = vmax.f32 %v1091_v20, 0.0  ;;  %v1347_v3 = vadd.f32 %v14202_v6, %v14061_v1 }
 0x5ee   : > { %v10072_v5 = vsel %vm9980_vm11, %v9823_v54, %v10071_v28  ;;  %v7678_v2 = vmax.f32 %v7676_v27, %v7677_v18  ;;  %v7685_v26 = vmax.f32 %v7683_v22, %v7684_v32  ;;  %v14331_v25 = vsel %vm9972_vm7, %v9939_v15, %v10172_v50 }
 0x5ef   : > { %v10212_v8 = vpack.c.b16 %v10072_v5, %v10072_v5  ;;  %v7673_v38 = vmax.f32 %v7671_v24, %v7672_v39  ;;  %v7691_v34 = vrot.slane %v7690_v11, 2  ;;  %v2547_v45 = vcombine.high %v1443_v16, %v1443_v16 }
 0x5f0   : > { %v7679_v37 = vrot.slane %v7678_v2, 1  ;;  %v7686_v44 = vrot.slane %v7685_v26, 1  ;;  %v2554_v7 = vrot.slane %v1443_v16, %v11479_v14  ;;  %v1507_v58 = vmax.f32 %v1347_v3, 0.0 }
 0x5f1   : > { %10277 = vst.msk [vmem:[%s11900_s4 + $0x34] sm:$0xf] %vm10263_vm12, %v10212_v8  ;;  %v7692_v1 = vmax.f32 %v7690_v11, %v7691_v34  ;;  %v8629_v56 = vsel %vm7919_vm4, %v7673_v38, -inf  ;;  %v2561_v42 = vrot.slane %v2547_v45, %v11479_v14  ;;  %v14342_v15 = vadd.f32 %v14202_v6, %v14100_v61 }
 0x5f2   : > { %v7680_v50 = vmax.f32 %v7678_v2, %v7679_v37  ;;  %v7687_v60 = vmax.f32 %v7685_v26, %v7686_v44  ;;  %v8630_v21 = vmax.f32 %v14138_v59, %v8629_v56  ;;  %v2562_v4 = vcombine.high %v2554_v7, %v2554_v7 }
 0x5f3   : > { %v7693_v57 = vrot.slane %v7692_v1, 1  ;;  %v2563_v36 = vcombine.high %v2561_v42, %v2561_v42  ;;  %v5819_v55 = vsel %vm4334_vm3, %v2554_v7, -inf  ;;  %v5833_v63 = vsel %vm4334_vm3, %v2561_v42, -inf }
 0x5f4   : > { %v8632_v33 = vsel %vm7919_vm4, %v7680_v50, -inf  ;;  %v8635_v13 = vsel %vm7919_vm4, %v7687_v60, -inf  ;;  %v10986_v47 = vpack.c.bf16 %v8630_v21, %v8630_v21  ;;  %v5820_v49 = vrot.slane %v5819_v55, 4 }
 0x5f5   : > { %v7694_v9 = vmax.f32 %v7692_v1, %v7693_v57  ;;  %v8633_v61 = vmax.f32 %v14142_v31, %v8632_v33  ;;  %v8636_v46 = vmax.f32 %v14145_v62, %v8635_v13  ;;  %v5826_v59 = vsel %vm4334_vm3, %v2562_v4, -inf }
 0x5f6   : > { %v9948_v30 = vunpack.c.l.b16 %v10986_v47  ;;  %v5821_v52 = vmax.f32 %v5819_v55, %v5820_v49  ;;  %v5827_v27 = vrot.slane %v5826_v59, 4  ;;  %v5834_v22 = vrot.slane %v5833_v63, 4 }
 0x5f7   : > { %v8638_v28 = vsel %vm7919_vm4, %v7694_v9, -inf  ;;  %v10987_v24 = vpack.c.bf16 %v8633_v61, %v8633_v61  ;;  %v10988_v35 = vpack.c.bf16 %v8636_v46, %v8636_v46  ;;  %v5840_v20 = vsel %vm4334_vm3, %v2563_v36, -inf }
 0x5f8   : > { %v8639_v54 = vmax.f32 %v14151_v23, %v8638_v28  ;;  %v10181_v18 = vsel %vm9974_vm8, %v9948_v30, %v10180_v48  ;;  %v5822_v32 = vrot.slane %v5821_v52, 2  ;;  %v5828_v31 = vmax.f32 %v5826_v59, %v5827_v27  ;;  %v14367_v59 = vpop.f32.mrb[62].mxu0 }
 0x5f9   : > { %v9949_v39 = vunpack.c.l.b16 %v10987_v24  ;;  %v9950_v62 = vunpack.c.l.b16 %v10988_v35  ;;  %v5835_v11 = vmax.f32 %v5833_v63, %v5834_v22  ;;  %v5841_v16 = vrot.slane %v5840_v20, 4 }
 0x5fa   : > { %v10989_v3 = vpack.c.bf16 %v8639_v54, %v8639_v54  ;;  %v5823_v5 = vmax.f32 %v5821_v52, %v5822_v32  ;;  %v5829_v2 = vrot.slane %v5828_v31, 2  ;;  %v3635_v26 = vcombine.high %v1507_v58, %v1507_v58 }
 0x5fb   : > { %v10182_v8 = vsel %vm9976_vm9, %v9949_v39, %v10181_v18  ;;  %v5836_v38 = vrot.slane %v5835_v11, 2  ;;  %v5842_v34 = vmax.f32 %v5840_v20, %v5841_v16  ;;  %v3642_v45 = vrot.slane %v1507_v58, %v11479_v14  ;;  %v14910_v16 = vld [vmem:[#allocation11_spill] sm:$0xff] }
 0x5fc   : > { %v9951_v37 = vunpack.c.l.b16 %v10989_v3  ;;  %v10183_v23 = vsel %vm9978_vm10, %v9950_v62, %v10182_v8  ;;  %v5824_v48 = vrot.slane %v5823_v5, 1  ;;  %v5830_v44 = vmax.f32 %v5828_v31, %v5829_v2 }
 0x5fd   : > { %v5837_v7 = vmax.f32 %v5835_v11, %v5836_v38  ;;  %v5843_v1 = vrot.slane %v5842_v34, 2  ;;  %v3649_v56 = vrot.slane %v3635_v26, %v11479_v14  ;;  %v3650_v42 = vcombine.high %v3642_v45, %v3642_v45 }
 0x5fe   : > { %v10184_v50 = vsel %vm9980_vm11, %v9951_v37, %v10183_v23  ;;  %v5825_v60 = vmax.f32 %v5823_v5, %v5824_v48  ;;  %v5831_v21 = vrot.slane %v5830_v44, 1  ;;  %v7611_v4 = vsel %vm4334_vm3, %v3642_v45, -inf }
 0x5ff   : > { %v10228_v57 = vpack.c.b16 %v10184_v50, %v10184_v50  ;;  %v5838_v36 = vrot.slane %v5837_v7, 1  ;;  %v5844_v58 = vmax.f32 %v5842_v34, %v5843_v1  ;;  %v3651_v55 = vcombine.high %v3649_v56, %v3649_v56 }
 0x600   : > { %v5832_v63 = vmax.f32 %v5830_v44, %v5831_v21  ;;  %v8221_v33 = vsel %vm7919_vm4, %v5825_v60, -inf  ;;  %v7612_v13 = vrot.slane %v7611_v4, 4  ;;  %v7618_v47 = vsel %vm4334_vm3, %v3650_v42, -inf  ;;  %v14382_v21 = vpop.f32.mrb[62].mxu1 }
 0x601   : > { %10293 = vst.msk [vmem:[%s11900_s4 + $0x74] sm:$0xf] %vm10263_vm12, %v10228_v57  ;;  %v5839_v49 = vmax.f32 %v5837_v7, %v5838_v36  ;;  %v5845_v9 = vrot.slane %v5844_v58, 1  ;;  %v8222_v61 = vmax.f32 %v14161_v43, %v8221_v33  ;;  %v7619_v46 = vrot.slane %v7618_v47, 4  ;;  %v14911_v33 = vld [vmem:[#allocation3_spill] sm:$0xff] }
 0x602   : > { %v8224_v30 = vsel %vm7919_vm4, %v5832_v63, -inf  ;;  %v7613_v52 = vmax.f32 %v7611_v4, %v7612_v13  ;;  %v7625_v27 = vsel %vm4334_vm3, %v3649_v56, -inf  ;;  %v7632_v22 = vsel %vm4334_vm3, %v3651_v55, -inf }
 0x603   : > { %v5846_v28 = vmax.f32 %v5844_v58, %v5845_v9  ;;  %v8225_v24 = vmax.f32 %v14164_v17, %v8224_v30  ;;  %v8227_v35 = vsel %vm7919_vm4, %v5839_v49, -inf  ;;  %v10850_v20 = vpack.c.bf16 %v8222_v61, %v8222_v61  ;;  %v14912_v9 = vld [vmem:[#allocation5_spill] sm:$0xff] }
 0x604   : > { %v8228_v54 = vmax.f32 %v14167_v10, %v8227_v35  ;;  %v7614_v18 = vrot.slane %v7613_v52, 2  ;;  %v7620_v43 = vmax.f32 %v7618_v47, %v7619_v46  ;;  %v7626_v32 = vrot.slane %v7625_v27, 4 }
 0x605   : > { %v8230_v31 = vsel %vm7919_vm4, %v5846_v28, -inf  ;;  %v10851_v39 = vpack.c.bf16 %v8225_v24, %v8225_v24  ;;  %v9812_v62 = vunpack.c.l.b16 %v10850_v20  ;;  %v7633_v11 = vrot.slane %v7632_v22, 4  ;;  %v14913_v24 = vld [vmem:[#allocation6_spill] sm:$0xff] }
 0x606   : > { %v8231_v3 = vmax.f32 %v14910_v16, %v8230_v31  ;;  %v10852_v5 = vpack.c.bf16 %v8228_v54, %v8228_v54  ;;  %v7615_v2 = vmax.f32 %v7613_v52, %v7614_v18  ;;  %v7621_v26 = vrot.slane %v7620_v43, 2  ;;  %v14914_v16 = vld [vmem:[#allocation10_spill] sm:$0xff] }
 0x607   : > { %v9813_v8 = vunpack.c.l.b16 %v10851_v39  ;;  %v10062_v17 = vsel %vm9974_vm8, %v9812_v62, %v14325_v53  ;;  %v7627_v38 = vmax.f32 %v7625_v27, %v7626_v32  ;;  %v7634_v34 = vmax.f32 %v7632_v22, %v7633_v11 }
 0x608   : > { %v10853_v10 = vpack.c.bf16 %v8231_v3, %v8231_v3  ;;  %v9814_v45 = vunpack.c.l.b16 %v10852_v5  ;;  %v7616_v37 = vrot.slane %v7615_v2, 1  ;;  %v7622_v23 = vmax.f32 %v7620_v43, %v7621_v26  ;;  %v14915_v5 = vld [vmem:[#allocation4_spill] sm:$0xff] }
 0x609   : > { %v10063_v48 = vsel %vm9976_vm9, %v9813_v8, %v10062_v17  ;;  %v7628_v44 = vrot.slane %v7627_v38, 2  ;;  %v7635_v7 = vrot.slane %v7634_v34, 2  ;;  %v1448_v1 = vmax.f32 %v14342_v15, 0.0 }
 0x60a   : > { %v9815_v56 = vunpack.c.l.b16 %v10853_v10  ;;  %v10064_v42 = vsel %vm9978_vm10, %v9814_v45, %v10063_v48  ;;  %v7617_v50 = vmax.f32 %v7615_v2, %v7616_v37  ;;  %v7623_v60 = vrot.slane %v7622_v23, 1 }
 0x60b   : > { %v7629_v53 = vmax.f32 %v7627_v38, %v7628_v44  ;;  %v7636_v4 = vmax.f32 %v7634_v34, %v7635_v7  ;;  %v2632_v57 = vcombine.high %v1448_v1, %v1448_v1  ;;  %v2639_v36 = vrot.slane %v1448_v1, %v11479_v14 }
 0x60c   : > { %v10065_v58 = vsel %vm9980_vm11, %v9815_v56, %v10064_v42  ;;  %v7624_v55 = vmax.f32 %v7622_v23, %v7623_v60  ;;  %v8605_v63 = vsel %vm7919_vm4, %v7617_v50, -inf  ;;  %v1368_v15 = vadd.f32 %v14202_v6, %v14911_v33 }
 0x60d   : > { %v10211_v13 = vpack.c.b16 %v10065_v58, %v10065_v58  ;;  %v7630_v47 = vrot.slane %v7629_v53, 1  ;;  %v7637_v49 = vrot.slane %v7636_v4, 1  ;;  %v8606_v61 = vmax.f32 %v14912_v9, %v8605_v63 }
 0x60e   : > { %v8608_v46 = vsel %vm7919_vm4, %v7624_v55, -inf  ;;  %v2646_v30 = vrot.slane %v2632_v57, %v11479_v14  ;;  %v2647_v52 = vcombine.high %v2639_v36, %v2639_v36  ;;  %v5959_v27 = vsel %vm4334_vm3, %v2639_v36, -inf }
 0x60f   : > { %10276 = vst.msk [vmem:[%s11900_s4 + $0x30] sm:$0xf] %vm10263_vm12, %v10211_v13  ;;  %v7631_v22 = vmax.f32 %v7629_v53, %v7630_v47  ;;  %v7638_v28 = vmax.f32 %v7636_v4, %v7637_v49  ;;  %v8609_v35 = vmax.f32 %v14913_v24, %v8608_v46  ;;  %v10978_v20 = vpack.c.bf16 %v8606_v61, %v8606_v61 }
 0x610   : > { %v2648_v54 = vcombine.high %v2646_v30, %v2646_v30  ;;  %v5960_v18 = vrot.slane %v5959_v27, 4  ;;  %v5966_v43 = vsel %vm4334_vm3, %v2647_v52, -inf  ;;  %v5973_v32 = vsel %vm4334_vm3, %v2646_v30, -inf  ;;  %v14916_v52 = vld [vmem:[#allocation8_spill] sm:$0xff] }
 0x611   : > { %v8611_v31 = vsel %vm7919_vm4, %v7631_v22, -inf  ;;  %v8614_v39 = vsel %vm7919_vm4, %v7638_v28, -inf  ;;  %v10979_v62 = vpack.c.bf16 %v8609_v35, %v8609_v35  ;;  %v9940_v11 = vunpack.c.l.b16 %v10978_v20 }
 0x612   : > { %v8612_v3 = vmax.f32 %v14914_v16, %v8611_v31  ;;  %v8615_v2 = vmax.f32 %v14915_v5, %v8614_v39  ;;  %v5961_v26 = vmax.f32 %v5959_v27, %v5960_v18  ;;  %v5967_v8 = vrot.slane %v5966_v43, 4  ;;  %v14418_v31 = vpop.f32.mrb[63].mxu0  ;;  %v14917_v16 = vld [vmem:[#allocation9_spill] sm:$0xff] }
 0x613   : > { %v9941_v17 = vunpack.c.l.b16 %v10979_v62  ;;  %v10174_v38 = vsel %vm9974_vm8, %v9940_v11, %v14331_v25  ;;  %v5974_v34 = vrot.slane %v5973_v32, 4  ;;  %v5980_v10 = vsel %vm4334_vm3, %v2648_v54, -inf }
 0x614   : > { %v10980_v45 = vpack.c.bf16 %v8612_v3, %v8612_v3  ;;  %v10981_v37 = vpack.c.bf16 %v8615_v2, %v8615_v2  ;;  %v5962_v23 = vrot.slane %v5961_v26, 2  ;;  %v5968_v48 = vmax.f32 %v5966_v43, %v5967_v8 }
 0x615   : > { %v10175_v44 = vsel %vm9976_vm9, %v9941_v17, %v10174_v38  ;;  %v5975_v7 = vmax.f32 %v5973_v32, %v5974_v34  ;;  %v5981_v1 = vrot.slane %v5980_v10, 4  ;;  %v1512_v56 = vmax.f32 %v1368_v15, 0.0 }
 0x616   : > { %v9942_v42 = vunpack.c.l.b16 %v10980_v45  ;;  %v9943_v50 = vunpack.c.l.b16 %v10981_v37  ;;  %v5969_v60 = vrot.slane %v5968_v48, 2  ;;  %v5963_v36 = vmax.f32 %v5961_v26, %v5962_v23 }
 0x617   : > { %v5982_v53 = vmax.f32 %v5980_v10, %v5981_v1  ;;  %v3720_v4 = vcombine.high %v1512_v56, %v1512_v56  ;;  %v3727_v25 = vrot.slane %v1512_v56, %v11479_v14  ;;  %v5976_v55 = vrot.slane %v5975_v7, 2 }
 0x618   : > { %v10176_v57 = vsel %vm9978_vm10, %v9942_v42, %v10175_v44  ;;  %v5970_v15 = vmax.f32 %v5968_v48, %v5969_v60  ;;  %v5964_v61 = vrot.slane %v5963_v36, 1  ;;  %v1104_v27 = vadd.f32 %v14202_v6, %v14916_v52 }
 0x619   : > { %v10177_v58 = vsel %vm9980_vm11, %v9943_v50, %v10176_v57  ;;  %v5983_v63 = vrot.slane %v5982_v53, 2  ;;  %v3734_v33 = vrot.slane %v3720_v4, %v11479_v14  ;;  %v3735_v47 = vcombine.high %v3727_v25, %v3727_v25  ;;  %v14428_v50 = vpop.f32.mrb[63].mxu1 }
 0x61a   : > { %v10227_v13 = vpack.c.b16 %v10177_v58, %v10177_v58  ;;  %v7751_v9 = vsel %vm4334_vm3, %v3727_v25, -inf  ;;  %v5977_v22 = vmax.f32 %v5975_v7, %v5976_v55  ;;  %v5971_v43 = vrot.slane %v5970_v15, 1  ;;  %14918 = vst [vmem:[#allocation7_spill] sm:$0xff] %v14428_v50  ;;  %v14919_v55 = vld [vmem:[#allocation14_spill] sm:$0xff] }
 0x61b   : > { %v3736_v49 = vcombine.high %v3734_v33, %v3734_v33  ;;  %v7752_v46 = vrot.slane %v7751_v9, 4  ;;  %v7758_v30 = vsel %vm4334_vm3, %v3735_v47, -inf  ;;  %v5984_v28 = vmax.f32 %v5982_v53, %v5983_v63 }
 0x61c   : > { %10292 = vst.msk [vmem:[%s11900_s4 + $0x70] sm:$0xf] %vm10263_vm12, %v10227_v13  ;;  %v7759_v24 = vrot.slane %v7758_v30, 4  ;;  %v7765_v35 = vsel %vm4334_vm3, %v3734_v33, -inf  ;;  %v1446_v11 = vmax.f32 %v1104_v27, 0.0  ;;  %v1360_v3 = vadd.f32 %v14202_v6, %v14917_v16 }
 0x61d   : > { %v7753_v20 = vmax.f32 %v7751_v9, %v7752_v46  ;;  %v7766_v54 = vrot.slane %v7765_v35, 4  ;;  %v7772_v18 = vsel %vm4334_vm3, %v3736_v49, -inf  ;;  %v5965_v5 = vmax.f32 %v5963_v36, %v5964_v61 }
 0x61e   : > { %v7760_v32 = vmax.f32 %v7758_v30, %v7759_v24  ;;  %v7773_v62 = vrot.slane %v7772_v18, 4  ;;  %v5978_v2 = vrot.slane %v5977_v22, 1  ;;  %v5985_v26 = vrot.slane %v5984_v28, 1 }
 0x61f   : > { %v7767_v39 = vmax.f32 %v7765_v35, %v7766_v54  ;;  %v7754_v8 = vrot.slane %v7753_v20, 2  ;;  %v2598_v38 = vcombine.high %v1446_v11, %v1446_v11  ;;  %v2605_v34 = vrot.slane %v1446_v11, %v11479_v14 }
 0x620   : > { %v7761_v17 = vrot.slane %v7760_v32, 2  ;;  %v5972_v10 = vmax.f32 %v5970_v15, %v5971_v43  ;;  %v1510_v45 = vmax.f32 %v1360_v3, 0.0  ;;  %v7774_v23 = vmax.f32 %v7772_v18, %v7773_v62 }
 0x621   : > { %v7768_v37 = vrot.slane %v7767_v39, 2  ;;  %v2612_v48 = vrot.slane %v2598_v38, %v11479_v14  ;;  %v2613_v44 = vcombine.high %v2605_v34, %v2605_v34  ;;  %v5979_v7 = vmax.f32 %v5977_v22, %v5978_v2 }
 0x622   : > { %v5986_v1 = vmax.f32 %v5984_v28, %v5985_v26  ;;  %v14425_v56 = vsel %vm7919_vm4, %v5965_v5, -inf  ;;  %v5903_v42 = vsel %vm4334_vm3, %v2605_v34, -inf  ;;  %v7755_v60 = vmax.f32 %v7753_v20, %v7754_v8 }
 0x623   : > { %v7762_v53 = vmax.f32 %v7760_v32, %v7761_v17  ;;  %v2614_v4 = vcombine.high %v2612_v48, %v2612_v48  ;;  %v5904_v25 = vrot.slane %v5903_v42, 4  ;;  %v5910_v57 = vsel %vm4334_vm3, %v2613_v44, -inf }
 0x624   : > { %v5917_v36 = vsel %vm4334_vm3, %v2612_v48, -inf  ;;  %v3686_v58 = vcombine.high %v1510_v45, %v1510_v45  ;;  %v1115_v63 = vadd.f32 %v14202_v6, %v14919_v55  ;;  %v7769_v33 = vmax.f32 %v7767_v39, %v7768_v37 }
 0x625   : > { %v7775_v13 = vrot.slane %v7774_v23, 2  ;;  %v5905_v47 = vmax.f32 %v5903_v42, %v5904_v25  ;;  %v5911_v15 = vrot.slane %v5910_v57, 4  ;;  %v14435_v49 = vsel %vm7919_vm4, %v5972_v10, -inf }
 0x626   : > { %v14438_v9 = vsel %vm7919_vm4, %v5979_v7, -inf  ;;  %v5918_v61 = vrot.slane %v5917_v36, 4  ;;  %v5924_v46 = vsel %vm4334_vm3, %v2614_v4, -inf  ;;  %v7756_v30 = vrot.slane %v7755_v60, 1 }
 0x627   : > { %v7763_v52 = vrot.slane %v7762_v53, 1  ;;  %v5912_v27 = vmax.f32 %v5910_v57, %v5911_v15  ;;  %v5925_v22 = vrot.slane %v5924_v46, 4  ;;  %v14442_v28 = vsel %vm7919_vm4, %v5986_v1, -inf }
 0x628   : > { %v5919_v6 = vmax.f32 %v5917_v36, %v5918_v61  ;;  %v3693_v24 = vrot.slane %v1510_v45, %v11479_v14  ;;  %v3700_v35 = vrot.slane %v3686_v58, %v11479_v14  ;;  %v7770_v20 = vrot.slane %v7769_v33, 1 }
 0x629   : > { %v7776_v54 = vmax.f32 %v7774_v23, %v7775_v13  ;;  %v5906_v18 = vrot.slane %v5905_v47, 2  ;;  %v1449_v43 = vmax.f32 %v1115_v63, 0.0  ;;  %v5926_v32 = vmax.f32 %v5924_v46, %v5925_v22 }
 0x62a   : > { %v3701_v39 = vcombine.high %v3693_v24, %v3693_v24  ;;  %v3702_v62 = vcombine.high %v3700_v35, %v3700_v35  ;;  %v7695_v11 = vsel %vm4334_vm3, %v3693_v24, -inf  ;;  %v7757_v16 = vmax.f32 %v7755_v60, %v7756_v30 }
 0x62b   : > { %v7764_v3 = vmax.f32 %v7762_v53, %v7763_v52  ;;  %v5913_v5 = vrot.slane %v5912_v27, 2  ;;  %v7696_v2 = vrot.slane %v7695_v11, 4  ;;  %v5920_v26 = vrot.slane %v5919_v6, 2 }
 0x62c   : > { %v7702_v8 = vsel %vm4334_vm3, %v3701_v39, -inf  ;;  %v7709_v17 = vsel %vm4334_vm3, %v3700_v35, -inf  ;;  %v7716_v38 = vsel %vm4334_vm3, %v3702_v62, -inf  ;;  %v7771_v34 = vmax.f32 %v7769_v33, %v7770_v20 }
 0x62d   : > { %v7777_v10 = vrot.slane %v7776_v54, 1  ;;  %v5907_v45 = vmax.f32 %v5905_v47, %v5906_v18  ;;  %v7697_v37 = vmax.f32 %v7695_v11, %v7696_v2  ;;  %v5927_v23 = vrot.slane %v5926_v32, 2 }
 0x62e   : > { %v7703_v48 = vrot.slane %v7702_v8, 4  ;;  %v7710_v44 = vrot.slane %v7709_v17, 4  ;;  %v7717_v7 = vrot.slane %v7716_v38, 4  ;;  %v14451_v1 = vsel %vm7919_vm4, %v7757_v16, -inf }
 0x62f   : > { %v5914_v42 = vmax.f32 %v5912_v27, %v5913_v5  ;;  %v7698_v60 = vrot.slane %v7697_v37, 2  ;;  %v2649_v53 = vcombine.high %v1449_v43, %v1449_v43  ;;  %v5921_v4 = vmax.f32 %v5919_v6, %v5920_v26 }
 0x630   : > { %v7704_v25 = vmax.f32 %v7702_v8, %v7703_v48  ;;  %v7711_v57 = vmax.f32 %v7709_v17, %v7710_v44  ;;  %v7718_v36 = vmax.f32 %v7716_v38, %v7717_v7  ;;  %v7778_v58 = vmax.f32 %v7776_v54, %v7777_v10 }
 0x631   : > { %v14454_v55 = vsel %vm7919_vm4, %v7764_v3, -inf  ;;  %v5908_v63 = vrot.slane %v5907_v45, 1  ;;  %v2656_v33 = vrot.slane %v1449_v43, %v11479_v14  ;;  %v5928_v13 = vmax.f32 %v5926_v32, %v5927_v23 }
 0x632   : > { %v7699_v47 = vmax.f32 %v7697_v37, %v7698_v60  ;;  %v7705_v15 = vrot.slane %v7704_v25, 2  ;;  %v7712_v61 = vrot.slane %v7711_v57, 2  ;;  %v5915_v46 = vrot.slane %v5914_v42, 1 }
 0x633   : > { %v7719_v30 = vrot.slane %v7718_v36, 2  ;;  %v2663_v52 = vrot.slane %v2649_v53, %v11479_v14  ;;  %v2664_v27 = vcombine.high %v2656_v33, %v2656_v33  ;;  %v5922_v22 = vrot.slane %v5921_v4, 1 }
 0x634   : > { %v7706_v6 = vmax.f32 %v7704_v25, %v7705_v15  ;;  %v7713_v24 = vmax.f32 %v7711_v57, %v7712_v61  ;;  %v5987_v35 = vsel %vm4334_vm3, %v2656_v33, -inf  ;;  %v14460_v20 = vsel %vm7919_vm4, %v7771_v34, -inf }
 0x635   : > { %v2665_v54 = vcombine.high %v2663_v52, %v2663_v52  ;;  %v5988_v18 = vrot.slane %v5987_v35, 4  ;;  %v5994_v43 = vsel %vm4334_vm3, %v2664_v27, -inf  ;;  %v5909_v32 = vmax.f32 %v5907_v45, %v5908_v63  ;;  %v14468_v45 = vld [vmem:[%s14780_s2] ss:$0 sm:$0xff] }
 0x636   : > { %v5929_v39 = vrot.slane %v5928_v13, 1  ;;  %v7700_v62 = vrot.slane %v7699_v47, 1  ;;  %v5995_v11 = vrot.slane %v5994_v43, 4  ;;  %v7720_v16 = vmax.f32 %v7718_v36, %v7719_v30 }
 0x637   : > { %v5989_v3 = vmax.f32 %v5987_v35, %v5988_v18  ;;  %v6001_v5 = vsel %vm4334_vm3, %v2663_v52, -inf  ;;  %v6008_v2 = vsel %vm4334_vm3, %v2665_v54, -inf  ;;  %v5916_v26 = vmax.f32 %v5914_v42, %v5915_v46 }
 0x638   : > { %v5923_v8 = vmax.f32 %v5921_v4, %v5922_v22  ;;  %v7707_v17 = vrot.slane %v7706_v6, 1  ;;  %v7714_v38 = vrot.slane %v7713_v24, 1  ;;  %v5996_v34 = vmax.f32 %v5994_v43, %v5995_v11 }
 0x639   : > { %v6002_v10 = vrot.slane %v6001_v5, 4  ;;  %v6009_v37 = vrot.slane %v6008_v2, 4  ;;  %v1371_v23 = vadd.f32 %v14468_v45, %v14213_v12  ;;  %v14473_v48 = vsel %vm7919_vm4, %v7778_v58, -inf }
 0x63a   : > { %v5930_v44 = vmax.f32 %v5928_v13, %v5929_v39  ;;  %v14476_v7 = vsel %vm7919_vm4, %v5909_v32, -inf  ;;  %v7701_v42 = vmax.f32 %v7699_v47, %v7700_v62  ;;  %v7721_v60 = vrot.slane %v7720_v16, 1 }
 0x63b   : > { %v5990_v53 = vrot.slane %v5989_v3, 2  ;;  %v6003_v4 = vmax.f32 %v6001_v5, %v6002_v10  ;;  %v1513_v25 = vmax.f32 %v1371_v23, 0.0  ;;  %v14479_v57 = vsel %vm7919_vm4, %v5916_v26, -inf }
 0x63c   : > { %v14482_v36 = vsel %vm7919_vm4, %v5923_v8, -inf  ;;  %v7708_v63 = vmax.f32 %v7706_v6, %v7707_v17  ;;  %v1107_v12 = vadd.f32 %v14468_v45, %v14233_v40  ;;  %v7715_v58 = vmax.f32 %v7713_v24, %v7714_v38 }
 0x63d   : > { %v5997_v33 = vrot.slane %v5996_v34, 2  ;;  %v6010_v13 = vmax.f32 %v6008_v2, %v6009_v37  ;;  %v3737_v15 = vcombine.high %v1513_v25, %v1513_v25  ;;  %v14487_v47 = vsel %vm7919_vm4, %v5930_v44, -inf }
 0x63e   : > { %v14490_v61 = vsel %vm7919_vm4, %v7701_v42, -inf  ;;  %v3744_v46 = vrot.slane %v1513_v25, %v11479_v14  ;;  %v1447_v30 = vmax.f32 %v1107_v12, 0.0  ;;  %v7722_v52 = vmax.f32 %v7720_v16, %v7721_v60 }
 0x63f   : > { %v5991_v27 = vmax.f32 %v5989_v3, %v5990_v53  ;;  %v6004_v22 = vrot.slane %v6003_v4, 2  ;;  %v3751_v6 = vrot.slane %v3737_v15, %v11479_v14  ;;  %v14495_v40 = vsel %vm7919_vm4, %v7708_v63, -inf }
 0x640   : > { %v3752_v24 = vcombine.high %v3744_v46, %v3744_v46  ;;  %v7779_v35 = vsel %vm4334_vm3, %v3744_v46, -inf  ;;  %v2615_v54 = vcombine.high %v1447_v30, %v1447_v30  ;;  %v14499_v18 = vsel %vm7919_vm4, %v7715_v58, -inf }
 0x641   : > { %v5998_v43 = vmax.f32 %v5996_v34, %v5997_v33  ;;  %v6011_v32 = vrot.slane %v6010_v13, 2  ;;  %v3753_v39 = vcombine.high %v3751_v6, %v3751_v6  ;;  %v7780_v62 = vrot.slane %v7779_v35, 4 }
 0x642   : > { %v7786_v11 = vsel %vm4334_vm3, %v3752_v24, -inf  ;;  %v7793_v16 = vsel %vm4334_vm3, %v3751_v6, -inf  ;;  %v1363_v3 = vadd.f32 %v14468_v45, %v14244_v0  ;;  %v5992_v5 = vrot.slane %v5991_v27, 1 }
 0x643   : > { %v6005_v2 = vmax.f32 %v6003_v4, %v6004_v22  ;;  %v7787_v26 = vrot.slane %v7786_v11, 4  ;;  %v7794_v8 = vrot.slane %v7793_v16, 4  ;;  %v7781_v17 = vmax.f32 %v7779_v35, %v7780_v62 }
 0x644   : > { %v7800_v38 = vsel %vm4334_vm3, %v3753_v39, -inf  ;;  %v2622_v10 = vrot.slane %v1447_v30, %v11479_v14  ;;  %v2629_v34 = vrot.slane %v2615_v54, %v11479_v14  ;;  %v5999_v37 = vrot.slane %v5998_v43, 1 }
 0x645   : > { %v6012_v23 = vmax.f32 %v6010_v13, %v6011_v32  ;;  %v7788_v44 = vmax.f32 %v7786_v11, %v7787_v26  ;;  %v7795_v42 = vmax.f32 %v7793_v16, %v7794_v8  ;;  %v7782_v60 = vrot.slane %v7781_v17, 2 }
 0x646   : > { %v7801_v53 = vrot.slane %v7800_v38, 4  ;;  %v2630_v25 = vcombine.high %v2622_v10, %v2622_v10  ;;  %v2631_v63 = vcombine.high %v2629_v34, %v2629_v34  ;;  %v5931_v4 = vsel %vm4334_vm3, %v2622_v10, -inf }
 0x647   : > { %v7789_v0 = vrot.slane %v7788_v44, 2  ;;  %v7796_v12 = vrot.slane %v7795_v42, 2  ;;  %v5945_v58 = vsel %vm4334_vm3, %v2629_v34, -inf  ;;  %v6006_v33 = vrot.slane %v6005_v2, 1 }
 0x648   : > { %v7802_v15 = vmax.f32 %v7800_v38, %v7801_v53  ;;  %v5932_v46 = vrot.slane %v5931_v4, 4  ;;  %v5938_v30 = vsel %vm4334_vm3, %v2630_v25, -inf  ;;  %v6013_v22 = vrot.slane %v6012_v23, 1 }
 0x649   : > { %v7783_v6 = vmax.f32 %v7781_v17, %v7782_v60  ;;  %v5939_v13 = vrot.slane %v5938_v30, 4  ;;  %v5946_v24 = vrot.slane %v5945_v58, 4  ;;  %v7790_v35 = vmax.f32 %v7788_v44, %v7789_v0 }
 0x64a   : > { %v7803_v54 = vrot.slane %v7802_v15, 2  ;;  %v5933_v32 = vmax.f32 %v5931_v4, %v5932_v46  ;;  %v5952_v39 = vsel %vm4334_vm3, %v2631_v63, -inf  ;;  %v5993_v62 = vmax.f32 %v5991_v27, %v5992_v5 }
 0x64b   : > { %v7797_v11 = vmax.f32 %v7795_v42, %v7796_v12  ;;  %v5940_v16 = vmax.f32 %v5938_v30, %v5939_v13  ;;  %v5947_v26 = vmax.f32 %v5945_v58, %v5946_v24  ;;  %v5953_v34 = vrot.slane %v5952_v39, 4 }
 0x64c   : > { %v7804_v8 = vmax.f32 %v7802_v15, %v7803_v54  ;;  %v5934_v10 = vrot.slane %v5933_v32, 2  ;;  %v1511_v38 = vmax.f32 %v1363_v3, 0.0  ;;  %v14513_v53 = vsel %vm7919_vm4, %v7722_v52, -inf }
 0x64d   : > { %v6000_v25 = vmax.f32 %v5998_v43, %v5999_v37  ;;  %v6007_v17 = vmax.f32 %v6005_v2, %v6006_v33  ;;  %v7784_v60 = vrot.slane %v7783_v6, 1  ;;  %v6014_v50 = vmax.f32 %v6012_v23, %v6013_v22 }
 0x64e   : > { %v7791_v44 = vrot.slane %v7790_v35, 1  ;;  %v5941_v0 = vrot.slane %v5940_v16, 2  ;;  %v5954_v4 = vmax.f32 %v5952_v39, %v5953_v34  ;;  %v14516_v63 = vsel %vm7919_vm4, %v5993_v62, -inf }
 0x64f   : > { %v7798_v27 = vrot.slane %v7797_v11, 1  ;;  %v5948_v5 = vrot.slane %v5947_v26, 2  ;;  %v1128_v42 = vadd.f32 %v14468_v45, %v14281_v41  ;;  %v7805_v12 = vrot.slane %v7804_v8, 1 }
 0x650   : > { %v5935_v3 = vmax.f32 %v5933_v32, %v5934_v10  ;;  %v5955_v58 = vrot.slane %v5954_v4, 2  ;;  %v3703_v52 = vcombine.high %v1511_v38, %v1511_v38  ;;  %v14521_v43 = vsel %vm7919_vm4, %v6000_v25, -inf }
 0x651   : > { %v14524_v2 = vsel %vm7919_vm4, %v6007_v17, -inf  ;;  %v7785_v37 = vmax.f32 %v7783_v6, %v7784_v60  ;;  %v3710_v23 = vrot.slane %v1511_v38, %v11479_v14  ;;  %v14528_v33 = vsel %vm7919_vm4, %v6014_v50, -inf }
 0x652   : > { %v7792_v15 = vmax.f32 %v7790_v35, %v7791_v44  ;;  %v5942_v46 = vmax.f32 %v5940_v16, %v5941_v0  ;;  %v3717_v41 = vrot.slane %v3703_v52, %v11479_v14  ;;  %v7799_v30 = vmax.f32 %v7797_v11, %v7798_v27 }
 0x653   : > { %v3718_v22 = vcombine.high %v3710_v23, %v3710_v23  ;;  %v7723_v13 = vsel %vm4334_vm3, %v3710_v23, -inf  ;;  %v1452_v24 = vmax.f32 %v1128_v42, 0.0  ;;  %v7806_v54 = vmax.f32 %v7804_v8, %v7805_v12 }
 0x654   : > { %v5936_v32 = vrot.slane %v5935_v3, 1  ;;  %v5949_v39 = vmax.f32 %v5947_v26, %v5948_v5  ;;  %v5956_v62 = vmax.f32 %v5954_v4, %v5955_v58  ;;  %v14533_v6 = vsel %vm7919_vm4, %v7785_v37, -inf }
 0x655   : > { %v3719_v10 = vcombine.high %v3717_v41, %v3717_v41  ;;  %v7730_v50 = vsel %vm4334_vm3, %v3718_v22, -inf  ;;  %v7737_v35 = vsel %vm4334_vm3, %v3717_v41, -inf  ;;  %v14538_v16 = vsel %vm7919_vm4, %v7792_v15, -inf }
 0x656   : > { %v5943_v11 = vrot.slane %v5942_v46, 1  ;;  %v7724_v34 = vrot.slane %v7723_v13, 4  ;;  %v7731_v38 = vrot.slane %v7730_v50, 4  ;;  %v14541_v25 = vsel %vm7919_vm4, %v7799_v30, -inf }
 0x657   : > { %v7738_v8 = vrot.slane %v7737_v35, 4  ;;  %v2700_v26 = vcombine.high %v1452_v24, %v1452_v24  ;;  %v2707_v17 = vrot.slane %v1452_v24, %v11479_v14  ;;  %v14545_v60 = vsel %vm7919_vm4, %v7806_v54, -inf }
 0x658   : > { %14920 = vst [vmem:[#allocation12_spill] sm:$0xff] %v14545_v60  ;;  %v5937_v44 = vmax.f32 %v5935_v3, %v5936_v32  ;;  %v5950_v0 = vrot.slane %v5949_v39, 1  ;;  %v5957_v4 = vrot.slane %v5956_v62, 1  ;;  %v7744_v27 = vsel %vm4334_vm3, %v3719_v10, -inf }
 0x659   : > { %v2714_v5 = vrot.slane %v2700_v26, %v11479_v14  ;;  %v2715_v42 = vcombine.high %v2707_v17, %v2707_v17  ;;  %v6071_v12 = vsel %vm4334_vm3, %v2707_v17, -inf  ;;  %v5944_v58 = vmax.f32 %v5942_v46, %v5943_v11 }
 0x65a   : > { %v7725_v52 = vmax.f32 %v7723_v13, %v7724_v34  ;;  %v7732_v37 = vmax.f32 %v7730_v50, %v7731_v38  ;;  %v6072_v23 = vrot.slane %v6071_v12, 4  ;;  %v7739_v15 = vmax.f32 %v7737_v35, %v7738_v8 }
 0x65b   : > { %v2716_v41 = vcombine.high %v2714_v5, %v2714_v5  ;;  %v6078_v30 = vsel %vm4334_vm3, %v2715_v42, -inf  ;;  %v6085_v22 = vsel %vm4334_vm3, %v2714_v5, -inf  ;;  %v5951_v3 = vmax.f32 %v5949_v39, %v5950_v0 }
 0x65c   : > { %v14553_v24 = vsel %vm7919_vm4, %v5937_v44, -inf  ;;  %v7745_v54 = vrot.slane %v7744_v27, 4  ;;  %v6073_v32 = vmax.f32 %v6071_v12, %v6072_v23  ;;  %v5958_v10 = vmax.f32 %v5956_v62, %v5957_v4 }
 0x65d   : > { %v6079_v26 = vrot.slane %v6078_v30, 4  ;;  %v6086_v60 = vrot.slane %v6085_v22, 4  ;;  %v6092_v46 = vsel %vm4334_vm3, %v2716_v41, -inf  ;;  %v7726_v13 = vrot.slane %v7725_v52, 2 }
 0x65e   : > { %v7733_v50 = vrot.slane %v7732_v37, 2  ;;  %v6074_v11 = vrot.slane %v6073_v32, 2  ;;  %v1384_v35 = vadd.f32 %v14468_v45, %v14283_v19  ;;  %v7740_v34 = vrot.slane %v7739_v15, 2 }
 0x65f   : > { %v6080_v38 = vmax.f32 %v6078_v30, %v6079_v26  ;;  %v6087_v8 = vmax.f32 %v6085_v22, %v6086_v60  ;;  %v6093_v39 = vrot.slane %v6092_v46, 4  ;;  %v14559_v17 = vsel %vm7919_vm4, %v5944_v58, -inf }
 0x660   : > { %v14562_v44 = vsel %vm7919_vm4, %v5951_v3, -inf  ;;  %v14564_v62 = vmax.f32 %v7744_v27, %v7745_v54  ;;  %v6075_v0 = vmax.f32 %v6073_v32, %v6074_v11  ;;  %v14567_v4 = vsel %vm7919_vm4, %v5958_v10, -inf }
 0x661   : > { %v6081_v5 = vrot.slane %v6080_v38, 2  ;;  %v6088_v42 = vrot.slane %v6087_v8, 2  ;;  %v6094_v12 = vmax.f32 %v6092_v46, %v6093_v39  ;;  %v14569_v19 = vmax.f32 %v7725_v52, %v7726_v13 }
 0x662   : > { %v14571_v23 = vmax.f32 %v7732_v37, %v7733_v50  ;;  %v6076_v60 = vrot.slane %v6075_v0, 1  ;;  %v1516_v41 = vmax.f32 %v1384_v35, 0.0  ;;  %v14573_v58 = vmax.f32 %v7739_v15, %v7740_v34 }
 0x663   : > { %v6082_v30 = vmax.f32 %v6080_v38, %v6081_v5  ;;  %v6089_v22 = vmax.f32 %v6087_v8, %v6088_v42  ;;  %v6095_v3 = vrot.slane %v6094_v12, 2  ;;  %v7747_v27 = vrot.slane %v14564_v62, 2 }
 0x664   : > { %v6077_v54 = vmax.f32 %v6075_v0, %v6076_v60  ;;  %v3788_v32 = vcombine.high %v1516_v41, %v1516_v41  ;;  %v3795_v10 = vrot.slane %v1516_v41, %v11479_v14  ;;  %v1120_v52 = vadd.f32 %v14468_v45, %v14306_v51 }
 0x665   : > { %v6083_v26 = vrot.slane %v6082_v30, 1  ;;  %v6090_v11 = vrot.slane %v6089_v22, 1  ;;  %v6096_v46 = vmax.f32 %v6094_v12, %v6095_v3 }
 0x666   : > { %v8281_v37 = vsel %vm7919_vm4, %v6077_v54, -inf  ;;  %v3802_v15 = vrot.slane %v3788_v32, %v11479_v14  ;;  %v3803_v13 = vcombine.high %v3795_v10, %v3795_v10  ;;  %v7863_v50 = vsel %vm4334_vm3, %v3795_v10, -inf }
 0x667   : > { %v6084_v35 = vmax.f32 %v6082_v30, %v6083_v26  ;;  %v6091_v34 = vmax.f32 %v6089_v22, %v6090_v11  ;;  %v6097_v38 = vrot.slane %v6096_v46, 1  ;;  %v8282_v8 = vmax.f32 %v14425_v56, %v8281_v37 }
 0x668   : > { %v3804_v39 = vcombine.high %v3802_v15, %v3802_v15  ;;  %v7864_v0 = vrot.slane %v7863_v50, 4  ;;  %v7870_v5 = vsel %vm4334_vm3, %v3803_v13, -inf  ;;  %v7877_v42 = vsel %vm4334_vm3, %v3802_v15, -inf }
 0x669   : > { %v6098_v12 = vmax.f32 %v6096_v46, %v6097_v38  ;;  %v8284_v51 = vsel %vm7919_vm4, %v6084_v35, -inf  ;;  %v8287_v60 = vsel %vm7919_vm4, %v6091_v34, -inf  ;;  %v10870_v41 = vpack.c.bf16 %v8282_v8, %v8282_v8 }
 0x66a   : > { %v8285_v3 = vmax.f32 %v14435_v49, %v8284_v51  ;;  %v8288_v30 = vmax.f32 %v14438_v9, %v8287_v60  ;;  %v7865_v22 = vmax.f32 %v7863_v50, %v7864_v0  ;;  %v7871_v54 = vrot.slane %v7870_v5, 4 }
 0x66b   : > { %v8290_v56 = vsel %vm7919_vm4, %v6098_v12, -inf  ;;  %v9832_v32 = vunpack.c.l.b16 %v10870_v41  ;;  %v7878_v10 = vrot.slane %v7877_v42, 4  ;;  %v7884_v26 = vsel %vm4334_vm3, %v3804_v39, -inf }
 0x66c   : > { %v8291_v11 = vmax.f32 %v14442_v28, %v8290_v56  ;;  %v10871_v46 = vpack.c.bf16 %v8285_v3, %v8285_v3  ;;  %v10872_v37 = vpack.c.bf16 %v8288_v30, %v8288_v30  ;;  %v7866_v15 = vrot.slane %v7865_v22, 2 }
 0x66d   : > { %v7872_v13 = vmax.f32 %v7870_v5, %v7871_v54  ;;  %v7879_v35 = vmax.f32 %v7877_v42, %v7878_v10  ;;  %v7885_v34 = vrot.slane %v7884_v26, 4  ;;  %v1450_v38 = vmax.f32 %v1120_v52, 0.0 }
 0x66e   : > { %v10873_v49 = vpack.c.bf16 %v8291_v11, %v8291_v11  ;;  %v9833_v8 = vunpack.c.l.b16 %v10871_v46  ;;  %v9834_v9 = vunpack.c.l.b16 %v10872_v37  ;;  %v7867_v50 = vmax.f32 %v7865_v22, %v7866_v15 }
 0x66f   : > { %v7873_v0 = vrot.slane %v7872_v13, 2  ;;  %v7880_v51 = vrot.slane %v7879_v35, 2  ;;  %v7886_v12 = vmax.f32 %v7884_v26, %v7885_v34  ;;  %v2666_v60 = vcombine.high %v1450_v38, %v1450_v38 }
 0x670   : > { %v14592_v41 = vunpack.c.l.b16 %v10873_v49  ;;  %v10080_v39 = vsel %vm9968_vm5, %v9833_v8, %v9832_v32  ;;  %v7868_v28 = vrot.slane %v7867_v50, 1  ;;  %v2673_v3 = vrot.slane %v1450_v38, %v11479_v14 }
 0x671   : > { %v14597_v5 = vsel %vm9970_vm6, %v9834_v9, %v10080_v39  ;;  %v7874_v42 = vmax.f32 %v7872_v13, %v7873_v0  ;;  %v7881_v52 = vmax.f32 %v7879_v35, %v7880_v51  ;;  %v7887_v30 = vrot.slane %v7886_v12, 2 }
 0x672   : > { %v7869_v54 = vmax.f32 %v7867_v50, %v7868_v28  ;;  %v2680_v22 = vrot.slane %v2666_v60, %v11479_v14  ;;  %v2681_v56 = vcombine.high %v2673_v3, %v2673_v3  ;;  %v6015_v10 = vsel %vm4334_vm3, %v2673_v3, -inf }
 0x673   : > { %v7875_v26 = vrot.slane %v7874_v42, 1  ;;  %v7882_v11 = vrot.slane %v7881_v52, 1  ;;  %v7888_v46 = vmax.f32 %v7886_v12, %v7887_v30  ;;  %v6016_v37 = vrot.slane %v6015_v10, 4 }
 0x674   : > { %v8665_v32 = vsel %vm7919_vm4, %v7869_v54, -inf  ;;  %v2682_v15 = vcombine.high %v2680_v22, %v2680_v22  ;;  %v6022_v34 = vsel %vm4334_vm3, %v2681_v56, -inf  ;;  %v6029_v38 = vsel %vm4334_vm3, %v2680_v22, -inf }
 0x675   : > { %v7876_v13 = vmax.f32 %v7874_v42, %v7875_v26  ;;  %v7883_v35 = vmax.f32 %v7881_v52, %v7882_v11  ;;  %v7889_v49 = vrot.slane %v7888_v46, 1  ;;  %v8666_v8 = vmax.f32 %v14451_v1, %v8665_v32 }
 0x676   : > { %v6017_v9 = vmax.f32 %v6015_v10, %v6016_v37  ;;  %v6023_v50 = vrot.slane %v6022_v34, 4  ;;  %v6030_v0 = vrot.slane %v6029_v38, 4  ;;  %v6036_v51 = vsel %vm4334_vm3, %v2682_v15, -inf }
 0x677   : > { %v7890_v60 = vmax.f32 %v7888_v46, %v7889_v49  ;;  %v8668_v12 = vsel %vm7919_vm4, %v7876_v13, -inf  ;;  %v8671_v39 = vsel %vm7919_vm4, %v7883_v35, -inf  ;;  %v10998_v28 = vpack.c.bf16 %v8666_v8, %v8666_v8 }
 0x678   : > { %v8669_v3 = vmax.f32 %v14454_v55, %v8668_v12  ;;  %v8672_v30 = vmax.f32 %v14460_v20, %v8671_v39  ;;  %v6018_v42 = vrot.slane %v6017_v9, 2  ;;  %v6024_v52 = vmax.f32 %v6022_v34, %v6023_v50 }
 0x679   : > { %v8674_v54 = vsel %vm7919_vm4, %v7890_v60, -inf  ;;  %v9960_v1 = vunpack.c.l.b16 %v10998_v28  ;;  %v6031_v22 = vmax.f32 %v6029_v38, %v6030_v0  ;;  %v6037_v56 = vrot.slane %v6036_v51, 4 }
 0x67a   : > { %v8675_v10 = vmax.f32 %v14473_v48, %v8674_v54  ;;  %v10999_v26 = vpack.c.bf16 %v8669_v3, %v8669_v3  ;;  %v11000_v11 = vpack.c.bf16 %v8672_v30, %v8672_v30  ;;  %v6019_v46 = vmax.f32 %v6017_v9, %v6018_v42 }
 0x67b   : > { %v6025_v37 = vrot.slane %v6024_v52, 2  ;;  %v6032_v32 = vrot.slane %v6031_v22, 2  ;;  %v6038_v15 = vmax.f32 %v6036_v51, %v6037_v56  ;;  %v1376_v55 = vadd.f32 %v14468_v45, %v14334_v29 }
 0x67c   : > { %v11001_v13 = vpack.c.bf16 %v8675_v10, %v8675_v10  ;;  %v9961_v20 = vunpack.c.l.b16 %v10999_v26  ;;  %v9962_v35 = vunpack.c.l.b16 %v11000_v11  ;;  %v6020_v34 = vrot.slane %v6019_v46, 1 }
 0x67d   : > { %v6026_v49 = vmax.f32 %v6024_v52, %v6025_v37  ;;  %v6033_v8 = vmax.f32 %v6031_v22, %v6032_v32  ;;  %v6039_v50 = vrot.slane %v6038_v15, 2  ;;  %v1514_v38 = vmax.f32 %v1376_v55, 0.0 }
 0x67e   : > { %v14614_v0 = vunpack.c.l.b16 %v11001_v13  ;;  %v10192_v48 = vsel %vm9968_vm5, %v9961_v20, %v9960_v1  ;;  %v6021_v60 = vmax.f32 %v6019_v46, %v6020_v34  ;;  %v1131_v9 = vadd.f32 %v14468_v45, %v14367_v59 }
 0x67f   : > { %v14620_v51 = vsel %vm9970_vm6, %v9962_v35, %v10192_v48  ;;  %v6027_v29 = vrot.slane %v6026_v49, 1  ;;  %v6034_v12 = vrot.slane %v6033_v8, 1  ;;  %v6040_v39 = vmax.f32 %v6038_v15, %v6039_v50 }
 0x680   : > { %v8257_v28 = vsel %vm7919_vm4, %v6021_v60, -inf  ;;  %v3754_v3 = vcombine.high %v1514_v38, %v1514_v38  ;;  %v3761_v30 = vrot.slane %v1514_v38, %v11479_v14  ;;  %v1453_v42 = vmax.f32 %v1131_v9, 0.0 }
 0x681   : > { %v6028_v52 = vmax.f32 %v6026_v49, %v6027_v29  ;;  %v6035_v54 = vmax.f32 %v6033_v8, %v6034_v12  ;;  %v6041_v22 = vrot.slane %v6040_v39, 1  ;;  %v8258_v1 = vmax.f32 %v14476_v7, %v8257_v28 }
 0x682   : > { %v3768_v56 = vrot.slane %v3754_v3, %v11479_v14  ;;  %v3769_v59 = vcombine.high %v3761_v30, %v3761_v30  ;;  %v7807_v10 = vsel %vm4334_vm3, %v3761_v30, -inf  ;;  %v2717_v26 = vcombine.high %v1453_v42, %v1453_v42 }
 0x683   : > { %v6042_v11 = vmax.f32 %v6040_v39, %v6041_v22  ;;  %v8260_v46 = vsel %vm7919_vm4, %v6028_v52, -inf  ;;  %v8263_v37 = vsel %vm7919_vm4, %v6035_v54, -inf  ;;  %v10862_v32 = vpack.c.bf16 %v8258_v1, %v8258_v1 }
 0x684   : > { %v8261_v15 = vmax.f32 %v14479_v57, %v8260_v46  ;;  %v8264_v55 = vmax.f32 %v14482_v36, %v8263_v37  ;;  %v3770_v13 = vcombine.high %v3768_v56, %v3768_v56  ;;  %v7808_v20 = vrot.slane %v7807_v10, 4 }
 0x685   : > { %v8266_v7 = vsel %vm7919_vm4, %v6042_v11, -inf  ;;  %v9824_v35 = vunpack.c.l.b16 %v10862_v32  ;;  %v7814_v34 = vsel %vm4334_vm3, %v3769_v59, -inf  ;;  %v7821_v49 = vsel %vm4334_vm3, %v3768_v56, -inf }
 0x686   : > { %v8267_v8 = vmax.f32 %v14487_v47, %v8266_v7  ;;  %v10863_v50 = vpack.c.bf16 %v8261_v15, %v8261_v15  ;;  %v10864_v38 = vpack.c.bf16 %v8264_v55, %v8264_v55  ;;  %v7809_v48 = vmax.f32 %v7807_v10, %v7808_v20 }
 0x687   : > { %v7815_v60 = vrot.slane %v7814_v34, 4  ;;  %v7822_v9 = vrot.slane %v7821_v49, 4  ;;  %v7828_v57 = vsel %vm4334_vm3, %v3770_v13, -inf  ;;  %v2724_v36 = vrot.slane %v1453_v42, %v11479_v14 }
 0x688   : > { %v10865_v29 = vpack.c.bf16 %v8267_v8, %v8267_v8  ;;  %v9825_v12 = vunpack.c.l.b16 %v10863_v50  ;;  %v9826_v39 = vunpack.c.l.b16 %v10864_v38  ;;  %v7810_v28 = vrot.slane %v7809_v48, 2 }
 0x689   : > { %v7816_v3 = vmax.f32 %v7814_v34, %v7815_v60  ;;  %v7823_v30 = vmax.f32 %v7821_v49, %v7822_v9  ;;  %v7829_v52 = vrot.slane %v7828_v57, 4  ;;  %v2731_v54 = vrot.slane %v2717_v26, %v11479_v14 }
 0x68a   : > { %v14638_v22 = vunpack.c.l.b16 %v10865_v29  ;;  %v10073_v47 = vsel %vm9968_vm5, %v9825_v12, %v9824_v35  ;;  %v7811_v1 = vmax.f32 %v7809_v48, %v7810_v28  ;;  %v2732_v56 = vcombine.high %v2724_v36, %v2724_v36 }
 0x68b   : > { %v14642_v59 = vsel %vm9970_vm6, %v9826_v39, %v10073_v47  ;;  %v7817_v10 = vrot.slane %v7816_v3, 2  ;;  %v7824_v42 = vrot.slane %v7823_v30, 2  ;;  %v7830_v11 = vmax.f32 %v7828_v57, %v7829_v52 }
 0x68c   : > { %v7812_v46 = vrot.slane %v7811_v1, 1  ;;  %v2733_v37 = vcombine.high %v2731_v54, %v2731_v54  ;;  %v6099_v32 = vsel %vm4334_vm3, %v2724_v36, -inf  ;;  %v6106_v15 = vsel %vm4334_vm3, %v2732_v56, -inf }
 0x68d   : > { %v7818_v55 = vmax.f32 %v7816_v3, %v7817_v10  ;;  %v7825_v26 = vmax.f32 %v7823_v30, %v7824_v42  ;;  %v7831_v13 = vrot.slane %v7830_v11, 2  ;;  %v6100_v20 = vrot.slane %v6099_v32, 4 }
 0x68e   : > { %v7813_v7 = vmax.f32 %v7811_v1, %v7812_v46  ;;  %v6107_v35 = vrot.slane %v6106_v15, 4  ;;  %v6113_v34 = vsel %vm4334_vm3, %v2731_v54, -inf  ;;  %v6120_v49 = vsel %vm4334_vm3, %v2733_v37, -inf }
 0x68f   : > { %v7819_v8 = vrot.slane %v7818_v55, 1  ;;  %v7826_v50 = vrot.slane %v7825_v26, 1  ;;  %v7832_v38 = vmax.f32 %v7830_v11, %v7831_v13  ;;  %v6101_v48 = vmax.f32 %v6099_v32, %v6100_v20 }
 0x690   : > { %v8641_v60 = vsel %vm7919_vm4, %v7813_v7, -inf  ;;  %v6108_v9 = vmax.f32 %v6106_v15, %v6107_v35  ;;  %v6114_v57 = vrot.slane %v6113_v34, 4  ;;  %v6121_v36 = vrot.slane %v6120_v49, 4 }
 0x691   : > { %v7820_v29 = vmax.f32 %v7818_v55, %v7819_v8  ;;  %v7827_v12 = vmax.f32 %v7825_v26, %v7826_v50  ;;  %v7833_v39 = vrot.slane %v7832_v38, 1  ;;  %v8642_v28 = vmax.f32 %v14490_v61, %v8641_v60 }
 0x692   : > { %v6102_v3 = vrot.slane %v6101_v48, 2  ;;  %v6109_v30 = vrot.slane %v6108_v9, 2  ;;  %v6115_v52 = vmax.f32 %v6113_v34, %v6114_v57  ;;  %v6122_v54 = vmax.f32 %v6120_v49, %v6121_v36 }
 0x693   : > { %v7834_v47 = vmax.f32 %v7832_v38, %v7833_v39  ;;  %v8644_v1 = vsel %vm7919_vm4, %v7820_v29, -inf  ;;  %v8647_v56 = vsel %vm7919_vm4, %v7827_v12, -inf  ;;  %v10990_v10 = vpack.c.bf16 %v8642_v28, %v8642_v28 }
 0x694   : > { %v8645_v42 = vmax.f32 %v14495_v40, %v8644_v1  ;;  %v8648_v11 = vmax.f32 %v14499_v18, %v8647_v56  ;;  %v6103_v46 = vmax.f32 %v6101_v48, %v6102_v3  ;;  %v6110_v37 = vmax.f32 %v6108_v9, %v6109_v30 }
 0x695   : > { %v8650_v32 = vsel %vm7919_vm4, %v7834_v47, -inf  ;;  %v9952_v15 = vunpack.c.l.b16 %v10990_v10  ;;  %v6116_v61 = vrot.slane %v6115_v52, 2  ;;  %v6123_v55 = vrot.slane %v6122_v54, 2 }
 0x696   : > { %v8651_v26 = vmax.f32 %v14513_v53, %v8650_v32  ;;  %v10991_v13 = vpack.c.bf16 %v8645_v42, %v8645_v42  ;;  %v10992_v20 = vpack.c.bf16 %v8648_v11, %v8648_v11  ;;  %v6104_v7 = vrot.slane %v6103_v46, 1 }
 0x697   : > { %v6111_v35 = vrot.slane %v6110_v37, 1  ;;  %v6117_v34 = vmax.f32 %v6115_v52, %v6116_v61  ;;  %v6124_v49 = vmax.f32 %v6122_v54, %v6123_v55  ;;  %v10082_v40 = vsel %vm9972_vm7, %v14592_v41, %v14597_v5 }
 0x698   : > { %v10993_v18 = vpack.c.bf16 %v8651_v26, %v8651_v26  ;;  %v9953_v8 = vunpack.c.l.b16 %v10991_v13  ;;  %v9954_v50 = vunpack.c.l.b16 %v10992_v20  ;;  %v6105_v38 = vmax.f32 %v6103_v46, %v6104_v7  ;;  %v14921_v46 = vld [vmem:[#allocation7_spill] sm:$0xff] }
 0x699   : > { %v6112_v48 = vmax.f32 %v6110_v37, %v6111_v35  ;;  %v6118_v60 = vrot.slane %v6117_v34, 1  ;;  %v6125_v9 = vrot.slane %v6124_v49, 1  ;;  %v1387_v53 = vadd.f32 %v14468_v45, %v14382_v21 }
 0x69a   : > { %v14661_v57 = vunpack.c.l.b16 %v10993_v18  ;;  %v10185_v36 = vsel %vm9968_vm5, %v9953_v8, %v9952_v15  ;;  %v8293_v29 = vsel %vm7919_vm4, %v6105_v38, -inf  ;;  %v14668_v41 = vsel %vm9972_vm7, %v14614_v0, %v14620_v51 }
 0x69b   : > { %v14671_v5 = vsel %vm9970_vm6, %v9954_v50, %v10185_v36  ;;  %v6119_v12 = vmax.f32 %v6117_v34, %v6118_v60  ;;  %v6126_v39 = vmax.f32 %v6124_v49, %v6125_v9  ;;  %v8294_v28 = vmax.f32 %v14516_v63, %v8293_v29 }
 0x69c   : > { %v8296_v21 = vsel %vm7919_vm4, %v6112_v48, -inf  ;;  %v1517_v3 = vmax.f32 %v1387_v53, 0.0  ;;  %v1123_v30 = vadd.f32 %v14468_v45, %v14418_v31  ;;  %v14680_v52 = vsel %vm9972_vm7, %v14638_v22, %v14642_v59 }
 0x69d   : > { %v8297_v0 = vmax.f32 %v14521_v43, %v8296_v21  ;;  %v8299_v51 = vsel %vm7919_vm4, %v6119_v12, -inf  ;;  %v8302_v54 = vsel %vm7919_vm4, %v6126_v39, -inf  ;;  %v10874_v47 = vpack.c.bf16 %v8294_v28, %v8294_v28 }
 0x69e   : > { %v8300_v63 = vmax.f32 %v14524_v2, %v8299_v51  ;;  %v8303_v1 = vmax.f32 %v14528_v33, %v8302_v54  ;;  %v3805_v56 = vcombine.high %v1517_v3, %v1517_v3  ;;  %v3812_v10 = vrot.slane %v1517_v3, %v11479_v14 }
 0x69f   : > { %v10875_v31 = vpack.c.bf16 %v8297_v0, %v8297_v0  ;;  %v9836_v42 = vunpack.c.l.b16 %v10874_v47  ;;  %v1451_v11 = vmax.f32 %v1123_v30, 0.0  ;;  %v14690_v22 = vadd.f32 %v14468_v45, %v14921_v46 }
 0x6a0   : > { %v10876_v43 = vpack.c.bf16 %v8300_v63, %v8300_v63  ;;  %v10877_v59 = vpack.c.bf16 %v8303_v1, %v8303_v1  ;;  %v3819_v37 = vrot.slane %v3805_v56, %v11479_v14  ;;  %v3820_v32 = vcombine.high %v3812_v10, %v3812_v10 }
 0x6a1   : > { %v9837_v15 = vunpack.c.l.b16 %v10875_v31  ;;  %v10083_v2 = vsel %vm9974_vm8, %v9836_v42, %v10082_v40  ;;  %v7891_v33 = vsel %vm4334_vm3, %v3812_v10, -inf  ;;  %v2683_v61 = vcombine.high %v1451_v11, %v1451_v11 }
 0x6a2   : > { %v9838_v55 = vunpack.c.l.b16 %v10876_v43  ;;  %v9839_v26 = vunpack.c.l.b16 %v10877_v59  ;;  %v3821_v13 = vcombine.high %v3819_v37, %v3819_v37  ;;  %v7892_v20 = vrot.slane %v7891_v33, 4 }
 0x6a3   : > { %v10084_v7 = vsel %vm9976_vm9, %v9837_v15, %v10083_v2  ;;  %v7898_v45 = vsel %vm4334_vm3, %v3820_v32, -inf  ;;  %v7905_v35 = vsel %vm4334_vm3, %v3819_v37, -inf  ;;  %v2690_v34 = vrot.slane %v1451_v11, %v11479_v14 }
 0x6a4   : > { %v10085_v49 = vsel %vm9978_vm10, %v9838_v55, %v10084_v7  ;;  %v7893_v18 = vmax.f32 %v7891_v33, %v7892_v20  ;;  %v7899_v40 = vrot.slane %v7898_v45, 4  ;;  %v7906_v8 = vrot.slane %v7905_v35, 4 }
 0x6a5   : > { %v10086_v50 = vsel %vm9980_vm11, %v9839_v26, %v10085_v49  ;;  %v7912_v38 = vsel %vm4334_vm3, %v3821_v13, -inf  ;;  %v2697_v48 = vrot.slane %v2683_v61, %v11479_v14  ;;  %v2698_v60 = vcombine.high %v2690_v34, %v2690_v34 }
 0x6a6   : > { %v10214_v9 = vpack.c.b16 %v10086_v50, %v10086_v50  ;;  %v7894_v53 = vrot.slane %v7893_v18, 2  ;;  %v7900_v36 = vmax.f32 %v7898_v45, %v7899_v40  ;;  %v7907_v29 = vmax.f32 %v7905_v35, %v7906_v8 }
 0x6a7   : > { %v7913_v12 = vrot.slane %v7912_v38, 4  ;;  %v2699_v39 = vcombine.high %v2697_v48, %v2697_v48  ;;  %v6043_v28 = vsel %vm4334_vm3, %v2690_v34, -inf  ;;  %v6050_v21 = vsel %vm4334_vm3, %v2698_v60, -inf }
 0x6a8   : > { %10279 = vst.msk [vmem:[%s11900_s4 + $0x3c] sm:$0xf] %vm10263_vm12, %v10214_v9  ;;  %v7895_v3 = vmax.f32 %v7893_v18, %v7894_v53  ;;  %v7901_v30 = vrot.slane %v7900_v36, 2  ;;  %v7908_v0 = vrot.slane %v7907_v29, 2  ;;  %v6044_v51 = vrot.slane %v6043_v28, 4 }
 0x6a9   : > { %v7914_v54 = vmax.f32 %v7912_v38, %v7913_v12  ;;  %v6051_v47 = vrot.slane %v6050_v21, 4  ;;  %v6057_v63 = vsel %vm4334_vm3, %v2697_v48, -inf  ;;  %v6064_v1 = vsel %vm4334_vm3, %v2699_v39, -inf }
 0x6aa   : > { %v7896_v56 = vrot.slane %v7895_v3, 1  ;;  %v7902_v10 = vmax.f32 %v7900_v36, %v7901_v30  ;;  %v7909_v31 = vmax.f32 %v7907_v29, %v7908_v0  ;;  %v6045_v42 = vmax.f32 %v6043_v28, %v6044_v51  ;;  %v14922_v30 = vld [vmem:[#allocation12_spill] sm:$0xff] }
 0x6ab   : > { %v7915_v11 = vrot.slane %v7914_v54, 2  ;;  %v6052_v46 = vmax.f32 %v6050_v21, %v6051_v47  ;;  %v6058_v43 = vrot.slane %v6057_v63, 4  ;;  %v6065_v59 = vrot.slane %v6064_v1, 4 }
 0x6ac   : > { %v7897_v37 = vmax.f32 %v7895_v3, %v7896_v56  ;;  %v7903_v32 = vrot.slane %v7902_v10, 1  ;;  %v7910_v15 = vrot.slane %v7909_v31, 1  ;;  %v6046_v2 = vrot.slane %v6045_v42, 2 }
 0x6ad   : > { %v7916_v33 = vmax.f32 %v7914_v54, %v7915_v11  ;;  %v6053_v61 = vrot.slane %v6052_v46, 2  ;;  %v6059_v55 = vmax.f32 %v6057_v63, %v6058_v43  ;;  %v6066_v26 = vmax.f32 %v6064_v1, %v6065_v59 }
 0x6ae   : > { %v7904_v13 = vmax.f32 %v7902_v10, %v7903_v32  ;;  %v7911_v20 = vmax.f32 %v7909_v31, %v7910_v15  ;;  %v8677_v7 = vsel %vm7919_vm4, %v7897_v37, -inf  ;;  %v6047_v45 = vmax.f32 %v6045_v42, %v6046_v2 }
 0x6af   : > { %v7917_v35 = vrot.slane %v7916_v33, 1  ;;  %v8678_v34 = vmax.f32 %v14533_v6, %v8677_v7  ;;  %v6054_v49 = vmax.f32 %v6052_v46, %v6053_v61  ;;  %v6060_v18 = vrot.slane %v6059_v55, 2 }
 0x6b0   : > { %v8680_v40 = vsel %vm7919_vm4, %v7904_v13, -inf  ;;  %v8683_v8 = vsel %vm7919_vm4, %v7911_v20, -inf  ;;  %v6048_v50 = vrot.slane %v6047_v45, 1  ;;  %v6067_v38 = vrot.slane %v6066_v26, 2 }
 0x6b1   : > { %v7918_v48 = vmax.f32 %v7916_v33, %v7917_v35  ;;  %v8681_v60 = vmax.f32 %v14538_v16, %v8680_v40  ;;  %v8684_v9 = vmax.f32 %v14541_v25, %v8683_v8  ;;  %v11002_v53 = vpack.c.bf16 %v8678_v34, %v8678_v34 }
 0x6b2   : > { %v6049_v36 = vmax.f32 %v6047_v45, %v6048_v50  ;;  %v6055_v29 = vrot.slane %v6054_v49, 1  ;;  %v6061_v12 = vmax.f32 %v6059_v55, %v6060_v18  ;;  %v6068_v39 = vmax.f32 %v6066_v26, %v6067_v38 }
 0x6b3   : > { %v8686_v6 = vsel %vm7919_vm4, %v7918_v48, -inf  ;;  %v11003_v28 = vpack.c.bf16 %v8681_v60, %v8681_v60  ;;  %v11004_v21 = vpack.c.bf16 %v8684_v9, %v8684_v9  ;;  %v9964_v3 = vunpack.c.l.b16 %v11002_v53 }
 0x6b4   : > { %v8687_v0 = vmax.f32 %v14922_v30, %v8686_v6  ;;  %v6056_v51 = vmax.f32 %v6054_v49, %v6055_v29  ;;  %v6062_v54 = vrot.slane %v6061_v12, 1  ;;  %v6069_v47 = vrot.slane %v6068_v39, 1 }
 0x6b5   : > { %v9965_v63 = vunpack.c.l.b16 %v11003_v28  ;;  %v9966_v1 = vunpack.c.l.b16 %v11004_v21  ;;  %v10195_v16 = vsel %vm9974_vm8, %v9964_v3, %v14668_v41  ;;  %v8269_v25 = vsel %vm7919_vm4, %v6049_v36, -inf }
 0x6b6   : > { %v11005_v56 = vpack.c.bf16 %v8687_v0, %v8687_v0  ;;  %v6063_v10 = vmax.f32 %v6061_v12, %v6062_v54  ;;  %v6070_v31 = vmax.f32 %v6068_v39, %v6069_v47  ;;  %v8270_v42 = vmax.f32 %v14553_v24, %v8269_v25 }
 0x6b7   : > { %v10196_v11 = vsel %vm9976_vm9, %v9965_v63, %v10195_v16  ;;  %v8272_v46 = vsel %vm7919_vm4, %v6056_v51, -inf  ;;  %v1515_v43 = vmax.f32 %v14690_v22, 0.0  ;;  %v14727_v59 = vsel %vm9972_vm7, %v14661_v57, %v14671_v5 }
 0x6b8   : > { %v9967_v37 = vunpack.c.l.b16 %v11005_v56  ;;  %v10197_v41 = vsel %vm9978_vm10, %v9966_v1, %v10196_v11  ;;  %v8273_v32 = vmax.f32 %v14559_v17, %v8272_v46  ;;  %v8275_v15 = vsel %vm7919_vm4, %v6063_v10, -inf }
 0x6b9   : > { %v8276_v24 = vmax.f32 %v14562_v44, %v8275_v15  ;;  %v8278_v2 = vsel %vm7919_vm4, %v6070_v31, -inf  ;;  %v10866_v33 = vpack.c.bf16 %v8270_v42, %v8270_v42  ;;  %v3771_v61 = vcombine.high %v1515_v43, %v1515_v43 }
 0x6ba   : > { %v10198_v22 = vsel %vm9980_vm11, %v9967_v37, %v10197_v41  ;;  %v8279_v55 = vmax.f32 %v14567_v4, %v8278_v2  ;;  %v10867_v57 = vpack.c.bf16 %v8273_v32, %v8273_v32  ;;  %v3778_v5 = vrot.slane %v1515_v43, %v11479_v14 }
 0x6bb   : > { %v10230_v26 = vpack.c.b16 %v10198_v22, %v10198_v22  ;;  %v10868_v13 = vpack.c.bf16 %v8276_v24, %v8276_v24  ;;  %v9828_v20 = vunpack.c.l.b16 %v10866_v33  ;;  %v3785_v17 = vrot.slane %v3771_v61, %v11479_v14 }
 0x6bc   : > { %v10869_v7 = vpack.c.bf16 %v8279_v55, %v8279_v55  ;;  %v9829_v45 = vunpack.c.l.b16 %v10867_v57  ;;  %v3786_v44 = vcombine.high %v3778_v5, %v3778_v5  ;;  %v7835_v35 = vsel %vm4334_vm3, %v3778_v5, -inf }
 0x6bd   : > { %10295 = vst.msk [vmem:[%s11900_s4 + $0x7c] sm:$0xf] %vm10263_vm12, %v10230_v26  ;;  %v9830_v34 = vunpack.c.l.b16 %v10868_v13  ;;  %v10076_v49 = vsel %vm9974_vm8, %v9828_v20, %v14680_v52  ;;  %v3787_v4 = vcombine.high %v3785_v17, %v3785_v17  ;;  %v7836_v18 = vrot.slane %v7835_v35, 4 }
 0x6be   : > { %v9831_v40 = vunpack.c.l.b16 %v10869_v7  ;;  %v10077_v8 = vsel %vm9976_vm9, %v9829_v45, %v10076_v49  ;;  %v7842_v50 = vsel %vm4334_vm3, %v3786_v44, -inf  ;;  %v7849_v14 = vsel %vm4334_vm3, %v3785_v17, -inf }
 0x6bf   : > { %v10078_v38 = vsel %vm9978_vm10, %v9830_v34, %v10077_v8  ;;  %v7837_v48 = vmax.f32 %v7835_v35, %v7836_v18  ;;  %v7843_v60 = vrot.slane %v7842_v50, 4  ;;  %v7850_v9 = vrot.slane %v7849_v14, 4 }
 0x6c0   : > { %v7728_v53 = vrot.slane %v14569_v19, 1  ;;  %v7748_v52 = vmax.f32 %v14564_v62, %v7747_v27  ;;  %v10079_v36 = vsel %vm9980_vm11, %v9831_v40, %v10078_v38  ;;  %v7856_v29 = vsel %vm4334_vm3, %v3787_v4, -inf }
 0x6c1   : > { %v10213_v12 = vpack.c.b16 %v10079_v36, %v10079_v36  ;;  %v7838_v39 = vrot.slane %v7837_v48, 2  ;;  %v7844_v6 = vmax.f32 %v7842_v50, %v7843_v60  ;;  %v7851_v28 = vmax.f32 %v7849_v14, %v7850_v9 }
 0x6c2   : > { %v7735_v21 = vrot.slane %v14571_v23, 1  ;;  %v7857_v3 = vrot.slane %v7856_v29, 4  ;;  %v7742_v30 = vrot.slane %v14573_v58, 1  ;;  %v7729_v62 = vmax.f32 %v14569_v19, %v7728_v53 }
 0x6c3   : > { %10278 = vst.msk [vmem:[%s11900_s4 + $0x38] sm:$0xf] %vm10263_vm12, %v10213_v12  ;;  %v7839_v0 = vmax.f32 %v7837_v48, %v7838_v39  ;;  %v7845_v51 = vrot.slane %v7844_v6, 2  ;;  %v7852_v54 = vrot.slane %v7851_v28, 2  ;;  %v7749_v47 = vrot.slane %v7748_v52, 1 }
 0x6c4   : > { %v7858_v27 = vmax.f32 %v7856_v29, %v7857_v3  ;;  %v7736_v25 = vmax.f32 %v14571_v23, %v7735_v21  ;;  %v7743_v10 = vmax.f32 %v14573_v58, %v7742_v30  ;;  %v8652_v46 = vsel %vm7919_vm4, %v7729_v62, -inf }
 0x6c5   : > { %v7840_v63 = vrot.slane %v7839_v0, 1  ;;  %v7846_v1 = vmax.f32 %v7844_v6, %v7845_v51  ;;  %v7853_v16 = vmax.f32 %v7851_v28, %v7852_v54  ;;  %v7750_v37 = vmax.f32 %v7748_v52, %v7749_v47 }
 0x6c6   : > { %v7859_v56 = vrot.slane %v7858_v27, 2  ;;  %v8655_v2 = vsel %vm7919_vm4, %v7736_v25, -inf  ;;  %v8658_v23 = vsel %vm7919_vm4, %v7743_v10, -inf }
 0x6c7   : > { %v7841_v31 = vmax.f32 %v7839_v0, %v7840_v63  ;;  %v7847_v42 = vrot.slane %v7846_v1, 1  ;;  %v7854_v11 = vrot.slane %v7853_v16, 1  ;;  %v8661_v5 = vsel %vm7919_vm4, %v7750_v37, -inf }
 0x6c8   : > { %v7860_v43 = vmax.f32 %v7858_v27, %v7859_v56 }
 0x6c9   : > { %v7848_v41 = vmax.f32 %v7846_v1, %v7847_v42  ;;  %v7855_v32 = vmax.f32 %v7853_v16, %v7854_v11  ;;  %v8653_v19 = vsel %vm7919_vm4, %v7841_v31, -inf }
 0x6ca   : > { %v7861_v15 = vrot.slane %v7860_v43, 1  ;;  %v8654_v24 = vmax.f32 %v8652_v46, %v8653_v19 }
 0x6cb   : > { %v8656_v33 = vsel %vm7919_vm4, %v7848_v41, -inf  ;;  %v8659_v58 = vsel %vm7919_vm4, %v7855_v32, -inf }
 0x6cc   : > { %v7862_v61 = vmax.f32 %v7860_v43, %v7861_v15  ;;  %v8657_v22 = vmax.f32 %v8655_v2, %v8656_v33  ;;  %v8660_v55 = vmax.f32 %v8658_v23, %v8659_v58  ;;  %v10994_v57 = vpack.c.bf16 %v8654_v24, %v8654_v24 }
 0x6ce   : > { %v8662_v26 = vsel %vm7919_vm4, %v7862_v61, -inf  ;;  %v10995_v13 = vpack.c.bf16 %v8657_v22, %v8657_v22  ;;  %v10996_v20 = vpack.c.bf16 %v8660_v55, %v8660_v55  ;;  %v9956_v17 = vunpack.c.l.b16 %v10994_v57 }
 0x6cf   : > { %v8663_v7 = vmax.f32 %v8661_v5, %v8662_v26 }
 0x6d0   : > { %v9957_v45 = vunpack.c.l.b16 %v10995_v13  ;;  %v10188_v44 = vsel %vm9974_vm8, %v9956_v17, %v14727_v59  ;;  %v9958_v34 = vunpack.c.l.b16 %v10996_v20 }
 0x6d1   : > { %v10997_v35 = vpack.c.bf16 %v8663_v7, %v8663_v7 }
 0x6d2   : > { %v10189_v49 = vsel %vm9976_vm9, %v9957_v45, %v10188_v44 }
 0x6d3   : > { %v9959_v4 = vunpack.c.l.b16 %v10997_v35  ;;  %v10190_v18 = vsel %vm9978_vm10, %v9958_v34, %v10189_v49 }
 0x6d5   : > { %v10191_v40 = vsel %vm9980_vm11, %v9959_v4, %v10190_v18 }
 0x6d6   : > { %v10229_v8 = vpack.c.b16 %v10191_v40, %v10191_v40 }
 0x6d8   : > { %10294 = vst.msk [vmem:[%s11900_s4 + $0x78] sm:$0xf] %vm10263_vm12, %v10229_v8 }
 0x6d9 PF: > { %s13_s12 = sadd.s32 1, %s11300_s12  }
 0x6da   : > { %p10_p5 = scmp.ge.s32.totalorder %s13_s12, 4  }
 0x6dc   :  { %12 = sbr.rel (!%p10_p5) target bundleno = 1 (0x1), region = 62 }

</bundles_post_ra>
